<compile_context>
chip_gen: v7x
topology: tpu7x:2x2x1
jax: 0.10.0
libtpu: 0.0.40
codegen_flags: <defaults>
</compile_context>

<pallas_src>
import functools

import jax
import jax.numpy as jnp
import numpy as np
from jax.experimental import pallas as pl
from jax.experimental.pallas import tpu as pltpu

_EPS = 1e-5        # PyTorch GroupNorm default eps
_LANE = 128        # lane width: pad channel dims to a multiple of this


# ----------------------------------------------------------------------------
# fused per-batch kernel
# ----------------------------------------------------------------------------
def _make_downblock_kernel(H, W, groups, cin, cout, eps, proj_shortcut,
                           has_attn, kv_chunk, mm_dtype, approx_recip):
    f32 = jnp.float32
    hw = H * W
    pad = W + 1
    n1 = float(hw * (cin // groups))     # elements per group for GN1 (real channels)
    n2 = float(hw * (cout // groups))    # elements per group for GN2

    def kernel(*refs):
        it = iter(refs)
        x_ref, temb_ref = next(it), next(it)
        g1_ref, bt1_ref, m1cg_ref, m1gc_ref = next(it), next(it), next(it), next(it)
        w1_ref, cb1_ref = next(it), next(it)
        g2_ref, bt2_ref, m2cg_ref, m2gc_ref = next(it), next(it), next(it), next(it)
        w2_ref, cb2_ref = next(it), next(it)
        if proj_shortcut:
            scw_ref, scb_ref = next(it), next(it)
        if has_attn:
            cond_ref, cw_ref, cdb_ref = next(it), next(it), next(it)
            wq_ref, bq_ref = next(it), next(it)
            wk_ref, bk_ref = next(it), next(it)
            wv_ref, bv_ref = next(it), next(it)
            wo_ref, bo_ref = next(it), next(it)
        o_ref = next(it)
        xp1_ref, xp2_ref = next(it), next(it)
        if has_attn:
            k_scr, v_scr = next(it), next(it)

        cout_p = w1_ref.shape[2]

        # column-validity masks for the dx=0 / dx=2 conv taps (computed once,
        # shared by both convs).
        col = jax.lax.broadcasted_iota(jnp.int32, (hw, 1), 0) % W
        mask_l = (col >= 1).astype(f32)
        mask_r = (col <= W - 2).astype(f32)

        def gn_swish(x, g_r, b_r, mcg_r, mgc_r, n_per_group):
            """GroupNorm + Swish on an (HW, C_pad) f32 value; padded lanes stay 0."""
            gamma, beta = g_r[...].astype(f32), b_r[...].astype(f32)
            mcg, mgc = mcg_r[...].astype(f32), mgc_r[...].astype(f32)
            s1 = jnp.sum(x, axis=0, keepdims=True)            # (1, C_pad)
            s2 = jnp.sum(x * x, axis=0, keepdims=True)
            mean_g = jnp.dot(s1, mcg, preferred_element_type=f32) / n_per_group
            ex2_g = jnp.dot(s2, mcg, preferred_element_type=f32) / n_per_group
            var_g = jnp.maximum(ex2_g - mean_g * mean_g, 0.0)  # clamp (review note)
            inv_g = jax.lax.rsqrt(var_g + eps)
            mean_c = jnp.dot(mean_g, mgc, preferred_element_type=f32)
            inv_c = jnp.dot(inv_g, mgc, preferred_element_type=f32)
            y = (x - mean_c) * inv_c * gamma + beta
            return y * jax.nn.sigmoid(y)                       # Swish / SiLU

        def conv3x3(y, w_r, xp_r):
            """3x3 'same' conv on flattened-spatial y (HW, Cin_p) -> (HW, Cout_p).

            With channels padded to 128 each tap is a full MXU K-tile, so the conv
            is 9 accumulating matmuls; only the halo rows of the padded scratch are
            zeroed (body rows get overwritten each call).
            """
            c = xp_r.shape[1]
            xp_r[pl.ds(0, pad), :] = jnp.zeros((pad, c), f32)          # top halo
            xp_r[pl.ds(pad + hw, pad), :] = jnp.zeros((pad, c), f32)   # bottom halo
            xp_r[pl.ds(pad, hw), :] = y                                # body
            acc = jnp.zeros((hw, cout_p), f32)
            for dy in range(3):
                for dx in range(3):
                    t = dy * 3 + dx
                    start = pad + (dy - 1) * W + (dx - 1)              # static offset
                    xs = xp_r[pl.ds(start, hw), :]
                    if dx == 0:
                        xs = xs * mask_l
                    elif dx == 2:
                        xs = xs * mask_r
                    acc = acc + jnp.dot(xs.astype(mm_dtype), w_r[t].astype(mm_dtype),
                                        preferred_element_type=f32)
            return acc

        # ---- residual branch 1: GN1 + swish + conv1 + bias + time-emb ----
        x = x_ref[0].astype(f32)                                       # (HW, Cin_p)
        y1 = gn_swish(x, g1_ref, bt1_ref, m1cg_ref, m1gc_ref, n1)
        h = conv3x3(y1, w1_ref, xp1_ref)
        h = h + cb1_ref[...].astype(f32) + temb_ref[0].astype(f32)

        # ---- residual branch 2: GN2 + swish + conv2 + bias + shortcut ----
        y2 = gn_swish(h, g2_ref, bt2_ref, m2cg_ref, m2gc_ref, n2)
        out = conv3x3(y2, w2_ref, xp2_ref) + cb2_ref[...].astype(f32)
        if proj_shortcut:                                              # fused 1x1 shortcut
            out = out + jnp.dot(x.astype(mm_dtype), scw_ref[...].astype(mm_dtype),
                                preferred_element_type=f32) + scb_ref[...].astype(f32)
        else:                                                          # identity shortcut
            out = out + x

        if not has_attn:
            o_ref[0] = out.astype(o_ref.dtype)
            return

        # ---- fused cond_proj (1x1) ----
        cond = cond_ref[0].astype(mm_dtype)
        xc = out + jnp.dot(cond, cw_ref[...].astype(mm_dtype),
                           preferred_element_type=f32) + cdb_ref[...].astype(f32)

        # ---- single-head self-attention (online softmax over KV chunks) ----
        xm = xc.astype(mm_dtype)
        # wq/bq already carry the softmax scale (folded in the wrapper).
        q = jnp.dot(xm, wq_ref[...].astype(mm_dtype),
                    preferred_element_type=f32) + bq_ref[...].astype(f32)
        k_scr[...] = jnp.dot(xm, wk_ref[...].astype(mm_dtype),
                             preferred_element_type=f32) + bk_ref[...].astype(f32)
        v_scr[...] = jnp.dot(xm, wv_ref[...].astype(mm_dtype),
                             preferred_element_type=f32) + bv_ref[...].astype(f32)

        qm = q.astype(mm_dtype)
        dn = (((1,), (1,)), ((), ()))                  # q (HW,C) . k (kv,C) -> (HW,kv)
        n_chunks = hw // kv_chunk

        def body(ci, carry):
            m_i, l_i, acc = carry
            start = pl.multiple_of(ci * kv_chunk, kv_chunk)
            kc = k_scr[pl.ds(start, kv_chunk), :].astype(mm_dtype)
            vc = v_scr[pl.ds(start, kv_chunk), :].astype(mm_dtype)
            s = jax.lax.dot_general(qm, kc, dn, preferred_element_type=f32)
            m_new = jnp.maximum(m_i, jnp.max(s, axis=-1, keepdims=True))
            alpha = jnp.exp(m_i - m_new)
            p = jnp.exp(s - m_new)
            l_new = alpha * l_i + jnp.sum(p, axis=-1, keepdims=True)
            acc_new = alpha * acc + jnp.dot(p.astype(mm_dtype), vc,
                                            preferred_element_type=f32)
            return m_new, l_new, acc_new

        m0 = jnp.full((hw, 1), -jnp.inf, f32)
        l0 = jnp.zeros((hw, 1), f32)
        a0 = jnp.zeros((hw, cout_p), f32)
        m_i, l_i, acc = jax.lax.fori_loop(0, n_chunks, body, (m0, l0, a0))

        # normalize AFTER the PV matmul (one (HW,C) multiply, no (HW,HW) divides).
        res = acc * pl.reciprocal(l_i, approx=approx_recip)
        o = jnp.dot(res.astype(mm_dtype), wo_ref[...].astype(mm_dtype),
                    preferred_element_type=f32) + bo_ref[...].astype(f32) + xc
        o_ref[0] = o.astype(o_ref.dtype)

    return kernel


# ----------------------------------------------------------------------------
# wrapper helpers
# ----------------------------------------------------------------------------
def _rup(n, m=_LANE):
    return ((n + m - 1) // m) * m


def _pad_last(a, target):
    p = target - a.shape[-1]
    if p == 0:
        return a
    return jnp.pad(a, [(0, 0)] * (a.ndim - 1) + [(0, p)])


def _pad_axis(a, axis, target):
    p = target - a.shape[axis]
    if p == 0:
        return a
    cfg = [(0, 0)] * a.ndim
    cfg[axis] = (0, p)
    return jnp.pad(a, cfg)


def _group_onehots(c_real, c_pad, groups):
    """Group-membership matrices restricted to the REAL channels (padded lanes -> 0)."""
    cg = c_real // groups
    m = np.zeros((c_pad, groups), np.float32)
    for c in range(c_real):
        m[c, c // cg] = 1.0
    return jnp.asarray(m), jnp.asarray(m.T)


def _pick_kv_chunk(hw, cap=512):
    """Largest divisor of hw that is <= cap (never silently falls back to full HW)."""
    cap = min(cap, hw)
    for d in range(cap, 0, -1):
        if hw % d == 0:
            return d
    return hw


def _bcast(shape):
    zeros = (0,) * len(shape)
    return pl.BlockSpec(shape, lambda b, _z=zeros: _z)


# ----------------------------------------------------------------------------
# DownBlock forward (wrapper / glue)
# ----------------------------------------------------------------------------
def down_block_apply(params, x_nchw, t, cond_nchw, *, has_attn, groups,
                     mm_dtype=jnp.float32, approx_recip=False):
    B, cin, H, W = x_nchw.shape
    cout = params["conv1_w"].shape[-1]
    hw = H * W
    pad = W + 1
    cin_p, cout_p = _rup(cin), _rup(cout)
    proj_shortcut = (cin != cout)

    # NCHW -> (B, HW, C) once per block, zero-padded to a lane-dense channel count.
    x_flat = _pad_last(jnp.transpose(x_nchw, (0, 2, 3, 1)).reshape(B, hw, cin), cin_p)

    # time embedding: tiny GEMV in plain JAX, folded into the kernel as an add input.
    time_w = _pad_last(params["time_w"], cout_p)
    time_b = _pad_last(params["time_b"], cout_p)
    temb = (jax.nn.silu(t) @ time_w + time_b).reshape(B, 1, cout_p)

    # padded params (padded weight rows/cols and biases are zero => padded lanes stay 0).
    g1 = _pad_last(params["gn1_gamma"], cin_p)
    bt1 = _pad_last(params["gn1_beta"], cin_p)
    cb1 = _pad_last(params["conv1_b"], cout_p)
    g2 = _pad_last(params["gn2_gamma"], cout_p)
    bt2 = _pad_last(params["gn2_beta"], cout_p)
    cb2 = _pad_last(params["conv2_b"], cout_p)
    w1 = _pad_axis(_pad_axis(params["conv1_w"], 2, cin_p), 3, cout_p).reshape(9, cin_p, cout_p)
    w2 = _pad_axis(_pad_axis(params["conv2_w"], 2, cout_p), 3, cout_p).reshape(9, cout_p, cout_p)
    m1_cg, m1_gc = _group_onehots(cin, cin_p, groups)
    m2_cg, m2_gc = _group_onehots(cout, cout_p, groups)

    inputs = [x_flat, temb, g1, bt1, m1_cg, m1_gc, w1, cb1,
              g2, bt2, m2_cg, m2_gc, w2, cb2]
    in_specs = [
        pl.BlockSpec((1, hw, cin_p), lambda b: (b, 0, 0)),
        pl.BlockSpec((1, 1, cout_p), lambda b: (b, 0, 0)),
        _bcast((1, cin_p)), _bcast((1, cin_p)),
        _bcast((cin_p, groups)), _bcast((groups, cin_p)),
        _bcast((9, cin_p, cout_p)), _bcast((1, cout_p)),
        _bcast((1, cout_p)), _bcast((1, cout_p)),
        _bcast((cout_p, groups)), _bcast((groups, cout_p)),
        _bcast((9, cout_p, cout_p)), _bcast((1, cout_p)),
    ]
    # TODO(synk): mark the invariant weight operands pipeline_mode=pl.Buffered(1) at
    #             production channel counts to save double-buffered VMEM.

    if proj_shortcut:
        sc_w = _pad_axis(_pad_last(params["sc_w"], cout_p), 0, cin_p)
        sc_b = _pad_last(params["sc_b"], cout_p)
        inputs += [sc_w, sc_b]
        in_specs += [_bcast((cin_p, cout_p)), _bcast((1, cout_p))]

    kv_chunk = 1
    if has_attn:
        oc = cond_nchw.shape[1]
        oc_p = _rup(oc)
        cond_flat = _pad_last(
            jnp.transpose(cond_nchw, (0, 2, 3, 1)).reshape(B, hw, oc), oc_p)
        cond_w = _pad_axis(_pad_last(params["cond_w"], cout_p), 0, oc_p)
        cond_b = _pad_last(params["cond_b"], cout_p)
        scale = float(cout) ** -0.5              # fold softmax scale into q projection
        wq_s = _pad_axis(_pad_last(params["wq"] * scale, cout_p), 0, cout_p)
        bq_s = _pad_last(params["bq"] * scale, cout_p)
        wk = _pad_axis(_pad_last(params["wk"], cout_p), 0, cout_p)
        bk = _pad_last(params["bk"], cout_p)
        wv = _pad_axis(_pad_last(params["wv"], cout_p), 0, cout_p)
        bv = _pad_last(params["bv"], cout_p)
        wo = _pad_axis(_pad_last(params["wo"], cout_p), 0, cout_p)
        bo = _pad_last(params["bo"], cout_p)
        inputs += [cond_flat, cond_w, cond_b, wq_s, bq_s, wk, bk, wv, bv, wo, bo]
        in_specs += [pl.BlockSpec((1, hw, oc_p), lambda b: (b, 0, 0)),
                     _bcast((oc_p, cout_p)), _bcast((1, cout_p))]
        in_specs += [_bcast((cout_p, cout_p)), _bcast((1, cout_p))] * 4
        kv_chunk = _pick_kv_chunk(hw)

    scratch = [pltpu.VMEM((hw + 2 * pad, cin_p), jnp.float32),
               pltpu.VMEM((hw + 2 * pad, cout_p), jnp.float32)]
    if has_attn:
        scratch += [pltpu.VMEM((hw, cout_p), jnp.float32),
                    pltpu.VMEM((hw, cout_p), jnp.float32)]

    o = pl.pallas_call(
        _make_downblock_kernel(H, W, groups, cin, cout, _EPS, proj_shortcut,
                               has_attn, kv_chunk, mm_dtype, approx_recip),
        out_shape=jax.ShapeDtypeStruct((B, hw, cout_p), x_flat.dtype),
        grid=(B,),
        in_specs=in_specs,
        out_specs=pl.BlockSpec((1, hw, cout_p), lambda b: (b, 0, 0)),
        scratch_shapes=scratch,
        compiler_params=pltpu.CompilerParams(dimension_semantics=("parallel",)),
        # TODO(synk): set vmem_limit_bytes from the real block+scratch footprint once
        #             HW/Cout tiling is added for production sizes.
    )(*inputs)

    out = jnp.transpose(o[..., :cout].reshape(B, H, W, cout), (0, 3, 1, 2))
    return out, cond_nchw


# ----------------------------------------------------------------------------
# deterministic parameter init (shapes implied by the module's __init__)
# ----------------------------------------------------------------------------
def init_params(key, in_ch, out_ch, time_ch, orig_ch, has_attn):
    keys = iter(jax.random.split(key, 32))

    def nrm(shape, scale=0.1):
        return scale * jax.random.normal(next(keys), shape, jnp.float32)

    p = {
        "gn1_gamma": 1.0 + nrm((1, in_ch)),
        "gn1_beta": nrm((1, in_ch)),
        "conv1_w": nrm((3, 3, in_ch, out_ch)),
        "conv1_b": nrm((1, out_ch)),
        "gn2_gamma": 1.0 + nrm((1, out_ch)),
        "gn2_beta": nrm((1, out_ch)),
        "conv2_w": nrm((3, 3, out_ch, out_ch)),
        "conv2_b": nrm((1, out_ch)),
        "time_w": nrm((time_ch, out_ch)),
        "time_b": nrm((1, out_ch)),
    }
    if in_ch != out_ch:
        p["sc_w"] = nrm((in_ch, out_ch))
        p["sc_b"] = nrm((1, out_ch))
    if has_attn:
        p["cond_w"] = nrm((orig_ch, out_ch))
        p["cond_b"] = nrm((1, out_ch))
        for name in ("q", "k", "v", "o"):
            p[f"w{name}"] = nrm((out_ch, out_ch))
            p[f"b{name}"] = nrm((1, out_ch))
    return p


# ----------------------------------------------------------------------------
# pure-JAX reference (NCHW) for correctness check
# ----------------------------------------------------------------------------
def reference_forward(params, x, t, cond, *, has_attn, groups):
    def swish(z):
        return z * jax.nn.sigmoid(z)

    def group_norm(z, gamma, beta):
        B, C, H, W = z.shape
        zg = z.reshape(B, groups, -1)
        mean = zg.mean(axis=-1, keepdims=True)
        var = zg.var(axis=-1, keepdims=True)
        zn = ((zg - mean) / jnp.sqrt(var + _EPS)).reshape(B, C, H, W)
        return zn * gamma.reshape(1, C, 1, 1) + beta.reshape(1, C, 1, 1)

    def conv3(z, w, b):
        w_oihw = jnp.transpose(w, (3, 2, 0, 1))
        y = jax.lax.conv_general_dilated(z, w_oihw, (1, 1), ((1, 1), (1, 1)),
                                         dimension_numbers=("NCHW", "OIHW", "NCHW"))
        return y + b.reshape(1, -1, 1, 1)

    def conv1(z, w, b):
        return jnp.einsum("bchw,cd->bdhw", z, w) + b.reshape(1, -1, 1, 1)

    B, cin, H, W = x.shape
    cout = params["conv1_w"].shape[-1]

    h = conv3(swish(group_norm(x, params["gn1_gamma"], params["gn1_beta"])),
              params["conv1_w"], params["conv1_b"])
    temb = swish(t) @ params["time_w"] + params["time_b"]
    h = h + temb[:, :, None, None]
    h = conv3(swish(group_norm(h, params["gn2_gamma"], params["gn2_beta"])),
              params["conv2_w"], params["conv2_b"])
    sc = conv1(x, params["sc_w"], params["sc_b"]) if cin != cout else x
    xr = h + sc

    if has_attn:
        xr = xr + conv1(cond, params["cond_w"], params["cond_b"])
        z = xr.reshape(B, cout, H * W).transpose(0, 2, 1)
        q = z @ params["wq"] + params["bq"]
        k = z @ params["wk"] + params["bk"]
        v = z @ params["wv"] + params["bv"]
        attn = jax.nn.softmax(jnp.einsum("bid,bjd->bij", q, k) * (float(cout) ** -0.5), axis=-1)
        res = jnp.einsum("bij,bjd->bid", attn, v)
        res = res @ params["wo"] + params["bo"] + z
        xr = res.transpose(0, 2, 1).reshape(B, cout, H, W)
    return xr, cond


if __name__ == "__main__":
    B, H, W = 2, 16, 16
    in_ch, out_ch, time_ch, orig_ch = 8, 16, 32, 8
    groups = 4            # GroupNorm groups (must divide both channel counts)
    has_attn = True

    key = jax.random.PRNGKey(0)
    kp, kx, kt, kc = jax.random.split(key, 4)
    params = init_params(kp, in_ch, out_ch, time_ch, orig_ch, has_attn)
    x = jax.random.normal(kx, (B, in_ch, H, W), jnp.float32)
    t = jax.random.normal(kt, (B, time_ch), jnp.float32)
    cond = jax.random.normal(kc, (B, orig_ch, H, W), jnp.float32)

    fwd = jax.jit(functools.partial(down_block_apply, has_attn=has_attn, groups=groups,
                                    mm_dtype=jnp.float32, approx_recip=False))
    out, cond_out = fwd(params, x, t, cond)
    out = jax.block_until_ready(out)

    ref_out, _ = reference_forward(params, x, t, cond, has_attn=has_attn, groups=groups)
    assert out.shape == (B, out_ch, H, W)
    np.testing.assert_allclose(np.asarray(out), np.asarray(ref_out), rtol=2e-3, atol=2e-3)
    assert cond_out.shape == cond.shape

    print("KERNEL_OK")
</pallas_src>

<mosaic_0001>
module attributes {stable_mosaic.version = 11 : i64} {
  func.func @kernel(%arg0: i32, %arg1: memref<1x256x128xf32, #tpu.memory_space<vmem>>, %arg2: memref<1x1x128xf32, #tpu.memory_space<vmem>>, %arg3: memref<1x128xf32, #tpu.memory_space<vmem>>, %arg4: memref<1x128xf32, #tpu.memory_space<vmem>>, %arg5: memref<128x4xf32, #tpu.memory_space<vmem>>, %arg6: memref<4x128xf32, #tpu.memory_space<vmem>>, %arg7: memref<9x128x128xf32, #tpu.memory_space<vmem>>, %arg8: memref<1x128xf32, #tpu.memory_space<vmem>>, %arg9: memref<1x128xf32, #tpu.memory_space<vmem>>, %arg10: memref<1x128xf32, #tpu.memory_space<vmem>>, %arg11: memref<128x4xf32, #tpu.memory_space<vmem>>, %arg12: memref<4x128xf32, #tpu.memory_space<vmem>>, %arg13: memref<9x128x128xf32, #tpu.memory_space<vmem>>, %arg14: memref<1x128xf32, #tpu.memory_space<vmem>>, %arg15: memref<128x128xf32, #tpu.memory_space<vmem>>, %arg16: memref<1x128xf32, #tpu.memory_space<vmem>>, %arg17: memref<1x256x128xf32, #tpu.memory_space<vmem>>, %arg18: memref<128x128xf32, #tpu.memory_space<vmem>>, %arg19: memref<1x128xf32, #tpu.memory_space<vmem>>, %arg20: memref<128x128xf32, #tpu.memory_space<vmem>>, %arg21: memref<1x128xf32, #tpu.memory_space<vmem>>, %arg22: memref<128x128xf32, #tpu.memory_space<vmem>>, %arg23: memref<1x128xf32, #tpu.memory_space<vmem>>, %arg24: memref<128x128xf32, #tpu.memory_space<vmem>>, %arg25: memref<1x128xf32, #tpu.memory_space<vmem>>, %arg26: memref<128x128xf32, #tpu.memory_space<vmem>>, %arg27: memref<1x128xf32, #tpu.memory_space<vmem>>, %arg28: memref<1x256x128xf32, #tpu.memory_space<vmem>>, %arg29: memref<290x128xf32, #tpu.memory_space<vmem>>, %arg30: memref<290x128xf32, #tpu.memory_space<vmem>>, %arg31: memref<256x128xf32, #tpu.memory_space<vmem>>, %arg32: memref<256x128xf32, #tpu.memory_space<vmem>>) attributes {dimension_semantics = [#tpu.dimension_semantics<parallel>], iteration_bounds = array<i64: 2>, scalar_prefetch = 0 : i64, scratch_operands = 4 : i64, tpu.core_type = #tpu.core_type<tc>, window_params = [{transform_indices = @transform_0, window_bounds = array<i64: 1, 256, 128>}, {transform_indices = @transform_1, window_bounds = array<i64: 1, 1, 128>}, {pipeline_mode = #tpu.pipeline_mode<synchronous>, transform_indices = @transform_2, window_bounds = array<i64: 1, 128>}, {pipeline_mode = #tpu.pipeline_mode<synchronous>, transform_indices = @transform_3, window_bounds = array<i64: 1, 128>}, {pipeline_mode = #tpu.pipeline_mode<synchronous>, transform_indices = @transform_4, window_bounds = array<i64: 128, 4>}, {pipeline_mode = #tpu.pipeline_mode<synchronous>, transform_indices = @transform_5, window_bounds = array<i64: 4, 128>}, {pipeline_mode = #tpu.pipeline_mode<synchronous>, transform_indices = @transform_6, window_bounds = array<i64: 9, 128, 128>}, {pipeline_mode = #tpu.pipeline_mode<synchronous>, transform_indices = @transform_7, window_bounds = array<i64: 1, 128>}, {pipeline_mode = #tpu.pipeline_mode<synchronous>, transform_indices = @transform_8, window_bounds = array<i64: 1, 128>}, {pipeline_mode = #tpu.pipeline_mode<synchronous>, transform_indices = @transform_9, window_bounds = array<i64: 1, 128>}, {pipeline_mode = #tpu.pipeline_mode<synchronous>, transform_indices = @transform_10, window_bounds = array<i64: 128, 4>}, {pipeline_mode = #tpu.pipeline_mode<synchronous>, transform_indices = @transform_11, window_bounds = array<i64: 4, 128>}, {pipeline_mode = #tpu.pipeline_mode<synchronous>, transform_indices = @transform_12, window_bounds = array<i64: 9, 128, 128>}, {pipeline_mode = #tpu.pipeline_mode<synchronous>, transform_indices = @transform_13, window_bounds = array<i64: 1, 128>}, {pipeline_mode = #tpu.pipeline_mode<synchronous>, transform_indices = @transform_14, window_bounds = array<i64: 128, 128>}, {pipeline_mode = #tpu.pipeline_mode<synchronous>, transform_indices = @transform_15, window_bounds = array<i64: 1, 128>}, {transform_indices = @transform_16, window_bounds = array<i64: 1, 256, 128>}, {pipeline_mode = #tpu.pipeline_mode<synchronous>, transform_indices = @transform_17, window_bounds = array<i64: 128, 128>}, {pipeline_mode = #tpu.pipeline_mode<synchronous>, transform_indices = @transform_18, window_bounds = array<i64: 1, 128>}, {pipeline_mode = #tpu.pipeline_mode<synchronous>, transform_indices = @transform_19, window_bounds = array<i64: 128, 128>}, {pipeline_mode = #tpu.pipeline_mode<synchronous>, transform_indices = @transform_20, window_bounds = array<i64: 1, 128>}, {pipeline_mode = #tpu.pipeline_mode<synchronous>, transform_indices = @transform_21, window_bounds = array<i64: 128, 128>}, {pipeline_mode = #tpu.pipeline_mode<synchronous>, transform_indices = @transform_22, window_bounds = array<i64: 1, 128>}, {pipeline_mode = #tpu.pipeline_mode<synchronous>, transform_indices = @transform_23, window_bounds = array<i64: 128, 128>}, {pipeline_mode = #tpu.pipeline_mode<synchronous>, transform_indices = @transform_24, window_bounds = array<i64: 1, 128>}, {pipeline_mode = #tpu.pipeline_mode<synchronous>, transform_indices = @transform_25, window_bounds = array<i64: 128, 128>}, {pipeline_mode = #tpu.pipeline_mode<synchronous>, transform_indices = @transform_26, window_bounds = array<i64: 1, 128>}, {transform_indices = @transform_27, window_bounds = array<i64: 1, 256, 128>}]} {
    %0 = tpu.iota {dimensions = array<i32: 0>} : vector<256x1xi32>
    %c16_i32 = arith.constant 16 : i32
    %c0_i32 = arith.constant 0 : i32
    %1 = arith.cmpi eq, %c16_i32, %c0_i32 : i32
    %c1_i32 = arith.constant 1 : i32
    %2 = arith.select %1, %c1_i32, %c16_i32 : i32
    %3 = vector.broadcast %2 : i32 to vector<256x1xi32>
    %4 = arith.remsi %0, %3 : vector<256x1xi32>
    %c0_i32_0 = arith.constant 0 : i32
    %5 = vector.broadcast %c0_i32_0 : i32 to vector<256x1xi32>
    %6 = arith.cmpi ne, %4, %5 : vector<256x1xi32>
    %c0_i32_1 = arith.constant 0 : i32
    %7 = vector.broadcast %c0_i32_1 : i32 to vector<256x1xi32>
    %8 = arith.cmpi slt, %4, %7 : vector<256x1xi32>
    %c0_i32_2 = arith.constant 0 : i32
    %9 = arith.cmpi slt, %2, %c0_i32_2 : i32
    %10 = vector.broadcast %9 : i1 to vector<256x1xi1>
    %11 = vector.broadcast %10 : vector<256x1xi1> to vector<256x1xi1>
    %12 = arith.xori %8, %11 : vector<256x1xi1>
    %13 = arith.andi %12, %6 : vector<256x1xi1>
    %14 = vector.broadcast %2 : i32 to vector<256x1xi32>
    %15 = arith.addi %4, %14 : vector<256x1xi32>
    %16 = arith.select %13, %15, %4 : vector<256x1xi1>, vector<256x1xi32>
    %c1_i32_3 = arith.constant 1 : i32
    %17 = vector.broadcast %c1_i32_3 : i32 to vector<256x1xi32>
    %18 = arith.cmpi sge, %16, %17 : vector<256x1xi32>
    %19 = arith.extui %18 : vector<256x1xi1> to vector<256x1xi32>
    %20 = arith.sitofp %19 : vector<256x1xi32> to vector<256x1xf32>
    %c14_i32 = arith.constant 14 : i32
    %21 = vector.broadcast %c14_i32 : i32 to vector<256x1xi32>
    %22 = arith.cmpi sle, %16, %21 : vector<256x1xi32>
    %23 = arith.extui %22 : vector<256x1xi1> to vector<256x1xi32>
    %24 = arith.sitofp %23 : vector<256x1xi32> to vector<256x1xf32>
    %c0 = arith.constant 0 : index
    %c0_4 = arith.constant 0 : index
    %c0_5 = arith.constant 0 : index
    %25 = vector.load %arg1[%c0, %c0_4, %c0_5] : memref<1x256x128xf32, #tpu.memory_space<vmem>>, vector<1x256x128xf32>
    %26 = vector.shape_cast %25 : vector<1x256x128xf32> to vector<256x128xf32>
    %c0_6 = arith.constant 0 : index
    %c0_7 = arith.constant 0 : index
    %27 = vector.load %arg3[%c0_6, %c0_7] : memref<1x128xf32, #tpu.memory_space<vmem>>, vector<1x128xf32>
    %c0_8 = arith.constant 0 : index
    %c0_9 = arith.constant 0 : index
    %28 = vector.load %arg4[%c0_8, %c0_9] : memref<1x128xf32, #tpu.memory_space<vmem>>, vector<1x128xf32>
    %c0_10 = arith.constant 0 : index
    %c0_11 = arith.constant 0 : index
    %29 = vector.load %arg5[%c0_10, %c0_11] : memref<128x4xf32, #tpu.memory_space<vmem>>, vector<128x4xf32>
    %c0_12 = arith.constant 0 : index
    %c0_13 = arith.constant 0 : index
    %30 = vector.load %arg6[%c0_12, %c0_13] : memref<4x128xf32, #tpu.memory_space<vmem>>, vector<4x128xf32>
    %cst = arith.constant dense<0.000000e+00> : vector<128xf32>
    %31 = vector.multi_reduction <add>, %26, %cst [0] : vector<256x128xf32> to vector<128xf32>
    %32 = vector.shape_cast %31 : vector<128xf32> to vector<1x128xf32>
    %33 = arith.mulf %26, %26 : vector<256x128xf32>
    %cst_14 = arith.constant dense<0.000000e+00> : vector<128xf32>
    %34 = vector.multi_reduction <add>, %33, %cst_14 [0] : vector<256x128xf32> to vector<128xf32>
    %35 = vector.shape_cast %34 : vector<128xf32> to vector<1x128xf32>
    %cst_15 = arith.constant dense<0.000000e+00> : vector<1x4xf32>
    %36 = tpu.matmul %32, %29, %cst_15 {dimension_numbers = #tpu.dot_dimension_numbers<[1], [0], [0], [1], [0, 0, 1, 1], [], []>} : vector<1x128xf32>, vector<128x4xf32>, vector<1x4xf32> -> vector<1x4xf32>
    %cst_16 = arith.constant 5.120000e+02 : f32
    %37 = vector.broadcast %cst_16 : f32 to vector<1x4xf32>
    %38 = arith.divf %36, %37 : vector<1x4xf32>
    %cst_17 = arith.constant dense<0.000000e+00> : vector<1x4xf32>
    %39 = tpu.matmul %35, %29, %cst_17 {dimension_numbers = #tpu.dot_dimension_numbers<[1], [0], [0], [1], [0, 0, 1, 1], [], []>} : vector<1x128xf32>, vector<128x4xf32>, vector<1x4xf32> -> vector<1x4xf32>
    %cst_18 = arith.constant 5.120000e+02 : f32
    %40 = vector.broadcast %cst_18 : f32 to vector<1x4xf32>
    %41 = arith.divf %39, %40 : vector<1x4xf32>
    %42 = arith.mulf %38, %38 : vector<1x4xf32>
    %43 = arith.subf %41, %42 : vector<1x4xf32>
    %cst_19 = arith.constant 0.000000e+00 : f32
    %44 = vector.broadcast %cst_19 : f32 to vector<1x4xf32>
    %45 = arith.maximumf %43, %44 : vector<1x4xf32>
    %cst_20 = arith.constant 9.99999974E-6 : f32
    %46 = vector.broadcast %cst_20 : f32 to vector<1x4xf32>
    %47 = arith.addf %45, %46 : vector<1x4xf32>
    %48 = math.rsqrt %47 : vector<1x4xf32>
    %cst_21 = arith.constant dense<0.000000e+00> : vector<1x128xf32>
    %49 = tpu.matmul %38, %30, %cst_21 {dimension_numbers = #tpu.dot_dimension_numbers<[1], [0], [0], [1], [0, 0, 1, 1], [], []>} : vector<1x4xf32>, vector<4x128xf32>, vector<1x128xf32> -> vector<1x128xf32>
    %cst_22 = arith.constant dense<0.000000e+00> : vector<1x128xf32>
    %50 = tpu.matmul %48, %30, %cst_22 {dimension_numbers = #tpu.dot_dimension_numbers<[1], [0], [0], [1], [0, 0, 1, 1], [], []>} : vector<1x4xf32>, vector<4x128xf32>, vector<1x128xf32> -> vector<1x128xf32>
    %51 = vector.broadcast %49 : vector<1x128xf32> to vector<256x128xf32>
    %52 = arith.subf %26, %51 : vector<256x128xf32>
    %53 = vector.broadcast %50 : vector<1x128xf32> to vector<256x128xf32>
    %54 = arith.mulf %52, %53 : vector<256x128xf32>
    %55 = vector.broadcast %27 : vector<1x128xf32> to vector<256x128xf32>
    %56 = arith.mulf %54, %55 : vector<256x128xf32>
    %57 = vector.broadcast %28 : vector<1x128xf32> to vector<256x128xf32>
    %58 = arith.addf %56, %57 : vector<256x128xf32>
    %59 = arith.negf %58 : vector<256x128xf32>
    %60 = math.exp %59 : vector<256x128xf32>
    %cst_23 = arith.constant 1.000000e+00 : f32
    %61 = vector.broadcast %cst_23 : f32 to vector<256x128xf32>
    %62 = arith.addf %61, %60 : vector<256x128xf32>
    %63 = arith.divf %61, %62 : vector<256x128xf32>
    %64 = arith.mulf %58, %63 : vector<256x128xf32>
    %cst_24 = arith.constant 0.000000e+00 : f32
    %65 = vector.broadcast %cst_24 : f32 to vector<17x128xf32>
    %c0_25 = arith.constant 0 : index
    %c0_26 = arith.constant 0 : index
    %66 = vector.load %arg29[%c0_25, %c0_26] : memref<290x128xf32, #tpu.memory_space<vmem>>, vector<17x128xf32>
    tpu.vector_store %arg29[%c0_25, %c0_26], %65 {strides = array<i32>} : memref<290x128xf32, #tpu.memory_space<vmem>>, vector<17x128xf32>,
    %cst_27 = arith.constant 0.000000e+00 : f32
    %67 = vector.broadcast %cst_27 : f32 to vector<17x128xf32>
    %c273 = arith.constant 273 : index
    %c0_28 = arith.constant 0 : index
    %68 = vector.load %arg29[%c273, %c0_28] : memref<290x128xf32, #tpu.memory_space<vmem>>, vector<17x128xf32>
    tpu.vector_store %arg29[%c273, %c0_28], %67 {strides = array<i32>} : memref<290x128xf32, #tpu.memory_space<vmem>>, vector<17x128xf32>,
    %c17 = arith.constant 17 : index
    %c0_29 = arith.constant 0 : index
    %69 = vector.load %arg29[%c17, %c0_29] : memref<290x128xf32, #tpu.memory_space<vmem>>, vector<256x128xf32>
    tpu.vector_store %arg29[%c17, %c0_29], %64 {strides = array<i32>} : memref<290x128xf32, #tpu.memory_space<vmem>>, vector<256x128xf32>,
    %cst_30 = arith.constant 0.000000e+00 : f32
    %70 = vector.broadcast %cst_30 : f32 to vector<256x128xf32>
    %c0_31 = arith.constant 0 : index
    %c0_32 = arith.constant 0 : index
    %71 = vector.load %arg29[%c0_31, %c0_32] : memref<290x128xf32, #tpu.memory_space<vmem>>, vector<256x128xf32>
    %72 = vector.broadcast %20 : vector<256x1xf32> to vector<256x128xf32>
    %73 = arith.mulf %71, %72 : vector<256x128xf32>
    %c0_33 = arith.constant 0 : index
    %c0_34 = arith.constant 0 : index
    %c0_35 = arith.constant 0 : index
    %74 = vector.load %arg7[%c0_33, %c0_34, %c0_35] : memref<9x128x128xf32, #tpu.memory_space<vmem>>, vector<1x128x128xf32>
    %75 = vector.shape_cast %74 : vector<1x128x128xf32> to vector<128x128xf32>
    %cst_36 = arith.constant dense<0.000000e+00> : vector<256x128xf32>
    %76 = tpu.matmul %73, %75, %cst_36 {dimension_numbers = #tpu.dot_dimension_numbers<[1], [0], [0], [1], [0, 0, 1, 1], [], []>} : vector<256x128xf32>, vector<128x128xf32>, vector<256x128xf32> -> vector<256x128xf32>
    %77 = arith.addf %70, %76 : vector<256x128xf32>
    %c1 = arith.constant 1 : index
    %c0_37 = arith.constant 0 : index
    %78 = vector.load %arg29[%c1, %c0_37] : memref<290x128xf32, #tpu.memory_space<vmem>>, vector<256x128xf32>
    %c1_38 = arith.constant 1 : index
    %c0_39 = arith.constant 0 : index
    %c0_40 = arith.constant 0 : index
    %79 = vector.load %arg7[%c1_38, %c0_39, %c0_40] : memref<9x128x128xf32, #tpu.memory_space<vmem>>, vector<1x128x128xf32>
    %80 = vector.shape_cast %79 : vector<1x128x128xf32> to vector<128x128xf32>
    %cst_41 = arith.constant dense<0.000000e+00> : vector<256x128xf32>
    %81 = tpu.matmul %78, %80, %cst_41 {dimension_numbers = #tpu.dot_dimension_numbers<[1], [0], [0], [1], [0, 0, 1, 1], [], []>} : vector<256x128xf32>, vector<128x128xf32>, vector<256x128xf32> -> vector<256x128xf32>
    %82 = arith.addf %77, %81 : vector<256x128xf32>
    %c2 = arith.constant 2 : index
    %c0_42 = arith.constant 0 : index
    %83 = vector.load %arg29[%c2, %c0_42] : memref<290x128xf32, #tpu.memory_space<vmem>>, vector<256x128xf32>
    %84 = vector.broadcast %24 : vector<256x1xf32> to vector<256x128xf32>
    %85 = arith.mulf %83, %84 : vector<256x128xf32>
    %c2_43 = arith.constant 2 : index
    %c0_44 = arith.constant 0 : index
    %c0_45 = arith.constant 0 : index
    %86 = vector.load %arg7[%c2_43, %c0_44, %c0_45] : memref<9x128x128xf32, #tpu.memory_space<vmem>>, vector<1x128x128xf32>
    %87 = vector.shape_cast %86 : vector<1x128x128xf32> to vector<128x128xf32>
    %cst_46 = arith.constant dense<0.000000e+00> : vector<256x128xf32>
    %88 = tpu.matmul %85, %87, %cst_46 {dimension_numbers = #tpu.dot_dimension_numbers<[1], [0], [0], [1], [0, 0, 1, 1], [], []>} : vector<256x128xf32>, vector<128x128xf32>, vector<256x128xf32> -> vector<256x128xf32>
    %89 = arith.addf %82, %88 : vector<256x128xf32>
    %c16 = arith.constant 16 : index
    %c0_47 = arith.constant 0 : index
    %90 = vector.load %arg29[%c16, %c0_47] : memref<290x128xf32, #tpu.memory_space<vmem>>, vector<256x128xf32>
    %91 = vector.broadcast %20 : vector<256x1xf32> to vector<256x128xf32>
    %92 = arith.mulf %90, %91 : vector<256x128xf32>
    %c3 = arith.constant 3 : index
    %c0_48 = arith.constant 0 : index
    %c0_49 = arith.constant 0 : index
    %93 = vector.load %arg7[%c3, %c0_48, %c0_49] : memref<9x128x128xf32, #tpu.memory_space<vmem>>, vector<1x128x128xf32>
    %94 = vector.shape_cast %93 : vector<1x128x128xf32> to vector<128x128xf32>
    %cst_50 = arith.constant dense<0.000000e+00> : vector<256x128xf32>
    %95 = tpu.matmul %92, %94, %cst_50 {dimension_numbers = #tpu.dot_dimension_numbers<[1], [0], [0], [1], [0, 0, 1, 1], [], []>} : vector<256x128xf32>, vector<128x128xf32>, vector<256x128xf32> -> vector<256x128xf32>
    %96 = arith.addf %89, %95 : vector<256x128xf32>
    %c17_51 = arith.constant 17 : index
    %c0_52 = arith.constant 0 : index
    %97 = vector.load %arg29[%c17_51, %c0_52] : memref<290x128xf32, #tpu.memory_space<vmem>>, vector<256x128xf32>
    %c4 = arith.constant 4 : index
    %c0_53 = arith.constant 0 : index
    %c0_54 = arith.constant 0 : index
    %98 = vector.load %arg7[%c4, %c0_53, %c0_54] : memref<9x128x128xf32, #tpu.memory_space<vmem>>, vector<1x128x128xf32>
    %99 = vector.shape_cast %98 : vector<1x128x128xf32> to vector<128x128xf32>
    %cst_55 = arith.constant dense<0.000000e+00> : vector<256x128xf32>
    %100 = tpu.matmul %97, %99, %cst_55 {dimension_numbers = #tpu.dot_dimension_numbers<[1], [0], [0], [1], [0, 0, 1, 1], [], []>} : vector<256x128xf32>, vector<128x128xf32>, vector<256x128xf32> -> vector<256x128xf32>
    %101 = arith.addf %96, %100 : vector<256x128xf32>
    %c18 = arith.constant 18 : index
    %c0_56 = arith.constant 0 : index
    %102 = vector.load %arg29[%c18, %c0_56] : memref<290x128xf32, #tpu.memory_space<vmem>>, vector<256x128xf32>
    %103 = vector.broadcast %24 : vector<256x1xf32> to vector<256x128xf32>
    %104 = arith.mulf %102, %103 : vector<256x128xf32>
    %c5 = arith.constant 5 : index
    %c0_57 = arith.constant 0 : index
    %c0_58 = arith.constant 0 : index
    %105 = vector.load %arg7[%c5, %c0_57, %c0_58] : memref<9x128x128xf32, #tpu.memory_space<vmem>>, vector<1x128x128xf32>
    %106 = vector.shape_cast %105 : vector<1x128x128xf32> to vector<128x128xf32>
    %cst_59 = arith.constant dense<0.000000e+00> : vector<256x128xf32>
    %107 = tpu.matmul %104, %106, %cst_59 {dimension_numbers = #tpu.dot_dimension_numbers<[1], [0], [0], [1], [0, 0, 1, 1], [], []>} : vector<256x128xf32>, vector<128x128xf32>, vector<256x128xf32> -> vector<256x128xf32>
    %108 = arith.addf %101, %107 : vector<256x128xf32>
    %c32 = arith.constant 32 : index
    %c0_60 = arith.constant 0 : index
    %109 = vector.load %arg29[%c32, %c0_60] : memref<290x128xf32, #tpu.memory_space<vmem>>, vector<256x128xf32>
    %110 = vector.broadcast %20 : vector<256x1xf32> to vector<256x128xf32>
    %111 = arith.mulf %109, %110 : vector<256x128xf32>
    %c6 = arith.constant 6 : index
    %c0_61 = arith.constant 0 : index
    %c0_62 = arith.constant 0 : index
    %112 = vector.load %arg7[%c6, %c0_61, %c0_62] : memref<9x128x128xf32, #tpu.memory_space<vmem>>, vector<1x128x128xf32>
    %113 = vector.shape_cast %112 : vector<1x128x128xf32> to vector<128x128xf32>
    %cst_63 = arith.constant dense<0.000000e+00> : vector<256x128xf32>
    %114 = tpu.matmul %111, %113, %cst_63 {dimension_numbers = #tpu.dot_dimension_numbers<[1], [0], [0], [1], [0, 0, 1, 1], [], []>} : vector<256x128xf32>, vector<128x128xf32>, vector<256x128xf32> -> vector<256x128xf32>
    %115 = arith.addf %108, %114 : vector<256x128xf32>
    %c33 = arith.constant 33 : index
    %c0_64 = arith.constant 0 : index
    %116 = vector.load %arg29[%c33, %c0_64] : memref<290x128xf32, #tpu.memory_space<vmem>>, vector<256x128xf32>
    %c7 = arith.constant 7 : index
    %c0_65 = arith.constant 0 : index
    %c0_66 = arith.constant 0 : index
    %117 = vector.load %arg7[%c7, %c0_65, %c0_66] : memref<9x128x128xf32, #tpu.memory_space<vmem>>, vector<1x128x128xf32>
    %118 = vector.shape_cast %117 : vector<1x128x128xf32> to vector<128x128xf32>
    %cst_67 = arith.constant dense<0.000000e+00> : vector<256x128xf32>
    %119 = tpu.matmul %116, %118, %cst_67 {dimension_numbers = #tpu.dot_dimension_numbers<[1], [0], [0], [1], [0, 0, 1, 1], [], []>} : vector<256x128xf32>, vector<128x128xf32>, vector<256x128xf32> -> vector<256x128xf32>
    %120 = arith.addf %115, %119 : vector<256x128xf32>
    %c34 = arith.constant 34 : index
    %c0_68 = arith.constant 0 : index
    %121 = vector.load %arg29[%c34, %c0_68] : memref<290x128xf32, #tpu.memory_space<vmem>>, vector<256x128xf32>
    %122 = vector.broadcast %24 : vector<256x1xf32> to vector<256x128xf32>
    %123 = arith.mulf %121, %122 : vector<256x128xf32>
    %c8 = arith.constant 8 : index
    %c0_69 = arith.constant 0 : index
    %c0_70 = arith.constant 0 : index
    %124 = vector.load %arg7[%c8, %c0_69, %c0_70] : memref<9x128x128xf32, #tpu.memory_space<vmem>>, vector<1x128x128xf32>
    %125 = vector.shape_cast %124 : vector<1x128x128xf32> to vector<128x128xf32>
    %cst_71 = arith.constant dense<0.000000e+00> : vector<256x128xf32>
    %126 = tpu.matmul %123, %125, %cst_71 {dimension_numbers = #tpu.dot_dimension_numbers<[1], [0], [0], [1], [0, 0, 1, 1], [], []>} : vector<256x128xf32>, vector<128x128xf32>, vector<256x128xf32> -> vector<256x128xf32>
    %127 = arith.addf %120, %126 : vector<256x128xf32>
    %c0_72 = arith.constant 0 : index
    %c0_73 = arith.constant 0 : index
    %128 = vector.load %arg8[%c0_72, %c0_73] : memref<1x128xf32, #tpu.memory_space<vmem>>, vector<1x128xf32>
    %129 = vector.broadcast %128 : vector<1x128xf32> to vector<256x128xf32>
    %130 = arith.addf %127, %129 : vector<256x128xf32>
    %c0_74 = arith.constant 0 : index
    %c0_75 = arith.constant 0 : index
    %c0_76 = arith.constant 0 : index
    %131 = vector.load %arg2[%c0_74, %c0_75, %c0_76] : memref<1x1x128xf32, #tpu.memory_space<vmem>>, vector<1x1x128xf32>
    %132 = vector.shape_cast %131 : vector<1x1x128xf32> to vector<1x128xf32>
    %133 = vector.broadcast %132 : vector<1x128xf32> to vector<256x128xf32>
    %134 = arith.addf %130, %133 : vector<256x128xf32>
    %c0_77 = arith.constant 0 : index
    %c0_78 = arith.constant 0 : index
    %135 = vector.load %arg9[%c0_77, %c0_78] : memref<1x128xf32, #tpu.memory_space<vmem>>, vector<1x128xf32>
    %c0_79 = arith.constant 0 : index
    %c0_80 = arith.constant 0 : index
    %136 = vector.load %arg10[%c0_79, %c0_80] : memref<1x128xf32, #tpu.memory_space<vmem>>, vector<1x128xf32>
    %c0_81 = arith.constant 0 : index
    %c0_82 = arith.constant 0 : index
    %137 = vector.load %arg11[%c0_81, %c0_82] : memref<128x4xf32, #tpu.memory_space<vmem>>, vector<128x4xf32>
    %c0_83 = arith.constant 0 : index
    %c0_84 = arith.constant 0 : index
    %138 = vector.load %arg12[%c0_83, %c0_84] : memref<4x128xf32, #tpu.memory_space<vmem>>, vector<4x128xf32>
    %cst_85 = arith.constant dense<0.000000e+00> : vector<128xf32>
    %139 = vector.multi_reduction <add>, %134, %cst_85 [0] : vector<256x128xf32> to vector<128xf32>
    %140 = vector.shape_cast %139 : vector<128xf32> to vector<1x128xf32>
    %141 = arith.mulf %134, %134 : vector<256x128xf32>
    %cst_86 = arith.constant dense<0.000000e+00> : vector<128xf32>
    %142 = vector.multi_reduction <add>, %141, %cst_86 [0] : vector<256x128xf32> to vector<128xf32>
    %143 = vector.shape_cast %142 : vector<128xf32> to vector<1x128xf32>
    %cst_87 = arith.constant dense<0.000000e+00> : vector<1x4xf32>
    %144 = tpu.matmul %140, %137, %cst_87 {dimension_numbers = #tpu.dot_dimension_numbers<[1], [0], [0], [1], [0, 0, 1, 1], [], []>} : vector<1x128xf32>, vector<128x4xf32>, vector<1x4xf32> -> vector<1x4xf32>
    %cst_88 = arith.constant 1.024000e+03 : f32
    %145 = vector.broadcast %cst_88 : f32 to vector<1x4xf32>
    %146 = arith.divf %144, %145 : vector<1x4xf32>
    %cst_89 = arith.constant dense<0.000000e+00> : vector<1x4xf32>
    %147 = tpu.matmul %143, %137, %cst_89 {dimension_numbers = #tpu.dot_dimension_numbers<[1], [0], [0], [1], [0, 0, 1, 1], [], []>} : vector<1x128xf32>, vector<128x4xf32>, vector<1x4xf32> -> vector<1x4xf32>
    %cst_90 = arith.constant 1.024000e+03 : f32
    %148 = vector.broadcast %cst_90 : f32 to vector<1x4xf32>
    %149 = arith.divf %147, %148 : vector<1x4xf32>
    %150 = arith.mulf %146, %146 : vector<1x4xf32>
    %151 = arith.subf %149, %150 : vector<1x4xf32>
    %cst_91 = arith.constant 0.000000e+00 : f32
    %152 = vector.broadcast %cst_91 : f32 to vector<1x4xf32>
    %153 = arith.maximumf %151, %152 : vector<1x4xf32>
    %cst_92 = arith.constant 9.99999974E-6 : f32
    %154 = vector.broadcast %cst_92 : f32 to vector<1x4xf32>
    %155 = arith.addf %153, %154 : vector<1x4xf32>
    %156 = math.rsqrt %155 : vector<1x4xf32>
    %cst_93 = arith.constant dense<0.000000e+00> : vector<1x128xf32>
    %157 = tpu.matmul %146, %138, %cst_93 {dimension_numbers = #tpu.dot_dimension_numbers<[1], [0], [0], [1], [0, 0, 1, 1], [], []>} : vector<1x4xf32>, vector<4x128xf32>, vector<1x128xf32> -> vector<1x128xf32>
    %cst_94 = arith.constant dense<0.000000e+00> : vector<1x128xf32>
    %158 = tpu.matmul %156, %138, %cst_94 {dimension_numbers = #tpu.dot_dimension_numbers<[1], [0], [0], [1], [0, 0, 1, 1], [], []>} : vector<1x4xf32>, vector<4x128xf32>, vector<1x128xf32> -> vector<1x128xf32>
    %159 = vector.broadcast %157 : vector<1x128xf32> to vector<256x128xf32>
    %160 = arith.subf %134, %159 : vector<256x128xf32>
    %161 = vector.broadcast %158 : vector<1x128xf32> to vector<256x128xf32>
    %162 = arith.mulf %160, %161 : vector<256x128xf32>
    %163 = vector.broadcast %135 : vector<1x128xf32> to vector<256x128xf32>
    %164 = arith.mulf %162, %163 : vector<256x128xf32>
    %165 = vector.broadcast %136 : vector<1x128xf32> to vector<256x128xf32>
    %166 = arith.addf %164, %165 : vector<256x128xf32>
    %167 = arith.negf %166 : vector<256x128xf32>
    %168 = math.exp %167 : vector<256x128xf32>
    %cst_95 = arith.constant 1.000000e+00 : f32
    %169 = vector.broadcast %cst_95 : f32 to vector<256x128xf32>
    %170 = arith.addf %169, %168 : vector<256x128xf32>
    %171 = arith.divf %169, %170 : vector<256x128xf32>
    %172 = arith.mulf %166, %171 : vector<256x128xf32>
    %cst_96 = arith.constant 0.000000e+00 : f32
    %173 = vector.broadcast %cst_96 : f32 to vector<17x128xf32>
    %c0_97 = arith.constant 0 : index
    %c0_98 = arith.constant 0 : index
    %174 = vector.load %arg30[%c0_97, %c0_98] : memref<290x128xf32, #tpu.memory_space<vmem>>, vector<17x128xf32>
    tpu.vector_store %arg30[%c0_97, %c0_98], %173 {strides = array<i32>} : memref<290x128xf32, #tpu.memory_space<vmem>>, vector<17x128xf32>,
    %cst_99 = arith.constant 0.000000e+00 : f32
    %175 = vector.broadcast %cst_99 : f32 to vector<17x128xf32>
    %c273_100 = arith.constant 273 : index
    %c0_101 = arith.constant 0 : index
    %176 = vector.load %arg30[%c273_100, %c0_101] : memref<290x128xf32, #tpu.memory_space<vmem>>, vector<17x128xf32>
    tpu.vector_store %arg30[%c273_100, %c0_101], %175 {strides = array<i32>} : memref<290x128xf32, #tpu.memory_space<vmem>>, vector<17x128xf32>,
    %c17_102 = arith.constant 17 : index
    %c0_103 = arith.constant 0 : index
    %177 = vector.load %arg30[%c17_102, %c0_103] : memref<290x128xf32, #tpu.memory_space<vmem>>, vector<256x128xf32>
    tpu.vector_store %arg30[%c17_102, %c0_103], %172 {strides = array<i32>} : memref<290x128xf32, #tpu.memory_space<vmem>>, vector<256x128xf32>,
    %cst_104 = arith.constant 0.000000e+00 : f32
    %178 = vector.broadcast %cst_104 : f32 to vector<256x128xf32>
    %c0_105 = arith.constant 0 : index
    %c0_106 = arith.constant 0 : index
    %179 = vector.load %arg30[%c0_105, %c0_106] : memref<290x128xf32, #tpu.memory_space<vmem>>, vector<256x128xf32>
    %180 = vector.broadcast %20 : vector<256x1xf32> to vector<256x128xf32>
    %181 = arith.mulf %179, %180 : vector<256x128xf32>
    %c0_107 = arith.constant 0 : index
    %c0_108 = arith.constant 0 : index
    %c0_109 = arith.constant 0 : index
    %182 = vector.load %arg13[%c0_107, %c0_108, %c0_109] : memref<9x128x128xf32, #tpu.memory_space<vmem>>, vector<1x128x128xf32>
    %183 = vector.shape_cast %182 : vector<1x128x128xf32> to vector<128x128xf32>
    %cst_110 = arith.constant dense<0.000000e+00> : vector<256x128xf32>
    %184 = tpu.matmul %181, %183, %cst_110 {dimension_numbers = #tpu.dot_dimension_numbers<[1], [0], [0], [1], [0, 0, 1, 1], [], []>} : vector<256x128xf32>, vector<128x128xf32>, vector<256x128xf32> -> vector<256x128xf32>
    %185 = arith.addf %178, %184 : vector<256x128xf32>
    %c1_111 = arith.constant 1 : index
    %c0_112 = arith.constant 0 : index
    %186 = vector.load %arg30[%c1_111, %c0_112] : memref<290x128xf32, #tpu.memory_space<vmem>>, vector<256x128xf32>
    %c1_113 = arith.constant 1 : index
    %c0_114 = arith.constant 0 : index
    %c0_115 = arith.constant 0 : index
    %187 = vector.load %arg13[%c1_113, %c0_114, %c0_115] : memref<9x128x128xf32, #tpu.memory_space<vmem>>, vector<1x128x128xf32>
    %188 = vector.shape_cast %187 : vector<1x128x128xf32> to vector<128x128xf32>
    %cst_116 = arith.constant dense<0.000000e+00> : vector<256x128xf32>
    %189 = tpu.matmul %186, %188, %cst_116 {dimension_numbers = #tpu.dot_dimension_numbers<[1], [0], [0], [1], [0, 0, 1, 1], [], []>} : vector<256x128xf32>, vector<128x128xf32>, vector<256x128xf32> -> vector<256x128xf32>
    %190 = arith.addf %185, %189 : vector<256x128xf32>
    %c2_117 = arith.constant 2 : index
    %c0_118 = arith.constant 0 : index
    %191 = vector.load %arg30[%c2_117, %c0_118] : memref<290x128xf32, #tpu.memory_space<vmem>>, vector<256x128xf32>
    %192 = vector.broadcast %24 : vector<256x1xf32> to vector<256x128xf32>
    %193 = arith.mulf %191, %192 : vector<256x128xf32>
    %c2_119 = arith.constant 2 : index
    %c0_120 = arith.constant 0 : index
    %c0_121 = arith.constant 0 : index
    %194 = vector.load %arg13[%c2_119, %c0_120, %c0_121] : memref<9x128x128xf32, #tpu.memory_space<vmem>>, vector<1x128x128xf32>
    %195 = vector.shape_cast %194 : vector<1x128x128xf32> to vector<128x128xf32>
    %cst_122 = arith.constant dense<0.000000e+00> : vector<256x128xf32>
    %196 = tpu.matmul %193, %195, %cst_122 {dimension_numbers = #tpu.dot_dimension_numbers<[1], [0], [0], [1], [0, 0, 1, 1], [], []>} : vector<256x128xf32>, vector<128x128xf32>, vector<256x128xf32> -> vector<256x128xf32>
    %197 = arith.addf %190, %196 : vector<256x128xf32>
    %c16_123 = arith.constant 16 : index
    %c0_124 = arith.constant 0 : index
    %198 = vector.load %arg30[%c16_123, %c0_124] : memref<290x128xf32, #tpu.memory_space<vmem>>, vector<256x128xf32>
    %199 = vector.broadcast %20 : vector<256x1xf32> to vector<256x128xf32>
    %200 = arith.mulf %198, %199 : vector<256x128xf32>
    %c3_125 = arith.constant 3 : index
    %c0_126 = arith.constant 0 : index
    %c0_127 = arith.constant 0 : index
    %201 = vector.load %arg13[%c3_125, %c0_126, %c0_127] : memref<9x128x128xf32, #tpu.memory_space<vmem>>, vector<1x128x128xf32>
    %202 = vector.shape_cast %201 : vector<1x128x128xf32> to vector<128x128xf32>
    %cst_128 = arith.constant dense<0.000000e+00> : vector<256x128xf32>
    %203 = tpu.matmul %200, %202, %cst_128 {dimension_numbers = #tpu.dot_dimension_numbers<[1], [0], [0], [1], [0, 0, 1, 1], [], []>} : vector<256x128xf32>, vector<128x128xf32>, vector<256x128xf32> -> vector<256x128xf32>
    %204 = arith.addf %197, %203 : vector<256x128xf32>
    %c17_129 = arith.constant 17 : index
    %c0_130 = arith.constant 0 : index
    %205 = vector.load %arg30[%c17_129, %c0_130] : memref<290x128xf32, #tpu.memory_space<vmem>>, vector<256x128xf32>
    %c4_131 = arith.constant 4 : index
    %c0_132 = arith.constant 0 : index
    %c0_133 = arith.constant 0 : index
    %206 = vector.load %arg13[%c4_131, %c0_132, %c0_133] : memref<9x128x128xf32, #tpu.memory_space<vmem>>, vector<1x128x128xf32>
    %207 = vector.shape_cast %206 : vector<1x128x128xf32> to vector<128x128xf32>
    %cst_134 = arith.constant dense<0.000000e+00> : vector<256x128xf32>
    %208 = tpu.matmul %205, %207, %cst_134 {dimension_numbers = #tpu.dot_dimension_numbers<[1], [0], [0], [1], [0, 0, 1, 1], [], []>} : vector<256x128xf32>, vector<128x128xf32>, vector<256x128xf32> -> vector<256x128xf32>
    %209 = arith.addf %204, %208 : vector<256x128xf32>
    %c18_135 = arith.constant 18 : index
    %c0_136 = arith.constant 0 : index
    %210 = vector.load %arg30[%c18_135, %c0_136] : memref<290x128xf32, #tpu.memory_space<vmem>>, vector<256x128xf32>
    %211 = vector.broadcast %24 : vector<256x1xf32> to vector<256x128xf32>
    %212 = arith.mulf %210, %211 : vector<256x128xf32>
    %c5_137 = arith.constant 5 : index
    %c0_138 = arith.constant 0 : index
    %c0_139 = arith.constant 0 : index
    %213 = vector.load %arg13[%c5_137, %c0_138, %c0_139] : memref<9x128x128xf32, #tpu.memory_space<vmem>>, vector<1x128x128xf32>
    %214 = vector.shape_cast %213 : vector<1x128x128xf32> to vector<128x128xf32>
    %cst_140 = arith.constant dense<0.000000e+00> : vector<256x128xf32>
    %215 = tpu.matmul %212, %214, %cst_140 {dimension_numbers = #tpu.dot_dimension_numbers<[1], [0], [0], [1], [0, 0, 1, 1], [], []>} : vector<256x128xf32>, vector<128x128xf32>, vector<256x128xf32> -> vector<256x128xf32>
    %216 = arith.addf %209, %215 : vector<256x128xf32>
    %c32_141 = arith.constant 32 : index
    %c0_142 = arith.constant 0 : index
    %217 = vector.load %arg30[%c32_141, %c0_142] : memref<290x128xf32, #tpu.memory_space<vmem>>, vector<256x128xf32>
    %218 = vector.broadcast %20 : vector<256x1xf32> to vector<256x128xf32>
    %219 = arith.mulf %217, %218 : vector<256x128xf32>
    %c6_143 = arith.constant 6 : index
    %c0_144 = arith.constant 0 : index
    %c0_145 = arith.constant 0 : index
    %220 = vector.load %arg13[%c6_143, %c0_144, %c0_145] : memref<9x128x128xf32, #tpu.memory_space<vmem>>, vector<1x128x128xf32>
    %221 = vector.shape_cast %220 : vector<1x128x128xf32> to vector<128x128xf32>
    %cst_146 = arith.constant dense<0.000000e+00> : vector<256x128xf32>
    %222 = tpu.matmul %219, %221, %cst_146 {dimension_numbers = #tpu.dot_dimension_numbers<[1], [0], [0], [1], [0, 0, 1, 1], [], []>} : vector<256x128xf32>, vector<128x128xf32>, vector<256x128xf32> -> vector<256x128xf32>
    %223 = arith.addf %216, %222 : vector<256x128xf32>
    %c33_147 = arith.constant 33 : index
    %c0_148 = arith.constant 0 : index
    %224 = vector.load %arg30[%c33_147, %c0_148] : memref<290x128xf32, #tpu.memory_space<vmem>>, vector<256x128xf32>
    %c7_149 = arith.constant 7 : index
    %c0_150 = arith.constant 0 : index
    %c0_151 = arith.constant 0 : index
    %225 = vector.load %arg13[%c7_149, %c0_150, %c0_151] : memref<9x128x128xf32, #tpu.memory_space<vmem>>, vector<1x128x128xf32>
    %226 = vector.shape_cast %225 : vector<1x128x128xf32> to vector<128x128xf32>
    %cst_152 = arith.constant dense<0.000000e+00> : vector<256x128xf32>
    %227 = tpu.matmul %224, %226, %cst_152 {dimension_numbers = #tpu.dot_dimension_numbers<[1], [0], [0], [1], [0, 0, 1, 1], [], []>} : vector<256x128xf32>, vector<128x128xf32>, vector<256x128xf32> -> vector<256x128xf32>
    %228 = arith.addf %223, %227 : vector<256x128xf32>
    %c34_153 = arith.constant 34 : index
    %c0_154 = arith.constant 0 : index
    %229 = vector.load %arg30[%c34_153, %c0_154] : memref<290x128xf32, #tpu.memory_space<vmem>>, vector<256x128xf32>
    %230 = vector.broadcast %24 : vector<256x1xf32> to vector<256x128xf32>
    %231 = arith.mulf %229, %230 : vector<256x128xf32>
    %c8_155 = arith.constant 8 : index
    %c0_156 = arith.constant 0 : index
    %c0_157 = arith.constant 0 : index
    %232 = vector.load %arg13[%c8_155, %c0_156, %c0_157] : memref<9x128x128xf32, #tpu.memory_space<vmem>>, vector<1x128x128xf32>
    %233 = vector.shape_cast %232 : vector<1x128x128xf32> to vector<128x128xf32>
    %cst_158 = arith.constant dense<0.000000e+00> : vector<256x128xf32>
    %234 = tpu.matmul %231, %233, %cst_158 {dimension_numbers = #tpu.dot_dimension_numbers<[1], [0], [0], [1], [0, 0, 1, 1], [], []>} : vector<256x128xf32>, vector<128x128xf32>, vector<256x128xf32> -> vector<256x128xf32>
    %235 = arith.addf %228, %234 : vector<256x128xf32>
    %c0_159 = arith.constant 0 : index
    %c0_160 = arith.constant 0 : index
    %236 = vector.load %arg14[%c0_159, %c0_160] : memref<1x128xf32, #tpu.memory_space<vmem>>, vector<1x128xf32>
    %237 = vector.broadcast %236 : vector<1x128xf32> to vector<256x128xf32>
    %238 = arith.addf %235, %237 : vector<256x128xf32>
    %c0_161 = arith.constant 0 : index
    %c0_162 = arith.constant 0 : index
    %239 = vector.load %arg15[%c0_161, %c0_162] : memref<128x128xf32, #tpu.memory_space<vmem>>, vector<128x128xf32>
    %cst_163 = arith.constant dense<0.000000e+00> : vector<256x128xf32>
    %240 = tpu.matmul %26, %239, %cst_163 {dimension_numbers = #tpu.dot_dimension_numbers<[1], [0], [0], [1], [0, 0, 1, 1], [], []>} : vector<256x128xf32>, vector<128x128xf32>, vector<256x128xf32> -> vector<256x128xf32>
    %241 = arith.addf %238, %240 : vector<256x128xf32>
    %c0_164 = arith.constant 0 : index
    %c0_165 = arith.constant 0 : index
    %242 = vector.load %arg16[%c0_164, %c0_165] : memref<1x128xf32, #tpu.memory_space<vmem>>, vector<1x128xf32>
    %243 = vector.broadcast %242 : vector<1x128xf32> to vector<256x128xf32>
    %244 = arith.addf %241, %243 : vector<256x128xf32>
    %c0_166 = arith.constant 0 : index
    %c0_167 = arith.constant 0 : index
    %c0_168 = arith.constant 0 : index
    %245 = vector.load %arg17[%c0_166, %c0_167, %c0_168] : memref<1x256x128xf32, #tpu.memory_space<vmem>>, vector<1x256x128xf32>
    %246 = vector.shape_cast %245 : vector<1x256x128xf32> to vector<256x128xf32>
    %c0_169 = arith.constant 0 : index
    %c0_170 = arith.constant 0 : index
    %247 = vector.load %arg18[%c0_169, %c0_170] : memref<128x128xf32, #tpu.memory_space<vmem>>, vector<128x128xf32>
    %cst_171 = arith.constant dense<0.000000e+00> : vector<256x128xf32>
    %248 = tpu.matmul %246, %247, %cst_171 {dimension_numbers = #tpu.dot_dimension_numbers<[1], [0], [0], [1], [0, 0, 1, 1], [], []>} : vector<256x128xf32>, vector<128x128xf32>, vector<256x128xf32> -> vector<256x128xf32>
    %249 = arith.addf %244, %248 : vector<256x128xf32>
    %c0_172 = arith.constant 0 : index
    %c0_173 = arith.constant 0 : index
    %250 = vector.load %arg19[%c0_172, %c0_173] : memref<1x128xf32, #tpu.memory_space<vmem>>, vector<1x128xf32>
    %251 = vector.broadcast %250 : vector<1x128xf32> to vector<256x128xf32>
    %252 = arith.addf %249, %251 : vector<256x128xf32>
    %c0_174 = arith.constant 0 : index
    %c0_175 = arith.constant 0 : index
    %253 = vector.load %arg20[%c0_174, %c0_175] : memref<128x128xf32, #tpu.memory_space<vmem>>, vector<128x128xf32>
    %cst_176 = arith.constant dense<0.000000e+00> : vector<256x128xf32>
    %254 = tpu.matmul %252, %253, %cst_176 {dimension_numbers = #tpu.dot_dimension_numbers<[1], [0], [0], [1], [0, 0, 1, 1], [], []>} : vector<256x128xf32>, vector<128x128xf32>, vector<256x128xf32> -> vector<256x128xf32>
    %c0_177 = arith.constant 0 : index
    %c0_178 = arith.constant 0 : index
    %255 = vector.load %arg21[%c0_177, %c0_178] : memref<1x128xf32, #tpu.memory_space<vmem>>, vector<1x128xf32>
    %256 = vector.broadcast %255 : vector<1x128xf32> to vector<256x128xf32>
    %257 = arith.addf %254, %256 : vector<256x128xf32>
    %c0_179 = arith.constant 0 : index
    %c0_180 = arith.constant 0 : index
    %258 = vector.load %arg22[%c0_179, %c0_180] : memref<128x128xf32, #tpu.memory_space<vmem>>, vector<128x128xf32>
    %cst_181 = arith.constant dense<0.000000e+00> : vector<256x128xf32>
    %259 = tpu.matmul %252, %258, %cst_181 {dimension_numbers = #tpu.dot_dimension_numbers<[1], [0], [0], [1], [0, 0, 1, 1], [], []>} : vector<256x128xf32>, vector<128x128xf32>, vector<256x128xf32> -> vector<256x128xf32>
    %c0_182 = arith.constant 0 : index
    %c0_183 = arith.constant 0 : index
    %260 = vector.load %arg23[%c0_182, %c0_183] : memref<1x128xf32, #tpu.memory_space<vmem>>, vector<1x128xf32>
    %261 = vector.broadcast %260 : vector<1x128xf32> to vector<256x128xf32>
    %262 = arith.addf %259, %261 : vector<256x128xf32>
    %c0_184 = arith.constant 0 : index
    %c0_185 = arith.constant 0 : index
    %263 = vector.load %arg31[%c0_184, %c0_185] : memref<256x128xf32, #tpu.memory_space<vmem>>, vector<256x128xf32>
    tpu.vector_store %arg31[%c0_184, %c0_185], %262 {strides = array<i32>} : memref<256x128xf32, #tpu.memory_space<vmem>>, vector<256x128xf32>,
    %c0_186 = arith.constant 0 : index
    %c0_187 = arith.constant 0 : index
    %264 = vector.load %arg24[%c0_186, %c0_187] : memref<128x128xf32, #tpu.memory_space<vmem>>, vector<128x128xf32>
    %cst_188 = arith.constant dense<0.000000e+00> : vector<256x128xf32>
    %265 = tpu.matmul %252, %264, %cst_188 {dimension_numbers = #tpu.dot_dimension_numbers<[1], [0], [0], [1], [0, 0, 1, 1], [], []>} : vector<256x128xf32>, vector<128x128xf32>, vector<256x128xf32> -> vector<256x128xf32>
    %c0_189 = arith.constant 0 : index
    %c0_190 = arith.constant 0 : index
    %266 = vector.load %arg25[%c0_189, %c0_190] : memref<1x128xf32, #tpu.memory_space<vmem>>, vector<1x128xf32>
    %267 = vector.broadcast %266 : vector<1x128xf32> to vector<256x128xf32>
    %268 = arith.addf %265, %267 : vector<256x128xf32>
    %c0_191 = arith.constant 0 : index
    %c0_192 = arith.constant 0 : index
    %269 = vector.load %arg32[%c0_191, %c0_192] : memref<256x128xf32, #tpu.memory_space<vmem>>, vector<256x128xf32>
    tpu.vector_store %arg32[%c0_191, %c0_192], %268 {strides = array<i32>} : memref<256x128xf32, #tpu.memory_space<vmem>>, vector<256x128xf32>,
    %cst_193 = arith.constant 0xFF800000 : f32
    %270 = vector.broadcast %cst_193 : f32 to vector<256x1xf32>
    %cst_194 = arith.constant 0.000000e+00 : f32
    %271 = vector.broadcast %cst_194 : f32 to vector<256x1xf32>
    %cst_195 = arith.constant 0.000000e+00 : f32
    %272 = vector.broadcast %cst_195 : f32 to vector<256x128xf32>
    %c0_i32_196 = arith.constant 0 : i32
    %c256_i32 = arith.constant 256 : i32
    %273 = arith.muli %c0_i32_196, %c256_i32 : i32
    %274 = tpu.assume_multiple %273, 256 : i32
    %275 = arith.index_cast %274 : i32 to index
    %c0_197 = arith.constant 0 : index
    %276 = vector.load %arg31[%275, %c0_197] : memref<256x128xf32, #tpu.memory_space<vmem>>, vector<256x128xf32>
    %277 = arith.index_cast %274 : i32 to index
    %c0_198 = arith.constant 0 : index
    %278 = vector.load %arg32[%277, %c0_198] : memref<256x128xf32, #tpu.memory_space<vmem>>, vector<256x128xf32>
    %cst_199 = arith.constant dense<0.000000e+00> : vector<256x256xf32>
    %279 = tpu.matmul %257, %276, %cst_199 {dimension_numbers = #tpu.dot_dimension_numbers<[1], [1], [0], [0], [0, 0, 1, 0], [], []>} : vector<256x128xf32>, vector<256x128xf32>, vector<256x256xf32> -> vector<256x256xf32>
    %cst_200 = arith.constant dense<0xFF800000> : vector<256xf32>
    %280 = vector.multi_reduction <maximumf>, %279, %cst_200 [1] : vector<256x256xf32> to vector<256xf32>
    %281 = vector.shape_cast %280 : vector<256xf32> to vector<256x1xf32>
    %282 = arith.maximumf %270, %281 : vector<256x1xf32>
    %283 = arith.subf %270, %282 : vector<256x1xf32>
    %284 = math.exp %283 : vector<256x1xf32>
    %285 = vector.broadcast %282 : vector<256x1xf32> to vector<256x256xf32>
    %286 = arith.subf %279, %285 : vector<256x256xf32>
    %287 = math.exp %286 : vector<256x256xf32>
    %288 = arith.mulf %284, %271 : vector<256x1xf32>
    %cst_201 = arith.constant dense<0.000000e+00> : vector<256xf32>
    %289 = vector.multi_reduction <add>, %287, %cst_201 [1] : vector<256x256xf32> to vector<256xf32>
    %290 = vector.shape_cast %289 : vector<256xf32> to vector<256x1xf32>
    %291 = arith.addf %288, %290 : vector<256x1xf32>
    %292 = vector.broadcast %284 : vector<256x1xf32> to vector<256x128xf32>
    %293 = arith.mulf %292, %272 : vector<256x128xf32>
    %cst_202 = arith.constant dense<0.000000e+00> : vector<256x128xf32>
    %294 = tpu.matmul %287, %278, %cst_202 {dimension_numbers = #tpu.dot_dimension_numbers<[1], [0], [0], [1], [0, 0, 1, 1], [], []>} : vector<256x256xf32>, vector<256x128xf32>, vector<256x128xf32> -> vector<256x128xf32>
    %295 = arith.addf %293, %294 : vector<256x128xf32>
    %c1_i32_203 = arith.constant 1 : i32
    %296 = tpu.reciprocal %291 : vector<256x1xf32> -> vector<256x1xf32>
    %297 = vector.broadcast %296 : vector<256x1xf32> to vector<256x128xf32>
    %298 = arith.mulf %295, %297 : vector<256x128xf32>
    %c0_204 = arith.constant 0 : index
    %c0_205 = arith.constant 0 : index
    %299 = vector.load %arg26[%c0_204, %c0_205] : memref<128x128xf32, #tpu.memory_space<vmem>>, vector<128x128xf32>
    %cst_206 = arith.constant dense<0.000000e+00> : vector<256x128xf32>
    %300 = tpu.matmul %298, %299, %cst_206 {dimension_numbers = #tpu.dot_dimension_numbers<[1], [0], [0], [1], [0, 0, 1, 1], [], []>} : vector<256x128xf32>, vector<128x128xf32>, vector<256x128xf32> -> vector<256x128xf32>
    %c0_207 = arith.constant 0 : index
    %c0_208 = arith.constant 0 : index
    %301 = vector.load %arg27[%c0_207, %c0_208] : memref<1x128xf32, #tpu.memory_space<vmem>>, vector<1x128xf32>
    %302 = vector.broadcast %301 : vector<1x128xf32> to vector<256x128xf32>
    %303 = arith.addf %300, %302 : vector<256x128xf32>
    %304 = arith.addf %303, %252 : vector<256x128xf32>
    %c0_209 = arith.constant 0 : index
    %c0_210 = arith.constant 0 : index
    %c0_211 = arith.constant 0 : index
    %305 = vector.load %arg28[%c0_209, %c0_210, %c0_211] : memref<1x256x128xf32, #tpu.memory_space<vmem>>, vector<1x256x128xf32>
    %306 = vector.shape_cast %305 : vector<1x256x128xf32> to vector<256x128xf32>
    %307 = vector.shape_cast %304 : vector<256x128xf32> to vector<1x256x128xf32>
    tpu.vector_store %arg28[%c0_209, %c0_210, %c0_211], %307 {strides = array<i32>} : memref<1x256x128xf32, #tpu.memory_space<vmem>>, vector<1x256x128xf32>,
    return
  }
  func.func @transform_0(%arg0: i32) -> (i32, i32, i32) {
    %c0_i32 = arith.constant 0 : i32
    %c0_i32_0 = arith.constant 0 : i32
    %c0_i32_1 = arith.constant 0 : i32
    return %arg0, %c0_i32, %c0_i32_0 : i32, i32, i32
  }
  func.func @transform_1(%arg0: i32) -> (i32, i32, i32) {
    %c0_i32 = arith.constant 0 : i32
    %c0_i32_0 = arith.constant 0 : i32
    %c0_i32_1 = arith.constant 0 : i32
    return %arg0, %c0_i32, %c0_i32_0 : i32, i32, i32
  }
  func.func @transform_2(%arg0: i32) -> (i32, i32) {
    %c0_i32 = arith.constant 0 : i32
    %c0_i32_0 = arith.constant 0 : i32
    %c0_i32_1 = arith.constant 0 : i32
    return %c0_i32, %c0_i32_0 : i32, i32
  }
  func.func @transform_3(%arg0: i32) -> (i32, i32) {
    %c0_i32 = arith.constant 0 : i32
    %c0_i32_0 = arith.constant 0 : i32
    %c0_i32_1 = arith.constant 0 : i32
    return %c0_i32, %c0_i32_0 : i32, i32
  }
  func.func @transform_4(%arg0: i32) -> (i32, i32) {
    %c0_i32 = arith.constant 0 : i32
    %c0_i32_0 = arith.constant 0 : i32
    %c0_i32_1 = arith.constant 0 : i32
    return %c0_i32, %c0_i32_0 : i32, i32
  }
  func.func @transform_5(%arg0: i32) -> (i32, i32) {
    %c0_i32 = arith.constant 0 : i32
    %c0_i32_0 = arith.constant 0 : i32
    %c0_i32_1 = arith.constant 0 : i32
    return %c0_i32, %c0_i32_0 : i32, i32
  }
  func.func @transform_6(%arg0: i32) -> (i32, i32, i32) {
    %c0_i32 = arith.constant 0 : i32
    %c0_i32_0 = arith.constant 0 : i32
    %c0_i32_1 = arith.constant 0 : i32
    %c0_i32_2 = arith.constant 0 : i32
    return %c0_i32, %c0_i32_0, %c0_i32_1 : i32, i32, i32
  }
  func.func @transform_7(%arg0: i32) -> (i32, i32) {
    %c0_i32 = arith.constant 0 : i32
    %c0_i32_0 = arith.constant 0 : i32
    %c0_i32_1 = arith.constant 0 : i32
    return %c0_i32, %c0_i32_0 : i32, i32
  }
  func.func @transform_8(%arg0: i32) -> (i32, i32) {
    %c0_i32 = arith.constant 0 : i32
    %c0_i32_0 = arith.constant 0 : i32
    %c0_i32_1 = arith.constant 0 : i32
    return %c0_i32, %c0_i32_0 : i32, i32
  }
  func.func @transform_9(%arg0: i32) -> (i32, i32) {
    %c0_i32 = arith.constant 0 : i32
    %c0_i32_0 = arith.constant 0 : i32
    %c0_i32_1 = arith.constant 0 : i32
    return %c0_i32, %c0_i32_0 : i32, i32
  }
  func.func @transform_10(%arg0: i32) -> (i32, i32) {
    %c0_i32 = arith.constant 0 : i32
    %c0_i32_0 = arith.constant 0 : i32
    %c0_i32_1 = arith.constant 0 : i32
    return %c0_i32, %c0_i32_0 : i32, i32
  }
  func.func @transform_11(%arg0: i32) -> (i32, i32) {
    %c0_i32 = arith.constant 0 : i32
    %c0_i32_0 = arith.constant 0 : i32
    %c0_i32_1 = arith.constant 0 : i32
    return %c0_i32, %c0_i32_0 : i32, i32
  }
  func.func @transform_12(%arg0: i32) -> (i32, i32, i32) {
    %c0_i32 = arith.constant 0 : i32
    %c0_i32_0 = arith.constant 0 : i32
    %c0_i32_1 = arith.constant 0 : i32
    %c0_i32_2 = arith.constant 0 : i32
    return %c0_i32, %c0_i32_0, %c0_i32_1 : i32, i32, i32
  }
  func.func @transform_13(%arg0: i32) -> (i32, i32) {
    %c0_i32 = arith.constant 0 : i32
    %c0_i32_0 = arith.constant 0 : i32
    %c0_i32_1 = arith.constant 0 : i32
    return %c0_i32, %c0_i32_0 : i32, i32
  }
  func.func @transform_14(%arg0: i32) -> (i32, i32) {
    %c0_i32 = arith.constant 0 : i32
    %c0_i32_0 = arith.constant 0 : i32
    %c0_i32_1 = arith.constant 0 : i32
    return %c0_i32, %c0_i32_0 : i32, i32
  }
  func.func @transform_15(%arg0: i32) -> (i32, i32) {
    %c0_i32 = arith.constant 0 : i32
    %c0_i32_0 = arith.constant 0 : i32
    %c0_i32_1 = arith.constant 0 : i32
    return %c0_i32, %c0_i32_0 : i32, i32
  }
  func.func @transform_16(%arg0: i32) -> (i32, i32, i32) {
    %c0_i32 = arith.constant 0 : i32
    %c0_i32_0 = arith.constant 0 : i32
    %c0_i32_1 = arith.constant 0 : i32
    return %arg0, %c0_i32, %c0_i32_0 : i32, i32, i32
  }
  func.func @transform_17(%arg0: i32) -> (i32, i32) {
    %c0_i32 = arith.constant 0 : i32
    %c0_i32_0 = arith.constant 0 : i32
    %c0_i32_1 = arith.constant 0 : i32
    return %c0_i32, %c0_i32_0 : i32, i32
  }
  func.func @transform_18(%arg0: i32) -> (i32, i32) {
    %c0_i32 = arith.constant 0 : i32
    %c0_i32_0 = arith.constant 0 : i32
    %c0_i32_1 = arith.constant 0 : i32
    return %c0_i32, %c0_i32_0 : i32, i32
  }
  func.func @transform_19(%arg0: i32) -> (i32, i32) {
    %c0_i32 = arith.constant 0 : i32
    %c0_i32_0 = arith.constant 0 : i32
    %c0_i32_1 = arith.constant 0 : i32
    return %c0_i32, %c0_i32_0 : i32, i32
  }
  func.func @transform_20(%arg0: i32) -> (i32, i32) {
    %c0_i32 = arith.constant 0 : i32
    %c0_i32_0 = arith.constant 0 : i32
    %c0_i32_1 = arith.constant 0 : i32
    return %c0_i32, %c0_i32_0 : i32, i32
  }
  func.func @transform_21(%arg0: i32) -> (i32, i32) {
    %c0_i32 = arith.constant 0 : i32
    %c0_i32_0 = arith.constant 0 : i32
    %c0_i32_1 = arith.constant 0 : i32
    return %c0_i32, %c0_i32_0 : i32, i32
  }
  func.func @transform_22(%arg0: i32) -> (i32, i32) {
    %c0_i32 = arith.constant 0 : i32
    %c0_i32_0 = arith.constant 0 : i32
    %c0_i32_1 = arith.constant 0 : i32
    return %c0_i32, %c0_i32_0 : i32, i32
  }
  func.func @transform_23(%arg0: i32) -> (i32, i32) {
    %c0_i32 = arith.constant 0 : i32
    %c0_i32_0 = arith.constant 0 : i32
    %c0_i32_1 = arith.constant 0 : i32
    return %c0_i32, %c0_i32_0 : i32, i32
  }
  func.func @transform_24(%arg0: i32) -> (i32, i32) {
    %c0_i32 = arith.constant 0 : i32
    %c0_i32_0 = arith.constant 0 : i32
    %c0_i32_1 = arith.constant 0 : i32
    return %c0_i32, %c0_i32_0 : i32, i32
  }
  func.func @transform_25(%arg0: i32) -> (i32, i32) {
    %c0_i32 = arith.constant 0 : i32
    %c0_i32_0 = arith.constant 0 : i32
    %c0_i32_1 = arith.constant 0 : i32
    return %c0_i32, %c0_i32_0 : i32, i32
  }
  func.func @transform_26(%arg0: i32) -> (i32, i32) {
    %c0_i32 = arith.constant 0 : i32
    %c0_i32_0 = arith.constant 0 : i32
    %c0_i32_1 = arith.constant 0 : i32
    return %c0_i32, %c0_i32_0 : i32, i32
  }
  func.func @transform_27(%arg0: i32) -> (i32, i32, i32) {
    %c0_i32 = arith.constant 0 : i32
    %c0_i32_0 = arith.constant 0 : i32
    %c0_i32_1 = arith.constant 0 : i32
    return %arg0, %c0_i32, %c0_i32_0 : i32, i32, i32
  }
}

</mosaic_0001>

<bundles_post_ra>
// kernel: down_block_apply.1
= control target key start
LH: loop header
LB: loop body
LE: loop exit
PB: predicated region body
PF: predicated region fallthrough
CT: control target
= control target key end

     0   :  { %s23025_s0 = inlined_call_operand.vmem [shape: f32[2,256,128], index: 0, kind: input, shape index: {}]   ;;  %s23026_s1 = inlined_call_operand.vmem [shape: f32[2,1,128], index: 1, kind: input, shape index: {}]   ;;  %s23027_s2 = inlined_call_operand.vmem [shape: f32[1,128], index: 2, kind: input, shape index: {}]   ;;  %s23028_s3 = inlined_call_operand.vmem [shape: f32[1,128], index: 3, kind: input, shape index: {}]   ;;  %s23029_s4 = inlined_call_operand.vmem [shape: f32[128,4], index: 4, kind: input, shape index: {}]   ;;  %s23030_s5 = inlined_call_operand.vmem [shape: f32[4,128], index: 5, kind: input, shape index: {}]   ;;  %s23031_s6 = inlined_call_operand.vmem [shape: f32[9,128,128], index: 6, kind: input, shape index: {}]   ;;  %s23032_s7 = inlined_call_operand.vmem [shape: f32[1,128], index: 7, kind: input, shape index: {}]   ;;  %s23033_s8 = inlined_call_operand.vmem [shape: f32[1,128], index: 8, kind: input, shape index: {}]   ;;  %s23034_s9 = inlined_call_operand.vmem [shape: f32[1,128], index: 9, kind: input, shape index: {}]   ;;  %s23035_s10 = inlined_call_operand.vmem [shape: f32[128,4], index: 10, kind: input, shape index: {}]   ;;  %s23036_s11 = inlined_call_operand.vmem [shape: f32[4,128], index: 11, kind: input, shape index: {}]   ;;  %s23037_s12 = inlined_call_operand.vmem [shape: f32[9,128,128], index: 12, kind: input, shape index: {}]   ;;  %s23038_s13 = inlined_call_operand.vmem [shape: f32[1,128], index: 13, kind: input, shape index: {}]   ;;  %s23039_s14 = inlined_call_operand.vmem [shape: f32[128,128], index: 14, kind: input, shape index: {}]   ;;  %s23040_s15 = inlined_call_operand.vmem [shape: f32[1,128], index: 15, kind: input, shape index: {}]   ;;  %s23041_s16 = inlined_call_operand.vmem [shape: f32[2,256,128], index: 16, kind: input, shape index: {}]   ;;  %s23042_s17 = inlined_call_operand.vmem [shape: f32[128,128], index: 17, kind: input, shape index: {}]   ;;  %s23043_s18 = inlined_call_operand.vmem [shape: f32[1,128], index: 18, kind: input, shape index: {}]   ;;  %s23044_s19 = inlined_call_operand.vmem [shape: f32[128,128], index: 19, kind: input, shape index: {}]   ;;  %s23045_s20 = inlined_call_operand.vmem [shape: f32[1,128], index: 20, kind: input, shape index: {}]   ;;  %s23046_s21 = inlined_call_operand.vmem [shape: f32[128,128], index: 21, kind: input, shape index: {}]   ;;  %s23047_s22 = inlined_call_operand.vmem [shape: f32[1,128], index: 22, kind: input, shape index: {}]   ;;  %s23048_s23 = inlined_call_operand.vmem [shape: f32[128,128], index: 23, kind: input, shape index: {}]   ;;  %s23049_s24 = inlined_call_operand.vmem [shape: f32[1,128], index: 24, kind: input, shape index: {}]   ;;  %s23050_s25 = inlined_call_operand.vmem [shape: f32[128,128], index: 25, kind: input, shape index: {}]   ;;  %s23051_s26 = inlined_call_operand.vmem [shape: f32[1,128], index: 26, kind: input, shape index: {}]   ;;  %s23052_s27 = inlined_call_operand.vmem [shape: f32[2,256,128], index: 27, kind: output, shape index: {}]  }
   0x1   :  { %23237 = sst [smem:[#allocation67_spill]] %s23025_s0 }
   0x2   :  { %23238 = sst [smem:[#allocation68_spill]] %s23026_s1 }
   0x3   :  { %23239 = sst [smem:[#allocation69_spill]] %s23027_s2 }
   0x4   :  { %23240 = sst [smem:[#allocation70_spill]] %s23028_s3 }
   0x5   :  { %23241 = sst [smem:[#allocation71_spill]] %s23029_s4 }
   0x6   :  { %23242 = sst [smem:[#allocation72_spill]] %s23030_s5 }
   0x7   :  { %23243 = sst [smem:[#allocation73_spill]] %s23031_s6 }
   0x8   :  { %23244 = sst [smem:[#allocation74_spill]] %s23032_s7  ;;  %s18184_s7 = smov 0  }
   0x9   :  { %23245 = sst [smem:[#allocation75_spill]] %s23033_s8 }
   0xa   :  { %23246 = sst [smem:[#allocation76_spill]] %s23034_s9 }
   0xb   :  { %23247 = sst [smem:[#allocation77_spill]] %s23035_s10 }
   0xc   :  { %23248 = sst [smem:[#allocation78_spill]] %s23036_s11 }
   0xd LB: > { %s12077_s4 = sadd.s32 4294967295, %s18039_s7   ;;  %p12081_p0 = scmp.ge.s32.totalorder %s18039_s7, 1  ;;  %s18039_s7 = sphi %s18184_s7, %s37_s7  }
   0xe   : > { %p755_p1 = scmp.lt.s32.totalorder %s18039_s7, 3 }
  0x10   : > { %p756_p2 = pnand %p12081_p0, %p755_p1 }
  0x12   : > { %759 = sbr.rel (%p756_p2) target bundleno = 4107 (0x100b), region = 128 }
  0x19   : > { %s23249_s9 = sld [smem:[#allocation71_spill]]  ;;  %v23056_v3 = vmov 0.0|0.0   ;;  %v18042_v6 = vmov 0.0   ;;  %p835_p3 = scmp.lt.s32.totalorder %s12077_s4, 1  ;;  %vm18043_vm0 = vmmov 0   ;;  %vm1771_vm1 = vcmask 1043456  }
  0x1a   : > { %15870 = vmatprep.subr.bf16.mxu0 %v23056_v3  ;;  %15894 = vmatprep.subr.bf16.mxu1 %v23056_v3  ;;  %2290 = vst [vmem:[#allocation2] sm:$0xff] %v18042_v6  ;;  %2291 = vst [vmem:[#allocation2 + $0x8] sm:$0xff] %v18042_v6  ;;  %s23250_s28 = sld [smem:[#allocation67_spill]]  ;;  %s23251_s1 = sld [smem:[#allocation72_spill]]  ;;  %vm1767_vm2 = vcmask 31744  }
  0x1b   : > { %2292 = vst [vmem:[#allocation2 + $0x10] sm:$0x1] %v18042_v6  ;;  %2293 = vst [vmem:[#allocation2 + $0x111] sm:$0xff] %v18042_v6  ;;  %13822 = vmatprep.mubr.msk.f32.mxu0 %vm18043_vm0, %v18042_v6  ;;  %13857 = vmatprep.mubr.msk.f32.mxu1 %vm18043_vm0, %v18042_v6  ;;  %s23584_s4 = smov (!%p835_p3, %s12077_s4), 1  ;;  %s23252_s2 = sld [smem:[#allocation73_spill]] }
  0x1c   : > { %2294 = vst [vmem:[#allocation2 + $0x119] sm:$0xff] %v18042_v6  ;;  %2295 = vst [vmem:[#allocation2 + $0x121] sm:$0x1] %v18042_v6  ;;  %s18237_s8 = sshll.u32 %s23584_s4, 8  ;;  %s23254_s29 = sld [smem:[#allocation69_spill]] }
  0x1d   : > { %6081 = vst [vmem:[#allocation3] sm:$0xff] %v18042_v6  ;;  %6082 = vst [vmem:[#allocation3 + $0x8] sm:$0xff] %v18042_v6  ;;  %s23255_s11 = sld [smem:[#allocation70_spill]]  ;;  %s23369_s6 = sld [smem:[#allocation68_spill]] }
  0x1e   : > { %6083 = vst [vmem:[#allocation3 + $0x10] sm:$0x1] %v18042_v6  ;;  %6084 = vst [vmem:[#allocation3 + $0x111] sm:$0xff] %v18042_v6  ;;  %s23371_s5 = sld [smem:[#allocation78_spill]]  ;;  %s23373_s30 = sld [smem:[#allocation75_spill]] }
  0x1f   : > { %v1496_v0 = vld [vmem:[%s23249_s9] sm:$0xff]  ;;  %v1497_v1 = vld [vmem:[%s23249_s9 + $0x8] sm:$0xff]  ;;  %v1498_v2 = vld [vmem:[%s23249_s9 + $0x10] sm:$0xff]  ;;  %6085 = vst [vmem:[#allocation3 + $0x119] sm:$0xff] %v18042_v6 }
  0x20   : > { %v15871_v4 = vpack.c.bf16 %v1497_v1, %v1496_v0  ;;  %v1499_v5 = vld [vmem:[%s23249_s9 + $0x18] sm:$0xff]  ;;  %6086 = vst [vmem:[#allocation3 + $0x121] sm:$0x1] %v18042_v6  ;;  %v1500_v8 = vld [vmem:[%s23249_s9 + $0x20] sm:$0xff]  ;;  %v1501_v9 = vld [vmem:[%s23249_s9 + $0x28] sm:$0xff]  ;;  %s18243_s0 = scalar_lea.vmem %s23250_s28, %s18237_s8 }
  0x21   : > { %v15874_v7 = vpack.c.bf16 %v1499_v5, %v1498_v2  ;;  %v15877_v10 = vpack.c.bf16 %v1501_v9, %v1500_v8  ;;  %v18246_v11 = vld [vmem:[%s18243_s0] sm:$0xff]  ;;  %v18249_v12 = vld [vmem:[%s18243_s0 + $0x8] sm:$0xff]  ;;  %v18252_v13 = vld [vmem:[%s18243_s0 + $0x10] sm:$0xff] }
  0x22   : > { %15872 = vmatpush3.bf16.msra.mxu0 %v15871_v4  ;;  %15896 = vmatpush3.bf16.msra.mxu1 %v15871_v4  ;;  %v1502_v14 = vld [vmem:[%s23249_s9 + $0x30] sm:$0xff]  ;;  %v1503_v15 = vld [vmem:[%s23249_s9 + $0x38] sm:$0xff]  ;;  %v1513_v16 = vadd.f32 %v18249_v12, %v18246_v11  ;;  %v18269_v20 = vld [vmem:[%s18243_s0 + $0x20] sm:$0xff]  ;;  %v1550_v26 = vmul.f32 %v18246_v11, %v18246_v11  ;;  %v1551_v27 = vmul.f32 %v18249_v12, %v18249_v12 }
  0x23   : > { %15873 = vmatprep.subr.bf16.mxu0 %v23056_v3  ;;  %15897 = vmatprep.subr.bf16.mxu1 %v23056_v3  ;;  %v18265_v17 = vld [vmem:[%s18243_s0 + $0x18] sm:$0xff]  ;;  %v15880_v19 = vpack.c.bf16 %v1503_v15, %v1502_v14  ;;  %v1504_v21 = vld [vmem:[%s23249_s9 + $0x40] sm:$0xff]  ;;  %v1505_v22 = vld [vmem:[%s23249_s9 + $0x48] sm:$0xff]  ;;  %v1552_v33 = vmul.f32 %v18252_v13, %v18252_v13  ;;  %v1554_v43 = vmul.f32 %v18269_v20, %v18269_v20 }
  0x24   : > { %v1514_v18 = vadd.f32 %v1513_v16, %v18252_v13  ;;  %v18281_v24 = vld [vmem:[%s18243_s0 + $0x28] sm:$0xff]  ;;  %v15883_v28 = vpack.c.bf16 %v1505_v22, %v1504_v21  ;;  %v18289_v29 = vld [vmem:[%s18243_s0 + $0x30] sm:$0xff]  ;;  %v1507_v31 = vld [vmem:[%s23249_s9 + $0x58] sm:$0xff]  ;;  %v1553_v36 = vmul.f32 %v18265_v17, %v18265_v17  ;;  %v1582_v37 = vadd.f32 %v1551_v27, %v1550_v26 }
  0x25   : > { %v1506_v30 = vld [vmem:[%s23249_s9 + $0x50] sm:$0xff]  ;;  %v18303_v34 = vld [vmem:[%s18243_s0 + $0x38] sm:$0xff]  ;;  %v18309_v39 = vld [vmem:[%s18243_s0 + $0x40] sm:$0xff]  ;;  %v1555_v47 = vmul.f32 %v18281_v24, %v18281_v24  ;;  %v1556_v54 = vmul.f32 %v18289_v29, %v18289_v29 }
  0x26   : > { %15875 = vmatpush3.bf16.msra.mxu0 %v15874_v7  ;;  %15899 = vmatpush3.bf16.msra.mxu1 %v15874_v7  ;;  %v1515_v23 = vadd.f32 %v1514_v18, %v18265_v17  ;;  %v15886_v38 = vpack.c.bf16 %v1507_v31, %v1506_v30  ;;  %v1508_v40 = vld [vmem:[%s23249_s9 + $0x60] sm:$0xff]  ;;  %v1509_v41 = vld [vmem:[%s23249_s9 + $0x68] sm:$0xff]  ;;  %v1583_v44 = vadd.f32 %v1582_v37, %v1552_v33  ;;  %v18329_v50 = vld [vmem:[%s18243_s0 + $0x50] sm:$0xff] }
  0x27   : > { %15876 = vmatprep.subr.bf16.mxu0 %v23056_v3  ;;  %15900 = vmatprep.subr.bf16.mxu1 %v23056_v3  ;;  %v18323_v45 = vld [vmem:[%s18243_s0 + $0x48] sm:$0xff]  ;;  %v15889_v49 = vpack.c.bf16 %v1509_v41, %v1508_v40  ;;  %v1510_v51 = vld [vmem:[%s23249_s9 + $0x70] sm:$0xff]  ;;  %v1511_v52 = vld [vmem:[%s23249_s9 + $0x78] sm:$0xff]  ;;  %v1557_v58 = vmul.f32 %v18303_v34, %v18303_v34  ;;  %v1558_v63 = vmul.f32 %v18309_v39, %v18309_v39 }
  0x28   : > { %v1516_v25 = vadd.f32 %v1515_v23, %v18269_v20  ;;  %v1584_v48 = vadd.f32 %v1583_v44, %v1553_v36  ;;  %v18343_v56 = vld [vmem:[%s18243_s0 + $0x58] sm:$0xff]  ;;  %v15892_v60 = vpack.c.bf16 %v1511_v52, %v1510_v51  ;;  %v18349_v61 = vld [vmem:[%s18243_s0 + $0x60] sm:$0xff]  ;;  %v18357_v1 = vld [vmem:[%s18243_s0 + $0x68] sm:$0xff]  ;;  %v1559_v4 = vmul.f32 %v18323_v45, %v18323_v45 }
  0x29   : > { %v18363_v7 = vld [vmem:[%s18243_s0 + $0x70] sm:$0xff]  ;;  %v1560_v9 = vmul.f32 %v18329_v50, %v18329_v50  ;;  %v18371_v14 = vld [vmem:[%s18243_s0 + $0x78] sm:$0xff]  ;;  %v1561_v16 = vmul.f32 %v18343_v56, %v18343_v56  ;;  %v1562_v22 = vmul.f32 %v18349_v61, %v18349_v61  ;;  %v1563_v27 = vmul.f32 %v18357_v1, %v18357_v1  ;;  %v18401_v40 = vld [vmem:[%s18243_s0 + $0xa0] sm:$0xff] }
  0x2a   : > { %15878 = vmatpush3.bf16.msra.mxu0 %v15877_v10  ;;  %15902 = vmatpush3.bf16.msra.mxu1 %v15877_v10  ;;  %v1517_v32 = vadd.f32 %v1516_v25, %v18281_v24  ;;  %v1585_v55 = vadd.f32 %v1584_v48, %v1554_v43  ;;  %v18383_v25 = vld [vmem:[%s18243_s0 + $0x88] sm:$0xff]  ;;  %v18389_v30 = vld [vmem:[%s18243_s0 + $0x90] sm:$0xff]  ;;  %v1565_v37 = vmul.f32 %v18371_v14, %v18371_v14 }
  0x2b   : > { %15879 = vmatprep.subr.bf16.mxu0 %v23056_v3  ;;  %15903 = vmatprep.subr.bf16.mxu1 %v23056_v3  ;;  %v18407_v44 = vld [vmem:[%s18243_s0 + $0xa8] sm:$0xff]  ;;  %v1568_v52 = vmul.f32 %v18389_v30, %v18389_v30 }
  0x2c   : > { %v1518_v35 = vadd.f32 %v1517_v32, %v18289_v29  ;;  %v1586_v59 = vadd.f32 %v1585_v55, %v1555_v47  ;;  %v1564_v32 = vmul.f32 %v18363_v7, %v18363_v7  ;;  %v1567_v47 = vmul.f32 %v18383_v25, %v18383_v25 }
  0x2e   : > { %15881 = vmatpush3.bf16.msra.mxu0 %v15880_v19  ;;  %15905 = vmatpush3.bf16.msra.mxu1 %v15880_v19  ;;  %v1519_v42 = vadd.f32 %v1518_v35, %v18303_v34  ;;  %v1587_v0 = vadd.f32 %v1586_v59, %v1556_v54  ;;  %v18377_v19 = vld [vmem:[%s18243_s0 + $0x80] sm:$0xff]  ;;  %v18395_v35 = vld [vmem:[%s18243_s0 + $0x98] sm:$0xff] }
  0x2f   : > { %15882 = vmatprep.subr.bf16.mxu0 %v23056_v3  ;;  %15906 = vmatprep.subr.bf16.mxu1 %v23056_v3  ;;  %v18419_v54 = vld [vmem:[%s18243_s0 + $0xb8] sm:$0xff]  ;;  %v18425_v59 = vld [vmem:[%s18243_s0 + $0xc0] sm:$0xff] }
  0x30   : > { %v1520_v46 = vadd.f32 %v1519_v42, %v18309_v39  ;;  %v1588_v5 = vadd.f32 %v1587_v0, %v1557_v58  ;;  %v1566_v42 = vmul.f32 %v18377_v19, %v18377_v19  ;;  %v18431_v0 = vld [vmem:[%s18243_s0 + $0xc8] sm:$0xff] }
  0x32   : > { %15884 = vmatpush3.bf16.msra.mxu0 %v15883_v28  ;;  %15908 = vmatpush3.bf16.msra.mxu1 %v15883_v28  ;;  %v1521_v53 = vadd.f32 %v1520_v46, %v18323_v45  ;;  %v1589_v10 = vadd.f32 %v1588_v5, %v1558_v63 }
  0x33   : > { %15885 = vmatprep.subr.bf16.mxu0 %v23056_v3  ;;  %15909 = vmatprep.subr.bf16.mxu1 %v23056_v3 }
  0x34   : > { %v1522_v57 = vadd.f32 %v1521_v53, %v18329_v50  ;;  %v1590_v18 = vadd.f32 %v1589_v10, %v1559_v4  ;;  %v1571_v4 = vmul.f32 %v18407_v44, %v18407_v44 }
  0x36   : > { %15887 = vmatpush3.bf16.msra.mxu0 %v15886_v38  ;;  %15911 = vmatpush3.bf16.msra.mxu1 %v15886_v38  ;;  %v1523_v62 = vadd.f32 %v1522_v57, %v18343_v56  ;;  %v1591_v23 = vadd.f32 %v1590_v18, %v1560_v9  ;;  %v1569_v57 = vmul.f32 %v18395_v35, %v18395_v35 }
  0x37   : > { %15888 = vmatprep.subr.bf16.mxu0 %v23056_v3  ;;  %15912 = vmatprep.subr.bf16.mxu1 %v23056_v3 }
  0x38   : > { %v1524_v2 = vadd.f32 %v1523_v62, %v18349_v61  ;;  %v1592_v28 = vadd.f32 %v1591_v23, %v1561_v16  ;;  %v1570_v62 = vmul.f32 %v18401_v40, %v18401_v40  ;;  %v18443_v16 = vld [vmem:[%s18243_s0 + $0xd8] sm:$0xff]  ;;  %v18449_v23 = vld [vmem:[%s18243_s0 + $0xe0] sm:$0xff] }
  0x3a   : > { %15890 = vmatpush3.bf16.msra.mxu0 %v15889_v49  ;;  %15914 = vmatpush3.bf16.msra.mxu1 %v15889_v49  ;;  %v1525_v8 = vadd.f32 %v1524_v2, %v18357_v1  ;;  %v1593_v33 = vadd.f32 %v1592_v28, %v1562_v22  ;;  %v18413_v49 = vld [vmem:[%s18243_s0 + $0xb0] sm:$0xff] }
  0x3b   : > { %15891 = vmatprep.subr.bf16.mxu0 %v23056_v3  ;;  %15915 = vmatprep.subr.bf16.mxu1 %v23056_v3  ;;  %v1572_v10 = vmul.f32 %v18413_v49, %v18413_v49 }
  0x3c   : > { %v1526_v15 = vadd.f32 %v1525_v8, %v18363_v7  ;;  %v1594_v38 = vadd.f32 %v1593_v33, %v1563_v27  ;;  %v18437_v8 = vld [vmem:[%s18243_s0 + $0xd0] sm:$0xff]  ;;  %v1574_v27 = vmul.f32 %v18425_v59, %v18425_v59  ;;  %v1575_v33 = vmul.f32 %v18431_v0, %v18431_v0 }
  0x3e   : > { %15893 = vmatpush3.bf16.msra.mxu0 %v15892_v60  ;;  %15917 = vmatpush3.bf16.msra.mxu1 %v15892_v60  ;;  %v1527_v21 = vadd.f32 %v1526_v15, %v18371_v14  ;;  %v1595_v43 = vadd.f32 %v1594_v38, %v1564_v32 }
  0x3f   : > { %13860 = vmatprep.subr.mxu0 %v18042_v6  ;;  %13865 = vmatprep.subr.mxu1 %v18042_v6 }
  0x40   : > { %v1528_v26 = vadd.f32 %v1527_v21, %v18377_v19  ;;  %v1596_v48 = vadd.f32 %v1595_v43, %v1565_v37  ;;  %v1573_v21 = vmul.f32 %v18419_v54, %v18419_v54  ;;  %v18461_v37 = vld [vmem:[%s18243_s0 + $0xf0] sm:$0xff]  ;;  %v18467_v43 = vld [vmem:[%s18243_s0 + $0xf8] sm:$0xff] }
  0x42   : > { %v1529_v31 = vadd.f32 %v1528_v26, %v18383_v25  ;;  %v1597_v53 = vadd.f32 %v1596_v48, %v1566_v42 }
  0x44   : > { %v1530_v36 = vadd.f32 %v1529_v31, %v18389_v30  ;;  %v1598_v58 = vadd.f32 %v1597_v53, %v1567_v47  ;;  %v18455_v31 = vld [vmem:[%s18243_s0 + $0xe8] sm:$0xff]  ;;  %v1577_v47 = vmul.f32 %v18443_v16, %v18443_v16 }
  0x46   : > { %v1531_v41 = vadd.f32 %v1530_v36, %v18395_v35  ;;  %v1599_v63 = vadd.f32 %v1598_v58, %v1568_v52  ;;  %v1578_v52 = vmul.f32 %v18449_v23, %v18449_v23 }
  0x48   : > { %v1532_v46 = vadd.f32 %v1531_v41, %v18401_v40  ;;  %v1600_v5 = vadd.f32 %v1599_v63, %v1569_v57  ;;  %v1576_v41 = vmul.f32 %v18437_v8, %v18437_v8  ;;  %v1579_v57 = vmul.f32 %v18455_v31, %v18455_v31 }
  0x4a   : > { %v1533_v51 = vadd.f32 %v1532_v46, %v18407_v44  ;;  %v1601_v15 = vadd.f32 %v1600_v5, %v1570_v62  ;;  %v1580_v62 = vmul.f32 %v18461_v37, %v18461_v37 }
  0x4c   : > { %v1534_v55 = vadd.f32 %v1533_v51, %v18413_v49  ;;  %v1602_v22 = vadd.f32 %v1601_v15, %v1571_v4  ;;  %v1581_v4 = vmul.f32 %v18467_v43, %v18467_v43 }
  0x4e   : > { %v1535_v60 = vadd.f32 %v1534_v55, %v18419_v54  ;;  %v1603_v28 = vadd.f32 %v1602_v22, %v1572_v10 }
  0x50   : > { %v1536_v2 = vadd.f32 %v1535_v60, %v18425_v59  ;;  %v1604_v36 = vadd.f32 %v1603_v28, %v1573_v21 }
  0x52   : > { %v1537_v9 = vadd.f32 %v1536_v2, %v18431_v0  ;;  %v1605_v42 = vadd.f32 %v1604_v36, %v1574_v27  ;;  %v1512_v36 = vld [vmem:[%s23251_s1] sm:$0xf]  ;;  %s23367_s1 = sld [smem:[#allocation77_spill]] }
  0x54   : > { %v1538_v18 = vadd.f32 %v1537_v9, %v18437_v8  ;;  %v1606_v48 = vadd.f32 %v1605_v42, %v1575_v33 }
  0x56   : > { %v1539_v26 = vadd.f32 %v1538_v18, %v18443_v16  ;;  %v1607_v53 = vadd.f32 %v1606_v48, %v1576_v41 }
  0x58   : > { %v1540_v32 = vadd.f32 %v1539_v26, %v18449_v23  ;;  %v1608_v58 = vadd.f32 %v1607_v53, %v1577_v47 }
  0x5a   : > { %v1541_v38 = vadd.f32 %v1540_v32, %v18455_v31  ;;  %v1609_v63 = vadd.f32 %v1608_v58, %v1578_v52  ;;  %v12158_v58 = vld [vmem:[%s23252_s2 + $0x80] sm:$0xff] }
  0x5c   : > { %v1542_v46 = vadd.f32 %v1541_v38, %v18461_v37  ;;  %v1610_v5 = vadd.f32 %v1609_v63, %v1579_v57  ;;  %v12160_v63 = vld [vmem:[%s23252_s2 + $0x90] sm:$0xff] }
  0x5e   : > { %v1543_v51 = vadd.f32 %v1542_v46, %v18467_v43  ;;  %v1611_v10 = vadd.f32 %v1610_v5, %v1580_v62  ;;  %v12163_v5 = vld [vmem:[%s23252_s2 + $0xa8] sm:$0xff] }
  0x60   : > { %v1544_v55 = vrot.slane %v1543_v51, 4  ;;  %v1612_v18 = vadd.f32 %v1611_v10, %v1581_v4  ;;  %v12162_v4 = vld [vmem:[%s23252_s2 + $0xa0] sm:$0xff]  ;;  %v12164_v10 = vld [vmem:[%s23252_s2 + $0xb0] sm:$0xff] }
  0x62   : > { %v1545_v60 = vadd.f32 %v1544_v55, %v1543_v51  ;;  %v1613_v22 = vrot.slane %v1612_v18, 4 }
  0x64   : > { %v1546_v2 = vrot.slane %v1545_v60, 2  ;;  %v1614_v26 = vadd.f32 %v1613_v22, %v1612_v18  ;;  %v12167_v22 = vld [vmem:[%s23252_s2 + $0xc8] sm:$0xff] }
  0x66   : > { %v1547_v9 = vadd.f32 %v1546_v2, %v1545_v60  ;;  %v1615_v27 = vrot.slane %v1614_v26, 2  ;;  %v12159_v60 = vld [vmem:[%s23252_s2 + $0x88] sm:$0xff]  ;;  %v12161_v2 = vld [vmem:[%s23252_s2 + $0x98] sm:$0xff] }
  0x67   : > { %v15918_v62 = vpack.c.bf16 %v12159_v60, %v12158_v58  ;;  %v2396_v60 = vld [vmem:[%s23252_s2 + $0x20] sm:$0xff] }
  0x68   : > { %v1548_v15 = vrot.slane %v1547_v9, 1  ;;  %v1616_v28 = vadd.f32 %v1615_v27, %v1614_v26  ;;  %v12168_v27 = vld [vmem:[%s23252_s2 + $0xd0] sm:$0xff] }
  0x6a   : > { %v1549_v21 = vadd.f32 %v1548_v15, %v1547_v9  ;;  %v1617_v32 = vrot.slane %v1616_v28, 1  ;;  %v15926_v9 = vpack.c.bf16 %v12163_v5, %v12162_v4  ;;  %v12165_v15 = vld [vmem:[%s23252_s2 + $0xb8] sm:$0xff]  ;;  %v2400_v5 = vld [vmem:[%s23252_s2 + $0x40] sm:$0xff] }
  0x6b   : > { %v15930_v18 = vpack.c.bf16 %v12165_v15, %v12164_v10  ;;  %v2402_v15 = vld [vmem:[%s23252_s2 + $0x50] sm:$0xff] }
  0x6c   : > { %13823 = vmatmul.mubr.f32.vlgmr.msra.gmra.mrb[0].mxu0 %v1549_v21  ;;  %v1618_v33 = vadd.f32 %v1617_v32, %v1616_v28  ;;  %v12166_v21 = vld [vmem:[%s23252_s2 + $0xc0] sm:$0xff]  ;;  %v12169_v28 = vld [vmem:[%s23252_s2 + $0xd8] sm:$0xff] }
  0x6d   : > { %13862 = vmatprep.mubr.msk.f32.mxu0 %vm18043_vm0, %v18042_v6  ;;  %13861 = vmatpush3.msk.msra.mxu0 %vm1771_vm1, %v1512_v36  ;;  %v15934_v26 = vpack.c.bf16 %v12167_v22, %v12166_v21  ;;  %v15938_v32 = vpack.c.bf16 %v12169_v28, %v12168_v27  ;;  %v2404_v22 = vld [vmem:[%s23252_s2 + $0x60] sm:$0xff] }
  0x6e   : > { %13858 = vmatmul.mubr.f32.vlgmr.msra.gmra.mrb[0].mxu1 %v1618_v33  ;;  %15919 = vmatprep.subr.bf16.mxu0 %v15918_v62  ;;  %v12170_v33 = vld [vmem:[%s23252_s2 + $0xe0] sm:$0xff] }
  0x6f   : > { %13867 = vmatprep.mubr.msk.f32.mxu1 %vm18043_vm0, %v18042_v6  ;;  %13866 = vmatpush3.msk.msra.mxu1 %vm1771_vm1, %v1512_v36  ;;  %v12171_v36 = vld [vmem:[%s23252_s2 + $0xe8] sm:$0xff] }
  0x70   : > { %16206 = vmatprep.subr.bf16.mxu1 %v23056_v3 }
 0x13f   : > { %v1685_v38 = vpop.f32.mrb[0].mxu0 }
 0x140   : > { %v1690_v41 = vmul.f32 0.001953125, %v1685_v38  ;;  %v13824_v42 = vpop.f32.mrb[1].mxu0  ;;  %v15942_v38 = vpack.c.bf16 %v12171_v36, %v12170_v33  ;;  %v853_v33 = vlaneseq  ;;  %v2406_v36 = vld [vmem:[%s23252_s2 + $0x70] sm:$0xff] }
 0x141   : > { %v1757_v47 = vpop.f32.mrb[0].mxu1  ;;  %v12173_v42 = vld [vmem:[%s23252_s2 + $0xf8] sm:$0xff] }
 0x142   : > { %13863 = vmatmul.mubr.msk.f32.vlgmr.msra.gmra.mrb[2].mxu0 %vm1767_vm2, %v1690_v41  ;;  %v1762_v46 = vmul.f32 %v1690_v41, %v1690_v41  ;;  %v1761_v48 = vmul.f32 0.001953125, %v1757_v47  ;;  %v13859_v51 = vpop.f32.mrb[1].mxu1  ;;  %v12172_v41 = vld [vmem:[%s23252_s2 + $0xf0] sm:$0xff]  ;;  %v2408_v47 = vld [vmem:[#allocation2 + $0x1] sm:$0xff] }
 0x143   : > { %15921 = vmatpush3.bf16.msra.mxu0 %v15918_v62  ;;  %13902 = vmatprep.mubr.f32.mxu0 %v2408_v47  ;;  %v2392_v51 = vld [vmem:[%s23252_s2] sm:$0xff]  ;;  %v2397_v62 = vld [vmem:[%s23252_s2 + $0x28] sm:$0xff] }
 0x144   : > { %v1763_v52 = vsub.f32 %v1761_v48, %v1762_v46  ;;  %v15946_v46 = vpack.c.bf16 %v12173_v42, %v12172_v41  ;;  %v2409_v48 = vld [vmem:[#allocation2 + $0x9] sm:$0xff]  ;;  %v18591_v41 = vshrl.u32 %v853_v33, 7  ;;  %v18687_v33 = vld [vmem:[%s23255_s11] ss:$0 sm:$0xff]  ;;  %s842_s11 = scalar_lea.vmem %s23369_s6, %s23584_s4 }
 0x145   : > { %v12175_v47 = vld [vmem:[%s23252_s2 + $0x108] sm:$0xff] }
 0x146   : > { %v1764_v53 = vmax.f32 %v1763_v52, 0.0  ;;  %v2393_v52 = vld [vmem:[%s23252_s2 + $0x8] sm:$0xff] }
 0x148   : > { %v1765_v55 = vadd.f32 1e-05, %v1764_v53  ;;  %v15950_v53 = vpack.c.bf16 %v2393_v52, %v2392_v51  ;;  %v18602_v51 = vsub.s32 0, %v18591_v41 }
 0x14a   : > { %17481 = vrsqrt.f32 %v1765_v55  ;;  %v2394_v55 = vld [vmem:[%s23252_s2 + $0x10] sm:$0xff]  ;;  %23253 = vst [vmem:[#allocation6_spill] sm:$0xff] %v18602_v51 }
 0x154   : > { %v17482_v57 = vpop.eup %17481 }
 0x155   : > { %13868 = vmatmul.mubr.msk.f32.vlgmr.msra.gmra.mrb[2].mxu1 %vm1767_vm2, %v17482_v57  ;;  %v2395_v57 = vld [vmem:[%s23252_s2 + $0x18] sm:$0xff] }
 0x156   : > { %14622 = vmatprep.mubr.msk.f32.mxu1 %vm18043_vm0, %v18042_v6  ;;  %v15922_v6 = vpack.c.bf16 %v12161_v2, %v12160_v63  ;;  %v15954_v58 = vpack.c.bf16 %v2395_v57, %v2394_v55  ;;  %v15958_v63 = vpack.c.bf16 %v2397_v62, %v2396_v60  ;;  %v2398_v2 = vld [vmem:[%s23252_s2 + $0x30] sm:$0xff] }
 0x158   : > { %15923 = vmatprep.subr.bf16.mxu0 %v15922_v6 }
 0x159   : > { %15925 = vmatpush3.bf16.msra.mxu0 %v15922_v6  ;;  %v2399_v6 = vld [vmem:[%s23252_s2 + $0x38] sm:$0xff] }
 0x15a   : > { %15927 = vmatprep.subr.bf16.mxu0 %v15926_v9  ;;  %v15962_v4 = vpack.c.bf16 %v2399_v6, %v2398_v2 }
 0x15d   : > { %15929 = vmatpush3.bf16.msra.mxu0 %v15926_v9  ;;  %v2401_v9 = vld [vmem:[%s23252_s2 + $0x48] sm:$0xff] }
 0x15e   : > { %15931 = vmatprep.subr.bf16.mxu0 %v15930_v18  ;;  %v15966_v10 = vpack.c.bf16 %v2401_v9, %v2400_v5 }
 0x161   : > { %15933 = vmatpush3.bf16.msra.mxu0 %v15930_v18  ;;  %v2403_v18 = vld [vmem:[%s23252_s2 + $0x58] sm:$0xff] }
 0x162   : > { %15935 = vmatprep.subr.bf16.mxu0 %v15934_v26  ;;  %v15970_v21 = vpack.c.bf16 %v2403_v18, %v2402_v15 }
 0x165   : > { %15937 = vmatpush3.bf16.msra.mxu0 %v15934_v26  ;;  %v2405_v26 = vld [vmem:[%s23252_s2 + $0x68] sm:$0xff] }
 0x166   : > { %15939 = vmatprep.subr.bf16.mxu0 %v15938_v32  ;;  %v15974_v27 = vpack.c.bf16 %v2405_v26, %v2404_v22 }
 0x169   : > { %15941 = vmatpush3.bf16.msra.mxu0 %v15938_v32 }
 0x16a   : > { %15943 = vmatprep.subr.bf16.mxu0 %v15942_v38 }
 0x16d   : > { %15945 = vmatpush3.bf16.msra.mxu0 %v15942_v38  ;;  %v2407_v38 = vld [vmem:[%s23252_s2 + $0x78] sm:$0xff] }
 0x16e   : > { %15947 = vmatprep.subr.bf16.mxu0 %v15946_v46  ;;  %v15978_v42 = vpack.c.bf16 %v2407_v38, %v2406_v36 }
 0x171   : > { %15949 = vmatpush3.bf16.msra.mxu0 %v15946_v46  ;;  %v12174_v46 = vld [vmem:[%s23252_s2 + $0x100] sm:$0xff] }
 0x172   : > { %15951 = vmatprep.subr.bf16.mxu0 %v15950_v53 }
 0x174   : > { %13903 = vmatmul.mubr.f32.vlgmr.msra.gmra.mrb[4].mxu0 %v2409_v48  ;;  %v18599_v48 = vpack.c.bf16 %v12175_v47, %v12174_v46 }
 0x175   : > { %15953 = vmatpush3.bf16.msra.mxu0 %v15950_v53 }
 0x176   : > { %15955 = vmatprep.subr.bf16.mxu0 %v15954_v58 }
 0x179   : > { %15957 = vmatpush3.bf16.msra.mxu0 %v15954_v58 }
 0x17a   : > { %15959 = vmatprep.subr.bf16.mxu0 %v15958_v63 }
 0x17d   : > { %15961 = vmatpush3.bf16.msra.mxu0 %v15958_v63 }
 0x17e   : > { %15963 = vmatprep.subr.bf16.mxu0 %v15962_v4 }
 0x181   : > { %15965 = vmatpush3.bf16.msra.mxu0 %v15962_v4 }
 0x182   : > { %15967 = vmatprep.subr.bf16.mxu0 %v15966_v10 }
 0x185   : > { %15969 = vmatpush3.bf16.msra.mxu0 %v15966_v10  ;;  %v18666_v10 = vld [vmem:[%s23254_s29] ss:$0 sm:$0xff]  ;;  %s21745_s29 = scalar_lea.vmem %s23041_s16, %s18237_s8 }
 0x186   : > { %15971 = vmatprep.subr.bf16.mxu0 %v15970_v21 }
 0x189   : > { %15973 = vmatpush3.bf16.msra.mxu0 %v15970_v21 }
 0x18a   : > { %15975 = vmatprep.subr.bf16.mxu0 %v15974_v27 }
 0x18d   : > { %15977 = vmatpush3.bf16.msra.mxu0 %v15974_v27 }
 0x18e   : > { %15979 = vmatprep.subr.bf16.mxu0 %v15978_v42 }
 0x191   : > { %15981 = vmatpush3.bf16.msra.mxu0 %v15978_v42 }
 0x192   : > { %15983 = vmatprep.subr.bf16.mxu0 %v18599_v48 }
 0x215   : > { %v1841_v28 = vpop.f32.mrb[2].mxu0 }
 0x216   : > { %v13864_v32 = vpop.f32.mrb[3].mxu0  ;;  %v18606_v52 = vrot.slane %v1841_v28, %v18602_v51 }
 0x218   : > { %v1941_v53 = vsub.f32 %v18395_v35, %v18606_v52  ;;  %v1942_v55 = vsub.f32 %v18401_v40, %v18606_v52  ;;  %v1943_v57 = vsub.f32 %v18407_v44, %v18606_v52  ;;  %v1944_v58 = vsub.f32 %v18413_v49, %v18606_v52 }
 0x219   : > { %v1945_v60 = vsub.f32 %v18419_v54, %v18606_v52  ;;  %v1946_v62 = vsub.f32 %v18425_v59, %v18606_v52  ;;  %v1947_v63 = vsub.f32 %v18431_v0, %v18606_v52  ;;  %v1948_v2 = vsub.f32 %v18437_v8, %v18606_v52 }
 0x21a   : > { %v1949_v6 = vsub.f32 %v18443_v16, %v18606_v52  ;;  %v1950_v44 = vsub.f32 %v18449_v23, %v18606_v52  ;;  %v1951_v49 = vsub.f32 %v18455_v31, %v18606_v52  ;;  %v1952_v54 = vsub.f32 %v18461_v37, %v18606_v52 }
 0x21b   : > { %v1953_v59 = vsub.f32 %v18467_v43, %v18606_v52  ;;  %v1922_v0 = vsub.f32 %v18246_v11, %v18606_v52  ;;  %v1923_v8 = vsub.f32 %v18249_v12, %v18606_v52  ;;  %v1924_v16 = vsub.f32 %v18252_v13, %v18606_v52 }
 0x21c   : > { %v1925_v23 = vsub.f32 %v18265_v17, %v18606_v52  ;;  %v1926_v31 = vsub.f32 %v18269_v20, %v18606_v52  ;;  %v1927_v37 = vsub.f32 %v18281_v24, %v18606_v52  ;;  %v1928_v12 = vsub.f32 %v18289_v29, %v18606_v52 }
 0x21d   : > { %v1929_v5 = vsub.f32 %v18303_v34, %v18606_v52  ;;  %v1930_v13 = vsub.f32 %v18309_v39, %v18606_v52  ;;  %v1931_v17 = vsub.f32 %v18323_v45, %v18606_v52  ;;  %v1932_v20 = vsub.f32 %v18329_v50, %v18606_v52 }
 0x21e   : > { %v1933_v24 = vsub.f32 %v18343_v56, %v18606_v52  ;;  %v1934_v9 = vsub.f32 %v18349_v61, %v18606_v52  ;;  %v1935_v46 = vsub.f32 %v18357_v1, %v18606_v52  ;;  %v1938_v50 = vsub.f32 %v18377_v19, %v18606_v52 }
 0x228   : > { %v1914_v4 = vpop.f32.mrb[2].mxu1 }
 0x229   : > { %v18647_v43 = vrot.slane %v1914_v4, %v18602_v51  ;;  %v13869_v11 = vpop.f32.mrb[3].mxu1 }
 0x22b   : > { %v18669_v15 = vmul.f32 %v18647_v43, %v1943_v57  ;;  %v18672_v18 = vmul.f32 %v18647_v43, %v1944_v58  ;;  %v18675_v21 = vmul.f32 %v18647_v43, %v1945_v60  ;;  %v18678_v22 = vmul.f32 %v18647_v43, %v1946_v62 }
 0x22c   : > { %v1983_v26 = vmul.f32 %v18647_v43, %v1947_v63  ;;  %v1984_v27 = vmul.f32 %v18647_v43, %v1948_v2  ;;  %v1985_v28 = vmul.f32 %v18647_v43, %v1949_v6  ;;  %v1986_v32 = vmul.f32 %v18647_v43, %v1950_v44 }
 0x22d   : > { %v1987_v36 = vmul.f32 %v18647_v43, %v1951_v49  ;;  %v1988_v38 = vmul.f32 %v18647_v43, %v1952_v54  ;;  %v1989_v42 = vmul.f32 %v18647_v43, %v1953_v59  ;;  %v1936_v60 = vsub.f32 %v18363_v7, %v18606_v52 }
 0x22e   : > { %v2021_v47 = vmul.f32 %v18666_v10, %v1983_v26  ;;  %v2022_v57 = vmul.f32 %v18666_v10, %v1984_v27  ;;  %v2023_v58 = vmul.f32 %v18666_v10, %v1985_v28  ;;  %v2024_v62 = vmul.f32 %v18666_v10, %v1986_v32 }
 0x22f   : > { %v2025_v63 = vmul.f32 %v18666_v10, %v1987_v36  ;;  %v2026_v2 = vmul.f32 %v18666_v10, %v1988_v38  ;;  %v2027_v6 = vmul.f32 %v18666_v10, %v1989_v42  ;;  %v1958_v59 = vmul.f32 %v18647_v43, %v1922_v0 }
 0x230   : > { %v18704_v44 = vadd.f32 %v18687_v33, %v2021_v47  ;;  %v18707_v49 = vadd.f32 %v18687_v33, %v2022_v57  ;;  %v18710_v54 = vadd.f32 %v18687_v33, %v2023_v58  ;;  %v18714_v4 = vadd.f32 %v18687_v33, %v2024_v62 }
 0x231   : > { %v18717_v11 = vadd.f32 %v18687_v33, %v2025_v63  ;;  %v18720_v26 = vadd.f32 %v18687_v33, %v2026_v2  ;;  %v18723_v27 = vadd.f32 %v18687_v33, %v2027_v6  ;;  %v1996_v0 = vmul.f32 %v18666_v10, %v1958_v59 }
 0x232   : > { %v12151_v28 = vmul.f32 -1.442695, %v18704_v44  ;;  %v12152_v32 = vmul.f32 -1.442695, %v18707_v49  ;;  %v12153_v36 = vmul.f32 -1.442695, %v18710_v54  ;;  %v1959_v57 = vmul.f32 %v18647_v43, %v1923_v8 }
 0x233   : > { %v12154_v38 = vmul.f32 -1.442695, %v18714_v4  ;;  %v12155_v42 = vmul.f32 -1.442695, %v18717_v11  ;;  %v12156_v47 = vmul.f32 -1.442695, %v18720_v26  ;;  %v18735_v62 = vadd.f32 %v18687_v33, %v1996_v0 }
 0x234   : > { %17483 = vpow2.f32 %v12151_v28  ;;  %v12157_v58 = vmul.f32 -1.442695, %v18723_v27  ;;  %v1960_v63 = vmul.f32 %v18647_v43, %v1924_v16  ;;  %v1997_v2 = vmul.f32 %v18666_v10, %v1959_v57 }
 0x235   : > { %17485 = vpow2.f32 %v12152_v32  ;;  %v1961_v6 = vmul.f32 %v18647_v43, %v1925_v23  ;;  %v1962_v59 = vmul.f32 %v18647_v43, %v1926_v31  ;;  %v12126_v3 = vmul.f32 -1.442695, %v18735_v62 }
 0x236   : > { %17487 = vpow2.f32 %v12153_v36  ;;  %v1998_v8 = vmul.f32 %v18666_v10, %v1960_v63  ;;  %v1963_v28 = vmul.f32 %v18647_v43, %v1927_v37  ;;  %v18745_v0 = vadd.f32 %v18687_v33, %v1997_v2 }
 0x237   : > { %17489 = vpow2.f32 %v12154_v38  ;;  %v1999_v16 = vmul.f32 %v18666_v10, %v1961_v6  ;;  %v2000_v32 = vmul.f32 %v18666_v10, %v1962_v59  ;;  %v1964_v36 = vmul.f32 %v18647_v43, %v1928_v12 }
 0x238   : > { %17491 = vpow2.f32 %v12155_v42  ;;  %v18750_v23 = vadd.f32 %v18687_v33, %v1998_v8  ;;  %v2001_v31 = vmul.f32 %v18666_v10, %v1963_v28  ;;  %v12127_v37 = vmul.f32 -1.442695, %v18745_v0 }
 0x239   : > { %17493 = vpow2.f32 %v12156_v47  ;;  %v18759_v38 = vadd.f32 %v18687_v33, %v1999_v16  ;;  %v18762_v57 = vadd.f32 %v18687_v33, %v2000_v32  ;;  %v2002_v2 = vmul.f32 %v18666_v10, %v1964_v36 }
 0x23a   : > { %17495 = vpow2.f32 %v12157_v58  ;;  %v12128_v42 = vmul.f32 -1.442695, %v18750_v23  ;;  %v18766_v63 = vadd.f32 %v18687_v33, %v2001_v31  ;;  %v1965_v47 = vmul.f32 %v18647_v43, %v1929_v5 }
 0x23b   : > { %17497 = vpow2.f32 %v12126_v3  ;;  %v12129_v29 = vmul.f32 -1.442695, %v18759_v38  ;;  %v12130_v12 = vmul.f32 -1.442695, %v18762_v57  ;;  %v1966_v6 = vmul.f32 %v18647_v43, %v1930_v13 }
 0x23c   : > { %17499 = vpow2.f32 %v12127_v37  ;;  %v12131_v58 = vmul.f32 -1.442695, %v18766_v63  ;;  %v1937_v3 = vsub.f32 %v18371_v14, %v18606_v52  ;;  %v2003_v59 = vmul.f32 %v18666_v10, %v1965_v47 }
 0x23d   : > { %17501 = vpow2.f32 %v12128_v42  ;;  %v1967_v34 = vmul.f32 %v18647_v43, %v1931_v17  ;;  %v1968_v5 = vmul.f32 %v18647_v43, %v1932_v20  ;;  %v18792_v39 = vadd.f32 %v18687_v33, %v2002_v2 }
 0x23e   : > { %v17484_v8 = vpop.eup %17483  ;;  %17503 = vpow2.f32 %v12129_v29  ;;  %v2004_v13 = vmul.f32 %v18666_v10, %v1966_v6  ;;  %v1969_v28 = vmul.f32 %v18647_v43, %v1933_v24  ;;  %v18800_v17 = vadd.f32 %v18687_v33, %v2003_v59 }
 0x23f   : > { %v17486_v45 = vpop.eup %17485  ;;  %v2187_v16 = vadd.f32 1.0, %v17484_v8  ;;  %17505 = vpow2.f32 %v12130_v12  ;;  %v2005_v31 = vmul.f32 %v18666_v10, %v1967_v34  ;;  %v1939_v36 = vsub.f32 %v18383_v25, %v18606_v52 }
 0x240   : > { %v17488_v20 = vpop.eup %17487  ;;  %v2188_v32 = vadd.f32 1.0, %v17486_v45  ;;  %17507 = vpow2.f32 %v12131_v58  ;;  %v2006_v24 = vmul.f32 %v18666_v10, %v1968_v5  ;;  %v1940_v42 = vsub.f32 %v18389_v30, %v18606_v52 }
 0x241   : > { %v17490_v56 = vpop.eup %17489  ;;  %v2189_v37 = vadd.f32 1.0, %v17488_v20  ;;  %17509 = vrcp.f32 %v2187_v16  ;;  %v12132_v12 = vmul.f32 -1.442695, %v18792_v39  ;;  %v18812_v47 = vadd.f32 %v18687_v33, %v2004_v13 }
 0x242   : > { %v17492_v2 = vpop.eup %17491  ;;  %v2190_v29 = vadd.f32 1.0, %v17490_v56  ;;  %17511 = vrcp.f32 %v2188_v32  ;;  %v12133_v25 = vmul.f32 -1.442695, %v18800_v17  ;;  %v2007_v59 = vmul.f32 %v18666_v10, %v1969_v28 }
 0x243   : > { %v17494_v58 = vpop.eup %17493  ;;  %v2191_v6 = vadd.f32 1.0, %v17492_v2  ;;  %17513 = vrcp.f32 %v2189_v37  ;;  %v18817_v30 = vadd.f32 %v18687_v33, %v2005_v31  ;;  %v1970_v8 = vmul.f32 %v18647_v43, %v1934_v9 }
 0x244   : > { %v17496_v34 = vpop.eup %17495  ;;  %v2192_v5 = vadd.f32 1.0, %v17494_v58  ;;  %17515 = vrcp.f32 %v2190_v29  ;;  %v18824_v16 = vadd.f32 %v18687_v33, %v2006_v24  ;;  %v1971_v28 = vmul.f32 %v18647_v43, %v1935_v46 }
 0x245   : > { %v17498_v13 = vpop.eup %17497  ;;  %v2193_v45 = vadd.f32 1.0, %v17496_v34  ;;  %17517 = vrcp.f32 %v2191_v6  ;;  %v18831_v31 = vadd.f32 %v18687_v33, %v2007_v59  ;;  %v1972_v61 = vmul.f32 %v18647_v43, %v1936_v60 }
 0x246   : > { %v17500_v20 = vpop.eup %17499  ;;  %17519 = vrcp.f32 %v2192_v5  ;;  %v2162_v32 = vadd.f32 1.0, %v17498_v13  ;;  %v12134_v37 = vmul.f32 -1.442695, %v18812_v47  ;;  %v2008_v1 = vmul.f32 %v18666_v10, %v1970_v8 }
 0x247   : > { %v17502_v9 = vpop.eup %17501  ;;  %17521 = vrcp.f32 %v2193_v45  ;;  %v2163_v56 = vadd.f32 1.0, %v17500_v20  ;;  %v12135_v2 = vmul.f32 -1.442695, %v18817_v30  ;;  %v2009_v29 = vmul.f32 %v18666_v10, %v1971_v28 }
 0x248   : > { %v17504_v24 = vpop.eup %17503  ;;  %17523 = vrcp.f32 %v2162_v32  ;;  %v2164_v46 = vadd.f32 1.0, %v17502_v9  ;;  %v2010_v7 = vmul.f32 %v18666_v10, %v1972_v61  ;;  %v1973_v60 = vmul.f32 %v18647_v43, %v1937_v3 }
 0x249   : > { %v17506_v58 = vpop.eup %17505  ;;  %17525 = vrcp.f32 %v2163_v56  ;;  %v2165_v6 = vadd.f32 1.0, %v17504_v24  ;;  %v12136_v5 = vmul.f32 -1.442695, %v18824_v16  ;;  %v12137_v8 = vmul.f32 -1.442695, %v18831_v31 }
 0x24a   : > { %v17508_v59 = vpop.eup %17507  ;;  %17527 = vrcp.f32 %v2164_v46  ;;  %v2166_v34 = vadd.f32 1.0, %v17506_v58  ;;  %v18851_v28 = vadd.f32 %v18687_v33, %v2008_v1  ;;  %v2011_v20 = vmul.f32 %v18666_v10, %v1973_v60 }
 0x24b   : > { %v18848_v13 = vpop.eup %17509  ;;  %17529 = vrcp.f32 %v2165_v6  ;;  %v2167_v45 = vadd.f32 1.0, %v17508_v59  ;;  %v18857_v14 = vadd.f32 %v18687_v33, %v2009_v29  ;;  %v1974_v3 = vmul.f32 %v18647_v43, %v1938_v50 }
 0x24c   : > { %v18854_v32 = vpop.eup %17511  ;;  %17531 = vrcp.f32 %v2166_v34  ;;  %v1975_v61 = vmul.f32 %v18647_v43, %v1939_v36  ;;  %v18865_v56 = vadd.f32 %v18687_v33, %v2010_v7  ;;  %v1976_v1 = vmul.f32 %v18647_v43, %v1940_v42 }
 0x24d   : > { %v17514_v9 = vpop.eup %17513  ;;  %17533 = vrcp.f32 %v2167_v45  ;;  %v18872_v24 = vmul.f32 %v18647_v43, %v1941_v53  ;;  %v2012_v50 = vmul.f32 %v18666_v10, %v1974_v3  ;;  %v18883_v42 = vadd.f32 %v18687_v33, %v2011_v20 }
 0x24e   : > { %v17516_v46 = vpop.eup %17515  ;;  %v18875_v19 = vmul.f32 %v17514_v9, %v18710_v54  ;;  %17535 = vpow2.f32 %v12132_v12  ;;  %v2013_v36 = vmul.f32 %v18666_v10, %v1975_v61  ;;  %v2014_v35 = vmul.f32 %v18666_v10, %v1976_v1 }
 0x24f   : > { %v17518_v29 = vpop.eup %17517  ;;  %v18880_v58 = vmul.f32 %v17516_v46, %v18714_v4  ;;  %17537 = vpow2.f32 %v12133_v25  ;;  %v12138_v54 = vmul.f32 -1.442695, %v18851_v28  ;;  %v18892_v12 = vadd.f32 %v18687_v33, %v2012_v50 }
 0x250   : > { %v17520_v53 = vpop.eup %17519  ;;  %v18887_v6 = vmul.f32 %v17518_v29, %v18717_v11  ;;  %2323 = vst [vmem:[#allocation2 + $0xe9] sm:$0xff] %v18875_v19  ;;  %17539 = vpow2.f32 %v12134_v37  ;;  %v12139_v7 = vmul.f32 -1.442695, %v18857_v14  ;;  %v18898_v60 = vadd.f32 %v18687_v33, %v2013_v36 }
 0x251   : > { %v17522_v4 = vpop.eup %17521  ;;  %v2288_v25 = vmul.f32 %v17520_v53, %v18720_v26  ;;  %2324 = vst [vmem:[#allocation2 + $0xf1] sm:$0xff] %v18880_v58  ;;  %17541 = vpow2.f32 %v12135_v2  ;;  %v12140_v37 = vmul.f32 -1.442695, %v18865_v56  ;;  %v18904_v34 = vadd.f32 %v18687_v33, %v2014_v35 }
 0x252   : > { %v17524_v11 = vpop.eup %17523  ;;  %v2289_v59 = vmul.f32 %v17522_v4, %v18723_v27  ;;  %2325 = vst [vmem:[#allocation2 + $0xf9] sm:$0xff] %v18887_v6  ;;  %17543 = vpow2.f32 %v12136_v5  ;;  %v12141_v45 = vmul.f32 -1.442695, %v18883_v42  ;;  %v12142_v27 = vmul.f32 -1.442695, %v18892_v12 }
 0x253   : > { %v17526_v26 = vpop.eup %17525  ;;  %2326 = vst [vmem:[#allocation2 + $0x101] sm:$0xff] %v2288_v25  ;;  %v2258_v2 = vmul.f32 %v17524_v11, %v18735_v62  ;;  %17545 = vpow2.f32 %v12137_v8  ;;  %v1978_v5 = vmul.f32 %v18647_v43, %v1942_v55  ;;  %v12143_v8 = vmul.f32 -1.442695, %v18898_v60 }
 0x254   : > { %v17528_v20 = vpop.eup %17527  ;;  %2327 = vst [vmem:[#allocation2 + $0x109] sm:$0xff] %v2289_v59  ;;  %v2259_v3 = vmul.f32 %v17526_v26, %v18745_v0  ;;  %17547 = vpow2.f32 %v12138_v54  ;;  %v12144_v1 = vmul.f32 -1.442695, %v18904_v34  ;;  %v2015_v54 = vmul.f32 %v18666_v10, %v18872_v24 }
 0x255   : > { %v17530_v61 = vpop.eup %17529  ;;  %2296 = vst [vmem:[#allocation2 + $0x11] sm:$0xff] %v2258_v2  ;;  %13905 = vmatprep.mubr.f32.mxu0 %v2258_v2  ;;  %v2260_v62 = vmul.f32 %v17528_v20, %v18750_v23  ;;  %17549 = vpow2.f32 %v12139_v7  ;;  %v2016_v7 = vmul.f32 %v18666_v10, %v1978_v5  ;;  %v2018_v24 = vmul.f32 %v18666_v10, %v18672_v18 }
 0x256   : > { %v17532_v9 = vpop.eup %17531  ;;  %2297 = vst [vmem:[#allocation2 + $0x19] sm:$0xff] %v2259_v3  ;;  %13906 = vmatmul.mubr.f32.gmra.mrb[6].mxu0 %v2259_v3  ;;  %v2261_v0 = vmul.f32 %v17530_v61, %v18759_v38  ;;  %17551 = vpow2.f32 %v12140_v37  ;;  %v2019_v37 = vmul.f32 %v18666_v10, %v18675_v21  ;;  %v18940_v2 = vadd.f32 %v18687_v33, %v2015_v54 }
 0x257   : > { %v17534_v46 = vpop.eup %17533  ;;  %2298 = vst [vmem:[#allocation2 + $0x21] sm:$0xff] %v2260_v62  ;;  %13908 = vmatprep.mubr.f32.mxu0 %v2260_v62  ;;  %v2262_v40 = vmul.f32 %v17532_v9, %v18762_v57  ;;  %17553 = vpow2.f32 %v12141_v45  ;;  %v18922_v57 = vmul.f32 %v18848_v13, %v18704_v44  ;;  %v2017_v13 = vmul.f32 %v18666_v10, %v18669_v15 }
 0x258   : > { %v17536_v52 = vpop.eup %17535  ;;  %2299 = vst [vmem:[#allocation2 + $0x29] sm:$0xff] %v2261_v0  ;;  %v2263_v55 = vmul.f32 %v17534_v46, %v18766_v63  ;;  %17555 = vpow2.f32 %v12142_v27  ;;  %v18926_v63 = vmul.f32 %v18854_v32, %v18707_v49  ;;  %v2020_v20 = vmul.f32 %v18666_v10, %v18678_v22 }
 0x259   : > { %v17538_v43 = vpop.eup %17537  ;;  %2300 = vst [vmem:[#allocation2 + $0x31] sm:$0xff] %v2262_v40  ;;  %v2168_v23 = vadd.f32 1.0, %v17536_v52  ;;  %17557 = vpow2.f32 %v12143_v8  ;;  %2321 = vst [vmem:[#allocation2 + $0xd9] sm:$0xff] %v18922_v57  ;;  %v18945_v3 = vadd.f32 %v18687_v33, %v2016_v7  ;;  %v18948_v5 = vadd.f32 %v18687_v33, %v2017_v13 }
 0x25a   : > { %v17540_v50 = vpop.eup %17539  ;;  %13909 = vmatmul.mubr.f32.gmra.mrb[8].mxu0 %v2261_v0  ;;  %2301 = vst [vmem:[#allocation2 + $0x39] sm:$0xff] %v2263_v55  ;;  %v2169_v38 = vadd.f32 1.0, %v17538_v43  ;;  %17559 = vpow2.f32 %v12144_v1  ;;  %2322 = vst [vmem:[#allocation2 + $0xe1] sm:$0xff] %v18926_v63  ;;  %v18951_v62 = vadd.f32 %v18687_v33, %v2018_v24  ;;  %v12145_v22 = vmul.f32 -1.442695, %v18940_v2 }
 0x25b   : > { %v17542_v36 = vpop.eup %17541  ;;  %13911 = vmatprep.mubr.f32.mxu0 %v2262_v40  ;;  %17561 = vrcp.f32 %v2168_v23  ;;  %v2170_v29 = vadd.f32 1.0, %v17540_v50  ;;  %v18955_v9 = vadd.f32 %v18687_v33, %v2019_v37  ;;  %v12146_v46 = vmul.f32 -1.442695, %v18945_v3 }
 0x25c   : > { %v17544_v35 = vpop.eup %17543  ;;  %17563 = vrcp.f32 %v2169_v38  ;;  %v2171_v53 = vadd.f32 1.0, %v17542_v36  ;;  %v18959_v40 = vadd.f32 %v18687_v33, %v2020_v20  ;;  %v12147_v43 = vmul.f32 -1.442695, %v18948_v5 }
 0x25d   : > { %v17546_v4 = vpop.eup %17545  ;;  %17565 = vrcp.f32 %v2170_v29  ;;  %v2172_v25 = vadd.f32 1.0, %v17544_v35  ;;  %v12148_v38 = vmul.f32 -1.442695, %v18951_v62  ;;  %v12149_v33 = vmul.f32 -1.442695, %v18955_v9 }
 0x25e   : > { %v17548_v44 = vpop.eup %17547  ;;  %13912 = vmatmul.mubr.f32.gmra.mrb[10].mxu0 %v2263_v55  ;;  %17567 = vrcp.f32 %v2171_v53  ;;  %v2173_v49 = vadd.f32 1.0, %v17546_v4  ;;  %v12150_v53 = vmul.f32 -1.442695, %v18959_v40 }
 0x25f   : > { %v17550_v32 = vpop.eup %17549  ;;  %17569 = vrcp.f32 %v2172_v25  ;;  %v2174_v11 = vadd.f32 1.0, %v17548_v44 }
 0x260   : > { %v17552_v59 = vpop.eup %17551  ;;  %17571 = vrcp.f32 %v2173_v49  ;;  %v2175_v26 = vadd.f32 1.0, %v17550_v32 }
 0x261   : > { %v17554_v45 = vpop.eup %17553  ;;  %17573 = vrcp.f32 %v2174_v11  ;;  %v2176_v15 = vadd.f32 1.0, %v17552_v59 }
 0x262   : > { %v17556_v27 = vpop.eup %17555  ;;  %17575 = vrcp.f32 %v2175_v26  ;;  %v2177_v18 = vadd.f32 1.0, %v17554_v45 }
 0x263   : > { %v17558_v21 = vpop.eup %17557  ;;  %17577 = vrcp.f32 %v2176_v15  ;;  %v2178_v61 = vadd.f32 1.0, %v17556_v27 }
 0x264   : > { %v17560_v8 = vpop.eup %17559  ;;  %17579 = vrcp.f32 %v2177_v18  ;;  %v2179_v10 = vadd.f32 1.0, %v17558_v21 }
 0x265   : > { %v17562_v0 = vpop.eup %17561  ;;  %17581 = vrcp.f32 %v2178_v61  ;;  %v2180_v1 = vadd.f32 1.0, %v17560_v8 }
 0x266   : > { %v17564_v52 = vpop.eup %17563  ;;  %v2264_v55 = vmul.f32 %v17562_v0, %v18792_v39  ;;  %17583 = vrcp.f32 %v2179_v10 }
 0x267   : > { %v17566_v23 = vpop.eup %17565  ;;  %v2265_v50 = vmul.f32 %v17564_v52, %v18800_v17  ;;  %17585 = vrcp.f32 %v2180_v1 }
 0x268   : > { %v17568_v36 = vpop.eup %17567  ;;  %2302 = vst [vmem:[#allocation2 + $0x41] sm:$0xff] %v2264_v55  ;;  %13914 = vmatprep.mubr.f32.mxu0 %v2264_v55  ;;  %v2266_v29 = vmul.f32 %v17566_v23, %v18812_v47  ;;  %17587 = vpow2.f32 %v12145_v22 }
 0x269   : > { %v17570_v35 = vpop.eup %17569  ;;  %2303 = vst [vmem:[#allocation2 + $0x49] sm:$0xff] %v2265_v50  ;;  %13915 = vmatmul.mubr.f32.gmra.mrb[12].mxu0 %v2265_v50  ;;  %v2267_v39 = vmul.f32 %v17568_v36, %v18817_v30  ;;  %17589 = vpow2.f32 %v12146_v46  ;;  %v12176_v50 = vld [vmem:[%s23252_s2 + $0x110] sm:$0xff] }
 0x26a   : > { %v17572_v17 = vpop.eup %17571  ;;  %2304 = vst [vmem:[#allocation2 + $0x51] sm:$0xff] %v2266_v29  ;;  %13917 = vmatprep.mubr.f32.mxu0 %v2266_v29  ;;  %v2268_v54 = vmul.f32 %v17570_v35, %v18824_v16  ;;  %17591 = vpow2.f32 %v12147_v43  ;;  %v862_v29 = vadd.s32 64, %v18591_v41 }
 0x26b   : > { %v17574_v4 = vpop.eup %17573  ;;  %2305 = vst [vmem:[#allocation2 + $0x59] sm:$0xff] %v2267_v39  ;;  %v2269_v47 = vmul.f32 %v17572_v17, %v18831_v31  ;;  %17593 = vpow2.f32 %v12148_v38  ;;  %v19024_v17 = vld [vmem:[#allocation2 + $0x20] sm:$0xff] }
 0x26c   : > { %v17576_v25 = vpop.eup %17575  ;;  %2306 = vst [vmem:[#allocation2 + $0x61] sm:$0xff] %v2268_v54  ;;  %v2270_v7 = vmul.f32 %v17574_v4, %v18851_v28  ;;  %17595 = vpow2.f32 %v12149_v33  ;;  %v864_v4 = vadd.s32 80, %v18591_v41 }
 0x26d   : > { %v17578_v30 = vpop.eup %17577  ;;  %13918 = vmatmul.mubr.f32.gmra.mrb[14].mxu0 %v2267_v39  ;;  %2307 = vst [vmem:[#allocation2 + $0x69] sm:$0xff] %v2269_v47  ;;  %v2271_v44 = vmul.f32 %v17576_v25, %v18857_v14  ;;  %17597 = vpow2.f32 %v12150_v53  ;;  %v12178_v39 = vld [vmem:[%s23252_s2 + $0x120] sm:$0xff]  ;;  %v19028_v25 = vld [vmem:[#allocation2 + $0x18] sm:$0xff] }
 0x26e   : > { %v17580_v49 = vpop.eup %17579  ;;  %13920 = vmatprep.mubr.f32.mxu0 %v2268_v54  ;;  %2308 = vst [vmem:[#allocation2 + $0x71] sm:$0xff] %v2270_v7  ;;  %v2272_v16 = vmul.f32 %v17578_v30, %v18865_v56  ;;  %v946_v54 = vand.u32 15, %v862_v29  ;;  %v12180_v30 = vld [vmem:[%s23252_s2 + $0x130] sm:$0xff]  ;;  %v12191_v29 = vld [vmem:[%s23252_s2 + $0x188] sm:$0xff] }
 0x26f   : > { %v17582_v13 = vpop.eup %17581  ;;  %2309 = vst [vmem:[#allocation2 + $0x79] sm:$0xff] %v2271_v44  ;;  %v2273_v31 = vmul.f32 %v17580_v49, %v18883_v42  ;;  %v19042_v49 = vld [vmem:[#allocation2 + $0x30] sm:$0xff] }
 0x270   : > { %v17584_v32 = vpop.eup %17583  ;;  %2310 = vst [vmem:[#allocation2 + $0x81] sm:$0xff] %v2272_v16  ;;  %v2274_v28 = vmul.f32 %v17582_v13, %v18892_v12  ;;  %vm1278_vm7 = vcmp.ge.s32.totalorder %v946_v54, 1  ;;  %v866_v13 = vadd.s32 96, %v18591_v41 }
 0x271   : > { %v17586_v11 = vpop.eup %17585  ;;  %13921 = vmatmul.mubr.f32.gmra.mrb[16].mxu0 %v2269_v47  ;;  %2311 = vst [vmem:[#allocation2 + $0x89] sm:$0xff] %v2273_v31  ;;  %v2275_v24 = vmul.f32 %v17584_v32, %v18898_v60  ;;  %v19045_v32 = vld [vmem:[#allocation2 + $0x28] sm:$0xff] }
 0x272   : > { %v17588_v14 = vpop.eup %17587  ;;  %13923 = vmatprep.mubr.f32.mxu0 %v2270_v7  ;;  %2312 = vst [vmem:[#allocation2 + $0x91] sm:$0xff] %v2274_v28  ;;  %v2276_v59 = vmul.f32 %v17586_v11, %v18904_v34  ;;  %v12182_v11 = vld [vmem:[%s23252_s2 + $0x140] sm:$0xff] }
 0x273   : > { %v17590_v37 = vpop.eup %17589  ;;  %2313 = vst [vmem:[#allocation2 + $0x99] sm:$0xff] %v2275_v24  ;;  %v2181_v56 = vadd.f32 1.0, %v17588_v14 }
 0x274   : > { %v17592_v26 = vpop.eup %17591  ;;  %2314 = vst [vmem:[#allocation2 + $0xa1] sm:$0xff] %v2276_v59  ;;  %v2182_v42 = vadd.f32 1.0, %v17590_v37  ;;  %v974_v37 = vand.u32 15, %v866_v13 }
 0x275   : > { %v17594_v45 = vpop.eup %17593  ;;  %13924 = vmatmul.mubr.f32.gmra.mrb[18].mxu0 %v2271_v44  ;;  %17599 = vrcp.f32 %v2181_v56  ;;  %v2183_v12 = vadd.f32 1.0, %v17592_v26  ;;  %v12181_v44 = vld [vmem:[%s23252_s2 + $0x138] sm:$0xff]  ;;  %v868_v56 = vadd.s32 112, %v18591_v41 }
 0x276   : > { %v17596_v20 = vpop.eup %17595  ;;  %13926 = vmatprep.mubr.f32.mxu0 %v2272_v16  ;;  %17601 = vrcp.f32 %v2182_v42  ;;  %v2184_v15 = vadd.f32 1.0, %v17594_v45  ;;  %v960_v16 = vand.u32 15, %v864_v4  ;;  %v19062_v42 = vld [vmem:[#allocation2 + $0x38] sm:$0xff]  ;;  %vm1282_vm9 = vcmp.ge.s32.totalorder %v974_v37, 1 }
 0x277   : > { %v17598_v60 = vpop.eup %17597  ;;  %17603 = vrcp.f32 %v2183_v12  ;;  %v2185_v27 = vadd.f32 1.0, %v17596_v20  ;;  %v12184_v12 = vld [vmem:[%s23252_s2 + $0x150] sm:$0xff]  ;;  %v12185_v20 = vld [vmem:[%s23252_s2 + $0x158] sm:$0xff]  ;;  %v880_v37 = vadd.s32 208, %v18591_v41 }
 0x278   : > { %17605 = vrcp.f32 %v2184_v15  ;;  %v2186_v18 = vadd.f32 1.0, %v17598_v60  ;;  %vm1280_vm8 = vcmp.ge.s32.totalorder %v960_v16, 1  ;;  %v19076_v60 = vld [vmem:[#allocation2 + $0x50] sm:$0xff]  ;;  %v19132_v4 = vld [vmem:[#allocation2 + $0x78] sm:$0xff]  ;;  %v878_v16 = vadd.s32 192, %v18591_v41  ;;  %v19144_v13 = vld [vmem:[#allocation2 + $0x88] sm:$0xff] }
 0x279   : > { %13927 = vmatmul.mubr.f32.gmra.mrb[20].mxu0 %v2273_v31  ;;  %17607 = vrcp.f32 %v2185_v27  ;;  %v15994_v31 = vpack.c.bf16 %v12181_v44, %v12180_v30  ;;  %v988_v27 = vand.u32 15, %v868_v56  ;;  %v19140_v30 = vld [vmem:[#allocation2 + $0x90] sm:$0xff] }
 0x27a   : > { %13929 = vmatprep.mubr.f32.mxu0 %v2274_v28  ;;  %17609 = vrcp.f32 %v2186_v18  ;;  %v870_v18 = vadd.s32 128, %v18591_v41  ;;  %v19155_v56 = vld [vmem:[#allocation2 + $0x98] sm:$0xff] }
 0x27b   : > { %vm1284_vm10 = vcmp.ge.s32.totalorder %v988_v27, 1  ;;  %v882_v27 = vadd.s32 224, %v18591_v41 }
 0x27d   : > { %13930 = vmatmul.mubr.f32.gmra.mrb[22].mxu0 %v2275_v24  ;;  %v12183_v24 = vld [vmem:[%s23252_s2 + $0x148] sm:$0xff] }
 0x27e   : > { %13932 = vmatprep.mubr.f32.mxu0 %v2276_v59  ;;  %v19059_v59 = vld [vmem:[#allocation2 + $0x40] sm:$0xff]  ;;  %v15998_v26 = vpack.c.bf16 %v12183_v24, %v12182_v11  ;;  %v1058_v24 = vand.u32 15, %v878_v16  ;;  %v857_v16 = vadd.s32 24, %v18591_v41 }
 0x27f   : > { %v17600_v34 = vpop.eup %17599  ;;  %v19152_v11 = vld [vmem:[#allocation2 + $0xa0] sm:$0xff] }
 0x280   : > { %v17602_v21 = vpop.eup %17601  ;;  %v2277_v61 = vmul.f32 %v17600_v34, %v18940_v2  ;;  %v16002_v34 = vpack.c.bf16 %v12185_v20, %v12184_v12  ;;  %vm1294_vm15 = vcmp.ge.s32.totalorder %v1058_v24, 1  ;;  %v1072_v20 = vand.u32 15, %v880_v37 }
 0x281   : > { %v17604_v8 = vpop.eup %17603  ;;  %v2278_v10 = vmul.f32 %v17602_v21, %v18945_v3  ;;  %v890_v3 = vand.u32 15, %v18591_v41  ;;  %v19079_v21 = vld [vmem:[#allocation2 + $0x48] sm:$0xff]  ;;  %v911_v37 = vand.u32 15, %v857_v16  ;;  %v19232_v16 = vld [vmem:[#allocation2 + $0x1a] sm:$0xff] }
 0x282   : > { %v17606_v22 = vpop.eup %17605  ;;  %2315 = vst [vmem:[#allocation2 + $0xa9] sm:$0xff] %v2277_v61  ;;  %13933 = vmatmul.mubr.f32.gmra.mrb[24].mxu0 %v2277_v61  ;;  %v2279_v0 = vmul.f32 %v17604_v8, %v18948_v5  ;;  %v856_v5 = vadd.s32 16, %v18591_v41  ;;  %v12186_v8 = vld [vmem:[%s23252_s2 + $0x160] sm:$0xff]  ;;  %23274 = vst [vmem:[#allocation25_spill] sm:$0xff] %v19232_v16 }
 0x283   : > { %v17608_v1 = vpop.eup %17607  ;;  %2316 = vst [vmem:[#allocation2 + $0xb1] sm:$0xff] %v2278_v10  ;;  %13935 = vmatprep.mubr.f32.mxu0 %v2278_v10  ;;  %v2280_v46 = vmul.f32 %v17606_v22, %v18951_v62  ;;  %vm1270_vm3 = vcmp.ge.s32.totalorder %v890_v3, 1  ;;  %v12187_v10 = vld [vmem:[%s23252_s2 + $0x168] sm:$0xff]  ;;  %v12188_v3 = vld [vmem:[%s23252_s2 + $0x170] sm:$0xff] }
 0x284   : > { %v17610_v52 = vpop.eup %17609  ;;  %2317 = vst [vmem:[#allocation2 + $0xb9] sm:$0xff] %v2279_v0  ;;  %v2281_v55 = vmul.f32 %v17608_v1, %v18955_v9  ;;  %v904_v62 = vand.u32 15, %v856_v5  ;;  %v858_v9 = vadd.s32 32, %v18591_v41  ;;  %v1002_v1 = vand.u32 15, %v870_v18  ;;  %v12189_v5 = vld [vmem:[%s23252_s2 + $0x178] sm:$0xff] }
 0x285   : > { %2318 = vst [vmem:[#allocation2 + $0xc1] sm:$0xff] %v2280_v46  ;;  %v2282_v2 = vmul.f32 %v17610_v52, %v18959_v40  ;;  %v18990_v40 = vld [vmem:[#allocation2] sm:$0xff]  ;;  %v16006_v52 = vpack.c.bf16 %v12187_v10, %v12186_v8  ;;  %v1086_v10 = vand.u32 15, %v882_v27 }
 0x286   : > { %13936 = vmatmul.mubr.f32.gmra.mrb[26].mxu0 %v2279_v0  ;;  %2319 = vst [vmem:[#allocation2 + $0xc9] sm:$0xff] %v2281_v55  ;;  %v18993_v43 = vsel %vm1270_vm3, 1.0, %v18990_v40  ;;  %vm1272_vm4 = vcmp.ge.s32.totalorder %v904_v62, 1  ;;  %v19057_v14 = vsel %vm1278_vm7, 1.0, %v18990_v40  ;;  %v19074_v15 = vsel %vm1280_vm8, 1.0, %v18990_v40  ;;  %v19093_v0 = vld [vmem:[#allocation2 + $0x60] sm:$0xff] }
 0x287   : > { %13938 = vmatprep.mubr.f32.mxu0 %v2280_v46  ;;  %2320 = vst [vmem:[#allocation2 + $0xd1] sm:$0xff] %v2282_v2  ;;  %23256 = vst [vmem:[#allocation7_spill] sm:$0xff] %v18993_v43  ;;  %v2360_v23 = vmul.f32 %v18990_v40, %v18993_v43  ;;  %v19007_v38 = vsel %vm1272_vm4, 1.0, %v18990_v40  ;;  %v2368_v45 = vmul.f32 %v19057_v14, %v19059_v59  ;;  %v19091_v22 = vsel %vm1282_vm9, 1.0, %v18990_v40  ;;  %v2907_v27 = vld [vmem:[#allocation2 + $0x2] sm:$0xff] }
 0x288   : > { %23257 = vst [vmem:[#allocation8_spill] sm:$0xff] %v19007_v38  ;;  %23260 = vst [vmem:[#allocation11_spill] sm:$0xff] %v19057_v14  ;;  %v2370_v61 = vmul.f32 %v19074_v15, %v19076_v60  ;;  %v872_v46 = vadd.s32 144, %v18591_v41  ;;  %v19108_v62 = vsel %vm1284_vm10, 1.0, %v18990_v40  ;;  %vm1286_vm11 = vcmp.ge.s32.totalorder %v1002_v1, 1 }
 0x289   : > { %23261 = vst [vmem:[#allocation12_spill] sm:$0xff] %v19074_v15  ;;  %23262 = vst [vmem:[#allocation13_spill] sm:$0xff] %v19091_v22  ;;  %v19166_v18 = vld [vmem:[#allocation2 + $0xa8] sm:$0xff]  ;;  %vm1296_vm3 = vcmp.ge.s32.totalorder %v1072_v20, 1  ;;  %v884_v1 = vadd.s32 240, %v18591_v41  ;;  %vm1298_vm4 = vcmp.ge.s32.totalorder %v1086_v10, 1 }
 0x28a   : > { %13939 = vmatmul.mubr.f32.gmra.mrb[28].mxu0 %v2281_v55  ;;  %v19096_v55 = vld [vmem:[#allocation2 + $0x58] sm:$0xff]  ;;  %23263 = vst [vmem:[#allocation14_spill] sm:$0xff] %v19108_v62  ;;  %v19163_v12 = vld [vmem:[#allocation2 + $0xb0] sm:$0xff]  ;;  %vm1369_vm7 = vcmp.le.s32.totalorder %v911_v37, 14  ;;  %v12195_v37 = vld [vmem:[%s23252_s2 + $0x1a8] sm:$0xff] }
 0x28b   : > { %13941 = vmatprep.mubr.f32.mxu0 %v2282_v2  ;;  %v2372_v2 = vmul.f32 %v19091_v22, %v19093_v0  ;;  %v19215_v20 = vld [vmem:[#allocation2 + $0xf8] sm:$0xff]  ;;  %v2908_v10 = vld [vmem:[#allocation2 + $0xa] sm:$0xff] }
 0x28c   : > { %v19174_v8 = vld [vmem:[#allocation2 + $0xc0] sm:$0xff] }
 0x28e   : > { %13942 = vmatmul.mubr.f32.gmra.mrb[30].mxu0 %v18922_v57  ;;  %v918_v57 = vand.u32 15, %v858_v9  ;;  %v19110_v9 = vld [vmem:[#allocation2 + $0x70] sm:$0xff] }
 0x28f   : > { %13944 = vmatprep.mubr.f32.mxu0 %v18926_v63  ;;  %v860_v63 = vadd.s32 48, %v18591_v41 }
 0x290   : > { %vm1274_vm5 = vcmp.ge.s32.totalorder %v918_v57, 1  ;;  %v874_v57 = vadd.s32 160, %v18591_v41 }
 0x291   : > { %v932_v36 = vand.u32 15, %v860_v63  ;;  %v19022_v53 = vsel %vm1274_vm5, 1.0, %v18990_v40  ;;  %v16010_v63 = vpack.c.bf16 %v12189_v5, %v12188_v3  ;;  %v19185_v3 = vld [vmem:[#allocation2 + $0xd0] sm:$0xff]  ;;  %v1100_v5 = vand.u32 15, %v884_v1 }
 0x292   : > { %13945 = vmatmul.mubr.f32.gmra.mrb[32].mxu0 %v18875_v19  ;;  %v12177_v19 = vld [vmem:[%s23252_s2 + $0x118] sm:$0xff]  ;;  %23258 = vst [vmem:[#allocation9_spill] sm:$0xff] %v19022_v53  ;;  %v2364_v7 = vmul.f32 %v19022_v53, %v19024_v17  ;;  %v12192_v1 = vld [vmem:[%s23252_s2 + $0x190] sm:$0xff] }
 0x293   : > { %13947 = vmatprep.mubr.f32.mxu0 %v18880_v58  ;;  %v19009_v58 = vld [vmem:[#allocation2 + $0x10] sm:$0xff]  ;;  %v15986_v33 = vpack.c.bf16 %v12177_v19, %v12176_v50  ;;  %vm1276_vm6 = vcmp.ge.s32.totalorder %v932_v36, 1  ;;  %v19113_v50 = vld [vmem:[#allocation2 + $0x68] sm:$0xff]  ;;  %v2374_v19 = vmul.f32 %v19108_v62, %v19110_v9  ;;  %v12190_v36 = vld [vmem:[%s23252_s2 + $0x180] sm:$0xff]  ;;  %vm1300_vm5 = vcmp.ge.s32.totalorder %v1100_v5, 1 }
 0x294   : > { %v2362_v35 = vmul.f32 %v19007_v38, %v19009_v58  ;;  %v19130_v54 = vpack.c.bf16 %v12191_v29, %v12190_v36  ;;  %v855_v36 = vadd.s32 8, %v18591_v41  ;;  %v19198_v29 = vld [vmem:[#allocation2 + $0xd8] sm:$0xff] }
 0x296   : > { %13948 = vmatmul.mubr.f32.gmra.mrb[34].mxu0 %v18887_v6  ;;  %v12179_v6 = vld [vmem:[%s23252_s2 + $0x128] sm:$0xff] }
 0x297   : > { %13982 = vmatprep.mubr.f32.mxu0 %v2360_v23  ;;  %v15990_v47 = vpack.c.bf16 %v12179_v6, %v12178_v39  ;;  %v1016_v23 = vand.u32 15, %v872_v46  ;;  %v1030_v39 = vand.u32 15, %v874_v57  ;;  %v876_v6 = vadd.s32 176, %v18591_v41  ;;  %v19177_v46 = vld [vmem:[#allocation2 + $0xb8] sm:$0xff] }
 0x299   : > { %vm1288_vm12 = vcmp.ge.s32.totalorder %v1016_v23, 1  ;;  %vm1290_vm13 = vcmp.ge.s32.totalorder %v1030_v39, 1  ;;  %v1044_v44 = vand.u32 15, %v876_v6  ;;  %v19187_v23 = vld [vmem:[#allocation2 + $0xc8] sm:$0xff]  ;;  %v19204_v6 = vsel %vm1300_vm5, 1.0, %v18990_v40 }
 0x29a   : > { %13983 = vmatmul.mubr.f32.vlgmr.msra.gmra.mrb[4].mxu0 %v18990_v40  ;;  %23271 = vst [vmem:[#allocation22_spill] sm:$0xff] %v19204_v6 }
 0x29b   : > { %13985 = vmatprep.mubr.f32.mxu0 %v2362_v35  ;;  %15985 = vmatpush3.bf16.msra.mxu0 %v18599_v48  ;;  %v19040_v48 = vsel %vm1276_vm6, 1.0, %v18990_v40  ;;  %v19127_v35 = vld [vmem:[#allocation2 + $0x80] sm:$0xff]  ;;  %vm1292_vm14 = vcmp.ge.s32.totalorder %v1044_v44, 1  ;;  %v897_v44 = vand.u32 15, %v855_v36 }
 0x29c   : > { %15987 = vmatprep.subr.bf16.mxu0 %v15986_v33  ;;  %23259 = vst [vmem:[#allocation10_spill] sm:$0xff] %v19040_v48  ;;  %v2366_v28 = vmul.f32 %v19040_v48, %v19042_v49 }
 0x29d   : > { %vm1367_vm6 = vcmp.le.s32.totalorder %v897_v44, 14  ;;  %v19230_v44 = vsel %vm1369_vm7, 1.0, %v18990_v40 }
 0x29e   : > { %13986 = vmatmul.mubr.f32.gmra.mrb[6].mxu0 %v19028_v25  ;;  %23273 = vst [vmem:[#allocation24_spill] sm:$0xff] %v19230_v44 }
 0x29f   : > { %13988 = vmatprep.mubr.f32.mxu0 %v2364_v7  ;;  %15989 = vmatpush3.bf16.msra.mxu0 %v15986_v33  ;;  %v19125_v33 = vsel %vm1286_vm11, 1.0, %v18990_v40  ;;  %v19138_v7 = vsel %vm1288_vm12, 1.0, %v18990_v40 }
 0x2a0   : > { %15991 = vmatprep.subr.bf16.mxu0 %v15990_v47  ;;  %23264 = vst [vmem:[#allocation15_spill] sm:$0xff] %v19125_v33  ;;  %23265 = vst [vmem:[#allocation16_spill] sm:$0xff] %v19138_v7 }
 0x2a2   : > { %13989 = vmatmul.mubr.f32.gmra.mrb[8].mxu0 %v19045_v32 }
 0x2a3   : > { %13991 = vmatprep.mubr.f32.mxu0 %v2366_v28  ;;  %15993 = vmatpush3.bf16.msra.mxu0 %v15990_v47  ;;  %v2376_v47 = vmul.f32 %v19125_v33, %v19127_v35  ;;  %v19150_v28 = vsel %vm1290_vm13, 1.0, %v18990_v40 }
 0x2a4   : > { %15995 = vmatprep.subr.bf16.mxu0 %v15994_v31  ;;  %23266 = vst [vmem:[#allocation17_spill] sm:$0xff] %v19150_v28 }
 0x2a6   : > { %13992 = vmatmul.mubr.f32.gmra.mrb[10].mxu0 %v19062_v42 }
 0x2a7   : > { %13994 = vmatprep.mubr.f32.mxu0 %v2368_v45  ;;  %15997 = vmatpush3.bf16.msra.mxu0 %v15994_v31  ;;  %v2378_v31 = vmul.f32 %v19138_v7, %v19140_v30  ;;  %v19161_v45 = vsel %vm1292_vm14, 1.0, %v18990_v40 }
 0x2a8   : > { %15999 = vmatprep.subr.bf16.mxu0 %v15998_v26  ;;  %23267 = vst [vmem:[#allocation18_spill] sm:$0xff] %v19161_v45 }
 0x2aa   : > { %13995 = vmatmul.mubr.f32.gmra.mrb[12].mxu0 %v19079_v21 }
 0x2ab   : > { %13997 = vmatprep.mubr.f32.mxu0 %v2370_v61  ;;  %16001 = vmatpush3.bf16.msra.mxu0 %v15998_v26  ;;  %v2380_v26 = vmul.f32 %v19150_v28, %v19152_v11  ;;  %v19172_v61 = vsel %vm1294_vm15, 1.0, %v18990_v40 }
 0x2ac   : > { %16003 = vmatprep.subr.bf16.mxu0 %v16002_v34  ;;  %23268 = vst [vmem:[#allocation19_spill] sm:$0xff] %v19172_v61 }
 0x2ae   : > { %13998 = vmatmul.mubr.f32.gmra.mrb[14].mxu0 %v19096_v55 }
 0x2af   : > { %14000 = vmatprep.mubr.f32.mxu0 %v2372_v2  ;;  %16005 = vmatpush3.bf16.msra.mxu0 %v16002_v34  ;;  %v2382_v34 = vmul.f32 %v19161_v45, %v19163_v12  ;;  %v19183_v2 = vsel %vm1296_vm3, 1.0, %v18990_v40 }
 0x2b0   : > { %16007 = vmatprep.subr.bf16.mxu0 %v16006_v52  ;;  %23269 = vst [vmem:[#allocation20_spill] sm:$0xff] %v19183_v2  ;;  %v2386_v57 = vmul.f32 %v19183_v2, %v19185_v3 }
 0x2b2   : > { %14001 = vmatmul.mubr.f32.gmra.mrb[16].mxu0 %v19113_v50 }
 0x2b3   : > { %14003 = vmatprep.mubr.f32.mxu0 %v2374_v19  ;;  %16009 = vmatpush3.bf16.msra.mxu0 %v16006_v52  ;;  %v2384_v52 = vmul.f32 %v19172_v61, %v19174_v8  ;;  %v19195_v19 = vld [vmem:[#allocation2 + $0xe0] sm:$0xff] }
 0x2b4   : > { %16011 = vmatprep.subr.bf16.mxu0 %v16010_v63 }
 0x2b6   : > { %14004 = vmatmul.mubr.f32.gmra.mrb[18].mxu0 %v19132_v4 }
 0x2b7   : > { %14006 = vmatprep.mubr.f32.mxu0 %v2376_v47  ;;  %16013 = vmatpush3.bf16.msra.mxu0 %v16010_v63  ;;  %v19193_v63 = vsel %vm1298_vm4, 1.0, %v18990_v40  ;;  %v19206_v47 = vld [vmem:[#allocation2 + $0xf0] sm:$0xff] }
 0x2b8   : > { %16015 = vmatprep.subr.bf16.mxu0 %v19130_v54  ;;  %23270 = vst [vmem:[#allocation21_spill] sm:$0xff] %v19193_v63  ;;  %v2388_v39 = vmul.f32 %v19193_v63, %v19195_v19  ;;  %v2390_v24 = vmul.f32 %v19204_v6, %v19206_v47 }
 0x2ba   : > { %14007 = vmatmul.mubr.f32.gmra.mrb[20].mxu0 %v19144_v13 }
 0x2bb   : > { %14009 = vmatprep.mubr.f32.mxu0 %v2378_v31  ;;  %v19209_v31 = vld [vmem:[#allocation2 + $0xe8] sm:$0xff] }
 0x2be   : > { %14010 = vmatmul.mubr.f32.gmra.mrb[22].mxu0 %v19155_v56 }
 0x2bf   : > { %14012 = vmatprep.mubr.f32.mxu0 %v2380_v26  ;;  %v859_v26 = vadd.s32 40, %v18591_v41 }
 0x2c1   : > { %v925_v5 = vand.u32 15, %v859_v26  ;;  %v19240_v26 = vld [vmem:[#allocation2 + $0x12] sm:$0xff] }
 0x2c2   : > { %14013 = vmatmul.mubr.f32.gmra.mrb[24].mxu0 %v19166_v18  ;;  %23275 = vst [vmem:[#allocation26_spill] sm:$0xff] %v19240_v26 }
 0x2c3   : > { %14015 = vmatprep.mubr.f32.mxu0 %v2382_v34  ;;  %v19218_v34 = vsel %vm1367_vm6, 1.0, %v18990_v40  ;;  %vm1371_vm8 = vcmp.le.s32.totalorder %v925_v5, 14  ;;  %v12196_v5 = vld [vmem:[%s23252_s2 + $0x1b0] sm:$0xff] }
 0x2c4   : > { %23272 = vst [vmem:[#allocation23_spill] sm:$0xff] %v19218_v34  ;;  %v2940_v36 = vmul.f32 %v19218_v34, %v2908_v10  ;;  %v863_v10 = vadd.s32 72, %v18591_v41  ;;  %v19248_v51 = vsel %vm1371_vm8, 1.0, %v18990_v40  ;;  %v19250_v34 = vld [vmem:[#allocation2 + $0x2a] sm:$0xff] }
 0x2c5   : > { %23276 = vst [vmem:[#allocation27_spill] sm:$0xff] %v19248_v51  ;;  %23277 = vst [vmem:[#allocation28_spill] sm:$0xff] %v19250_v34 }
 0x2c6   : > { %14016 = vmatmul.mubr.f32.gmra.mrb[26].mxu0 %v19177_v46 }
 0x2c7   : > { %14018 = vmatprep.mubr.f32.mxu0 %v2384_v52  ;;  %v12193_v52 = vld [vmem:[%s23252_s2 + $0x198] sm:$0xff] }
 0x2ca   : > { %14019 = vmatmul.mubr.f32.gmra.mrb[28].mxu0 %v19187_v23 }
 0x2cb   : > { %14021 = vmatprep.mubr.f32.mxu0 %v2386_v57  ;;  %v861_v57 = vadd.s32 56, %v18591_v41 }
 0x2ce   : > { %14022 = vmatmul.mubr.f32.gmra.mrb[30].mxu0 %v19198_v29 }
 0x2cf   : > { %14024 = vmatprep.mubr.f32.mxu0 %v2388_v39  ;;  %v16018_v39 = vpack.c.bf16 %v12193_v52, %v12192_v1  ;;  %v2942_v1 = vmul.f32 %v19230_v44, %v19232_v16 }
 0x2d2   : > { %14025 = vmatmul.mubr.f32.gmra.mrb[32].mxu0 %v19209_v31 }
 0x2d3   : > { %14027 = vmatprep.mubr.f32.mxu0 %v2390_v24  ;;  %v12194_v24 = vld [vmem:[%s23252_s2 + $0x1a0] sm:$0xff] }
 0x2d4   : > { %v16022_v52 = vpack.c.bf16 %v12195_v37, %v12194_v24  ;;  %v865_v24 = vadd.s32 88, %v18591_v41  ;;  %v2944_v37 = vmul.f32 %v19248_v51, %v19250_v34 }
 0x2d6   : > { %14028 = vmatmul.mubr.f32.gmra.mrb[34].mxu0 %v19215_v20 }
 0x2d7   : > { %14062 = vmatprep.mubr.f32.mxu0 %v2907_v27  ;;  %v939_v27 = vand.u32 15, %v861_v57  ;;  %v12197_v57 = vld [vmem:[%s23252_s2 + $0x1b8] sm:$0xff] }
 0x2d8   : > { %v16026_v44 = vpack.c.bf16 %v12197_v57, %v12196_v5  ;;  %v867_v5 = vadd.s32 104, %v18591_v41 }
 0x2d9   : > { %vm1373_vm9 = vcmp.le.s32.totalorder %v939_v27, 14  ;;  %v12198_v27 = vld [vmem:[%s23252_s2 + $0x1c0] sm:$0xff] }
 0x2da   : > { %14063 = vmatmul.mubr.f32.vlgmr.msra.gmra.mrb[4].mxu0 %v2940_v36  ;;  %v953_v36 = vand.u32 15, %v863_v10  ;;  %v19265_v16 = vsel %vm1373_vm9, 1.0, %v18990_v40  ;;  %v12199_v10 = vld [vmem:[%s23252_s2 + $0x1c8] sm:$0xff] }
 0x2db   : > { %14065 = vmatprep.mubr.f32.mxu0 %v19240_v26  ;;  %16017 = vmatpush3.bf16.msra.mxu0 %v19130_v54  ;;  %v19258_v54 = vld [vmem:[#allocation2 + $0x22] sm:$0xff]  ;;  %23279 = vst [vmem:[#allocation30_spill] sm:$0xff] %v19265_v16  ;;  %v19267_v26 = vld [vmem:[#allocation2 + $0x3a] sm:$0xff]  ;;  %v16030_v51 = vpack.c.bf16 %v12199_v10, %v12198_v27  ;;  %v869_v27 = vadd.s32 120, %v18591_v41 }
 0x2dc   : > { %16019 = vmatprep.subr.bf16.mxu0 %v16018_v39  ;;  %23278 = vst [vmem:[#allocation29_spill] sm:$0xff] %v19258_v54  ;;  %23280 = vst [vmem:[#allocation31_spill] sm:$0xff] %v19267_v26  ;;  %vm1375_vm10 = vcmp.le.s32.totalorder %v953_v36, 14  ;;  %v2946_v57 = vmul.f32 %v19265_v16, %v19267_v26  ;;  %v12200_v36 = vld [vmem:[%s23252_s2 + $0x1d0] sm:$0xff] }
 0x2dd   : > { %v19282_v34 = vsel %vm1375_vm10, 1.0, %v18990_v40 }
 0x2de   : > { %14066 = vmatmul.mubr.f32.gmra.mrb[6].mxu0 %v2942_v1  ;;  %v967_v1 = vand.u32 15, %v865_v24  ;;  %23282 = vst [vmem:[#allocation33_spill] sm:$0xff] %v19282_v34  ;;  %v12201_v24 = vld [vmem:[%s23252_s2 + $0x1d8] sm:$0xff] }
 0x2df   : > { %14068 = vmatprep.mubr.f32.mxu0 %v19258_v54  ;;  %16021 = vmatpush3.bf16.msra.mxu0 %v16018_v39  ;;  %v19275_v39 = vld [vmem:[#allocation2 + $0x32] sm:$0xff]  ;;  %v19284_v54 = vld [vmem:[#allocation2 + $0x4a] sm:$0xff]  ;;  %v16034_v16 = vpack.c.bf16 %v12201_v24, %v12200_v36  ;;  %v871_v36 = vadd.s32 136, %v18591_v41 }
 0x2e0   : > { %16023 = vmatprep.subr.bf16.mxu0 %v16022_v52  ;;  %23281 = vst [vmem:[#allocation32_spill] sm:$0xff] %v19275_v39  ;;  %23283 = vst [vmem:[#allocation34_spill] sm:$0xff] %v19284_v54  ;;  %vm1377_vm11 = vcmp.le.s32.totalorder %v967_v1, 14  ;;  %v2948_v10 = vmul.f32 %v19282_v34, %v19284_v54  ;;  %v12202_v1 = vld [vmem:[%s23252_s2 + $0x1e0] sm:$0xff] }
 0x2e1   : > { %v19299_v26 = vsel %vm1377_vm11, 1.0, %v18990_v40 }
 0x2e2   : > { %14069 = vmatmul.mubr.f32.gmra.mrb[8].mxu0 %v2944_v37  ;;  %v981_v37 = vand.u32 15, %v867_v5  ;;  %23285 = vst [vmem:[#allocation36_spill] sm:$0xff] %v19299_v26  ;;  %v12203_v5 = vld [vmem:[%s23252_s2 + $0x1e8] sm:$0xff] }
 0x2e3   : > { %14071 = vmatprep.mubr.f32.mxu0 %v19275_v39  ;;  %16025 = vmatpush3.bf16.msra.mxu0 %v16022_v52  ;;  %v19292_v52 = vld [vmem:[#allocation2 + $0x42] sm:$0xff]  ;;  %v19301_v39 = vld [vmem:[#allocation2 + $0x5a] sm:$0xff]  ;;  %v16038_v34 = vpack.c.bf16 %v12203_v5, %v12202_v1  ;;  %v873_v1 = vadd.s32 152, %v18591_v41 }
 0x2e4   : > { %16027 = vmatprep.subr.bf16.mxu0 %v16026_v44  ;;  %23284 = vst [vmem:[#allocation35_spill] sm:$0xff] %v19292_v52  ;;  %23286 = vst [vmem:[#allocation37_spill] sm:$0xff] %v19301_v39  ;;  %vm1379_vm12 = vcmp.le.s32.totalorder %v981_v37, 14  ;;  %v2950_v24 = vmul.f32 %v19299_v26, %v19301_v39  ;;  %v12204_v37 = vld [vmem:[%s23252_s2 + $0x1f0] sm:$0xff] }
 0x2e5   : > { %v19316_v54 = vsel %vm1379_vm12, 1.0, %v18990_v40 }
 0x2e6   : > { %14072 = vmatmul.mubr.f32.gmra.mrb[10].mxu0 %v2946_v57  ;;  %v995_v57 = vand.u32 15, %v869_v27  ;;  %23288 = vst [vmem:[#allocation39_spill] sm:$0xff] %v19316_v54  ;;  %v12205_v27 = vld [vmem:[%s23252_s2 + $0x1f8] sm:$0xff] }
 0x2e7   : > { %14074 = vmatprep.mubr.f32.mxu0 %v19292_v52  ;;  %16029 = vmatpush3.bf16.msra.mxu0 %v16026_v44  ;;  %v19309_v44 = vld [vmem:[#allocation2 + $0x52] sm:$0xff]  ;;  %v19318_v52 = vld [vmem:[#allocation2 + $0x6a] sm:$0xff]  ;;  %v16042_v26 = vpack.c.bf16 %v12205_v27, %v12204_v37  ;;  %v875_v37 = vadd.s32 168, %v18591_v41 }
 0x2e8   : > { %16031 = vmatprep.subr.bf16.mxu0 %v16030_v51  ;;  %23287 = vst [vmem:[#allocation38_spill] sm:$0xff] %v19309_v44  ;;  %23289 = vst [vmem:[#allocation40_spill] sm:$0xff] %v19318_v52  ;;  %vm1381_vm13 = vcmp.le.s32.totalorder %v995_v57, 14  ;;  %v2952_v5 = vmul.f32 %v19316_v54, %v19318_v52  ;;  %v12206_v57 = vld [vmem:[%s23252_s2 + $0x200] sm:$0xff] }
 0x2e9   : > { %v19333_v39 = vsel %vm1381_vm13, 1.0, %v18990_v40 }
 0x2ea   : > { %14075 = vmatmul.mubr.f32.gmra.mrb[12].mxu0 %v2948_v10  ;;  %v1009_v10 = vand.u32 15, %v871_v36  ;;  %23291 = vst [vmem:[#allocation42_spill] sm:$0xff] %v19333_v39  ;;  %v12207_v36 = vld [vmem:[%s23252_s2 + $0x208] sm:$0xff] }
 0x2eb   : > { %14077 = vmatprep.mubr.f32.mxu0 %v19309_v44  ;;  %16033 = vmatpush3.bf16.msra.mxu0 %v16030_v51  ;;  %v19326_v51 = vld [vmem:[#allocation2 + $0x62] sm:$0xff]  ;;  %v19335_v44 = vld [vmem:[#allocation2 + $0x7a] sm:$0xff]  ;;  %v19349_v54 = vpack.c.bf16 %v12207_v36, %v12206_v57 }
 0x2ec   : > { %16035 = vmatprep.subr.bf16.mxu0 %v16034_v16  ;;  %23290 = vst [vmem:[#allocation41_spill] sm:$0xff] %v19326_v51  ;;  %vm1383_vm14 = vcmp.le.s32.totalorder %v1009_v10, 14  ;;  %v2954_v27 = vmul.f32 %v19333_v39, %v19335_v44  ;;  %v1037_v10 = vand.u32 15, %v875_v37  ;;  %v19366_v36 = vld [vmem:[#allocation2 + $0x9a] sm:$0xff]  ;;  %v879_v37 = vadd.s32 200, %v18591_v41  ;;  %v19377_v39 = vld [vmem:[#allocation2 + $0xaa] sm:$0xff] }
 0x2ed   : > { %v19352_v52 = vsel %vm1383_vm14, 1.0, %v18990_v40  ;;  %23295 = vst [vmem:[#allocation46_spill] sm:$0xff] %v19366_v36  ;;  %23298 = vst [vmem:[#allocation49_spill] sm:$0xff] %v19377_v39 }
 0x2ee   : > { %14078 = vmatmul.mubr.f32.gmra.mrb[14].mxu0 %v2950_v24  ;;  %v1023_v24 = vand.u32 15, %v873_v1  ;;  %23292 = vst [vmem:[#allocation43_spill] sm:$0xff] %v19352_v52  ;;  %v877_v1 = vadd.s32 184, %v18591_v41  ;;  %vm1387_vm3 = vcmp.le.s32.totalorder %v1037_v10, 14  ;;  %v881_v10 = vadd.s32 216, %v18591_v41 }
 0x2ef   : > { %14080 = vmatprep.mubr.f32.mxu0 %v19326_v51  ;;  %16037 = vmatpush3.bf16.msra.mxu0 %v16034_v16  ;;  %v19343_v16 = vld [vmem:[#allocation2 + $0x72] sm:$0xff]  ;;  %v19354_v51 = vld [vmem:[#allocation2 + $0x8a] sm:$0xff] }
 0x2f0   : > { %16039 = vmatprep.subr.bf16.mxu0 %v16038_v34  ;;  %23293 = vst [vmem:[#allocation44_spill] sm:$0xff] %v19354_v51  ;;  %vm1385_vm15 = vcmp.le.s32.totalorder %v1023_v24, 14  ;;  %v1051_v24 = vand.u32 15, %v877_v1 }
 0x2f1   : > { %v19364_v57 = vsel %vm1385_vm15, 1.0, %v18990_v40 }
 0x2f2   : > { %14081 = vmatmul.mubr.f32.gmra.mrb[16].mxu0 %v2952_v5  ;;  %v19356_v5 = vld [vmem:[#allocation2 + $0x82] sm:$0xff]  ;;  %23294 = vst [vmem:[#allocation45_spill] sm:$0xff] %v19364_v57  ;;  %vm1389_vm4 = vcmp.le.s32.totalorder %v1051_v24, 14  ;;  %v883_v24 = vadd.s32 232, %v18591_v41 }
 0x2f3   : > { %14083 = vmatprep.mubr.f32.mxu0 %v19343_v16  ;;  %16041 = vmatpush3.bf16.msra.mxu0 %v16038_v34  ;;  %v2956_v34 = vmul.f32 %v19352_v52, %v19354_v51  ;;  %v19375_v52 = vsel %vm1387_vm3, 1.0, %v18990_v40  ;;  %v19379_v51 = vld [vmem:[#allocation2 + $0xa2] sm:$0xff] }
 0x2f4   : > { %16043 = vmatprep.subr.bf16.mxu0 %v16042_v26  ;;  %23297 = vst [vmem:[#allocation48_spill] sm:$0xff] %v19375_v52  ;;  %23299 = vst [vmem:[#allocation50_spill] sm:$0xff] %v19379_v51  ;;  %v2960_v1 = vmul.f32 %v19375_v52, %v19377_v39  ;;  %v19399_v52 = vld [vmem:[#allocation2 + $0xca] sm:$0xff]  ;;  %v19401_v39 = vld [vmem:[#allocation2 + $0xc2] sm:$0xff] }
 0x2f6   : > { %14084 = vmatmul.mubr.f32.gmra.mrb[18].mxu0 %v2954_v27  ;;  %v19368_v27 = vld [vmem:[#allocation2 + $0x92] sm:$0xff] }
 0x2f7   : > { %14086 = vmatprep.mubr.f32.mxu0 %v19356_v5  ;;  %16045 = vmatpush3.bf16.msra.mxu0 %v16042_v26  ;;  %23296 = vst [vmem:[#allocation47_spill] sm:$0xff] %v19368_v27  ;;  %v2958_v26 = vmul.f32 %v19364_v57, %v19366_v36  ;;  %v19388_v57 = vld [vmem:[#allocation2 + $0xba] sm:$0xff]  ;;  %v19390_v36 = vld [vmem:[#allocation2 + $0xb2] sm:$0xff] }
 0x2f8   : > { %16047 = vmatprep.subr.bf16.mxu0 %v19349_v54  ;;  %23301 = vst [vmem:[#allocation52_spill] sm:$0xff] %v19388_v57  ;;  %23302 = vst [vmem:[#allocation53_spill] sm:$0xff] %v19390_v36 }
 0x2fa   : > { %14087 = vmatmul.mubr.f32.gmra.mrb[20].mxu0 %v2956_v34  ;;  %v1065_v34 = vand.u32 15, %v879_v37 }
 0x2fb   : > { %14089 = vmatprep.mubr.f32.mxu0 %v19368_v27  ;;  %v19386_v27 = vsel %vm1389_vm4, 1.0, %v18990_v40 }
 0x2fc   : > { %23300 = vst [vmem:[#allocation51_spill] sm:$0xff] %v19386_v27  ;;  %vm1391_vm5 = vcmp.le.s32.totalorder %v1065_v34, 14  ;;  %v2962_v37 = vmul.f32 %v19386_v27, %v19388_v57  ;;  %v885_v34 = vadd.s32 248, %v18591_v41  ;;  %v19410_v27 = vld [vmem:[#allocation2 + $0xda] sm:$0xff]  ;;  %v19412_v57 = vld [vmem:[#allocation2 + $0xd2] sm:$0xff] }
 0x2fe   : > { %14090 = vmatmul.mubr.f32.gmra.mrb[22].mxu0 %v2958_v26  ;;  %v1079_v26 = vand.u32 15, %v881_v10 }
 0x2ff   : > { %14092 = vmatprep.mubr.f32.mxu0 %v19379_v51  ;;  %v19397_v51 = vsel %vm1391_vm5, 1.0, %v18990_v40 }
 0x300   : > { %23303 = vst [vmem:[#allocation54_spill] sm:$0xff] %v19397_v51  ;;  %vm1393_vm6 = vcmp.le.s32.totalorder %v1079_v26, 14  ;;  %v2964_v10 = vmul.f32 %v19397_v51, %v19399_v52  ;;  %v19422_v51 = vld [vmem:[#allocation2 + $0xe2] sm:$0xff] }
 0x302   : > { %14093 = vmatmul.mubr.f32.gmra.mrb[24].mxu0 %v2960_v1  ;;  %v1093_v1 = vand.u32 15, %v883_v24  ;;  %v19420_v24 = vld [vmem:[#allocation2 + $0xea] sm:$0xff] }
 0x303   : > { %14095 = vmatprep.mubr.f32.mxu0 %v19390_v36  ;;  %v19408_v36 = vsel %vm1393_vm6, 1.0, %v18990_v40 }
 0x304   : > { %23304 = vst [vmem:[#allocation55_spill] sm:$0xff] %v19408_v36  ;;  %vm1395_vm7 = vcmp.le.s32.totalorder %v1093_v1, 14  ;;  %v2966_v41 = vmul.f32 %v19408_v36, %v19410_v27  ;;  %v19432_v36 = vld [vmem:[#allocation2 + $0xf2] sm:$0xff] }
 0x305   : > { %v19418_v26 = vsel %vm1395_vm7, 1.0, %v18990_v40  ;;  %23307 = vst [vmem:[#allocation58_spill] sm:$0xff] %v19432_v36 }
 0x306   : > { %14096 = vmatmul.mubr.f32.gmra.mrb[26].mxu0 %v2962_v37  ;;  %v1107_v37 = vand.u32 15, %v885_v34  ;;  %23305 = vst [vmem:[#allocation56_spill] sm:$0xff] %v19418_v26  ;;  %v2968_v1 = vmul.f32 %v19418_v26, %v19420_v24  ;;  %v12208_v26 = vld [vmem:[%s23252_s2 + $0x210] sm:$0xff] }
 0x307   : > { %14098 = vmatprep.mubr.f32.mxu0 %v19401_v39 }
 0x308   : > { %vm1397_vm8 = vcmp.le.s32.totalorder %v1107_v37, 14  ;;  %v3277_v37 = vmul.f32 %v18993_v43, %v19009_v58  ;;  %v12211_v58 = vld [vmem:[%s23252_s2 + $0x228] sm:$0xff] }
 0x309   : > { %v19428_v34 = vsel %vm1397_vm8, 1.0, %v18990_v40  ;;  %v12209_v40 = vld [vmem:[%s23252_s2 + $0x218] sm:$0xff] }
 0x30a   : > { %14099 = vmatmul.mubr.f32.gmra.mrb[28].mxu0 %v2964_v10  ;;  %23306 = vst [vmem:[#allocation57_spill] sm:$0xff] %v19428_v34  ;;  %v19430_v10 = vld [vmem:[#allocation2 + $0xfa] sm:$0xff] }
 0x30b   : > { %14101 = vmatprep.mubr.f32.mxu0 %v19412_v57 }
 0x30e   : > { %14102 = vmatmul.mubr.f32.gmra.mrb[30].mxu0 %v2966_v41  ;;  %v2970_v41 = vmul.f32 %v19428_v34, %v19430_v10  ;;  %v12210_v34 = vld [vmem:[%s23252_s2 + $0x220] sm:$0xff] }
 0x30f   : > { %14104 = vmatprep.mubr.f32.mxu0 %v19422_v51 }
 0x312   : > { %14105 = vmatmul.mubr.f32.gmra.mrb[32].mxu0 %v2968_v1  ;;  %v16050_v1 = vpack.c.bf16 %v12209_v40, %v12208_v26  ;;  %v3281_v26 = vmul.f32 %v19022_v53, %v19042_v49  ;;  %v12214_v49 = vld [vmem:[%s23252_s2 + $0x240] sm:$0xff]  ;;  %v12217_v40 = vld [vmem:[%s23252_s2 + $0x258] sm:$0xff] }
 0x313   : > { %14107 = vmatprep.mubr.f32.mxu0 %v19432_v36  ;;  %v3279_v36 = vmul.f32 %v19007_v38, %v19024_v17  ;;  %v12212_v17 = vld [vmem:[%s23252_s2 + $0x230] sm:$0xff] }
 0x316   : > { %14108 = vmatmul.mubr.f32.gmra.mrb[34].mxu0 %v2970_v41  ;;  %v16054_v41 = vpack.c.bf16 %v12211_v58, %v12210_v34  ;;  %v3285_v34 = vmul.f32 %v19057_v14, %v19076_v60  ;;  %v12218_v60 = vld [vmem:[%s23252_s2 + $0x260] sm:$0xff]  ;;  %v12219_v58 = vld [vmem:[%s23252_s2 + $0x268] sm:$0xff] }
 0x317   : > { %14142 = vmatprep.mubr.f32.mxu0 %v3277_v37  ;;  %v12213_v37 = vld [vmem:[%s23252_s2 + $0x238] sm:$0xff] }
 0x31a   : > { %14143 = vmatmul.mubr.f32.vlgmr.msra.gmra.mrb[4].mxu0 %v19028_v25  ;;  %v16058_v25 = vpack.c.bf16 %v12213_v37, %v12212_v17  ;;  %v3291_v17 = vmul.f32 %v19108_v62, %v19127_v35  ;;  %v12223_v37 = vld [vmem:[%s23252_s2 + $0x288] sm:$0xff]  ;;  %v3295_v35 = vmul.f32 %v19138_v7, %v19152_v11  ;;  %v3303_v11 = vmul.f32 %v19183_v2, %v19195_v19 }
 0x31b   : > { %14145 = vmatprep.mubr.f32.mxu0 %v3279_v36  ;;  %16049 = vmatpush3.bf16.msra.mxu0 %v19349_v54  ;;  %v3283_v54 = vmul.f32 %v19040_v48, %v19059_v59  ;;  %v12215_v36 = vld [vmem:[%s23252_s2 + $0x248] sm:$0xff]  ;;  %v12216_v59 = vld [vmem:[%s23252_s2 + $0x250] sm:$0xff] }
 0x31c   : > { %16051 = vmatprep.subr.bf16.mxu0 %v16050_v1 }
 0x31e   : > { %14146 = vmatmul.mubr.f32.gmra.mrb[6].mxu0 %v19045_v32  ;;  %v16062_v32 = vpack.c.bf16 %v12215_v36, %v12214_v49  ;;  %v19553_v49 = vld [vmem:[#allocation2 + $0x29] sm:$0xff] }
 0x31f   : > { %14148 = vmatprep.mubr.f32.mxu0 %v3281_v26  ;;  %16053 = vmatpush3.bf16.msra.mxu0 %v16050_v1  ;;  %v3287_v1 = vmul.f32 %v19074_v15, %v19093_v0  ;;  %v12220_v0 = vld [vmem:[%s23252_s2 + $0x270] sm:$0xff]  ;;  %v12221_v26 = vld [vmem:[%s23252_s2 + $0x278] sm:$0xff] }
 0x320   : > { %16055 = vmatprep.subr.bf16.mxu0 %v16054_v41  ;;  %v12228_v36 = vld [vmem:[%s23252_s2 + $0x2b0] sm:$0xff] }
 0x322   : > { %14149 = vmatmul.mubr.f32.gmra.mrb[8].mxu0 %v19062_v42  ;;  %v16066_v42 = vpack.c.bf16 %v12217_v40, %v12216_v59  ;;  %v19565_v40 = vld [vmem:[#allocation2 + $0x39] sm:$0xff] }
 0x323   : > { %14151 = vmatprep.mubr.f32.mxu0 %v3283_v54  ;;  %16057 = vmatpush3.bf16.msra.mxu0 %v16054_v41  ;;  %v3289_v41 = vmul.f32 %v19091_v22, %v19110_v9  ;;  %v12222_v9 = vld [vmem:[%s23252_s2 + $0x280] sm:$0xff] }
 0x324   : > { %16059 = vmatprep.subr.bf16.mxu0 %v16058_v25 }
 0x326   : > { %14152 = vmatmul.mubr.f32.gmra.mrb[10].mxu0 %v19079_v21  ;;  %v16070_v21 = vpack.c.bf16 %v12219_v58, %v12218_v60  ;;  %v19574_v60 = vld [vmem:[#allocation2 + $0x41] sm:$0xff] }
 0x327   : > { %14154 = vmatprep.mubr.f32.mxu0 %v3285_v34  ;;  %16061 = vmatpush3.bf16.msra.mxu0 %v16058_v25  ;;  %v3293_v25 = vmul.f32 %v19125_v33, %v19140_v30  ;;  %v3299_v30 = vmul.f32 %v19161_v45, %v19174_v8  ;;  %v19535_v8 = vld [vmem:[#allocation2 + $0x108] sm:$0xff]  ;;  %v19562_v34 = vld [vmem:[#allocation2 + $0x31] sm:$0xff] }
 0x328   : > { %16063 = vmatprep.subr.bf16.mxu0 %v16062_v32 }
 0x32a   : > { %14155 = vmatmul.mubr.f32.gmra.mrb[12].mxu0 %v19096_v55  ;;  %v16074_v55 = vpack.c.bf16 %v12221_v26, %v12220_v0  ;;  %v12233_v0 = vld [vmem:[%s23252_s2 + $0x2d8] sm:$0xff] }
 0x32b   : > { %14157 = vmatprep.mubr.f32.mxu0 %v3287_v1  ;;  %16065 = vmatpush3.bf16.msra.mxu0 %v16062_v32  ;;  %v12229_v32 = vld [vmem:[%s23252_s2 + $0x2b8] sm:$0xff]  ;;  %v12231_v1 = vld [vmem:[%s23252_s2 + $0x2c8] sm:$0xff] }
 0x32c   : > { %16067 = vmatprep.subr.bf16.mxu0 %v16066_v42  ;;  %v16090_v59 = vpack.c.bf16 %v12229_v32, %v12228_v36  ;;  %v19586_v26 = vld [vmem:[#allocation2 + $0x51] sm:$0xff]  ;;  %v19643_v32 = vld [vmem:[#allocation2 + $0xb9] sm:$0xff] }
 0x32d   : > { %v19640_v36 = vld [vmem:[#allocation2 + $0xb1] sm:$0xff] }
 0x32e   : > { %14158 = vmatmul.mubr.f32.gmra.mrb[14].mxu0 %v19113_v50  ;;  %v16078_v50 = vpack.c.bf16 %v12223_v37, %v12222_v9  ;;  %v12234_v9 = vld [vmem:[%s23252_s2 + $0x2e0] sm:$0xff]  ;;  %v12235_v37 = vld [vmem:[%s23252_s2 + $0x2e8] sm:$0xff] }
 0x32f   : > { %14160 = vmatprep.mubr.f32.mxu0 %v3289_v41  ;;  %16069 = vmatpush3.bf16.msra.mxu0 %v16066_v42  ;;  %v12230_v42 = vld [vmem:[%s23252_s2 + $0x2c0] sm:$0xff]  ;;  %v12232_v41 = vld [vmem:[%s23252_s2 + $0x2d0] sm:$0xff] }
 0x330   : > { %16071 = vmatprep.subr.bf16.mxu0 %v16070_v21  ;;  %v16094_v58 = vpack.c.bf16 %v12231_v1, %v12230_v42  ;;  %v19649_v42 = vld [vmem:[#allocation2 + $0xc9] sm:$0xff]  ;;  %v19652_v1 = vld [vmem:[#allocation2 + $0xd1] sm:$0xff] }
 0x331   : > { %23308 = vst [vmem:[#allocation59_spill] sm:$0xff] %v19652_v1 }
 0x332   : > { %14161 = vmatmul.mubr.f32.gmra.mrb[16].mxu0 %v19132_v4  ;;  %v3297_v4 = vmul.f32 %v19150_v28, %v19163_v12  ;;  %v19530_v12 = vld [vmem:[#allocation2 + $0x100] sm:$0xff] }
 0x333   : > { %14163 = vmatprep.mubr.f32.mxu0 %v3291_v17  ;;  %16073 = vmatpush3.bf16.msra.mxu0 %v16070_v21  ;;  %v19577_v21 = vld [vmem:[#allocation2 + $0x49] sm:$0xff]  ;;  %v19589_v17 = vld [vmem:[#allocation2 + $0x59] sm:$0xff] }
 0x334   : > { %16075 = vmatprep.subr.bf16.mxu0 %v16074_v55 }
 0x336   : > { %14164 = vmatmul.mubr.f32.gmra.mrb[18].mxu0 %v19144_v13  ;;  %v3301_v13 = vmul.f32 %v19172_v61, %v19185_v3  ;;  %v12225_v3 = vld [vmem:[%s23252_s2 + $0x298] sm:$0xff] }
 0x337   : > { %14166 = vmatprep.mubr.f32.mxu0 %v3293_v25  ;;  %16077 = vmatpush3.bf16.msra.mxu0 %v16074_v55  ;;  %v16098_v55 = vpack.c.bf16 %v12233_v0, %v12232_v41  ;;  %v16102_v25 = vpack.c.bf16 %v12235_v37, %v12234_v9  ;;  %v19658_v41 = vld [vmem:[#allocation2 + $0xe1] sm:$0xff]  ;;  %v19661_v0 = vld [vmem:[#allocation2 + $0xe9] sm:$0xff]  ;;  %v19667_v9 = vld [vmem:[#allocation2 + $0xf9] sm:$0xff] }
 0x338   : > { %16079 = vmatprep.subr.bf16.mxu0 %v16078_v50  ;;  %23310 = vst [vmem:[#allocation61_spill] sm:$0xff] %v19658_v41  ;;  %23311 = vst [vmem:[#allocation62_spill] sm:$0xff] %v19661_v0  ;;  %v19670_v37 = vld [vmem:[#allocation2 + $0x101] sm:$0xff] }
 0x339   : > { %23313 = vst [vmem:[#allocation64_spill] sm:$0xff] %v19667_v9  ;;  %23314 = vst [vmem:[#allocation65_spill] sm:$0xff] %v19670_v37 }
 0x33a   : > { %14167 = vmatmul.mubr.f32.gmra.mrb[20].mxu0 %v19155_v56  ;;  %v3305_v56 = vmul.f32 %v19193_v63, %v19206_v47  ;;  %v12226_v47 = vld [vmem:[%s23252_s2 + $0x2a0] sm:$0xff] }
 0x33b   : > { %14169 = vmatprep.mubr.f32.mxu0 %v3295_v35  ;;  %v19601_v35 = vld [vmem:[#allocation2 + $0x69] sm:$0xff] }
 0x33e   : > { %14170 = vmatmul.mubr.f32.gmra.mrb[22].mxu0 %v19166_v18  ;;  %v3307_v18 = vmul.f32 %v19204_v6, %v19530_v12 }
 0x33f   : > { %14172 = vmatprep.mubr.f32.mxu0 %v3297_v4  ;;  %v12236_v4 = vld [vmem:[%s23252_s2 + $0x2f0] sm:$0xff] }
 0x342   : > { %14173 = vmatmul.mubr.f32.gmra.mrb[24].mxu0 %v19177_v46  ;;  %v12224_v46 = vld [vmem:[%s23252_s2 + $0x290] sm:$0xff] }
 0x343   : > { %14175 = vmatprep.mubr.f32.mxu0 %v3299_v30  ;;  %v16082_v19 = vpack.c.bf16 %v12225_v3, %v12224_v46  ;;  %v12237_v30 = vld [vmem:[%s23252_s2 + $0x2f8] sm:$0xff]  ;;  %v12239_v46 = vld [vmem:[%s23252_s2 + $0x308] sm:$0xff] }
 0x344   : > { %v19622_v3 = vld [vmem:[#allocation2 + $0x81] sm:$0xff] }
 0x346   : > { %14176 = vmatmul.mubr.f32.gmra.mrb[26].mxu0 %v19187_v23  ;;  %v3583_v23 = vld [vmem:[#allocation2 + $0x11] sm:$0xff] }
 0x347   : > { %14178 = vmatprep.mubr.f32.mxu0 %v3301_v13  ;;  %v19610_v13 = vld [vmem:[#allocation2 + $0x71] sm:$0xff] }
 0x34a   : > { %14179 = vmatmul.mubr.f32.gmra.mrb[28].mxu0 %v19198_v29  ;;  %v3584_v29 = vld [vmem:[#allocation2 + $0x19] sm:$0xff] }
 0x34b   : > { %14181 = vmatprep.mubr.f32.mxu0 %v3303_v11  ;;  %v16106_v11 = vpack.c.bf16 %v12237_v30, %v12236_v4  ;;  %v12240_v4 = vld [vmem:[%s23252_s2 + $0x310] sm:$0xff]  ;;  %v12241_v30 = vld [vmem:[%s23252_s2 + $0x318] sm:$0xff] }
 0x34e   : > { %14182 = vmatmul.mubr.f32.gmra.mrb[30].mxu0 %v19209_v31  ;;  %v12227_v31 = vld [vmem:[%s23252_s2 + $0x2a8] sm:$0xff] }
 0x34f   : > { %14184 = vmatprep.mubr.f32.mxu0 %v3305_v56  ;;  %v16086_v54 = vpack.c.bf16 %v12227_v31, %v12226_v47  ;;  %v19613_v56 = vld [vmem:[#allocation2 + $0x79] sm:$0xff]  ;;  %v19634_v31 = vld [vmem:[#allocation2 + $0xa1] sm:$0xff] }
 0x350   : > { %v19631_v47 = vld [vmem:[#allocation2 + $0x99] sm:$0xff] }
 0x352   : > { %14185 = vmatmul.mubr.f32.gmra.mrb[32].mxu0 %v19215_v20  ;;  %v19550_v20 = vld [vmem:[#allocation2 + $0x21] sm:$0xff] }
 0x353   : > { %14187 = vmatprep.mubr.f32.mxu0 %v3307_v18  ;;  %v12238_v18 = vld [vmem:[%s23252_s2 + $0x300] sm:$0xff] }
 0x356   : > { %14188 = vmatmul.mubr.f32.gmra.mrb[34].mxu0 %v19535_v8 }
 0x357   : > { %14222 = vmatprep.mubr.f32.mxu0 %v3583_v23  ;;  %v16110_v23 = vpack.c.bf16 %v12239_v46, %v12238_v18  ;;  %v23317_v18 = vld [vmem:[#allocation25_spill] sm:$0xff]  ;;  %v23318_v46 = vld [vmem:[#allocation23_spill] sm:$0xff] }
 0x35a   : > { %14223 = vmatmul.mubr.f32.vlgmr.msra.gmra.mrb[4].mxu0 %v3584_v29  ;;  %v19628_v29 = vld [vmem:[#allocation2 + $0x91] sm:$0xff] }
 0x35b   : > { %14225 = vmatprep.mubr.f32.mxu0 %v19550_v20  ;;  %16081 = vmatpush3.bf16.msra.mxu0 %v16078_v50  ;;  %v19598_v50 = vld [vmem:[#allocation2 + $0x61] sm:$0xff] }
 0x35c   : > { %16083 = vmatprep.subr.bf16.mxu0 %v16082_v19 }
 0x35e   : > { %14226 = vmatmul.mubr.f32.gmra.mrb[6].mxu0 %v19553_v49 }
 0x35f   : > { %14228 = vmatprep.mubr.f32.mxu0 %v19562_v34  ;;  %16085 = vmatpush3.bf16.msra.mxu0 %v16082_v19  ;;  %v19625_v19 = vld [vmem:[#allocation2 + $0x89] sm:$0xff] }
 0x360   : > { %16087 = vmatprep.subr.bf16.mxu0 %v16086_v54 }
 0x362   : > { %14229 = vmatmul.mubr.f32.gmra.mrb[8].mxu0 %v19565_v40 }
 0x363   : > { %14231 = vmatprep.mubr.f32.mxu0 %v19574_v60  ;;  %16089 = vmatpush3.bf16.msra.mxu0 %v16086_v54  ;;  %v19637_v54 = vld [vmem:[#allocation2 + $0xa9] sm:$0xff] }
 0x364   : > { %16091 = vmatprep.subr.bf16.mxu0 %v16090_v59 }
 0x366   : > { %14232 = vmatmul.mubr.f32.gmra.mrb[10].mxu0 %v19577_v21 }
 0x367   : > { %14234 = vmatprep.mubr.f32.mxu0 %v19586_v26  ;;  %16093 = vmatpush3.bf16.msra.mxu0 %v16090_v59  ;;  %v19646_v59 = vld [vmem:[#allocation2 + $0xc1] sm:$0xff] }
 0x368   : > { %16095 = vmatprep.subr.bf16.mxu0 %v16094_v58 }
 0x36a   : > { %14235 = vmatmul.mubr.f32.gmra.mrb[12].mxu0 %v19589_v17 }
 0x36b   : > { %14237 = vmatprep.mubr.f32.mxu0 %v19598_v50  ;;  %16097 = vmatpush3.bf16.msra.mxu0 %v16094_v58  ;;  %v19655_v58 = vld [vmem:[#allocation2 + $0xd9] sm:$0xff] }
 0x36c   : > { %16099 = vmatprep.subr.bf16.mxu0 %v16098_v55  ;;  %23309 = vst [vmem:[#allocation60_spill] sm:$0xff] %v19655_v58 }
 0x36e   : > { %14238 = vmatmul.mubr.f32.gmra.mrb[14].mxu0 %v19601_v35 }
 0x36f   : > { %14240 = vmatprep.mubr.f32.mxu0 %v19610_v13  ;;  %16101 = vmatpush3.bf16.msra.mxu0 %v16098_v55  ;;  %v19664_v55 = vld [vmem:[#allocation2 + $0xf1] sm:$0xff] }
 0x370   : > { %16103 = vmatprep.subr.bf16.mxu0 %v16102_v25  ;;  %23312 = vst [vmem:[#allocation63_spill] sm:$0xff] %v19664_v55 }
 0x372   : > { %14241 = vmatmul.mubr.f32.gmra.mrb[16].mxu0 %v19613_v56 }
 0x373   : > { %14243 = vmatprep.mubr.f32.mxu0 %v19622_v3  ;;  %16105 = vmatpush3.bf16.msra.mxu0 %v16102_v25  ;;  %v19673_v25 = vld [vmem:[#allocation2 + $0x109] sm:$0xff] }
 0x374   : > { %16107 = vmatprep.subr.bf16.mxu0 %v16106_v11  ;;  %23315 = vst [vmem:[#allocation66_spill] sm:$0xff] %v19673_v25 }
 0x376   : > { %14244 = vmatmul.mubr.f32.gmra.mrb[18].mxu0 %v19625_v19 }
 0x377   : > { %14246 = vmatprep.mubr.f32.mxu0 %v19628_v29  ;;  %16109 = vmatpush3.bf16.msra.mxu0 %v16106_v11  ;;  %v23316_v11 = vld [vmem:[#allocation26_spill] sm:$0xff] }
 0x378   : > { %16111 = vmatprep.subr.bf16.mxu0 %v16110_v23 }
 0x37a   : > { %14247 = vmatmul.mubr.f32.gmra.mrb[20].mxu0 %v19631_v47 }
 0x37b   : > { %14249 = vmatprep.mubr.f32.mxu0 %v19634_v31 }
 0x37e   : > { %14250 = vmatmul.mubr.f32.gmra.mrb[22].mxu0 %v19637_v54 }
 0x37f   : > { %14252 = vmatprep.mubr.f32.mxu0 %v19640_v36 }
 0x382   : > { %14253 = vmatmul.mubr.f32.gmra.mrb[24].mxu0 %v19643_v32 }
 0x383   : > { %14255 = vmatprep.mubr.f32.mxu0 %v19646_v59 }
 0x386   : > { %14256 = vmatmul.mubr.f32.gmra.mrb[26].mxu0 %v19649_v42 }
 0x387   : > { %14258 = vmatprep.mubr.f32.mxu0 %v19652_v1 }
 0x38a   : > { %14259 = vmatmul.mubr.f32.gmra.mrb[28].mxu0 %v19655_v58  ;;  %v23320_v58 = vld [vmem:[#allocation28_spill] sm:$0xff] }
 0x38b   : > { %14261 = vmatprep.mubr.f32.mxu0 %v19658_v41  ;;  %v23319_v41 = vld [vmem:[#allocation29_spill] sm:$0xff] }
 0x38e   : > { %14262 = vmatmul.mubr.f32.gmra.mrb[30].mxu0 %v19661_v0  ;;  %v12243_v0 = vld [vmem:[%s23252_s2 + $0x328] sm:$0xff] }
 0x38f   : > { %14264 = vmatprep.mubr.f32.mxu0 %v19664_v55  ;;  %v16114_v55 = vpack.c.bf16 %v12241_v30, %v12240_v4  ;;  %v12244_v4 = vld [vmem:[%s23252_s2 + $0x330] sm:$0xff]  ;;  %v12245_v30 = vld [vmem:[%s23252_s2 + $0x338] sm:$0xff] }
 0x392   : > { %14265 = vmatmul.mubr.f32.gmra.mrb[32].mxu0 %v19667_v9  ;;  %v3922_v9 = vmul.f32 %v23318_v46, %v23317_v18  ;;  %v23322_v18 = vld [vmem:[#allocation32_spill] sm:$0xff]  ;;  %v16122_v46 = vpack.c.bf16 %v12245_v30, %v12244_v4  ;;  %v12248_v4 = vld [vmem:[%s23252_s2 + $0x350] sm:$0xff]  ;;  %v12249_v30 = vld [vmem:[%s23252_s2 + $0x358] sm:$0xff] }
 0x393   : > { %14267 = vmatprep.mubr.f32.mxu0 %v19670_v37  ;;  %v12242_v37 = vld [vmem:[%s23252_s2 + $0x320] sm:$0xff] }
 0x396   : > { %14268 = vmatmul.mubr.f32.gmra.mrb[34].mxu0 %v19673_v25  ;;  %v23321_v25 = vld [vmem:[#allocation24_spill] sm:$0xff] }
 0x397   : > { %14302 = vmatprep.mubr.f32.mxu0 %v23316_v11  ;;  %v3924_v1 = vmul.f32 %v23321_v25, %v23320_v58  ;;  %v16118_v11 = vpack.c.bf16 %v12243_v0, %v12242_v37  ;;  %v12246_v58 = vld [vmem:[%s23252_s2 + $0x340] sm:$0xff]  ;;  %v12247_v0 = vld [vmem:[%s23252_s2 + $0x348] sm:$0xff]  ;;  %v23325_v37 = vld [vmem:[#allocation35_spill] sm:$0xff] }
 0x398   : > { %v16126_v25 = vpack.c.bf16 %v12247_v0, %v12246_v58  ;;  %v12250_v58 = vld [vmem:[%s23252_s2 + $0x360] sm:$0xff]  ;;  %v12251_v0 = vld [vmem:[%s23252_s2 + $0x368] sm:$0xff] }
 0x39a   : > { %14303 = vmatmul.mubr.f32.vlgmr.msra.gmra.mrb[4].mxu0 %v3922_v9  ;;  %v23323_v9 = vld [vmem:[#allocation31_spill] sm:$0xff] }
 0x39b   : > { %14305 = vmatprep.mubr.f32.mxu0 %v23319_v41  ;;  %16113 = vmatpush3.bf16.msra.mxu0 %v16110_v23  ;;  %v23324_v41 = vld [vmem:[#allocation27_spill] sm:$0xff] }
 0x39c   : > { %16115 = vmatprep.subr.bf16.mxu0 %v16114_v55  ;;  %v3926_v23 = vmul.f32 %v23324_v41, %v23323_v9  ;;  %v23328_v9 = vld [vmem:[#allocation38_spill] sm:$0xff]  ;;  %v16130_v41 = vpack.c.bf16 %v12249_v30, %v12248_v4  ;;  %v12253_v30 = vld [vmem:[%s23252_s2 + $0x378] sm:$0xff] }
 0x39d   : > { %v12252_v4 = vld [vmem:[%s23252_s2 + $0x370] sm:$0xff] }
 0x39e   : > { %14306 = vmatmul.mubr.f32.gmra.mrb[6].mxu0 %v3924_v1  ;;  %v23326_v1 = vld [vmem:[#allocation34_spill] sm:$0xff] }
 0x39f   : > { %14308 = vmatprep.mubr.f32.mxu0 %v23322_v18  ;;  %16117 = vmatpush3.bf16.msra.mxu0 %v16114_v55  ;;  %v23327_v18 = vld [vmem:[#allocation30_spill] sm:$0xff] }
 0x3a0   : > { %16119 = vmatprep.subr.bf16.mxu0 %v16118_v11  ;;  %v3928_v55 = vmul.f32 %v23327_v18, %v23326_v1  ;;  %v23331_v1 = vld [vmem:[#allocation41_spill] sm:$0xff]  ;;  %v16134_v18 = vpack.c.bf16 %v12251_v0, %v12250_v58  ;;  %v12254_v58 = vld [vmem:[%s23252_s2 + $0x380] sm:$0xff] }
 0x3a1   : > { %v12255_v0 = vld [vmem:[%s23252_s2 + $0x388] sm:$0xff] }
 0x3a2   : > { %14309 = vmatmul.mubr.f32.gmra.mrb[8].mxu0 %v3926_v23  ;;  %v23329_v23 = vld [vmem:[#allocation37_spill] sm:$0xff] }
 0x3a3   : > { %14311 = vmatprep.mubr.f32.mxu0 %v23325_v37  ;;  %16121 = vmatpush3.bf16.msra.mxu0 %v16118_v11  ;;  %v23330_v37 = vld [vmem:[#allocation33_spill] sm:$0xff] }
 0x3a4   : > { %16123 = vmatprep.subr.bf16.mxu0 %v16122_v46  ;;  %v3930_v11 = vmul.f32 %v23330_v37, %v23329_v23  ;;  %v23334_v23 = vld [vmem:[#allocation39_spill] sm:$0xff] }
 0x3a6   : > { %14312 = vmatmul.mubr.f32.gmra.mrb[10].mxu0 %v3928_v55  ;;  %v23332_v55 = vld [vmem:[#allocation40_spill] sm:$0xff] }
 0x3a7   : > { %14314 = vmatprep.mubr.f32.mxu0 %v23328_v9  ;;  %16125 = vmatpush3.bf16.msra.mxu0 %v16122_v46  ;;  %v23333_v9 = vld [vmem:[#allocation36_spill] sm:$0xff] }
 0x3a8   : > { %16127 = vmatprep.subr.bf16.mxu0 %v16126_v25  ;;  %v3932_v46 = vmul.f32 %v23333_v9, %v23332_v55  ;;  %v16142_v55 = vpack.c.bf16 %v12255_v0, %v12254_v58  ;;  %v23342_v9 = vld [vmem:[#allocation45_spill] sm:$0xff] }
 0x3aa   : > { %14315 = vmatmul.mubr.f32.gmra.mrb[12].mxu0 %v3930_v11  ;;  %v16138_v11 = vpack.c.bf16 %v12253_v30, %v12252_v4  ;;  %v23339_v4 = vld [vmem:[#allocation43_spill] sm:$0xff] }
 0x3ab   : > { %14317 = vmatprep.mubr.f32.mxu0 %v23331_v1  ;;  %16129 = vmatpush3.bf16.msra.mxu0 %v16126_v25  ;;  %v3934_v25 = vmul.f32 %v23334_v23, %v19335_v44  ;;  %v23335_v1 = vld [vmem:[#allocation44_spill] sm:$0xff]  ;;  %v23337_v44 = vld [vmem:[#allocation47_spill] sm:$0xff]  ;;  %v23340_v23 = vld [vmem:[#allocation50_spill] sm:$0xff] }
 0x3ac   : > { %16131 = vmatprep.subr.bf16.mxu0 %v16130_v41 }
 0x3ae   : > { %14318 = vmatmul.mubr.f32.gmra.mrb[14].mxu0 %v3932_v46  ;;  %v23338_v46 = vld [vmem:[#allocation46_spill] sm:$0xff] }
 0x3af   : > { %14320 = vmatprep.mubr.f32.mxu0 %v19343_v16  ;;  %16133 = vmatpush3.bf16.msra.mxu0 %v16130_v41  ;;  %v23336_v16 = vld [vmem:[#allocation42_spill] sm:$0xff]  ;;  %v3938_v30 = vmul.f32 %v23339_v4, %v23338_v46 }
 0x3b0   : > { %16135 = vmatprep.subr.bf16.mxu0 %v16134_v18  ;;  %v3936_v41 = vmul.f32 %v23336_v16, %v23335_v1  ;;  %v23344_v1 = vld [vmem:[#allocation52_spill] sm:$0xff] }
 0x3b1   : > { %v23345_v16 = vld [vmem:[#allocation48_spill] sm:$0xff] }
 0x3b2   : > { %14321 = vmatmul.mubr.f32.gmra.mrb[16].mxu0 %v3934_v25  ;;  %v23341_v25 = vld [vmem:[#allocation49_spill] sm:$0xff]  ;;  %v3942_v58 = vmul.f32 %v23345_v16, %v23344_v1  ;;  %v4229_v1 = vld [vmem:[#allocation2 + $0x30] sm:$0xff] }
 0x3b3   : > { %14323 = vmatprep.mubr.f32.mxu0 %v19356_v5  ;;  %16137 = vmatpush3.bf16.msra.mxu0 %v16134_v18  ;;  %v3940_v5 = vmul.f32 %v23342_v9, %v23341_v25  ;;  %v23343_v18 = vld [vmem:[#allocation53_spill] sm:$0xff] }
 0x3b4   : > { %16139 = vmatprep.subr.bf16.mxu0 %v16138_v11 }
 0x3b6   : > { %14324 = vmatmul.mubr.f32.gmra.mrb[18].mxu0 %v3936_v41 }
 0x3b7   : > { %14326 = vmatprep.mubr.f32.mxu0 %v23337_v44  ;;  %16141 = vmatpush3.bf16.msra.mxu0 %v16138_v11  ;;  %v23346_v11 = vld [vmem:[#allocation51_spill] sm:$0xff] }
 0x3b8   : > { %16143 = vmatprep.subr.bf16.mxu0 %v16142_v55  ;;  %v3944_v0 = vmul.f32 %v23346_v11, %v19399_v52  ;;  %v23348_v44 = vld [vmem:[#allocation55_spill] sm:$0xff]  ;;  %v19771_v52 = vld [vmem:[#allocation2 + $0x102] sm:$0xff] }
 0x3b9   : > { %v3948_v46 = vmul.f32 %v23348_v44, %v19420_v24  ;;  %v12256_v24 = vld [vmem:[%s23252_s2 + $0x390] sm:$0xff] }
 0x3ba   : > { %14327 = vmatmul.mubr.f32.gmra.mrb[20].mxu0 %v3938_v30  ;;  %v23349_v30 = vld [vmem:[#allocation58_spill] sm:$0xff] }
 0x3bb   : > { %14329 = vmatprep.mubr.f32.mxu0 %v23340_v23  ;;  %v23347_v23 = vld [vmem:[#allocation54_spill] sm:$0xff] }
 0x3bc   : > { %v3946_v41 = vmul.f32 %v23347_v23, %v19410_v27  ;;  %v23351_v27 = vld [vmem:[#allocation57_spill] sm:$0xff] }
 0x3be   : > { %14330 = vmatmul.mubr.f32.gmra.mrb[22].mxu0 %v3940_v5  ;;  %v19769_v5 = vld [vmem:[#allocation2 + $0x10a] sm:$0xff] }
 0x3bf   : > { %14332 = vmatprep.mubr.f32.mxu0 %v23343_v18 }
 0x3c2   : > { %14333 = vmatmul.mubr.f32.gmra.mrb[24].mxu0 %v3942_v58 }
 0x3c3   : > { %14335 = vmatprep.mubr.f32.mxu0 %v19401_v39  ;;  %v23350_v39 = vld [vmem:[#allocation56_spill] sm:$0xff] }
 0x3c4   : > { %v3950_v25 = vmul.f32 %v23350_v39, %v19430_v10  ;;  %v12257_v10 = vld [vmem:[%s23252_s2 + $0x398] sm:$0xff] }
 0x3c5   : > { %v16146_v58 = vpack.c.bf16 %v12257_v10, %v12256_v24  ;;  %v12260_v24 = vld [vmem:[%s23252_s2 + $0x3b0] sm:$0xff]  ;;  %v12261_v10 = vld [vmem:[%s23252_s2 + $0x3b8] sm:$0xff] }
 0x3c6   : > { %14336 = vmatmul.mubr.f32.gmra.mrb[26].mxu0 %v3944_v0  ;;  %v4228_v0 = vld [vmem:[#allocation2 + $0x28] sm:$0xff] }
 0x3c7   : > { %14338 = vmatprep.mubr.f32.mxu0 %v19412_v57  ;;  %v4227_v57 = vld [vmem:[#allocation2 + $0x20] sm:$0xff] }
 0x3c8   : > { %v4259_v18 = vmul.f32 %v18993_v43, %v4227_v57 }
 0x3ca   : > { %14339 = vmatmul.mubr.f32.gmra.mrb[28].mxu0 %v3946_v41  ;;  %v4261_v41 = vmul.f32 %v19007_v38, %v4229_v1  ;;  %v4233_v1 = vld [vmem:[#allocation2 + $0x50] sm:$0xff] }
 0x3cb   : > { %14341 = vmatprep.mubr.f32.mxu0 %v19422_v51  ;;  %v3952_v51 = vmul.f32 %v23351_v27, %v19769_v5 }
 0x3ce   : > { %14342 = vmatmul.mubr.f32.gmra.mrb[30].mxu0 %v3948_v46  ;;  %v12258_v46 = vld [vmem:[%s23252_s2 + $0x3a0] sm:$0xff] }
 0x3cf   : > { %14344 = vmatprep.mubr.f32.mxu0 %v23349_v30  ;;  %v12259_v30 = vld [vmem:[%s23252_s2 + $0x3a8] sm:$0xff] }
 0x3d0   : > { %v16150_v57 = vpack.c.bf16 %v12259_v30, %v12258_v46  ;;  %v12262_v46 = vld [vmem:[%s23252_s2 + $0x3c0] sm:$0xff]  ;;  %v12263_v30 = vld [vmem:[%s23252_s2 + $0x3c8] sm:$0xff] }
 0x3d2   : > { %14345 = vmatmul.mubr.f32.gmra.mrb[32].mxu0 %v3950_v25  ;;  %v4231_v25 = vld [vmem:[#allocation2 + $0x40] sm:$0xff] }
 0x3d3   : > { %14347 = vmatprep.mubr.f32.mxu0 %v19771_v52 }
 0x3d6   : > { %14348 = vmatmul.mubr.f32.gmra.mrb[34].mxu0 %v3952_v51  ;;  %v4230_v51 = vld [vmem:[#allocation2 + $0x38] sm:$0xff] }
 0x3d7   : > { %14382 = vmatprep.mubr.f32.mxu0 %v4259_v18  ;;  %v4263_v18 = vmul.f32 %v19022_v53, %v4231_v25  ;;  %v4235_v25 = vld [vmem:[#allocation2 + $0x60] sm:$0xff] }
 0x3da   : > { %14383 = vmatmul.mubr.f32.vlgmr.msra.gmra.mrb[4].mxu0 %v4228_v0  ;;  %v16154_v0 = vpack.c.bf16 %v12261_v10, %v12260_v24  ;;  %v12264_v24 = vld [vmem:[%s23252_s2 + $0x3d0] sm:$0xff]  ;;  %v12265_v10 = vld [vmem:[%s23252_s2 + $0x3d8] sm:$0xff] }
 0x3db   : > { %14385 = vmatprep.mubr.f32.mxu0 %v4261_v41  ;;  %16145 = vmatpush3.bf16.msra.mxu0 %v16142_v55  ;;  %v4232_v55 = vld [vmem:[#allocation2 + $0x48] sm:$0xff]  ;;  %v4265_v41 = vmul.f32 %v19040_v48, %v4233_v1  ;;  %v4237_v1 = vld [vmem:[#allocation2 + $0x70] sm:$0xff] }
 0x3dc   : > { %16147 = vmatprep.subr.bf16.mxu0 %v16146_v58 }
 0x3de   : > { %14386 = vmatmul.mubr.f32.gmra.mrb[6].mxu0 %v4230_v51  ;;  %v16158_v51 = vpack.c.bf16 %v12263_v30, %v12262_v46  ;;  %v12266_v46 = vld [vmem:[%s23252_s2 + $0x3e0] sm:$0xff]  ;;  %v12267_v30 = vld [vmem:[%s23252_s2 + $0x3e8] sm:$0xff] }
 0x3df   : > { %14388 = vmatprep.mubr.f32.mxu0 %v4263_v18  ;;  %16149 = vmatpush3.bf16.msra.mxu0 %v16146_v58  ;;  %v4234_v58 = vld [vmem:[#allocation2 + $0x58] sm:$0xff]  ;;  %v4267_v18 = vmul.f32 %v19057_v14, %v4235_v25  ;;  %v4239_v25 = vld [vmem:[#allocation2 + $0x80] sm:$0xff] }
 0x3e0   : > { %16151 = vmatprep.subr.bf16.mxu0 %v16150_v57 }
 0x3e2   : > { %14389 = vmatmul.mubr.f32.gmra.mrb[8].mxu0 %v4232_v55  ;;  %v16162_v55 = vpack.c.bf16 %v12265_v10, %v12264_v24  ;;  %v12268_v24 = vld [vmem:[%s23252_s2 + $0x3f0] sm:$0xff]  ;;  %v12269_v10 = vld [vmem:[%s23252_s2 + $0x3f8] sm:$0xff] }
 0x3e3   : > { %14391 = vmatprep.mubr.f32.mxu0 %v4265_v41  ;;  %16153 = vmatpush3.bf16.msra.mxu0 %v16150_v57  ;;  %v4236_v57 = vld [vmem:[#allocation2 + $0x68] sm:$0xff]  ;;  %v4269_v41 = vmul.f32 %v19074_v15, %v4237_v1  ;;  %v4241_v1 = vld [vmem:[#allocation2 + $0x90] sm:$0xff] }
 0x3e4   : > { %16155 = vmatprep.subr.bf16.mxu0 %v16154_v0 }
 0x3e6   : > { %14392 = vmatmul.mubr.f32.gmra.mrb[10].mxu0 %v4234_v58  ;;  %v16166_v58 = vpack.c.bf16 %v12267_v30, %v12266_v46  ;;  %v12270_v46 = vld [vmem:[%s23252_s2 + $0x400] sm:$0xff]  ;;  %v12271_v30 = vld [vmem:[%s23252_s2 + $0x408] sm:$0xff] }
 0x3e7   : > { %14394 = vmatprep.mubr.f32.mxu0 %v4267_v18  ;;  %16157 = vmatpush3.bf16.msra.mxu0 %v16154_v0  ;;  %v4238_v0 = vld [vmem:[#allocation2 + $0x78] sm:$0xff]  ;;  %v4271_v18 = vmul.f32 %v19091_v22, %v4239_v25  ;;  %v4243_v25 = vld [vmem:[#allocation2 + $0xa0] sm:$0xff] }
 0x3e8   : > { %16159 = vmatprep.subr.bf16.mxu0 %v16158_v51 }
 0x3ea   : > { %14395 = vmatmul.mubr.f32.gmra.mrb[12].mxu0 %v4236_v57  ;;  %v16170_v57 = vpack.c.bf16 %v12269_v10, %v12268_v24  ;;  %v4245_v24 = vld [vmem:[#allocation2 + $0xb0] sm:$0xff]  ;;  %v4244_v10 = vld [vmem:[#allocation2 + $0xa8] sm:$0xff] }
 0x3eb   : > { %14397 = vmatprep.mubr.f32.mxu0 %v4269_v41  ;;  %16161 = vmatpush3.bf16.msra.mxu0 %v16158_v51  ;;  %v4240_v51 = vld [vmem:[#allocation2 + $0x88] sm:$0xff]  ;;  %v4273_v41 = vmul.f32 %v19108_v62, %v4241_v1  ;;  %v4277_v1 = vmul.f32 %v19138_v7, %v4245_v24  ;;  %v4247_v62 = vld [vmem:[#allocation2 + $0xc0] sm:$0xff] }
 0x3ec   : > { %16163 = vmatprep.subr.bf16.mxu0 %v16162_v55  ;;  %v4252_v24 = vld [vmem:[#allocation2 + $0xe8] sm:$0xff] }
 0x3ee   : > { %14398 = vmatmul.mubr.f32.gmra.mrb[14].mxu0 %v4238_v0  ;;  %v16174_v0 = vpack.c.bf16 %v12271_v30, %v12270_v46  ;;  %v4248_v46 = vld [vmem:[#allocation2 + $0xc8] sm:$0xff] }
 0x3ef   : > { %14400 = vmatprep.mubr.f32.mxu0 %v4271_v18  ;;  %16165 = vmatpush3.bf16.msra.mxu0 %v16162_v55  ;;  %v4242_v55 = vld [vmem:[#allocation2 + $0x98] sm:$0xff]  ;;  %v4275_v18 = vmul.f32 %v19125_v33, %v4243_v25  ;;  %v4251_v25 = vld [vmem:[#allocation2 + $0xe0] sm:$0xff] }
 0x3f0   : > { %16167 = vmatprep.subr.bf16.mxu0 %v16166_v58 }
 0x3f2   : > { %14401 = vmatmul.mubr.f32.gmra.mrb[16].mxu0 %v4240_v51  ;;  %v4246_v51 = vld [vmem:[#allocation2 + $0xb8] sm:$0xff] }
 0x3f3   : > { %14403 = vmatprep.mubr.f32.mxu0 %v4273_v41  ;;  %16169 = vmatpush3.bf16.msra.mxu0 %v16166_v58  ;;  %v4279_v41 = vmul.f32 %v19150_v28, %v4247_v62  ;;  %v4249_v58 = vld [vmem:[#allocation2 + $0xd0] sm:$0xff]  ;;  %v4254_v62 = vld [vmem:[#allocation2 + $0xf8] sm:$0xff] }
 0x3f4   : > { %16171 = vmatprep.subr.bf16.mxu0 %v16170_v57  ;;  %v4281_v30 = vmul.f32 %v19161_v45, %v4249_v58  ;;  %v4258_v58 = vld [vmem:[#allocation2 + $0x118] sm:$0xff] }
 0x3f6   : > { %14404 = vmatmul.mubr.f32.gmra.mrb[18].mxu0 %v4242_v55  ;;  %v4283_v55 = vmul.f32 %v19172_v61, %v4251_v25  ;;  %v12274_v25 = vld [vmem:[%s23252_s2 + $0x420] sm:$0xff] }
 0x3f7   : > { %14406 = vmatprep.mubr.f32.mxu0 %v4275_v18  ;;  %16173 = vmatpush3.bf16.msra.mxu0 %v16170_v57  ;;  %v4250_v57 = vld [vmem:[#allocation2 + $0xd8] sm:$0xff]  ;;  %v4253_v18 = vld [vmem:[#allocation2 + $0xf0] sm:$0xff] }
 0x3f8   : > { %16175 = vmatprep.subr.bf16.mxu0 %v16174_v0 }
 0x3fa   : > { %14407 = vmatmul.mubr.f32.gmra.mrb[20].mxu0 %v4244_v10  ;;  %v4285_v10 = vmul.f32 %v19183_v2, %v4253_v18  ;;  %v12281_v18 = vld [vmem:[%s23252_s2 + $0x458] sm:$0xff] }
 0x3fb   : > { %14409 = vmatprep.mubr.f32.mxu0 %v4277_v1  ;;  %v4287_v1 = vmul.f32 %v19193_v63, %v19530_v12 }
 0x3fe   : > { %14410 = vmatmul.mubr.f32.gmra.mrb[22].mxu0 %v4246_v51  ;;  %v4257_v51 = vld [vmem:[#allocation2 + $0x110] sm:$0xff] }
 0x3ff   : > { %14412 = vmatprep.mubr.f32.mxu0 %v4279_v41  ;;  %v4289_v41 = vmul.f32 %v19204_v6, %v4257_v51  ;;  %v4873_v51 = vld [vmem:[#allocation2 + $0x32] sm:$0xff] }
 0x402   : > { %14413 = vmatmul.mubr.f32.gmra.mrb[24].mxu0 %v4248_v46  ;;  %v12272_v46 = vld [vmem:[%s23252_s2 + $0x410] sm:$0xff] }
 0x403   : > { %14415 = vmatprep.mubr.f32.mxu0 %v4281_v30  ;;  %v12273_v30 = vld [vmem:[%s23252_s2 + $0x418] sm:$0xff] }
 0x404   : > { %v16178_v12 = vpack.c.bf16 %v12273_v30, %v12272_v46  ;;  %v4876_v46 = vld [vmem:[#allocation2 + $0x4a] sm:$0xff]  ;;  %v4875_v30 = vld [vmem:[#allocation2 + $0x42] sm:$0xff] }
 0x406   : > { %14416 = vmatmul.mubr.f32.gmra.mrb[26].mxu0 %v4250_v57 }
 0x407   : > { %14418 = vmatprep.mubr.f32.mxu0 %v4283_v55  ;;  %v12277_v55 = vld [vmem:[%s23252_s2 + $0x438] sm:$0xff] }
 0x40a   : > { %14419 = vmatmul.mubr.f32.gmra.mrb[28].mxu0 %v4252_v24  ;;  %v12283_v24 = vld [vmem:[%s23252_s2 + $0x468] sm:$0xff] }
 0x40b   : > { %14421 = vmatprep.mubr.f32.mxu0 %v4285_v10  ;;  %v12285_v10 = vld [vmem:[%s23252_s2 + $0x478] sm:$0xff] }
 0x40e   : > { %14422 = vmatmul.mubr.f32.gmra.mrb[30].mxu0 %v4254_v62 }
 0x40f   : > { %14424 = vmatprep.mubr.f32.mxu0 %v4287_v1  ;;  %v4874_v1 = vld [vmem:[#allocation2 + $0x3a] sm:$0xff] }
 0x412   : > { %14425 = vmatmul.mubr.f32.gmra.mrb[32].mxu0 %v19535_v8  ;;  %v12275_v8 = vld [vmem:[%s23252_s2 + $0x428] sm:$0xff] }
 0x413   : > { %14427 = vmatprep.mubr.f32.mxu0 %v4289_v41  ;;  %v16182_v57 = vpack.c.bf16 %v12275_v8, %v12274_v25  ;;  %v23361_v41 = vld [vmem:[#allocation24_spill] sm:$0xff] }
 0x414   : > { %v4878_v8 = vld [vmem:[#allocation2 + $0x5a] sm:$0xff] }
 0x416   : > { %14428 = vmatmul.mubr.f32.gmra.mrb[34].mxu0 %v4258_v58  ;;  %v4906_v58 = vmul.f32 %v23361_v41, %v4874_v1  ;;  %v4894_v1 = vld [vmem:[#allocation2 + $0xda] sm:$0xff] }
 0x417   : > { %14462 = vmatprep.mubr.f32.mxu0 %v19550_v20  ;;  %v12276_v20 = vld [vmem:[%s23252_s2 + $0x430] sm:$0xff] }
 0x41a   : > { %14463 = vmatmul.mubr.f32.vlgmr.msra.gmra.mrb[4].mxu0 %v19553_v49  ;;  %v16186_v49 = vpack.c.bf16 %v12277_v55, %v12276_v20  ;;  %v23363_v20 = vld [vmem:[#allocation30_spill] sm:$0xff] }
 0x41b   : > { %14465 = vmatprep.mubr.f32.mxu0 %v19562_v34  ;;  %16177 = vmatpush3.bf16.msra.mxu0 %v16174_v0  ;;  %v12278_v34 = vld [vmem:[%s23252_s2 + $0x440] sm:$0xff]  ;;  %v12279_v0 = vld [vmem:[%s23252_s2 + $0x448] sm:$0xff]  ;;  %v4910_v55 = vmul.f32 %v23363_v20, %v4878_v8 }
 0x41c   : > { %16179 = vmatprep.subr.bf16.mxu0 %v16178_v12  ;;  %v4898_v8 = vld [vmem:[#allocation2 + $0xfa] sm:$0xff] }
 0x41e   : > { %14466 = vmatmul.mubr.f32.gmra.mrb[6].mxu0 %v19565_v40  ;;  %v16190_v40 = vpack.c.bf16 %v12279_v0, %v12278_v34  ;;  %v4879_v34 = vld [vmem:[#allocation2 + $0x62] sm:$0xff] }
 0x41f   : > { %14468 = vmatprep.mubr.f32.mxu0 %v19574_v60  ;;  %16181 = vmatpush3.bf16.msra.mxu0 %v16178_v12  ;;  %v12280_v60 = vld [vmem:[%s23252_s2 + $0x450] sm:$0xff]  ;;  %v23362_v12 = vld [vmem:[#allocation27_spill] sm:$0xff] }
 0x420   : > { %16183 = vmatprep.subr.bf16.mxu0 %v16182_v57  ;;  %v4908_v25 = vmul.f32 %v23362_v12, %v4876_v46  ;;  %v4896_v46 = vld [vmem:[#allocation2 + $0xea] sm:$0xff] }
 0x422   : > { %14469 = vmatmul.mubr.f32.gmra.mrb[8].mxu0 %v19577_v21  ;;  %v16194_v21 = vpack.c.bf16 %v12281_v18, %v12280_v60  ;;  %v4881_v60 = vld [vmem:[#allocation2 + $0x72] sm:$0xff]  ;;  %v23364_v18 = vld [vmem:[#allocation36_spill] sm:$0xff] }
 0x423   : > { %14471 = vmatprep.mubr.f32.mxu0 %v19586_v26  ;;  %16185 = vmatpush3.bf16.msra.mxu0 %v16182_v57  ;;  %v12282_v26 = vld [vmem:[%s23252_s2 + $0x460] sm:$0xff]  ;;  %v4877_v57 = vld [vmem:[#allocation2 + $0x52] sm:$0xff] }
 0x424   : > { %16187 = vmatprep.subr.bf16.mxu0 %v16186_v49 }
 0x426   : > { %14472 = vmatmul.mubr.f32.gmra.mrb[10].mxu0 %v19589_v17  ;;  %v16198_v17 = vpack.c.bf16 %v12283_v24, %v12282_v26  ;;  %v4884_v26 = vld [vmem:[#allocation2 + $0x8a] sm:$0xff]  ;;  %v4883_v24 = vld [vmem:[#allocation2 + $0x82] sm:$0xff] }
 0x427   : > { %14474 = vmatprep.mubr.f32.mxu0 %v19598_v50  ;;  %16189 = vmatpush3.bf16.msra.mxu0 %v16186_v49  ;;  %v12284_v50 = vld [vmem:[%s23252_s2 + $0x470] sm:$0xff]  ;;  %s23370_s2 = sld [smem:[#allocation74_spill]] }
 0x428   : > { %16191 = vmatprep.subr.bf16.mxu0 %v16190_v40  ;;  %v4880_v49 = vld [vmem:[#allocation2 + $0x6a] sm:$0xff] }
 0x429   : > { %v4912_v0 = vmul.f32 %v23330_v37, %v4880_v49  ;;  %v4902_v49 = vld [vmem:[#allocation2 + $0x11a] sm:$0xff] }
 0x42a   : > { %14475 = vmatmul.mubr.f32.gmra.mrb[12].mxu0 %v19601_v35  ;;  %v16202_v35 = vpack.c.bf16 %v12285_v10, %v12284_v50  ;;  %v4886_v10 = vld [vmem:[#allocation2 + $0x9a] sm:$0xff] }
 0x42b   : > { %14477 = vmatprep.mubr.f32.mxu0 %v19610_v13  ;;  %16193 = vmatpush3.bf16.msra.mxu0 %v16190_v40  ;;  %v23352_v13 = vld [vmem:[#allocation59_spill] sm:$0xff] }
 0x42c   : > { %16195 = vmatprep.subr.bf16.mxu0 %v16194_v21  ;;  %v4882_v40 = vld [vmem:[#allocation2 + $0x7a] sm:$0xff] }
 0x42e   : > { %14478 = vmatmul.mubr.f32.gmra.mrb[14].mxu0 %v19613_v56  ;;  %v23353_v56 = vld [vmem:[#allocation60_spill] sm:$0xff] }
 0x42f   : > { %14480 = vmatprep.mubr.f32.mxu0 %v19622_v3  ;;  %16197 = vmatpush3.bf16.msra.mxu0 %v16194_v21  ;;  %v23354_v3 = vld [vmem:[#allocation61_spill] sm:$0xff]  ;;  %v4914_v21 = vmul.f32 %v23364_v18, %v4882_v40  ;;  %v4934_v40 = vmul.f32 %v23351_v27, %v4902_v49 }
 0x430   : > { %16199 = vmatprep.subr.bf16.mxu0 %v16198_v17 }
 0x432   : > { %14481 = vmatmul.mubr.f32.gmra.mrb[16].mxu0 %v19625_v19  ;;  %v23355_v19 = vld [vmem:[#allocation62_spill] sm:$0xff] }
 0x433   : > { %14483 = vmatprep.mubr.f32.mxu0 %v19628_v29  ;;  %16201 = vmatpush3.bf16.msra.mxu0 %v16198_v17  ;;  %v23356_v29 = vld [vmem:[#allocation63_spill] sm:$0xff] }
 0x434   : > { %16203 = vmatprep.subr.bf16.mxu0 %v16202_v35  ;;  %v23365_v17 = vld [vmem:[#allocation39_spill] sm:$0xff] }
 0x435   : > { %v4916_v50 = vmul.f32 %v23365_v17, %v4884_v26 }
 0x436   : > { %14484 = vmatmul.mubr.f32.gmra.mrb[18].mxu0 %v19631_v47  ;;  %v23357_v47 = vld [vmem:[#allocation64_spill] sm:$0xff] }
 0x437   : > { %14486 = vmatprep.mubr.f32.mxu0 %v19634_v31  ;;  %16205 = vmatpush3.bf16.msra.mxu0 %v16202_v35  ;;  %v23358_v31 = vld [vmem:[#allocation65_spill] sm:$0xff]  ;;  %v4885_v35 = vld [vmem:[#allocation2 + $0x92] sm:$0xff] }
 0x43a   : > { %14487 = vmatmul.mubr.f32.gmra.mrb[20].mxu0 %v19637_v54  ;;  %v23359_v54 = vld [vmem:[#allocation66_spill] sm:$0xff] }
 0x43b   : > { %14489 = vmatprep.mubr.f32.mxu0 %v19640_v36  ;;  %v19914_v36 = vld [vmem:[#allocation2] sm:$0xff] }
 0x43e   : > { %14490 = vmatmul.mubr.f32.gmra.mrb[22].mxu0 %v19643_v32  ;;  %v4872_v32 = vld [vmem:[#allocation2 + $0x2a] sm:$0xff] }
 0x43f   : > { %14492 = vmatprep.mubr.f32.mxu0 %v19646_v59  ;;  %v4871_v59 = vld [vmem:[#allocation2 + $0x22] sm:$0xff] }
 0x442   : > { %14493 = vmatmul.mubr.f32.gmra.mrb[24].mxu0 %v19649_v42  ;;  %v23360_v42 = vld [vmem:[#allocation23_spill] sm:$0xff] }
 0x443   : > { %14495 = vmatprep.mubr.f32.mxu0 %v23352_v13  ;;  %v4904_v62 = vmul.f32 %v23360_v42, %v4872_v32  ;;  %v23366_v13 = vld [vmem:[#allocation42_spill] sm:$0xff] }
 0x444   : > { %v4892_v32 = vld [vmem:[#allocation2 + $0xca] sm:$0xff] }
 0x446   : > { %14496 = vmatmul.mubr.f32.gmra.mrb[26].mxu0 %v23353_v56  ;;  %v4918_v56 = vmul.f32 %v23366_v13, %v4886_v10  ;;  %v5293_v10 = vld [vmem:[%s23367_s1 + $0x20] sm:$0xff] }
 0x447   : > { %14498 = vmatprep.mubr.f32.mxu0 %v23354_v3  ;;  %v4888_v3 = vld [vmem:[#allocation2 + $0xaa] sm:$0xff] }
 0x44a   : > { %14499 = vmatmul.mubr.f32.gmra.mrb[28].mxu0 %v23355_v19  ;;  %v4887_v19 = vld [vmem:[#allocation2 + $0xa2] sm:$0xff] }
 0x44b   : > { %14501 = vmatprep.mubr.f32.mxu0 %v23356_v29  ;;  %v4920_v29 = vmul.f32 %v23339_v4, %v4888_v3  ;;  %v5295_v3 = vld [vmem:[%s23367_s1 + $0x30] sm:$0xff] }
 0x44e   : > { %14502 = vmatmul.mubr.f32.gmra.mrb[30].mxu0 %v23357_v47  ;;  %v4890_v47 = vld [vmem:[#allocation2 + $0xba] sm:$0xff] }
 0x44f   : > { %14504 = vmatprep.mubr.f32.mxu0 %v23358_v31  ;;  %v4889_v31 = vld [vmem:[#allocation2 + $0xb2] sm:$0xff] }
 0x452   : > { %14505 = vmatmul.mubr.f32.gmra.mrb[32].mxu0 %v23359_v54  ;;  %v4922_v54 = vmul.f32 %v23342_v9, %v4890_v47 }
 0x453   : > { %14507 = vmatprep.mubr.f32.mxu0 %v19914_v36 }
 0x456   : > { %14508 = vmatmul.mubr.f32.gmra.mrb[34].mxu0 %v19914_v36 }
 0x457   : > { %14542 = vmatprep.mubr.f32.mxu0 %v4871_v59  ;;  %v4891_v59 = vld [vmem:[#allocation2 + $0xc2] sm:$0xff] }
 0x45a   : > { %14543 = vmatmul.mubr.f32.vlgmr.msra.gmra.mrb[4].mxu0 %v4904_v62  ;;  %v4924_v62 = vmul.f32 %v23345_v16, %v4892_v32  ;;  %v5299_v32 = vld [vmem:[%s23367_s1 + $0x50] sm:$0xff] }
 0x45b   : > { %14545 = vmatprep.mubr.f32.mxu0 %v4873_v51  ;;  %v4893_v51 = vld [vmem:[#allocation2 + $0xd2] sm:$0xff] }
 0x45e   : > { %14546 = vmatmul.mubr.f32.gmra.mrb[6].mxu0 %v4906_v58  ;;  %v4926_v58 = vmul.f32 %v23346_v11, %v4894_v1  ;;  %v5301_v1 = vld [vmem:[%s23367_s1 + $0x60] sm:$0xff] }
 0x45f   : > { %14548 = vmatprep.mubr.f32.mxu0 %v4875_v30  ;;  %v4895_v30 = vld [vmem:[#allocation2 + $0xe2] sm:$0xff] }
 0x462   : > { %14549 = vmatmul.mubr.f32.gmra.mrb[8].mxu0 %v4908_v25  ;;  %v4928_v25 = vmul.f32 %v23347_v23, %v4896_v46  ;;  %v5303_v46 = vld [vmem:[%s23367_s1 + $0x70] sm:$0xff] }
 0x463   : > { %14551 = vmatprep.mubr.f32.mxu0 %v4877_v57  ;;  %v4897_v57 = vld [vmem:[#allocation2 + $0xf2] sm:$0xff] }
 0x466   : > { %14552 = vmatmul.mubr.f32.gmra.mrb[10].mxu0 %v4910_v55  ;;  %v4930_v55 = vmul.f32 %v23348_v44, %v4898_v8  ;;  %v20023_v8 = vld [vmem:[%s23370_s2] ss:$0 sm:$0xff] }
 0x467   : > { %14554 = vmatprep.mubr.f32.mxu0 %v4879_v34  ;;  %v4932_v34 = vmul.f32 %v23350_v39, %v19769_v5  ;;  %v5291_v5 = vld [vmem:[%s23367_s1 + $0x10] sm:$0xff] }
 0x46a   : > { %14555 = vmatmul.mubr.f32.gmra.mrb[12].mxu0 %v4912_v0  ;;  %v4901_v0 = vld [vmem:[#allocation2 + $0x112] sm:$0xff] }
 0x46b   : > { %14557 = vmatprep.mubr.f32.mxu0 %v4881_v60  ;;  %v5289_v60 = vld [vmem:[%s23367_s1] sm:$0xff] }
 0x46e   : > { %14558 = vmatmul.mubr.f32.gmra.mrb[14].mxu0 %v4914_v21  ;;  %v5290_v21 = vld [vmem:[%s23367_s1 + $0x8] sm:$0xff] }
 0x46f   : > { %14560 = vmatprep.mubr.f32.mxu0 %v4883_v24  ;;  %v19942_v26 = vpack.c.bf16 %v5290_v21, %v5289_v60  ;;  %v5292_v24 = vld [vmem:[%s23367_s1 + $0x18] sm:$0xff] }
 0x471   : > { %16208 = vmatpush3.bf16.msra.mxu1 %v19942_v26 }
 0x472   : > { %14561 = vmatmul.mubr.f32.gmra.mrb[16].mxu0 %v4916_v50  ;;  %v19952_v50 = vpack.c.bf16 %v5292_v24, %v5291_v5 }
 0x473   : > { %14563 = vmatprep.mubr.f32.mxu0 %v4885_v35  ;;  %v5294_v35 = vld [vmem:[%s23367_s1 + $0x28] sm:$0xff] }
 0x476   : > { %14564 = vmatmul.mubr.f32.gmra.mrb[18].mxu0 %v4918_v56  ;;  %v19962_v56 = vpack.c.bf16 %v5294_v35, %v5293_v10 }
 0x477   : > { %14566 = vmatprep.mubr.f32.mxu0 %v4887_v19  ;;  %v5296_v19 = vld [vmem:[%s23367_s1 + $0x38] sm:$0xff] }
 0x478   : > { %v19975_v47 = vpack.c.bf16 %v5296_v19, %v5295_v3 }
 0x47a   : > { %14567 = vmatmul.mubr.f32.gmra.mrb[20].mxu0 %v4920_v29  ;;  %v5297_v29 = vld [vmem:[%s23367_s1 + $0x40] sm:$0xff] }
 0x47b   : > { %14569 = vmatprep.mubr.f32.mxu0 %v4889_v31  ;;  %v5298_v31 = vld [vmem:[%s23367_s1 + $0x48] sm:$0xff] }
 0x47e   : > { %14570 = vmatmul.mubr.f32.gmra.mrb[22].mxu0 %v4922_v54  ;;  %v19981_v54 = vpack.c.bf16 %v5298_v31, %v5297_v29 }
 0x47f   : > { %14572 = vmatprep.mubr.f32.mxu0 %v4891_v59  ;;  %v5300_v59 = vld [vmem:[%s23367_s1 + $0x58] sm:$0xff] }
 0x482   : > { %14573 = vmatmul.mubr.f32.gmra.mrb[24].mxu0 %v4924_v62  ;;  %v19991_v62 = vpack.c.bf16 %v5300_v59, %v5299_v32 }
 0x483   : > { %14575 = vmatprep.mubr.f32.mxu0 %v4893_v51  ;;  %v5302_v51 = vld [vmem:[%s23367_s1 + $0x68] sm:$0xff] }
 0x486   : > { %14576 = vmatmul.mubr.f32.gmra.mrb[26].mxu0 %v4926_v58  ;;  %v20001_v58 = vpack.c.bf16 %v5302_v51, %v5301_v1 }
 0x487   : > { %14578 = vmatprep.mubr.f32.mxu0 %v4895_v30  ;;  %v5304_v30 = vld [vmem:[%s23367_s1 + $0x78] sm:$0xff] }
 0x48a   : > { %14579 = vmatmul.mubr.f32.gmra.mrb[28].mxu0 %v4928_v25  ;;  %v20011_v25 = vpack.c.bf16 %v5304_v30, %v5303_v46 }
 0x48b   : > { %14581 = vmatprep.mubr.f32.mxu0 %v4897_v57 }
 0x48e   : > { %14582 = vmatmul.mubr.f32.gmra.mrb[30].mxu0 %v4930_v55  ;;  %v20025_v55 = vld [vmem:[%s842_s11] ss:$0 sm:$0xff]  ;;  %s22925_s11 = scalar_lea.vmem %s23052_s27, %s18237_s8 }
 0x48f   : > { %14584 = vmatprep.mubr.f32.mxu0 %v19771_v52  ;;  %v23368_v52 = vmov 0.0|0.0  }
 0x490   : > { %16209 = vmatprep.subr.bf16.mxu1 %v23368_v52 }
 0x491   : > { %16211 = vmatpush3.bf16.msra.mxu1 %v19952_v50 }
 0x492   : > { %14585 = vmatmul.mubr.f32.gmra.mrb[32].mxu0 %v4932_v34  ;;  %16212 = vmatprep.subr.bf16.mxu1 %v23368_v52 }
 0x493   : > { %14587 = vmatprep.mubr.f32.mxu0 %v4901_v0 }
 0x495   : > { %16214 = vmatpush3.bf16.msra.mxu1 %v19962_v56 }
 0x496   : > { %14588 = vmatmul.mubr.f32.gmra.mrb[34].mxu0 %v4934_v40  ;;  %16215 = vmatprep.subr.bf16.mxu1 %v23368_v52 }
 0x499   : > { %16217 = vmatpush3.bf16.msra.mxu1 %v19975_v47 }
 0x49a   : > { %16218 = vmatprep.subr.bf16.mxu1 %v23368_v52 }
 0x49d   : > { %16220 = vmatpush3.bf16.msra.mxu1 %v19981_v54 }
 0x49e   : > { %16221 = vmatprep.subr.bf16.mxu1 %v23368_v52 }
 0x4a1   : > { %16223 = vmatpush3.bf16.msra.mxu1 %v19991_v62 }
 0x4a2   : > { %16224 = vmatprep.subr.bf16.mxu1 %v23368_v52 }
 0x4a5   : > { %16226 = vmatpush3.bf16.msra.mxu1 %v20001_v58 }
 0x4a6   : > { %16227 = vmatprep.subr.bf16.mxu1 %v23368_v52 }
 0x4a9   : > { %16229 = vmatpush3.bf16.msra.mxu1 %v20011_v25 }
 0x4aa   : > { %16230 = vmatprep.subr.bf16.mxu1 %v23368_v52 }
 0x52d   : > { %v14544_v57 = vpop.f32.mrb[4].mxu0 }
 0x52e   : > { %v5217_v49 = vadd.f32 %v14544_v57, %v20023_v8  ;;  %v5018_v34 = vpop.f32.mrb[5].mxu0 }
 0x52f   : > { %v5216_v0 = vadd.f32 %v20023_v8, %v5018_v34 }
 0x530   : > { %v20030_v40 = vadd.f32 %v20025_v55, %v5217_v49 }
 0x531   : > { %v20033_v60 = vadd.f32 %v20025_v55, %v5216_v0  ;;  %v14547_v21 = vpop.f32.mrb[6].mxu0 }
 0x532   : > { %v5219_v5 = vadd.f32 %v14547_v21, %v20023_v8  ;;  %v5028_v24 = vpop.f32.mrb[7].mxu0  ;;  %v5344_v10 = vmul.f32 %v20030_v40, %v20030_v40 }
 0x533   : > { %v5343_v35 = vmul.f32 %v20033_v60, %v20033_v60  ;;  %v5218_v3 = vadd.f32 %v20023_v8, %v5028_v24  ;;  %v5306_v29 = vadd.f32 %v20030_v40, %v20033_v60 }
 0x534   : > { %v20042_v19 = vadd.f32 %v20025_v55, %v5219_v5 }
 0x535   : > { %v20047_v31 = vadd.f32 %v20025_v55, %v5218_v3  ;;  %v14550_v32 = vpop.f32.mrb[8].mxu0  ;;  %v5375_v51 = vadd.f32 %v5344_v10, %v5343_v35 }
 0x536   : > { %v5221_v59 = vadd.f32 %v14550_v32, %v20023_v8  ;;  %v5038_v1 = vpop.f32.mrb[9].mxu0  ;;  %v5346_v49 = vmul.f32 %v20042_v19, %v20042_v19 }
 0x537   : > { %v5307_v46 = vadd.f32 %v5306_v29, %v20047_v31  ;;  %v5345_v30 = vmul.f32 %v20047_v31, %v20047_v31  ;;  %v5220_v57 = vadd.f32 %v20023_v8, %v5038_v1 }
 0x538   : > { %v20057_v0 = vadd.f32 %v20025_v55, %v5221_v59 }
 0x539   : > { %v5376_v34 = vadd.f32 %v5375_v51, %v5345_v30  ;;  %v20060_v21 = vadd.f32 %v20025_v55, %v5220_v57  ;;  %v5308_v5 = vadd.f32 %v5307_v46, %v20042_v19  ;;  %v14553_v24 = vpop.f32.mrb[10].mxu0 }
 0x53a   : > { %v5223_v10 = vadd.f32 %v14553_v24, %v20023_v8  ;;  %v5048_v35 = vpop.f32.mrb[11].mxu0  ;;  %v5348_v51 = vmul.f32 %v20057_v0, %v20057_v0 }
 0x53b   : > { %v5309_v3 = vadd.f32 %v5308_v5, %v20060_v21  ;;  %v5347_v29 = vmul.f32 %v20060_v21, %v20060_v21  ;;  %v5377_v32 = vadd.f32 %v5376_v34, %v5346_v49  ;;  %v5222_v1 = vadd.f32 %v20023_v8, %v5048_v35 }
 0x53c   : > { %v20069_v59 = vadd.f32 %v20025_v55, %v5223_v10 }
 0x53d   : > { %v5378_v30 = vadd.f32 %v5377_v32, %v5347_v29  ;;  %v20074_v46 = vadd.f32 %v20025_v55, %v5222_v1  ;;  %v5310_v57 = vadd.f32 %v5309_v3, %v20057_v0  ;;  %v14556_v24 = vpop.f32.mrb[12].mxu0 }
 0x53e   : > { %v5225_v5 = vadd.f32 %v14556_v24, %v20023_v8  ;;  %v5058_v27 = vpop.f32.mrb[13].mxu0  ;;  %v5350_v29 = vmul.f32 %v20069_v59, %v20069_v59 }
 0x53f   : > { %v5311_v49 = vadd.f32 %v5310_v57, %v20074_v46  ;;  %v5349_v34 = vmul.f32 %v20074_v46, %v20074_v46  ;;  %v5379_v10 = vadd.f32 %v5378_v30, %v5348_v51  ;;  %v5224_v35 = vadd.f32 %v20023_v8, %v5058_v27 }
 0x540   : > { %v20085_v1 = vadd.f32 %v20025_v55, %v5225_v5 }
 0x541   : > { %v5380_v32 = vadd.f32 %v5379_v10, %v5349_v34  ;;  %v20088_v3 = vadd.f32 %v20025_v55, %v5224_v35  ;;  %v5312_v24 = vadd.f32 %v5311_v49, %v20069_v59  ;;  %v14559_v39 = vpop.f32.mrb[14].mxu0 }
 0x542   : > { %v5227_v57 = vadd.f32 %v14559_v39, %v20023_v8  ;;  %v5068_v44 = vpop.f32.mrb[15].mxu0  ;;  %v5352_v10 = vmul.f32 %v20085_v1, %v20085_v1 }
 0x543   : > { %v5313_v51 = vadd.f32 %v5312_v24, %v20088_v3  ;;  %v5351_v27 = vmul.f32 %v20088_v3, %v20088_v3  ;;  %v5381_v30 = vadd.f32 %v5380_v32, %v5350_v29  ;;  %v5226_v34 = vadd.f32 %v20023_v8, %v5068_v44 }
 0x544   : > { %v20097_v5 = vadd.f32 %v20025_v55, %v5227_v57 }
 0x545   : > { %v5382_v35 = vadd.f32 %v5381_v30, %v5351_v27  ;;  %v20102_v49 = vadd.f32 %v20025_v55, %v5226_v34  ;;  %v5314_v39 = vadd.f32 %v5313_v51, %v20085_v1  ;;  %v14562_v23 = vpop.f32.mrb[16].mxu0 }
 0x546   : > { %v5229_v24 = vadd.f32 %v14562_v23, %v20023_v8  ;;  %v5078_v11 = vpop.f32.mrb[17].mxu0  ;;  %v5354_v27 = vmul.f32 %v20097_v5, %v20097_v5 }
 0x547   : > { %v5315_v29 = vadd.f32 %v5314_v39, %v20102_v49  ;;  %v5353_v44 = vmul.f32 %v20102_v49, %v20102_v49  ;;  %v5383_v32 = vadd.f32 %v5382_v35, %v5352_v10  ;;  %v5228_v57 = vadd.f32 %v20023_v8, %v5078_v11 }
 0x548   : > { %v20113_v34 = vadd.f32 %v20025_v55, %v5229_v24 }
 0x549   : > { %v5384_v30 = vadd.f32 %v5383_v32, %v5353_v44  ;;  %v20116_v51 = vadd.f32 %v20025_v55, %v5228_v57  ;;  %v5316_v23 = vadd.f32 %v5315_v29, %v20097_v5  ;;  %v14565_v16 = vpop.f32.mrb[18].mxu0 }
 0x54a   : > { %v5231_v39 = vadd.f32 %v14565_v16, %v20023_v8  ;;  %v5088_v9 = vpop.f32.mrb[19].mxu0  ;;  %v5356_v32 = vmul.f32 %v20113_v34, %v20113_v34 }
 0x54b   : > { %v5317_v10 = vadd.f32 %v5316_v23, %v20116_v51  ;;  %v5355_v11 = vmul.f32 %v20116_v51, %v20116_v51  ;;  %v5385_v35 = vadd.f32 %v5384_v30, %v5354_v27  ;;  %v5230_v44 = vadd.f32 %v20023_v8, %v5088_v9 }
 0x54c   : > { %v20125_v24 = vadd.f32 %v20025_v55, %v5231_v39 }
 0x54d   : > { %v5386_v57 = vadd.f32 %v5385_v35, %v5355_v11  ;;  %v20130_v29 = vadd.f32 %v20025_v55, %v5230_v44  ;;  %v5318_v16 = vadd.f32 %v5317_v10, %v20113_v34  ;;  %v14568_v4 = vpop.f32.mrb[20].mxu0 }
 0x54e   : > { %v5233_v23 = vadd.f32 %v14568_v4, %v20023_v8  ;;  %v5098_v13 = vpop.f32.mrb[21].mxu0  ;;  %v5358_v11 = vmul.f32 %v20125_v24, %v20125_v24 }
 0x54f   : > { %v5319_v27 = vadd.f32 %v5318_v16, %v20130_v29  ;;  %v5357_v9 = vmul.f32 %v20130_v29, %v20130_v29  ;;  %v5387_v30 = vadd.f32 %v5386_v57, %v5356_v32  ;;  %v5232_v39 = vadd.f32 %v20023_v8, %v5098_v13 }
 0x550   : > { %v20141_v44 = vadd.f32 %v20025_v55, %v5233_v23 }
 0x551   : > { %v5388_v35 = vadd.f32 %v5387_v30, %v5357_v9  ;;  %v20144_v10 = vadd.f32 %v20025_v55, %v5232_v39  ;;  %v5320_v4 = vadd.f32 %v5319_v27, %v20125_v24  ;;  %v14571_v17 = vpop.f32.mrb[22].mxu0 }
 0x552   : > { %v5235_v16 = vadd.f32 %v14571_v17, %v20023_v8  ;;  %v5108_v18 = vpop.f32.mrb[23].mxu0  ;;  %v5360_v30 = vmul.f32 %v20141_v44, %v20141_v44 }
 0x553   : > { %v5321_v32 = vadd.f32 %v5320_v4, %v20144_v10  ;;  %v5359_v13 = vmul.f32 %v20144_v10, %v20144_v10  ;;  %v5389_v57 = vadd.f32 %v5388_v35, %v5358_v11  ;;  %v5234_v9 = vadd.f32 %v20023_v8, %v5108_v18 }
 0x554   : > { %v20153_v23 = vadd.f32 %v20025_v55, %v5235_v16 }
 0x555   : > { %v5390_v39 = vadd.f32 %v5389_v57, %v5359_v13  ;;  %v20158_v27 = vadd.f32 %v20025_v55, %v5234_v9  ;;  %v5322_v17 = vadd.f32 %v5321_v32, %v20141_v44  ;;  %v14574_v37 = vpop.f32.mrb[24].mxu0 }
 0x556   : > { %v5237_v4 = vadd.f32 %v14574_v37, %v20023_v8  ;;  %v5118_v20 = vpop.f32.mrb[25].mxu0  ;;  %v5362_v13 = vmul.f32 %v20153_v23, %v20153_v23 }
 0x557   : > { %v5323_v11 = vadd.f32 %v5322_v17, %v20158_v27  ;;  %v5361_v18 = vmul.f32 %v20158_v27, %v20158_v27  ;;  %v5391_v35 = vadd.f32 %v5390_v39, %v5360_v30  ;;  %v5236_v16 = vadd.f32 %v20023_v8, %v5118_v20 }
 0x558   : > { %v20169_v9 = vadd.f32 %v20025_v55, %v5237_v4 }
 0x559   : > { %v5392_v57 = vadd.f32 %v5391_v35, %v5361_v18  ;;  %v20172_v32 = vadd.f32 %v20025_v55, %v5236_v16  ;;  %v5324_v37 = vadd.f32 %v5323_v11, %v20153_v23  ;;  %v14577_v12 = vpop.f32.mrb[26].mxu0 }
 0x55a   : > { %v5239_v17 = vadd.f32 %v14577_v12, %v20023_v8  ;;  %v5128_v41 = vpop.f32.mrb[27].mxu0  ;;  %v5364_v4 = vmul.f32 %v20169_v9, %v20169_v9 }
 0x55b   : > { %v5325_v30 = vadd.f32 %v5324_v37, %v20172_v32  ;;  %v5363_v20 = vmul.f32 %v20172_v32, %v20172_v32  ;;  %v5393_v39 = vadd.f32 %v5392_v57, %v5362_v13  ;;  %v5238_v18 = vadd.f32 %v20023_v8, %v5128_v41 }
 0x55c   : > { %v20187_v12 = vadd.f32 %v20025_v55, %v5239_v17 }
 0x55d   : > { %v5394_v35 = vadd.f32 %v5393_v39, %v5363_v20  ;;  %v20183_v16 = vadd.f32 %v20025_v55, %v5238_v18  ;;  %v5326_v11 = vadd.f32 %v5325_v30, %v20169_v9  ;;  %v14580_v42 = vpop.f32.mrb[28].mxu0 }
 0x55e   : > { %v5241_v37 = vadd.f32 %v14580_v42, %v20023_v8  ;;  %v5138_v6 = vpop.f32.mrb[29].mxu0  ;;  %v5366_v17 = vmul.f32 %v20187_v12, %v20187_v12 }
 0x55f   : > { %v5327_v13 = vadd.f32 %v5326_v11, %v20183_v16  ;;  %v5365_v41 = vmul.f32 %v20183_v16, %v20183_v16  ;;  %v5395_v57 = vadd.f32 %v5394_v35, %v5364_v4  ;;  %v5240_v20 = vadd.f32 %v20023_v8, %v5138_v6 }
 0x560   : > { %v20201_v2 = vadd.f32 %v20025_v55, %v5241_v37 }
 0x561   : > { %v5396_v39 = vadd.f32 %v5395_v57, %v5365_v41  ;;  %v20195_v18 = vadd.f32 %v20025_v55, %v5240_v20  ;;  %v5328_v30 = vadd.f32 %v5327_v13, %v20187_v12  ;;  %v14583_v63 = vpop.f32.mrb[30].mxu0 }
 0x562   : > { %v5148_v42 = vpop.f32.mrb[31].mxu0  ;;  %v5243_v4 = vadd.f32 %v14583_v63, %v20023_v8 }
 0x563   : > { %v5329_v11 = vadd.f32 %v5328_v30, %v20195_v18  ;;  %v5242_v6 = vadd.f32 %v20023_v8, %v5148_v42  ;;  %v5367_v35 = vmul.f32 %v20195_v18, %v20195_v18  ;;  %v5397_v41 = vadd.f32 %v5396_v39, %v5366_v17 }
 0x564   : > { %v20213_v37 = vadd.f32 %v20025_v55, %v5243_v4 }
 0x565   : > { %v20209_v13 = vadd.f32 %v20025_v55, %v5242_v6  ;;  %v5330_v57 = vadd.f32 %v5329_v11, %v20201_v2  ;;  %v14586_v20 = vpop.f32.mrb[32].mxu0  ;;  %v5398_v45 = vadd.f32 %v5397_v41, %v5367_v35  ;;  %v5368_v11 = vmul.f32 %v20201_v2, %v20201_v2 }
 0x566   : > { %v5158_v61 = vpop.f32.mrb[33].mxu0  ;;  %v5245_v63 = vadd.f32 %v14586_v20, %v20023_v8 }
 0x567   : > { %v5331_v30 = vadd.f32 %v5330_v57, %v20209_v13  ;;  %v5244_v42 = vadd.f32 %v20023_v8, %v5158_v61  ;;  %v5369_v35 = vmul.f32 %v20209_v13, %v20209_v13  ;;  %v5399_v41 = vadd.f32 %v5398_v45, %v5368_v11 }
 0x568   : > { %v20225_v4 = vadd.f32 %v20025_v55, %v5245_v63 }
 0x569   : > { %v20219_v28 = vadd.f32 %v20025_v55, %v5244_v42  ;;  %v5332_v39 = vadd.f32 %v5331_v30, %v20213_v37  ;;  %v14589_v17 = vpop.f32.mrb[34].mxu0  ;;  %v5400_v33 = vadd.f32 %v5399_v41, %v5369_v35 }
 0x56a   : > { %v5168_v6 = vpop.f32.mrb[35].mxu0  ;;  %v5247_v20 = vadd.f32 %v14589_v17, %v20023_v8 }
 0x56b   : > { %v5333_v57 = vadd.f32 %v5332_v39, %v20219_v28  ;;  %v5246_v61 = vadd.f32 %v20023_v8, %v5168_v6  ;;  %v5370_v8 = vmul.f32 %v20213_v37, %v20213_v37  ;;  %v5371_v45 = vmul.f32 %v20219_v28, %v20219_v28 }
 0x56c   : > { %v20237_v7 = vadd.f32 %v20025_v55, %v5247_v20 }
 0x56d   : > { %v20233_v30 = vadd.f32 %v20025_v55, %v5246_v61  ;;  %v5334_v42 = vadd.f32 %v5333_v57, %v20225_v4  ;;  %v5401_v11 = vadd.f32 %v5400_v33, %v5370_v8  ;;  %v5372_v55 = vmul.f32 %v20225_v4, %v20225_v4 }
 0x56f   : > { %v5335_v63 = vadd.f32 %v5334_v42, %v20233_v30  ;;  %v5402_v22 = vadd.f32 %v5401_v11, %v5371_v45  ;;  %v5373_v35 = vmul.f32 %v20233_v30, %v20233_v30 }
 0x571   : > { %v5336_v39 = vadd.f32 %v5335_v63, %v20237_v7  ;;  %v5403_v41 = vadd.f32 %v5402_v22, %v5372_v55  ;;  %v5374_v63 = vmul.f32 %v20237_v7, %v20237_v7 }
 0x573   : > { %v5337_v17 = vrot.slane %v5336_v39, 4  ;;  %v5404_v33 = vadd.f32 %v5403_v41, %v5373_v35  ;;  %v12326_v35 = vld [vmem:[%s23037_s12 + $0x80] sm:$0xff]  ;;  %v12327_v41 = vld [vmem:[%s23037_s12 + $0x88] sm:$0xff] }
 0x575   : > { %v5338_v6 = vadd.f32 %v5337_v17, %v5336_v39  ;;  %v5405_v39 = vadd.f32 %v5404_v33, %v5374_v63  ;;  %v12329_v33 = vld [vmem:[%s23037_s12 + $0x98] sm:$0xff] }
 0x577   : > { %v5339_v61 = vrot.slane %v5338_v6, 2  ;;  %v5406_v22 = vrot.slane %v5405_v39, 4 }
 0x579   : > { %v5340_v57 = vadd.f32 %v5339_v61, %v5338_v6 }
 0x57b   : > { %v5341_v20 = vrot.slane %v5340_v57, 1 }
 0x57d   : > { %v5342_v42 = vadd.f32 %v5341_v20, %v5340_v57 }
 0x57f   : > { %14623 = vmatmul.mubr.f32.vlgmr.msra.gmra.mrb[4].mxu1 %v5342_v42  ;;  %v12328_v42 = vld [vmem:[%s23037_s12 + $0x90] sm:$0xff] }
 0x580   : > { %16232 = vmatpush3.bf16.msra.mxu1 %v19942_v26  ;;  %14657 = vmatprep.mubr.msk.f32.mxu1 %vm18043_vm0, %v19914_v36  ;;  %v5407_v26 = vadd.f32 %v5406_v22, %v5405_v39  ;;  %v16258_v63 = vpack.c.bf16 %v12329_v33, %v12328_v42  ;;  %v12330_v39 = vld [vmem:[%s23037_s12 + $0xa0] sm:$0xff]  ;;  %v12331_v22 = vld [vmem:[%s23037_s12 + $0xa8] sm:$0xff] }
 0x581   : > { %16233 = vmatprep.subr.bf16.mxu1 %v23368_v52  ;;  %v6183_v42 = vld [vmem:[%s23037_s12] sm:$0xff]  ;;  %v6184_v33 = vld [vmem:[%s23037_s12 + $0x8] sm:$0xff] }
 0x582   : > { %v5408_v8 = vrot.slane %v5407_v26, 2 }
 0x584   : > { %16235 = vmatpush3.bf16.msra.mxu1 %v19952_v50  ;;  %v5409_v50 = vadd.f32 %v5408_v8, %v5407_v26  ;;  %v16262_v26 = vpack.c.bf16 %v12331_v22, %v12330_v39  ;;  %v16286_v39 = vpack.c.bf16 %v6184_v33, %v6183_v42  ;;  %v6186_v22 = vld [vmem:[%s23037_s12 + $0x18] sm:$0xff] }
 0x585   : > { %16236 = vmatprep.subr.bf16.mxu1 %v23368_v52 }
 0x588   : > { %16238 = vmatpush3.bf16.msra.mxu1 %v19962_v56  ;;  %v5410_v56 = vrot.slane %v5409_v50, 1 }
 0x589   : > { %16239 = vmatprep.subr.bf16.mxu1 %v23368_v52 }
 0x58c   : > { %16241 = vmatpush3.bf16.msra.mxu1 %v19975_v47  ;;  %v5411_v47 = vadd.f32 %v5410_v56, %v5409_v50  ;;  %v12332_v50 = vld [vmem:[%s23037_s12 + $0xb0] sm:$0xff]  ;;  %v12333_v56 = vld [vmem:[%s23037_s12 + $0xb8] sm:$0xff] }
 0x58d   : > { %16242 = vmatprep.subr.bf16.mxu1 %v23368_v52 }
 0x590   : > { %16244 = vmatpush3.bf16.msra.mxu1 %v19981_v54  ;;  %v5305_v54 = vld [vmem:[%s23371_s5] sm:$0xf]  ;;  %s23374_s5 = sld [smem:[#allocation76_spill]] }
 0x591   : > { %16245 = vmatprep.subr.bf16.mxu1 %v23368_v52 }
 0x594   : > { %16247 = vmatpush3.bf16.msra.mxu1 %v19991_v62 }
 0x595   : > { %16248 = vmatprep.subr.bf16.mxu1 %v23368_v52 }
 0x598   : > { %16250 = vmatpush3.bf16.msra.mxu1 %v20001_v58 }
 0x599   : > { %16251 = vmatprep.subr.bf16.mxu1 %v23368_v52 }
 0x59c   : > { %16253 = vmatpush3.bf16.msra.mxu1 %v20011_v25 }
 0x59d   : > { %14660 = vmatprep.subr.mxu1 %v19914_v36 }
 0x59f   : > { %14658 = vmatmul.mubr.f32.vlgmr.msra.gmra.mrb[6].mxu1 %v5411_v47 }
 0x5a0   : > { %14662 = vmatprep.mubr.msk.f32.mxu1 %vm18043_vm0, %v19914_v36  ;;  %14661 = vmatpush3.msk.msra.mxu1 %vm1771_vm1, %v5305_v54 }
 0x5a1   : > { %14665 = vmatprep.subr.mxu1 %v19914_v36 }
 0x652   : > { %v5478_v62 = vpop.f32.mrb[4].mxu1 }
 0x653   : > { %v5483_v58 = vmul.f32 0.0009765625, %v5478_v62  ;;  %v14624_v17 = vpop.f32.mrb[5].mxu1  ;;  %v12334_v62 = vld [vmem:[%s23037_s12 + $0xc0] sm:$0xff] }
 0x654   : > { %v12336_v17 = vld [vmem:[%s23037_s12 + $0xd0] sm:$0xff] }
 0x655   : > { %14663 = vmatmul.mubr.msk.f32.vlgmr.msra.gmra.mrb[8].mxu1 %vm1767_vm2, %v5483_v58  ;;  %v5555_v45 = vmul.f32 %v5483_v58, %v5483_v58  ;;  %v12335_v58 = vld [vmem:[%s23037_s12 + $0xc8] sm:$0xff] }
 0x656   : > { %14666 = vmatpush3.msk.msra.mxu1 %vm1771_vm1, %v5305_v54  ;;  %14667 = vmatprep.mubr.msk.f32.mxu1 %vm18043_vm0, %v19914_v36  ;;  %v16254_v36 = vpack.c.bf16 %v12327_v41, %v12326_v35  ;;  %v16266_v54 = vpack.c.bf16 %v12333_v56, %v12332_v50  ;;  %v6199_v41 = vld [vmem:[#allocation3 + $0x1] sm:$0xff]  ;;  %v6187_v50 = vld [vmem:[%s23037_s12 + $0x20] sm:$0xff] }
 0x657   : > { %v6188_v56 = vld [vmem:[%s23037_s12 + $0x28] sm:$0xff] }
 0x658   : > { %16255 = vmatprep.subr.bf16.mxu1 %v16254_v36 }
 0x672   : > { %v5550_v25 = vpop.f32.mrb[6].mxu1 }
 0x673   : > { %v5554_v11 = vmul.f32 0.0009765625, %v5550_v25  ;;  %v14659_v6 = vpop.f32.mrb[7].mxu1  ;;  %v12337_v25 = vld [vmem:[%s23037_s12 + $0xd8] sm:$0xff] }
 0x674   : > { %v12338_v6 = vld [vmem:[%s23037_s12 + $0xe0] sm:$0xff] }
 0x675   : > { %v5556_v61 = vsub.f32 %v5554_v11, %v5555_v45  ;;  %v16270_v45 = vpack.c.bf16 %v12335_v58, %v12334_v62  ;;  %v16274_v11 = vpack.c.bf16 %v12337_v25, %v12336_v17  ;;  %v6190_v62 = vld [vmem:[%s23037_s12 + $0x38] sm:$0xff]  ;;  %v6191_v17 = vld [vmem:[%s23037_s12 + $0x40] sm:$0xff]  ;;  %v6192_v25 = vld [vmem:[%s23037_s12 + $0x48] sm:$0xff] }
 0x677   : > { %v5557_v57 = vmax.f32 %v5556_v61, 0.0  ;;  %v12339_v61 = vld [vmem:[%s23037_s12 + $0xe8] sm:$0xff] }
 0x679   : > { %v5558_v55 = vadd.f32 1e-05, %v5557_v57  ;;  %v16278_v57 = vpack.c.bf16 %v12339_v61, %v12338_v6  ;;  %v16302_v6 = vpack.c.bf16 %v6192_v25, %v6191_v17  ;;  %v6193_v61 = vld [vmem:[%s23037_s12 + $0x50] sm:$0xff] }
 0x67b   : > { %17611 = vrsqrt.f32 %v5558_v55  ;;  %v12340_v55 = vld [vmem:[%s23037_s12 + $0xf0] sm:$0xff] }
 0x685   : > { %v17612_v20 = vpop.eup %17611 }
 0x686   : > { %14668 = vmatmul.mubr.msk.f32.vlgmr.msra.gmra.mrb[10].mxu1 %vm1767_vm2, %v17612_v20  ;;  %v12341_v20 = vld [vmem:[%s23037_s12 + $0xf8] sm:$0xff] }
 0x687   : > { %16257 = vmatpush3.bf16.msra.mxu1 %v16254_v36  ;;  %v16282_v35 = vpack.c.bf16 %v12341_v20, %v12340_v55  ;;  %14702 = vmatprep.mubr.f32.mxu1 %v6199_v41  ;;  %v6200_v36 = vld [vmem:[#allocation3 + $0x9] sm:$0xff] }
 0x688   : > { %16259 = vmatprep.subr.bf16.mxu1 %v16258_v63 }
 0x68b   : > { %16261 = vmatpush3.bf16.msra.mxu1 %v16258_v63  ;;  %v6185_v63 = vld [vmem:[%s23037_s12 + $0x10] sm:$0xff] }
 0x68c   : > { %16263 = vmatprep.subr.bf16.mxu1 %v16262_v26 }
 0x68f   : > { %16265 = vmatpush3.bf16.msra.mxu1 %v16262_v26  ;;  %v16290_v26 = vpack.c.bf16 %v6186_v22, %v6185_v63 }
 0x690   : > { %16267 = vmatprep.subr.bf16.mxu1 %v16266_v54 }
 0x693   : > { %16269 = vmatpush3.bf16.msra.mxu1 %v16266_v54  ;;  %v6189_v54 = vld [vmem:[%s23037_s12 + $0x30] sm:$0xff] }
 0x694   : > { %16271 = vmatprep.subr.bf16.mxu1 %v16270_v45  ;;  %v16298_v58 = vpack.c.bf16 %v6190_v62, %v6189_v54 }
 0x697   : > { %16273 = vmatpush3.bf16.msra.mxu1 %v16270_v45  ;;  %v23372_v45 = vld [vmem:[#allocation6_spill] sm:$0xff] }
 0x698   : > { %16275 = vmatprep.subr.bf16.mxu1 %v16274_v11 }
 0x69b   : > { %16277 = vmatpush3.bf16.msra.mxu1 %v16274_v11 }
 0x69c   : > { %16279 = vmatprep.subr.bf16.mxu1 %v16278_v57 }
 0x69f   : > { %16281 = vmatpush3.bf16.msra.mxu1 %v16278_v57  ;;  %v6194_v57 = vld [vmem:[%s23037_s12 + $0x58] sm:$0xff] }
 0x6a0   : > { %16283 = vmatprep.subr.bf16.mxu1 %v16282_v35 }
 0x6a3   : > { %16285 = vmatpush3.bf16.msra.mxu1 %v16282_v35  ;;  %v16306_v35 = vpack.c.bf16 %v6194_v57, %v6193_v61 }
 0x6a4   : > { %16287 = vmatprep.subr.bf16.mxu1 %v16286_v39 }
 0x6a6   : > { %14703 = vmatmul.mubr.f32.vlgmr.msra.gmra.mrb[12].mxu1 %v6200_v36 }
 0x6a7   : > { %16289 = vmatpush3.bf16.msra.mxu1 %v16286_v39 }
 0x6a8   : > { %16291 = vmatprep.subr.bf16.mxu1 %v16290_v26 }
 0x6ab   : > { %16293 = vmatpush3.bf16.msra.mxu1 %v16290_v26 }
 0x728   : > { %v5632_v8 = vpop.f32.mrb[8].mxu1 }
 0x729   : > { %v14664_v47 = vpop.f32.mrb[9].mxu1  ;;  %v20360_v11 = vrot.slane %v5632_v8, %v23372_v45 }
 0x72a   : > { %v16294_v47 = vpack.c.bf16 %v6188_v56, %v6187_v50 }
 0x72b   : > { %v5713_v55 = vsub.f32 %v20033_v60, %v20360_v11  ;;  %v5714_v20 = vsub.f32 %v20030_v40, %v20360_v11  ;;  %v5715_v8 = vsub.f32 %v20047_v31, %v20360_v11  ;;  %v5716_v41 = vsub.f32 %v20042_v19, %v20360_v11  ;;  %v6195_v40 = vld [vmem:[%s23037_s12 + $0x60] sm:$0xff]  ;;  %v6196_v31 = vld [vmem:[%s23037_s12 + $0x68] sm:$0xff] }
 0x72c   : > { %16295 = vmatprep.subr.bf16.mxu1 %v16294_v47  ;;  %v5717_v36 = vsub.f32 %v20060_v21, %v20360_v11  ;;  %v5718_v42 = vsub.f32 %v20057_v0, %v20360_v11  ;;  %v5719_v60 = vsub.f32 %v20074_v46, %v20360_v11  ;;  %v5720_v19 = vsub.f32 %v20069_v59, %v20360_v11 }
 0x72d   : > { %16297 = vmatpush3.bf16.msra.mxu1 %v16294_v47  ;;  %v5721_v21 = vsub.f32 %v20088_v3, %v20360_v11  ;;  %v5722_v0 = vsub.f32 %v20085_v1, %v20360_v11  ;;  %v5723_v46 = vsub.f32 %v20102_v49, %v20360_v11  ;;  %v5724_v33 = vsub.f32 %v20097_v5, %v20360_v11 }
 0x72e   : > { %16299 = vmatprep.subr.bf16.mxu1 %v16298_v58  ;;  %v5725_v63 = vsub.f32 %v20116_v51, %v20360_v11  ;;  %v5726_v39 = vsub.f32 %v20113_v34, %v20360_v11  ;;  %v5727_v59 = vsub.f32 %v20130_v29, %v20360_v11  ;;  %v5728_v3 = vsub.f32 %v20125_v24, %v20360_v11 }
 0x72f   : > { %v5729_v1 = vsub.f32 %v20144_v10, %v20360_v11  ;;  %v5730_v49 = vsub.f32 %v20141_v44, %v20360_v11  ;;  %v16310_v5 = vpack.c.bf16 %v6196_v31, %v6195_v40  ;;  %v5731_v51 = vsub.f32 %v20158_v27, %v20360_v11  ;;  %v6197_v10 = vld [vmem:[%s23037_s12 + $0x70] sm:$0xff]  ;;  %v6198_v44 = vld [vmem:[%s23037_s12 + $0x78] sm:$0xff] }
 0x730   : > { %v5732_v34 = vsub.f32 %v20153_v23, %v20360_v11  ;;  %v5733_v29 = vsub.f32 %v20172_v32, %v20360_v11  ;;  %v5734_v24 = vsub.f32 %v20169_v9, %v20360_v11  ;;  %v5735_v27 = vsub.f32 %v20183_v16, %v20360_v11 }
 0x731   : > { %16301 = vmatpush3.bf16.msra.mxu1 %v16298_v58  ;;  %v5736_v23 = vsub.f32 %v20187_v12, %v20360_v11  ;;  %v5737_v32 = vsub.f32 %v20195_v18, %v20360_v11  ;;  %v5738_v9 = vsub.f32 %v20201_v2, %v20360_v11  ;;  %v5739_v26 = vsub.f32 %v20209_v13, %v20360_v11 }
 0x732   : > { %16303 = vmatprep.subr.bf16.mxu1 %v16302_v6  ;;  %v5740_v50 = vsub.f32 %v20213_v37, %v20360_v11  ;;  %v5741_v56 = vsub.f32 %v20219_v28, %v20360_v11  ;;  %v5742_v12 = vsub.f32 %v20225_v4, %v20360_v11  ;;  %v5743_v2 = vsub.f32 %v20233_v30, %v20360_v11 }
 0x733   : > { %v5744_v18 = vsub.f32 %v20237_v7, %v20360_v11  ;;  %v16314_v13 = vpack.c.bf16 %v6198_v44, %v6197_v10 }
 0x735   : > { %16305 = vmatpush3.bf16.msra.mxu1 %v16302_v6 }
 0x736   : > { %16307 = vmatprep.subr.bf16.mxu1 %v16306_v35 }
 0x739   : > { %16309 = vmatpush3.bf16.msra.mxu1 %v16306_v35 }
 0x73a   : > { %16311 = vmatprep.subr.bf16.mxu1 %v16310_v5 }
 0x73d   : > { %16313 = vmatpush3.bf16.msra.mxu1 %v16310_v5  ;;  %v20488_v5 = vld [vmem:[%s23374_s5] ss:$0 sm:$0xff] }
 0x73e   : > { %16315 = vmatprep.subr.bf16.mxu1 %v16314_v13 }
 0x741   : > { %16317 = vmatpush3.bf16.msra.mxu1 %v16314_v13 }
 0x759   : > { %v5705_v22 = vpop.f32.mrb[10].mxu1 }
 0x75a   : > { %v5748_v16 = vrot.slane %v5705_v22, %v23372_v45  ;;  %v14669_v47 = vpop.f32.mrb[11].mxu1 }
 0x75c   : > { %v5749_v54 = vmul.f32 %v5748_v16, %v5713_v55  ;;  %v5750_v37 = vmul.f32 %v5748_v16, %v5714_v20  ;;  %v5751_v62 = vmul.f32 %v5748_v16, %v5715_v8  ;;  %v5752_v58 = vmul.f32 %v5748_v16, %v5716_v41 }
 0x75d   : > { %v5753_v28 = vmul.f32 %v5748_v16, %v5717_v36  ;;  %v5754_v17 = vmul.f32 %v5748_v16, %v5718_v42  ;;  %v5755_v25 = vmul.f32 %v5748_v16, %v5719_v60  ;;  %v5756_v45 = vmul.f32 %v5748_v16, %v5720_v19 }
 0x75e   : > { %v5757_v6 = vmul.f32 %v5748_v16, %v5721_v21  ;;  %v5758_v61 = vmul.f32 %v5748_v16, %v5722_v0  ;;  %v5759_v57 = vmul.f32 %v5748_v16, %v5723_v46  ;;  %v5760_v4 = vmul.f32 %v5748_v16, %v5724_v33 }
 0x75f   : > { %v5761_v35 = vmul.f32 %v5748_v16, %v5725_v63  ;;  %v5762_v30 = vmul.f32 %v5748_v16, %v5726_v39  ;;  %v5763_v40 = vmul.f32 %v5748_v16, %v5727_v59  ;;  %v5764_v31 = vmul.f32 %v5748_v16, %v5728_v3  ;;  %v20480_v59 = vld [vmem:[%s23373_s30] ss:$0 sm:$0xff] }
 0x760   : > { %v20445_v7 = vmul.f32 %v5748_v16, %v5729_v1  ;;  %v20447_v11 = vmul.f32 %v5748_v16, %v5730_v49  ;;  %v20449_v55 = vmul.f32 %v5748_v16, %v5731_v51  ;;  %v20451_v20 = vmul.f32 %v5748_v16, %v5732_v34 }
 0x761   : > { %v20453_v8 = vmul.f32 %v5748_v16, %v5733_v29  ;;  %v20455_v41 = vmul.f32 %v5748_v16, %v5734_v24  ;;  %v20457_v36 = vmul.f32 %v5748_v16, %v5735_v27  ;;  %v20459_v42 = vmul.f32 %v5748_v16, %v5736_v23 }
 0x762   : > { %v20461_v60 = vmul.f32 %v5748_v16, %v5737_v32  ;;  %v20463_v19 = vmul.f32 %v5748_v16, %v5738_v9  ;;  %v20465_v21 = vmul.f32 %v5748_v16, %v5739_v26  ;;  %v20467_v0 = vmul.f32 %v5748_v16, %v5740_v50  ;;  %v12342_v26 = vld [vmem:[%s23037_s12 + $0x100] sm:$0xff]  ;;  %v12343_v50 = vld [vmem:[%s23037_s12 + $0x108] sm:$0xff] }
 0x763   : > { %v20469_v46 = vmul.f32 %v5748_v16, %v5741_v56  ;;  %v20471_v33 = vmul.f32 %v5748_v16, %v5742_v12  ;;  %v20473_v63 = vmul.f32 %v5748_v16, %v5743_v2  ;;  %v20475_v39 = vmul.f32 %v5748_v16, %v5744_v18 }
 0x764   : > { %v5787_v3 = vmul.f32 %v20480_v59, %v5749_v54  ;;  %v5788_v1 = vmul.f32 %v20480_v59, %v5750_v37  ;;  %v5789_v49 = vmul.f32 %v20480_v59, %v5751_v62  ;;  %v5790_v51 = vmul.f32 %v20480_v59, %v5752_v58 }
 0x765   : > { %v5791_v34 = vmul.f32 %v20480_v59, %v5753_v28  ;;  %v5792_v29 = vmul.f32 %v20480_v59, %v5754_v17  ;;  %v5793_v24 = vmul.f32 %v20480_v59, %v5755_v25  ;;  %v5794_v23 = vmul.f32 %v20480_v59, %v5756_v45 }
 0x766   : > { %v20495_v10 = vadd.f32 %v20488_v5, %v5787_v3  ;;  %v20498_v44 = vadd.f32 %v20488_v5, %v5788_v1  ;;  %v20501_v27 = vadd.f32 %v20488_v5, %v5789_v49  ;;  %v20505_v32 = vadd.f32 %v20488_v5, %v5790_v51 }
 0x767   : > { %v5795_v9 = vmul.f32 %v20480_v59, %v5757_v6  ;;  %v20509_v22 = vadd.f32 %v20488_v5, %v5791_v34  ;;  %v5796_v56 = vmul.f32 %v20480_v59, %v5758_v61  ;;  %v5797_v16 = vmul.f32 %v20480_v59, %v5759_v57 }
 0x768   : > { %v20520_v47 = vadd.f32 %v20488_v5, %v5792_v29  ;;  %v20523_v12 = vadd.f32 %v20488_v5, %v5793_v24  ;;  %v12294_v2 = vmul.f32 -1.442695, %v20495_v10  ;;  %v12295_v18 = vmul.f32 -1.442695, %v20498_v44 }
 0x769   : > { %v12296_v13 = vmul.f32 -1.442695, %v20501_v27  ;;  %v5798_v54 = vmul.f32 %v20480_v59, %v5760_v4  ;;  %v20530_v37 = vadd.f32 %v20488_v5, %v5794_v23  ;;  %v12297_v62 = vmul.f32 -1.442695, %v20505_v32 }
 0x76a   : > { %v20533_v58 = vpack.c.bf16 %v12343_v50, %v12342_v26  ;;  %v5799_v28 = vmul.f32 %v20480_v59, %v5761_v35  ;;  %v20537_v17 = vadd.f32 %v20488_v5, %v5795_v9  ;;  %17613 = vpow2.f32 %v12294_v2 }
 0x76b   : > { %v12298_v25 = vmul.f32 -1.442695, %v20509_v22  ;;  %v5800_v45 = vmul.f32 %v20480_v59, %v5762_v30  ;;  %v20542_v6 = vadd.f32 %v20488_v5, %v5796_v56  ;;  %17615 = vpow2.f32 %v12295_v18 }
 0x76c   : > { %23375 = vst [vmem:[#allocation26_spill] sm:$0xff] %v20533_v58  ;;  %v12299_v61 = vmul.f32 -1.442695, %v20520_v47  ;;  %16319 = vmatprep.subr.bf16.mxu1 %v20533_v58  ;;  %v5801_v57 = vmul.f32 %v20480_v59, %v5763_v40  ;;  %v20548_v4 = vadd.f32 %v20488_v5, %v5797_v16  ;;  %17617 = vpow2.f32 %v12296_v13 }
 0x76d   : > { %v12300_v35 = vmul.f32 -1.442695, %v20523_v12  ;;  %v5802_v3 = vmul.f32 %v20480_v59, %v5764_v31  ;;  %v20553_v30 = vadd.f32 %v20488_v5, %v5798_v54  ;;  %17619 = vpow2.f32 %v12297_v62 }
 0x76e   : > { %v12301_v1 = vmul.f32 -1.442695, %v20530_v37  ;;  %v5803_v49 = vmul.f32 %v20480_v59, %v20445_v7  ;;  %v20559_v51 = vadd.f32 %v20488_v5, %v5799_v28  ;;  %17621 = vpow2.f32 %v12298_v25 }
 0x76f   : > { %v12302_v40 = vmul.f32 -1.442695, %v20537_v17  ;;  %v5804_v34 = vmul.f32 %v20480_v59, %v20447_v11  ;;  %v20565_v31 = vadd.f32 %v20488_v5, %v5800_v45  ;;  %17623 = vpow2.f32 %v12299_v61 }
 0x770   : > { %v12303_v29 = vmul.f32 -1.442695, %v20542_v6  ;;  %v5805_v24 = vmul.f32 %v20480_v59, %v20449_v55  ;;  %v20571_v7 = vadd.f32 %v20488_v5, %v5801_v57  ;;  %17625 = vpow2.f32 %v12300_v35 }
 0x771   : > { %v12304_v23 = vmul.f32 -1.442695, %v20548_v4  ;;  %v5806_v9 = vmul.f32 %v20480_v59, %v20451_v20  ;;  %v20577_v11 = vadd.f32 %v20488_v5, %v5802_v3  ;;  %17627 = vpow2.f32 %v12301_v1 }
 0x772   : > { %v12305_v26 = vmul.f32 -1.442695, %v20553_v30  ;;  %v5807_v50 = vmul.f32 %v20480_v59, %v20453_v8  ;;  %v20583_v55 = vadd.f32 %v20488_v5, %v5803_v49  ;;  %17629 = vpow2.f32 %v12302_v40 }
 0x773   : > { %v12306_v56 = vmul.f32 -1.442695, %v20559_v51  ;;  %v5808_v16 = vmul.f32 %v20480_v59, %v20455_v41  ;;  %v20589_v20 = vadd.f32 %v20488_v5, %v5804_v34  ;;  %17631 = vpow2.f32 %v12303_v29 }
 0x774   : > { %v12307_v2 = vmul.f32 -1.442695, %v20565_v31  ;;  %v20592_v18 = vpop.eup %17613  ;;  %v5809_v8 = vmul.f32 %v20480_v59, %v20457_v36  ;;  %v20597_v13 = vadd.f32 %v20488_v5, %v5805_v24  ;;  %17633 = vpow2.f32 %v12304_v23 }
 0x775   : > { %v12308_v54 = vmul.f32 -1.442695, %v20571_v7  ;;  %v20600_v62 = vpop.eup %17615  ;;  %v5810_v41 = vmul.f32 %v20480_v59, %v20459_v42  ;;  %v20605_v28 = vadd.f32 %v20488_v5, %v5806_v9  ;;  %17635 = vpow2.f32 %v12305_v26 }
 0x776   : > { %v12309_v25 = vmul.f32 -1.442695, %v20577_v11  ;;  %v20608_v45 = vpop.eup %17617  ;;  %v5811_v36 = vmul.f32 %v20480_v59, %v20461_v60  ;;  %v20613_v61 = vadd.f32 %v20488_v5, %v5807_v50  ;;  %17637 = vpow2.f32 %v12306_v56 }
 0x777   : > { %v12310_v57 = vmul.f32 -1.442695, %v20583_v55  ;;  %v20616_v35 = vpop.eup %17619  ;;  %v5812_v42 = vmul.f32 %v20480_v59, %v20463_v19  ;;  %v20621_v3 = vadd.f32 %v20488_v5, %v5808_v16  ;;  %17639 = vpow2.f32 %v12307_v2 }
 0x778   : > { %v12311_v1 = vmul.f32 -1.442695, %v20589_v20  ;;  %v20624_v49 = vpop.eup %17621  ;;  %v5813_v60 = vmul.f32 %v20480_v59, %v20465_v21  ;;  %v20629_v40 = vadd.f32 %v20488_v5, %v5809_v8  ;;  %17641 = vpow2.f32 %v12308_v54 }
 0x779   : > { %v12312_v34 = vmul.f32 -1.442695, %v20597_v13  ;;  %v20632_v29 = vpop.eup %17623  ;;  %v5814_v19 = vmul.f32 %v20480_v59, %v20467_v0  ;;  %v20637_v24 = vadd.f32 %v20488_v5, %v5810_v41  ;;  %17643 = vpow2.f32 %v12309_v25 }
 0x77a   : > { %v12313_v23 = vmul.f32 -1.442695, %v20605_v28  ;;  %v20640_v9 = vpop.eup %17625  ;;  %v5815_v21 = vmul.f32 %v20480_v59, %v20469_v46  ;;  %v20645_v26 = vadd.f32 %v20488_v5, %v5811_v36  ;;  %17645 = vpow2.f32 %v12310_v57 }
 0x77b   : > { %v12314_v50 = vmul.f32 -1.442695, %v20613_v61  ;;  %v20648_v56 = vpop.eup %17627  ;;  %v5816_v0 = vmul.f32 %v20480_v59, %v20471_v33  ;;  %v20653_v16 = vadd.f32 %v20488_v5, %v5812_v42  ;;  %17647 = vpow2.f32 %v12311_v1 }
 0x77c   : > { %v12315_v2 = vmul.f32 -1.442695, %v20621_v3  ;;  %v17630_v8 = vpop.eup %17629  ;;  %v5817_v46 = vmul.f32 %v20480_v59, %v20473_v63  ;;  %v20659_v54 = vadd.f32 %v20488_v5, %v5813_v60  ;;  %17649 = vpow2.f32 %v12312_v34 }
 0x77d   : > { %v12316_v41 = vmul.f32 -1.442695, %v20629_v40  ;;  %v17632_v25 = vpop.eup %17631  ;;  %v5818_v33 = vmul.f32 %v20480_v59, %v20475_v39  ;;  %v20665_v36 = vadd.f32 %v20488_v5, %v5814_v19  ;;  %17651 = vpow2.f32 %v12313_v23 }
 0x77e   : > { %v12317_v57 = vmul.f32 -1.442695, %v20637_v24  ;;  %v17634_v42 = vpop.eup %17633  ;;  %v20669_v1 = vadd.f32 %v20488_v5, %v5815_v21  ;;  %17653 = vpow2.f32 %v12314_v50  ;;  %v12318_v63 = vmul.f32 -1.442695, %v20645_v26 }
 0x77f   : > { %v17636_v60 = vpop.eup %17635  ;;  %v20673_v34 = vadd.f32 %v20488_v5, %v5816_v0  ;;  %17655 = vpow2.f32 %v12315_v2  ;;  %v12319_v39 = vmul.f32 -1.442695, %v20653_v16  ;;  %v20677_v19 = vadd.f32 %v20488_v5, %v5817_v46 }
 0x780   : > { %v17638_v59 = vpop.eup %17637  ;;  %17657 = vpow2.f32 %v12316_v41  ;;  %v12320_v23 = vmul.f32 -1.442695, %v20659_v54  ;;  %v20681_v21 = vadd.f32 %v20488_v5, %v5818_v33  ;;  %v12321_v50 = vmul.f32 -1.442695, %v20665_v36 }
 0x781   : > { %23376 = vst [vmem:[#allocation25_spill] sm:$0xff] %v20673_v34  ;;  %23377 = vst [vmem:[#allocation29_spill] sm:$0xff] %v20677_v19  ;;  %v17640_v52 = vpop.eup %17639  ;;  %17659 = vpow2.f32 %v12317_v57  ;;  %v12322_v0 = vmul.f32 -1.442695, %v20669_v1  ;;  %v12323_v14 = vmul.f32 -1.442695, %v20673_v34 }
 0x782   : > { %23378 = vst [vmem:[#allocation28_spill] sm:$0xff] %v20681_v21  ;;  %v17642_v15 = vpop.eup %17641  ;;  %17661 = vpow2.f32 %v12318_v63  ;;  %v12324_v41 = vmul.f32 -1.442695, %v20677_v19  ;;  %v12325_v5 = vmul.f32 -1.442695, %v20681_v21  ;;  %v5953_v57 = vadd.f32 1.0, %v20592_v18 }
 0x783   : > { %v17644_v2 = vpop.eup %17643  ;;  %17663 = vpow2.f32 %v12319_v39  ;;  %v5954_v63 = vadd.f32 1.0, %v20600_v62  ;;  %v5955_v39 = vadd.f32 1.0, %v20608_v45  ;;  %v5961_v43 = vadd.f32 1.0, %v17630_v8 }
 0x784   : > { %v17646_v46 = vpop.eup %17645  ;;  %17665 = vpow2.f32 %v12320_v23  ;;  %v5966_v8 = vadd.f32 1.0, %v17640_v52  ;;  %v5967_v19 = vadd.f32 1.0, %v17642_v15 }
 0x785   : > { %v17648_v48 = vpop.eup %17647  ;;  %17667 = vpow2.f32 %v12321_v50  ;;  %v5956_v50 = vadd.f32 1.0, %v20616_v35  ;;  %v5969_v34 = vadd.f32 1.0, %v17646_v46 }
 0x786   : > { %v17650_v33 = vpop.eup %17649  ;;  %17669 = vpow2.f32 %v12322_v0  ;;  %v5957_v0 = vadd.f32 1.0, %v20624_v49 }
 0x787   : > { %v17652_v53 = vpop.eup %17651  ;;  %17671 = vpow2.f32 %v12323_v14  ;;  %v5958_v14 = vadd.f32 1.0, %v20632_v29  ;;  %v5971_v15 = vadd.f32 1.0, %v17650_v33 }
 0x788   : > { %v20690_v58 = vpop.eup %17653  ;;  %17673 = vpow2.f32 %v12324_v41  ;;  %v5959_v41 = vadd.f32 1.0, %v20640_v9  ;;  %v5964_v9 = vadd.f32 1.0, %v17636_v60 }
 0x789   : > { %v20693_v23 = vpop.eup %17655  ;;  %17675 = vpow2.f32 %v12325_v5  ;;  %v5960_v5 = vadd.f32 1.0, %v20648_v56  ;;  %v5965_v56 = vadd.f32 1.0, %v17638_v59  ;;  %v5970_v59 = vadd.f32 1.0, %v17648_v48 }
 0x78a   : > { %v20696_v38 = vpop.eup %17657  ;;  %17677 = vrcp.f32 %v5953_v57  ;;  %v5962_v57 = vadd.f32 1.0, %v17632_v25 }
 0x78b   : > { %v20699_v18 = vpop.eup %17659  ;;  %17679 = vrcp.f32 %v5954_v63  ;;  %v5963_v63 = vadd.f32 1.0, %v17634_v42 }
 0x78c   : > { %v20702_v62 = vpop.eup %17661  ;;  %17681 = vrcp.f32 %v5955_v39 }
 0x78d   : > { %v20705_v45 = vpop.eup %17663  ;;  %17683 = vrcp.f32 %v5956_v50 }
 0x78e   : > { %v20708_v35 = vpop.eup %17665  ;;  %17685 = vrcp.f32 %v5957_v0 }
 0x78f   : > { %v20710_v49 = vpop.eup %17667  ;;  %17687 = vrcp.f32 %v5958_v14  ;;  %v5968_v14 = vadd.f32 1.0, %v17644_v2 }
 0x790   : > { %v20712_v29 = vpop.eup %17669  ;;  %17689 = vrcp.f32 %v5959_v41 }
 0x791   : > { %v20714_v21 = vpop.eup %17671  ;;  %17691 = vrcp.f32 %v5960_v5 }
 0x792   : > { %v20716_v39 = vpop.eup %17673  ;;  %17693 = vrcp.f32 %v5961_v43 }
 0x793   : > { %v20718_v50 = vpop.eup %17675  ;;  %17695 = vrcp.f32 %v5962_v57  ;;  %v5972_v57 = vadd.f32 1.0, %v17652_v53 }
 0x794   : > { %v17678_v0 = vpop.eup %17677  ;;  %17697 = vrcp.f32 %v5963_v63  ;;  %v5975_v63 = vadd.f32 1.0, %v20696_v38 }
 0x795   : > { %v17680_v25 = vpop.eup %17679  ;;  %17699 = vrcp.f32 %v5964_v9  ;;  %v6049_v42 = vmul.f32 %v17678_v0, %v20495_v10  ;;  %v5980_v0 = vadd.f32 1.0, %v20710_v49 }
 0x796   : > { %v17682_v41 = vpop.eup %17681  ;;  %17701 = vrcp.f32 %v5965_v56  ;;  %v6050_v60 = vmul.f32 %v17680_v25, %v20498_v44  ;;  %v5973_v44 = vadd.f32 1.0, %v20690_v58 }
 0x797   : > { %v17684_v5 = vpop.eup %17683  ;;  %17703 = vrcp.f32 %v5966_v8  ;;  %v6051_v43 = vmul.f32 %v17682_v41, %v20501_v27  ;;  %6087 = vst [vmem:[#allocation3 + $0x11] sm:$0xff] %v6049_v42  ;;  %14705 = vmatprep.mubr.f32.mxu1 %v6049_v42  ;;  %v5979_v8 = vadd.f32 1.0, %v20708_v35  ;;  %v5983_v42 = vadd.f32 1.0, %v20716_v39 }
 0x798   : > { %v17686_v52 = vpop.eup %17685  ;;  %17705 = vrcp.f32 %v5967_v19  ;;  %v6052_v2 = vmul.f32 %v17684_v5, %v20505_v32  ;;  %6088 = vst [vmem:[#allocation3 + $0x19] sm:$0xff] %v6050_v60  ;;  %14706 = vmatmul.mubr.f32.gmra.mrb[14].mxu1 %v6050_v60  ;;  %v5974_v19 = vadd.f32 1.0, %v20693_v23  ;;  %v5984_v41 = vadd.f32 1.0, %v20718_v50 }
 0x799   : > { %v17688_v10 = vpop.eup %17687  ;;  %17707 = vrcp.f32 %v5968_v14  ;;  %v6053_v46 = vmul.f32 %v17686_v52, %v20509_v22  ;;  %6089 = vst [vmem:[#allocation3 + $0x21] sm:$0xff] %v6051_v43  ;;  %14708 = vmatprep.mubr.f32.mxu1 %v6051_v43 }
 0x79a   : > { %v17690_v48 = vpop.eup %17689  ;;  %17709 = vrcp.f32 %v5969_v34  ;;  %v6054_v27 = vmul.f32 %v17688_v10, %v20520_v47  ;;  %6090 = vst [vmem:[#allocation3 + $0x29] sm:$0xff] %v6052_v2  ;;  %v5976_v34 = vadd.f32 1.0, %v20699_v18 }
 0x79b   : > { %v17692_v33 = vpop.eup %17691  ;;  %17711 = vrcp.f32 %v5970_v59  ;;  %v6055_v32 = vmul.f32 %v17690_v48, %v20523_v12  ;;  %6091 = vst [vmem:[#allocation3 + $0x31] sm:$0xff] %v6053_v46  ;;  %v5977_v12 = vadd.f32 1.0, %v20702_v62 }
 0x79c   : > { %v17694_v53 = vpop.eup %17693  ;;  %17713 = vrcp.f32 %v5971_v15  ;;  %v6056_v22 = vmul.f32 %v17692_v33, %v20530_v37  ;;  %6092 = vst [vmem:[#allocation3 + $0x39] sm:$0xff] %v6054_v27  ;;  %14709 = vmatmul.mubr.f32.gmra.mrb[16].mxu1 %v6052_v2  ;;  %v5978_v37 = vadd.f32 1.0, %v20705_v45  ;;  %v23380_v33 = vld [vmem:[#allocation29_spill] sm:$0xff] }
 0x79d   : > { %v17696_v58 = vpop.eup %17695  ;;  %17715 = vrcp.f32 %v5972_v57  ;;  %v6057_v47 = vmul.f32 %v17694_v53, %v20537_v17  ;;  %6093 = vst [vmem:[#allocation3 + $0x41] sm:$0xff] %v6055_v32  ;;  %14711 = vmatprep.mubr.f32.mxu1 %v6053_v46 }
 0x79e   : > { %v17698_v23 = vpop.eup %17697  ;;  %17717 = vrcp.f32 %v5973_v44  ;;  %v6058_v9 = vmul.f32 %v17696_v58, %v20542_v6  ;;  %6094 = vst [vmem:[#allocation3 + $0x49] sm:$0xff] %v6056_v22  ;;  %v23379_v44 = vld [vmem:[#allocation25_spill] sm:$0xff]  ;;  %v20771_v58 = vld [vmem:[#allocation3 + $0x10] sm:$0xff] }
 0x79f   : > { %v17700_v38 = vpop.eup %17699  ;;  %17719 = vrcp.f32 %v5974_v19  ;;  %v6059_v56 = vmul.f32 %v17698_v23, %v20548_v4  ;;  %6095 = vst [vmem:[#allocation3 + $0x51] sm:$0xff] %v6057_v47  ;;  %v5981_v4 = vadd.f32 1.0, %v20712_v29 }
 0x7a0   : > { %v17702_v18 = vpop.eup %17701  ;;  %17721 = vrcp.f32 %v5975_v63  ;;  %v6060_v17 = vmul.f32 %v17700_v38, %v20553_v30  ;;  %6096 = vst [vmem:[#allocation3 + $0x59] sm:$0xff] %v6058_v9  ;;  %14712 = vmatmul.mubr.f32.gmra.mrb[18].mxu1 %v6054_v27  ;;  %v5982_v30 = vadd.f32 1.0, %v20714_v21  ;;  %v12344_v63 = vld [vmem:[%s23037_s12 + $0x110] sm:$0xff]  ;;  %v20781_v38 = vld [vmem:[#allocation3 + $0x20] sm:$0xff] }
 0x7a1   : > { %v17704_v62 = vpop.eup %17703  ;;  %17723 = vrcp.f32 %v5976_v34  ;;  %v6061_v6 = vmul.f32 %v17702_v18, %v20559_v51  ;;  %6097 = vst [vmem:[#allocation3 + $0x61] sm:$0xff] %v6059_v56  ;;  %14714 = vmatprep.mubr.f32.mxu1 %v6055_v32  ;;  %v20784_v18 = vld [vmem:[#allocation3 + $0x18] sm:$0xff] }
 0x7a2   : > { %v17706_v45 = vpop.eup %17705  ;;  %17725 = vrcp.f32 %v5977_v12  ;;  %v6062_v25 = vmul.f32 %v17704_v62, %v20565_v31  ;;  %6098 = vst [vmem:[#allocation3 + $0x69] sm:$0xff] %v6060_v17  ;;  %v12346_v12 = vld [vmem:[%s23037_s12 + $0x120] sm:$0xff]  ;;  %v12348_v62 = vld [vmem:[%s23037_s12 + $0x130] sm:$0xff] }
 0x7a3   : > { %v17708_v35 = vpop.eup %17707  ;;  %17727 = vrcp.f32 %v5978_v37  ;;  %v6063_v14 = vmul.f32 %v17706_v45, %v20571_v7  ;;  %6099 = vst [vmem:[#allocation3 + $0x71] sm:$0xff] %v6061_v6  ;;  %v23384_v37 = vld [vmem:[#allocation26_spill] sm:$0xff] }
 0x7a4   : > { %v17710_v49 = vpop.eup %17709  ;;  %17729 = vrcp.f32 %v5979_v8  ;;  %v6064_v51 = vmul.f32 %v17708_v35, %v20577_v11  ;;  %6100 = vst [vmem:[#allocation3 + $0x79] sm:$0xff] %v6062_v25  ;;  %14715 = vmatmul.mubr.f32.gmra.mrb[20].mxu1 %v6056_v22  ;;  %v12345_v22 = vld [vmem:[%s23037_s12 + $0x118] sm:$0xff]  ;;  %v23385_v8 = vld [vmem:[#allocation9_spill] sm:$0xff] }
 0x7a5   : > { %v17712_v29 = vpop.eup %17711  ;;  %17731 = vrcp.f32 %v5980_v0  ;;  %v6065_v31 = vmul.f32 %v17710_v49, %v20583_v55  ;;  %6101 = vst [vmem:[#allocation3 + $0x81] sm:$0xff] %v6063_v14  ;;  %14717 = vmatprep.mubr.f32.mxu1 %v6057_v47  ;;  %v16322_v34 = vpack.c.bf16 %v12345_v22, %v12344_v63  ;;  %v23383_v47 = vld [vmem:[#allocation8_spill] sm:$0xff]  ;;  %v12349_v0 = vld [vmem:[%s23037_s12 + $0x138] sm:$0xff]  ;;  %v20808_v49 = vld [vmem:[#allocation3 + $0x40] sm:$0xff] }
 0x7a6   : > { %v17714_v21 = vpop.eup %17713  ;;  %17733 = vrcp.f32 %v5981_v4  ;;  %v6066_v7 = vmul.f32 %v17712_v29, %v20589_v20  ;;  %6102 = vst [vmem:[#allocation3 + $0x89] sm:$0xff] %v6064_v51  ;;  %v6153_v23 = vmul.f32 %v23383_v47, %v20771_v58  ;;  %v16330_v45 = vpack.c.bf16 %v12349_v0, %v12348_v62  ;;  %v20797_v4 = vld [vmem:[#allocation3 + $0x28] sm:$0xff]  ;;  %v23387_v29 = vld [vmem:[#allocation11_spill] sm:$0xff] }
 0x7a7   : > { %v17716_v60 = vpop.eup %17715  ;;  %17735 = vrcp.f32 %v5982_v30  ;;  %v6067_v39 = vmul.f32 %v17714_v21, %v20597_v13  ;;  %6103 = vst [vmem:[#allocation3 + $0x91] sm:$0xff] %v6065_v31  ;;  %v12350_v30 = vld [vmem:[%s23037_s12 + $0x140] sm:$0xff]  ;;  %v12353_v21 = vld [vmem:[%s23037_s12 + $0x158] sm:$0xff] }
 0x7a8   : > { %v17718_v11 = vpop.eup %17717  ;;  %17737 = vrcp.f32 %v5983_v42  ;;  %v6068_v5 = vmul.f32 %v17716_v60, %v20605_v28  ;;  %6104 = vst [vmem:[#allocation3 + $0x99] sm:$0xff] %v6066_v7  ;;  %14718 = vmatmul.mubr.f32.gmra.mrb[22].mxu1 %v6058_v9  ;;  %v12347_v9 = vld [vmem:[%s23037_s12 + $0x128] sm:$0xff] }
 0x7a9   : > { %v17720_v50 = vpop.eup %17719  ;;  %17739 = vrcp.f32 %v5984_v41  ;;  %v6069_v55 = vmul.f32 %v17718_v11, %v20613_v61  ;;  %6105 = vst [vmem:[#allocation3 + $0xa1] sm:$0xff] %v6067_v39  ;;  %14720 = vmatprep.mubr.f32.mxu1 %v6059_v56  ;;  %v16326_v56 = vpack.c.bf16 %v12347_v9, %v12346_v12  ;;  %v6159_v41 = vmul.f32 %v23387_v29, %v20808_v49  ;;  %v23388_v11 = vld [vmem:[#allocation12_spill] sm:$0xff] }
 0x7aa   : > { %v17722_v59 = vpop.eup %17721  ;;  %v6070_v20 = vmul.f32 %v17720_v50, %v20621_v3  ;;  %6106 = vst [vmem:[#allocation3 + $0xa9] sm:$0xff] %v6068_v5  ;;  %v12354_v50 = vld [vmem:[%s23037_s12 + $0x160] sm:$0xff] }
 0x7ab   : > { %v17724_v43 = vpop.eup %17723  ;;  %v6071_v13 = vmul.f32 %v17722_v59, %v20629_v40  ;;  %6107 = vst [vmem:[#allocation3 + $0xb1] sm:$0xff] %v6069_v55  ;;  %v20834_v59 = vld [vmem:[#allocation3 + $0x60] sm:$0xff] }
 0x7ac   : > { %v17726_v52 = vpop.eup %17725  ;;  %v6072_v15 = vmul.f32 %v17724_v43, %v20637_v24  ;;  %6108 = vst [vmem:[#allocation3 + $0xb9] sm:$0xff] %v6070_v20  ;;  %14721 = vmatmul.mubr.f32.gmra.mrb[24].mxu1 %v6060_v17  ;;  %v6155_v17 = vmul.f32 %v23385_v8, %v20781_v38  ;;  %v20836_v43 = vld [vmem:[#allocation3 + $0x58] sm:$0xff] }
 0x7ad   : > { %v17728_v28 = vpop.eup %17727  ;;  %v6073_v2 = vmul.f32 %v17726_v52, %v20645_v26  ;;  %6109 = vst [vmem:[#allocation3 + $0xc1] sm:$0xff] %v6071_v13  ;;  %14723 = vmatprep.mubr.f32.mxu1 %v6061_v6  ;;  %v20795_v6 = vld [vmem:[#allocation3 + $0x30] sm:$0xff] }
 0x7ae   : > { %v17730_v61 = vpop.eup %17729  ;;  %v6074_v10 = vmul.f32 %v17728_v28, %v20653_v16  ;;  %6110 = vst [vmem:[#allocation3 + $0xc9] sm:$0xff] %v6072_v15  ;;  %v12357_v28 = vld [vmem:[%s23037_s12 + $0x178] sm:$0xff] }
 0x7af   : > { %v17732_v3 = vpop.eup %17731  ;;  %v6075_v57 = vmul.f32 %v17730_v61, %v20659_v54  ;;  %6111 = vst [vmem:[#allocation3 + $0xd1] sm:$0xff] %v6073_v2  ;;  %v23381_v54 = vld [vmem:[#allocation28_spill] sm:$0xff] }
 0x7b0   : > { %v17734_v40 = vpop.eup %17733  ;;  %v6076_v46 = vmul.f32 %v17732_v3, %v20665_v36  ;;  %6112 = vst [vmem:[#allocation3 + $0xd9] sm:$0xff] %v6074_v10  ;;  %14724 = vmatmul.mubr.f32.gmra.mrb[26].mxu1 %v6062_v25  ;;  %v17999_v36 = vld [vmem:[#allocation2] sm:$0xff]  ;;  %v23386_v25 = vld [vmem:[#allocation10_spill] sm:$0xff] }
 0x7b1   : > { %v17736_v24 = vpop.eup %17735  ;;  %v6077_v48 = vmul.f32 %v17734_v40, %v20669_v1  ;;  %6113 = vst [vmem:[#allocation3 + $0xe1] sm:$0xff] %v6075_v57  ;;  %14726 = vmatprep.mubr.f32.mxu1 %v6063_v14  ;;  %v23382_v1 = vld [vmem:[#allocation7_spill] sm:$0xff]  ;;  %v6157_v35 = vmul.f32 %v23386_v25, %v20795_v6  ;;  %v12351_v14 = vld [vmem:[%s23037_s12 + $0x148] sm:$0xff]  ;;  %v23390_v3 = vld [vmem:[#allocation14_spill] sm:$0xff] }
 0x7b2   : > { %v17738_v26 = vpop.eup %17737  ;;  %v6078_v27 = vmul.f32 %v17736_v24, %v23379_v44  ;;  %6114 = vst [vmem:[#allocation3 + $0xe9] sm:$0xff] %v6076_v46  ;;  %v6151_v53 = vmul.f32 %v17999_v36, %v23382_v1  ;;  %v16334_v42 = vpack.c.bf16 %v12351_v14, %v12350_v30  ;;  %v12358_v40 = vld [vmem:[%s23037_s12 + $0x180] sm:$0xff]  ;;  %v20860_v24 = vld [vmem:[#allocation3 + $0x80] sm:$0xff]  ;;  %v23391_v44 = vld [vmem:[#allocation15_spill] sm:$0xff] }
 0x7b3   : > { %v17740_v16 = vpop.eup %17739  ;;  %v6079_v19 = vmul.f32 %v17738_v26, %v23380_v33  ;;  %6115 = vst [vmem:[#allocation3 + $0xf1] sm:$0xff] %v6077_v48  ;;  %v20862_v26 = vld [vmem:[#allocation3 + $0x78] sm:$0xff]  ;;  %v20869_v33 = vld [vmem:[#allocation3 + $0x88] sm:$0xff]  ;;  %v20881_v22 = vld [vmem:[#allocation3 + $0xb0] sm:$0xff] }
 0x7b4   : > { %v6080_v32 = vmul.f32 %v17740_v16, %v23381_v54  ;;  %6116 = vst [vmem:[#allocation3 + $0xf9] sm:$0xff] %v6078_v27  ;;  %14727 = vmatmul.mubr.f32.gmra.mrb[28].mxu1 %v6064_v51  ;;  %v20810_v51 = vld [vmem:[#allocation3 + $0x38] sm:$0xff]  ;;  %v20867_v16 = vld [vmem:[#allocation3 + $0x90] sm:$0xff]  ;;  %v20888_v9 = vld [vmem:[#allocation3 + $0xc0] sm:$0xff] }
 0x7b5   : > { %6117 = vst [vmem:[#allocation3 + $0x101] sm:$0xff] %v6079_v19  ;;  %14729 = vmatprep.mubr.f32.mxu1 %v6065_v31  ;;  %v12352_v31 = vld [vmem:[%s23037_s12 + $0x150] sm:$0xff]  ;;  %v23392_v19 = vld [vmem:[#allocation16_spill] sm:$0xff] }
 0x7b6   : > { %6118 = vst [vmem:[#allocation3 + $0x109] sm:$0xff] %v6080_v32  ;;  %v16338_v60 = vpack.c.bf16 %v12353_v21, %v12352_v31  ;;  %v6169_v54 = vmul.f32 %v23392_v19, %v20867_v16  ;;  %v20874_v32 = vld [vmem:[#allocation3 + $0xa0] sm:$0xff]  ;;  %v20895_v62 = vld [vmem:[#allocation3 + $0xd0] sm:$0xff]  ;;  %v20897_v0 = vld [vmem:[#allocation3 + $0xc8] sm:$0xff] }
 0x7b7   : > { %v20904_v14 = vld [vmem:[#allocation3 + $0xd8] sm:$0xff] }
 0x7b8   : > { %14730 = vmatmul.mubr.f32.gmra.mrb[30].mxu1 %v6066_v7  ;;  %v20821_v7 = vld [vmem:[#allocation3 + $0x50] sm:$0xff]  ;;  %v20902_v30 = vld [vmem:[#allocation3 + $0xe0] sm:$0xff] }
 0x7b9   : > { %14732 = vmatprep.mubr.f32.mxu1 %v6067_v39  ;;  %v20823_v39 = vld [vmem:[#allocation3 + $0x48] sm:$0xff] }
 0x7ba   : > { %v20909_v31 = vld [vmem:[#allocation3 + $0xf0] sm:$0xff]  ;;  %v20911_v21 = vld [vmem:[#allocation3 + $0xe8] sm:$0xff] }
 0x7bc   : > { %14733 = vmatmul.mubr.f32.gmra.mrb[32].mxu1 %v6068_v5  ;;  %v6161_v5 = vmul.f32 %v23388_v11, %v20821_v7 }
 0x7bd   : > { %14735 = vmatprep.mubr.f32.mxu1 %v6069_v55  ;;  %v12355_v55 = vld [vmem:[%s23037_s12 + $0x168] sm:$0xff] }
 0x7c0   : > { %14736 = vmatmul.mubr.f32.gmra.mrb[34].mxu1 %v6070_v20  ;;  %v16342_v20 = vpack.c.bf16 %v12355_v55, %v12354_v50  ;;  %v6698_v50 = vld [vmem:[#allocation3 + $0x2] sm:$0xff] }
 0x7c1   : > { %14738 = vmatprep.mubr.f32.mxu1 %v6071_v13  ;;  %v23389_v13 = vld [vmem:[#allocation13_spill] sm:$0xff]  ;;  %v12360_v55 = vld [vmem:[%s23037_s12 + $0x190] sm:$0xff] }
 0x7c2   : > { %v6163_v52 = vmul.f32 %v23389_v13, %v20834_v59 }
 0x7c4   : > { %14739 = vmatmul.mubr.f32.gmra.mrb[36].mxu1 %v6072_v15  ;;  %v12356_v15 = vld [vmem:[%s23037_s12 + $0x170] sm:$0xff] }
 0x7c5   : > { %14741 = vmatprep.mubr.f32.mxu1 %v6073_v2  ;;  %v20847_v2 = vld [vmem:[#allocation3 + $0x70] sm:$0xff]  ;;  %v16346_v61 = vpack.c.bf16 %v12357_v28, %v12356_v15 }
 0x7c6   : > { %v12361_v15 = vld [vmem:[%s23037_s12 + $0x198] sm:$0xff] }
 0x7c7   : > { %v23399_v28 = vld [vmem:[#allocation23_spill] sm:$0xff] }
 0x7c8   : > { %14742 = vmatmul.mubr.f32.gmra.mrb[38].mxu1 %v6074_v10  ;;  %v20849_v10 = vld [vmem:[#allocation3 + $0x68] sm:$0xff] }
 0x7c9   : > { %14744 = vmatprep.mubr.f32.mxu1 %v6075_v57  ;;  %v6165_v57 = vmul.f32 %v23390_v3, %v20847_v2 }
 0x7cc   : > { %14745 = vmatmul.mubr.f32.gmra.mrb[40].mxu1 %v6076_v46  ;;  %v12359_v46 = vld [vmem:[%s23037_s12 + $0x188] sm:$0xff] }
 0x7cd   : > { %14747 = vmatprep.mubr.f32.mxu1 %v6077_v48  ;;  %v16350_v48 = vpack.c.bf16 %v12359_v46, %v12358_v40  ;;  %v20926_v40 = vld [vmem:[#allocation3 + $0x1a] sm:$0xff] }
 0x7ce   : > { %v12362_v46 = vld [vmem:[%s23037_s12 + $0x1a0] sm:$0xff] }
 0x7d0   : > { %14748 = vmatmul.mubr.f32.gmra.mrb[42].mxu1 %v6078_v27  ;;  %v6167_v27 = vmul.f32 %v23391_v44, %v20860_v24 }
 0x7d1   : > { %14782 = vmatprep.mubr.f32.mxu1 %v6151_v53  ;;  %v23393_v53 = vld [vmem:[#allocation17_spill] sm:$0xff] }
 0x7d2   : > { %v6171_v63 = vmul.f32 %v23393_v53, %v20874_v32 }
 0x7d4   : > { %14783 = vmatmul.mubr.f32.vlgmr.msra.gmra.mrb[12].mxu1 %v17999_v36  ;;  %v20876_v36 = vld [vmem:[#allocation3 + $0x98] sm:$0xff] }
 0x7d5   : > { %14785 = vmatprep.mubr.f32.mxu1 %v6153_v23  ;;  %16321 = vmatpush3.bf16.msra.mxu1 %v23384_v37  ;;  %v23394_v23 = vld [vmem:[#allocation18_spill] sm:$0xff]  ;;  %v20890_v37 = vld [vmem:[#allocation3 + $0xb8] sm:$0xff] }
 0x7d6   : > { %16323 = vmatprep.subr.bf16.mxu1 %v16322_v34  ;;  %v6173_v12 = vmul.f32 %v23394_v23, %v20881_v22 }
 0x7d8   : > { %14786 = vmatmul.mubr.f32.gmra.mrb[14].mxu1 %v20784_v18 }
 0x7d9   : > { %14788 = vmatprep.mubr.f32.mxu1 %v6155_v17  ;;  %16325 = vmatpush3.bf16.msra.mxu1 %v16322_v34  ;;  %v20883_v34 = vld [vmem:[#allocation3 + $0xa8] sm:$0xff] }
 0x7da   : > { %16327 = vmatprep.subr.bf16.mxu1 %v16326_v56 }
 0x7dc   : > { %14789 = vmatmul.mubr.f32.gmra.mrb[16].mxu1 %v20797_v4 }
 0x7dd   : > { %14791 = vmatprep.mubr.f32.mxu1 %v6157_v35  ;;  %16329 = vmatpush3.bf16.msra.mxu1 %v16326_v56  ;;  %v23395_v56 = vld [vmem:[#allocation19_spill] sm:$0xff] }
 0x7de   : > { %16331 = vmatprep.subr.bf16.mxu1 %v16330_v45  ;;  %v6175_v17 = vmul.f32 %v23395_v56, %v20888_v9 }
 0x7e0   : > { %14792 = vmatmul.mubr.f32.gmra.mrb[18].mxu1 %v20810_v51 }
 0x7e1   : > { %14794 = vmatprep.mubr.f32.mxu1 %v6159_v41  ;;  %16333 = vmatpush3.bf16.msra.mxu1 %v16330_v45  ;;  %v23396_v45 = vld [vmem:[#allocation20_spill] sm:$0xff] }
 0x7e2   : > { %16335 = vmatprep.subr.bf16.mxu1 %v16334_v42  ;;  %v6177_v35 = vmul.f32 %v23396_v45, %v20895_v62 }
 0x7e4   : > { %14795 = vmatmul.mubr.f32.gmra.mrb[20].mxu1 %v20823_v39 }
 0x7e5   : > { %14797 = vmatprep.mubr.f32.mxu1 %v6161_v5  ;;  %16337 = vmatpush3.bf16.msra.mxu1 %v16334_v42  ;;  %v23397_v42 = vld [vmem:[#allocation21_spill] sm:$0xff] }
 0x7e6   : > { %16339 = vmatprep.subr.bf16.mxu1 %v16338_v60  ;;  %v6179_v41 = vmul.f32 %v23397_v42, %v20902_v30 }
 0x7e8   : > { %14798 = vmatmul.mubr.f32.gmra.mrb[22].mxu1 %v20836_v43 }
 0x7e9   : > { %14800 = vmatprep.mubr.f32.mxu1 %v6163_v52  ;;  %16341 = vmatpush3.bf16.msra.mxu1 %v16338_v60  ;;  %v23398_v60 = vld [vmem:[#allocation22_spill] sm:$0xff] }
 0x7ea   : > { %16343 = vmatprep.subr.bf16.mxu1 %v16342_v20  ;;  %v6181_v5 = vmul.f32 %v23398_v60, %v20909_v31  ;;  %v6699_v52 = vld [vmem:[#allocation3 + $0xa] sm:$0xff] }
 0x7ec   : > { %14801 = vmatmul.mubr.f32.gmra.mrb[24].mxu1 %v20849_v10 }
 0x7ed   : > { %14803 = vmatprep.mubr.f32.mxu1 %v6165_v57  ;;  %16345 = vmatpush3.bf16.msra.mxu1 %v16342_v20  ;;  %v20919_v20 = vld [vmem:[#allocation3 + $0xf8] sm:$0xff]  ;;  %v16354_v57 = vpack.c.bf16 %v12361_v15, %v12360_v55 }
 0x7ee   : > { %16347 = vmatprep.subr.bf16.mxu1 %v16346_v61  ;;  %v20952_v15 = vld [vmem:[#allocation3 + $0x3a] sm:$0xff] }
 0x7ef   : > { %23403 = vst [vmem:[#allocation31_spill] sm:$0xff] %v20952_v15 }
 0x7f0   : > { %14804 = vmatmul.mubr.f32.gmra.mrb[26].mxu1 %v20862_v26 }
 0x7f1   : > { %14806 = vmatprep.mubr.f32.mxu1 %v6167_v27  ;;  %16349 = vmatpush3.bf16.msra.mxu1 %v16346_v61  ;;  %v6731_v61 = vmul.f32 %v23399_v28, %v6699_v52  ;;  %v12363_v27 = vld [vmem:[%s23037_s12 + $0x1a8] sm:$0xff] }
 0x7f2   : > { %16351 = vmatprep.subr.bf16.mxu1 %v16350_v48 }
 0x7f4   : > { %14807 = vmatmul.mubr.f32.gmra.mrb[28].mxu1 %v20869_v33 }
 0x7f5   : > { %14809 = vmatprep.mubr.f32.mxu1 %v6169_v54  ;;  %v20934_v54 = vld [vmem:[#allocation3 + $0x12] sm:$0xff] }
 0x7f8   : > { %14810 = vmatmul.mubr.f32.gmra.mrb[30].mxu1 %v20876_v36 }
 0x7f9   : > { %14812 = vmatprep.mubr.f32.mxu1 %v6171_v63  ;;  %v23400_v63 = vld [vmem:[#allocation24_spill] sm:$0xff] }
 0x7fc   : > { %14813 = vmatmul.mubr.f32.gmra.mrb[32].mxu1 %v20883_v34 }
 0x7fd   : > { %14815 = vmatprep.mubr.f32.mxu1 %v6173_v12  ;;  %v6733_v12 = vmul.f32 %v23400_v63, %v20926_v40  ;;  %v20973_v63 = vld [vmem:[#allocation3 + $0x42] sm:$0xff] }
 0x7fe   : > { %23407 = vst [vmem:[#allocation38_spill] sm:$0xff] %v20973_v63 }
 0x800   : > { %14816 = vmatmul.mubr.f32.gmra.mrb[34].mxu1 %v20890_v37 }
 0x801   : > { %14818 = vmatprep.mubr.f32.mxu1 %v6175_v17  ;;  %v16358_v17 = vpack.c.bf16 %v12363_v27, %v12362_v46  ;;  %v12367_v46 = vld [vmem:[%s23037_s12 + $0x1c8] sm:$0xff]  ;;  %v20960_v27 = vld [vmem:[#allocation3 + $0x32] sm:$0xff] }
 0x802   : > { %23404 = vst [vmem:[#allocation35_spill] sm:$0xff] %v20960_v27 }
 0x804   : > { %14819 = vmatmul.mubr.f32.gmra.mrb[36].mxu1 %v20897_v0 }
 0x805   : > { %14821 = vmatprep.mubr.f32.mxu1 %v6177_v35  ;;  %v20939_v35 = vld [vmem:[#allocation3 + $0x2a] sm:$0xff] }
 0x806   : > { %23401 = vst [vmem:[#allocation32_spill] sm:$0xff] %v20939_v35 }
 0x808   : > { %14822 = vmatmul.mubr.f32.gmra.mrb[38].mxu1 %v20904_v14 }
 0x809   : > { %14824 = vmatprep.mubr.f32.mxu1 %v6179_v41  ;;  %v12364_v41 = vld [vmem:[%s23037_s12 + $0x1b0] sm:$0xff] }
 0x80c   : > { %14825 = vmatmul.mubr.f32.gmra.mrb[40].mxu1 %v20911_v21 }
 0x80d   : > { %14827 = vmatprep.mubr.f32.mxu1 %v6181_v5  ;;  %v12365_v5 = vld [vmem:[%s23037_s12 + $0x1b8] sm:$0xff] }
 0x80e   : > { %v16362_v52 = vpack.c.bf16 %v12365_v5, %v12364_v41  ;;  %v20965_v5 = vld [vmem:[#allocation3 + $0x4a] sm:$0xff] }
 0x80f   : > { %23406 = vst [vmem:[#allocation34_spill] sm:$0xff] %v20965_v5 }
 0x810   : > { %14828 = vmatmul.mubr.f32.gmra.mrb[42].mxu1 %v20919_v20 }
 0x811   : > { %14862 = vmatprep.mubr.f32.mxu1 %v6698_v50  ;;  %v20947_v50 = vld [vmem:[#allocation3 + $0x22] sm:$0xff] }
 0x814   : > { %14863 = vmatmul.mubr.f32.vlgmr.msra.gmra.mrb[12].mxu1 %v6731_v61  ;;  %v12366_v61 = vld [vmem:[%s23037_s12 + $0x1c0] sm:$0xff] }
 0x815   : > { %14865 = vmatprep.mubr.f32.mxu1 %v20934_v54  ;;  %16353 = vmatpush3.bf16.msra.mxu1 %v16350_v48  ;;  %v23402_v48 = vld [vmem:[#allocation27_spill] sm:$0xff]  ;;  %v16366_v41 = vpack.c.bf16 %v12367_v46, %v12366_v61  ;;  %v20978_v46 = vld [vmem:[#allocation3 + $0x5a] sm:$0xff] }
 0x816   : > { %16355 = vmatprep.subr.bf16.mxu1 %v16354_v57  ;;  %v6735_v55 = vmul.f32 %v23402_v48, %v20939_v35  ;;  %v12368_v48 = vld [vmem:[%s23037_s12 + $0x1d0] sm:$0xff]  ;;  %23409 = vst [vmem:[#allocation37_spill] sm:$0xff] %v20978_v46  ;;  %v21024_v35 = vld [vmem:[#allocation3 + $0x9a] sm:$0xff] }
 0x817   : > { %23418 = vst [vmem:[#allocation46_spill] sm:$0xff] %v21024_v35 }
 0x818   : > { %14866 = vmatmul.mubr.f32.gmra.mrb[14].mxu1 %v6733_v12 }
 0x819   : > { %14868 = vmatprep.mubr.f32.mxu1 %v20947_v50  ;;  %16357 = vmatpush3.bf16.msra.mxu1 %v16354_v57  ;;  %v23405_v57 = vld [vmem:[#allocation30_spill] sm:$0xff] }
 0x81a   : > { %16359 = vmatprep.subr.bf16.mxu1 %v16358_v17  ;;  %v6737_v12 = vmul.f32 %v23405_v57, %v20952_v15  ;;  %v12370_v15 = vld [vmem:[%s23037_s12 + $0x1e0] sm:$0xff] }
 0x81c   : > { %14869 = vmatmul.mubr.f32.gmra.mrb[16].mxu1 %v6735_v55  ;;  %v12369_v55 = vld [vmem:[%s23037_s12 + $0x1d8] sm:$0xff] }
 0x81d   : > { %14871 = vmatprep.mubr.f32.mxu1 %v20960_v27  ;;  %16361 = vmatpush3.bf16.msra.mxu1 %v16358_v17  ;;  %v23408_v17 = vld [vmem:[#allocation33_spill] sm:$0xff]  ;;  %v16370_v61 = vpack.c.bf16 %v12369_v55, %v12368_v48  ;;  %v20986_v27 = vld [vmem:[#allocation3 + $0x52] sm:$0xff]  ;;  %v20991_v55 = vld [vmem:[#allocation3 + $0x6a] sm:$0xff] }
 0x81e   : > { %16363 = vmatprep.subr.bf16.mxu1 %v16362_v52  ;;  %v6739_v57 = vmul.f32 %v23408_v17, %v20965_v5  ;;  %23410 = vst [vmem:[#allocation41_spill] sm:$0xff] %v20986_v27  ;;  %23412 = vst [vmem:[#allocation40_spill] sm:$0xff] %v20991_v55  ;;  %v12372_v5 = vld [vmem:[%s23037_s12 + $0x1f0] sm:$0xff] }
 0x820   : > { %14872 = vmatmul.mubr.f32.gmra.mrb[18].mxu1 %v6737_v12  ;;  %v12371_v12 = vld [vmem:[%s23037_s12 + $0x1e8] sm:$0xff] }
 0x821   : > { %14874 = vmatprep.mubr.f32.mxu1 %v20973_v63  ;;  %16365 = vmatpush3.bf16.msra.mxu1 %v16362_v52  ;;  %v23411_v52 = vld [vmem:[#allocation36_spill] sm:$0xff]  ;;  %v16374_v48 = vpack.c.bf16 %v12371_v12, %v12370_v15  ;;  %v20999_v63 = vld [vmem:[#allocation3 + $0x62] sm:$0xff] }
 0x822   : > { %16367 = vmatprep.subr.bf16.mxu1 %v16366_v41  ;;  %v6741_v17 = vmul.f32 %v23411_v52, %v20978_v46  ;;  %23413 = vst [vmem:[#allocation44_spill] sm:$0xff] %v20999_v63  ;;  %v21004_v12 = vld [vmem:[#allocation3 + $0x7a] sm:$0xff] }
 0x823   : > { %v12374_v46 = vld [vmem:[%s23037_s12 + $0x200] sm:$0xff] }
 0x824   : > { %14875 = vmatmul.mubr.f32.gmra.mrb[20].mxu1 %v6739_v57  ;;  %v12373_v57 = vld [vmem:[%s23037_s12 + $0x1f8] sm:$0xff] }
 0x825   : > { %14877 = vmatprep.mubr.f32.mxu1 %v20986_v27  ;;  %16369 = vmatpush3.bf16.msra.mxu1 %v16366_v41  ;;  %v23414_v41 = vld [vmem:[#allocation39_spill] sm:$0xff]  ;;  %v16378_v15 = vpack.c.bf16 %v12373_v57, %v12372_v5 }
 0x826   : > { %16371 = vmatprep.subr.bf16.mxu1 %v16370_v61  ;;  %v6743_v52 = vmul.f32 %v23414_v41, %v20991_v55  ;;  %v21012_v27 = vld [vmem:[#allocation3 + $0x72] sm:$0xff]  ;;  %v21017_v57 = vld [vmem:[#allocation3 + $0x8a] sm:$0xff]  ;;  %v21019_v55 = vld [vmem:[#allocation3 + $0x82] sm:$0xff] }
 0x827   : > { %23416 = vst [vmem:[#allocation47_spill] sm:$0xff] %v21017_v57 }
 0x828   : > { %14878 = vmatmul.mubr.f32.gmra.mrb[22].mxu1 %v6741_v17  ;;  %v12375_v17 = vld [vmem:[%s23037_s12 + $0x208] sm:$0xff] }
 0x829   : > { %14880 = vmatprep.mubr.f32.mxu1 %v20999_v63  ;;  %16373 = vmatpush3.bf16.msra.mxu1 %v16370_v61  ;;  %v23415_v61 = vld [vmem:[#allocation42_spill] sm:$0xff]  ;;  %v16382_v5 = vpack.c.bf16 %v12375_v17, %v12374_v46  ;;  %v23420_v46 = vld [vmem:[#allocation45_spill] sm:$0xff] }
 0x82a   : > { %16375 = vmatprep.subr.bf16.mxu1 %v16374_v48  ;;  %v6745_v41 = vmul.f32 %v23415_v61, %v21004_v12  ;;  %v6749_v17 = vmul.f32 %v23420_v46, %v21024_v35  ;;  %v21033_v61 = vld [vmem:[#allocation3 + $0xa2] sm:$0xff]  ;;  %v21045_v35 = vld [vmem:[#allocation3 + $0xca] sm:$0xff] }
 0x82b   : > { %23422 = vst [vmem:[#allocation53_spill] sm:$0xff] %v21033_v61  ;;  %23427 = vst [vmem:[#allocation59_spill] sm:$0xff] %v21045_v35 }
 0x82c   : > { %14881 = vmatmul.mubr.f32.gmra.mrb[24].mxu1 %v6743_v52  ;;  %v23417_v52 = vld [vmem:[#allocation43_spill] sm:$0xff] }
 0x82d   : > { %14883 = vmatprep.mubr.f32.mxu1 %v21012_v27  ;;  %16377 = vmatpush3.bf16.msra.mxu1 %v16374_v48  ;;  %v6747_v63 = vmul.f32 %v23417_v52, %v21017_v57  ;;  %v21026_v48 = vld [vmem:[#allocation3 + $0x92] sm:$0xff]  ;;  %v21038_v57 = vld [vmem:[#allocation3 + $0xba] sm:$0xff] }
 0x82e   : > { %16379 = vmatprep.subr.bf16.mxu1 %v16378_v15  ;;  %23419 = vst [vmem:[#allocation50_spill] sm:$0xff] %v21026_v48  ;;  %23424 = vst [vmem:[#allocation52_spill] sm:$0xff] %v21038_v57 }
 0x830   : > { %14884 = vmatmul.mubr.f32.gmra.mrb[26].mxu1 %v6745_v41  ;;  %v21031_v41 = vld [vmem:[#allocation3 + $0xaa] sm:$0xff] }
 0x831   : > { %14886 = vmatprep.mubr.f32.mxu1 %v21019_v55  ;;  %16381 = vmatpush3.bf16.msra.mxu1 %v16378_v15  ;;  %23421 = vst [vmem:[#allocation49_spill] sm:$0xff] %v21031_v41  ;;  %v23423_v15 = vld [vmem:[#allocation48_spill] sm:$0xff] }
 0x832   : > { %16383 = vmatprep.subr.bf16.mxu1 %v16382_v5  ;;  %v6751_v52 = vmul.f32 %v23423_v15, %v21031_v41  ;;  %v21052_v41 = vld [vmem:[#allocation3 + $0xda] sm:$0xff] }
 0x834   : > { %14887 = vmatmul.mubr.f32.gmra.mrb[28].mxu1 %v6747_v63  ;;  %v21040_v63 = vld [vmem:[#allocation3 + $0xb2] sm:$0xff] }
 0x835   : > { %14889 = vmatprep.mubr.f32.mxu1 %v21026_v48  ;;  %23425 = vst [vmem:[#allocation58_spill] sm:$0xff] %v21040_v63  ;;  %v23426_v48 = vld [vmem:[#allocation51_spill] sm:$0xff] }
 0x836   : > { %v6753_v46 = vmul.f32 %v23426_v48, %v21038_v57  ;;  %v21059_v57 = vld [vmem:[#allocation3 + $0xea] sm:$0xff] }
 0x838   : > { %14890 = vmatmul.mubr.f32.gmra.mrb[30].mxu1 %v6749_v17  ;;  %v21047_v17 = vld [vmem:[#allocation3 + $0xc2] sm:$0xff] }
 0x839   : > { %14892 = vmatprep.mubr.f32.mxu1 %v21033_v61  ;;  %23428 = vst [vmem:[#allocation60_spill] sm:$0xff] %v21047_v17  ;;  %v23429_v61 = vld [vmem:[#allocation54_spill] sm:$0xff] }
 0x83a   : > { %v6755_v15 = vmul.f32 %v23429_v61, %v21045_v35  ;;  %v21066_v35 = vld [vmem:[#allocation3 + $0xfa] sm:$0xff] }
 0x83c   : > { %14893 = vmatmul.mubr.f32.gmra.mrb[32].mxu1 %v6751_v52  ;;  %v21054_v52 = vld [vmem:[#allocation3 + $0xd2] sm:$0xff] }
 0x83d   : > { %14895 = vmatprep.mubr.f32.mxu1 %v21040_v63  ;;  %23430 = vst [vmem:[#allocation61_spill] sm:$0xff] %v21054_v52  ;;  %v23431_v63 = vld [vmem:[#allocation55_spill] sm:$0xff] }
 0x83e   : > { %v6757_v48 = vmul.f32 %v23431_v63, %v21052_v41 }
 0x840   : > { %14896 = vmatmul.mubr.f32.gmra.mrb[34].mxu1 %v6753_v46  ;;  %v21061_v46 = vld [vmem:[#allocation3 + $0xe2] sm:$0xff] }
 0x841   : > { %14898 = vmatprep.mubr.f32.mxu1 %v21047_v17  ;;  %23432 = vst [vmem:[#allocation62_spill] sm:$0xff] %v21061_v46  ;;  %v23433_v17 = vld [vmem:[#allocation56_spill] sm:$0xff] }
 0x842   : > { %v6759_v61 = vmul.f32 %v23433_v17, %v21059_v57  ;;  %v12377_v17 = vld [vmem:[%s23037_s12 + $0x218] sm:$0xff] }
 0x844   : > { %14899 = vmatmul.mubr.f32.gmra.mrb[36].mxu1 %v6755_v15  ;;  %v21068_v15 = vld [vmem:[#allocation3 + $0xf2] sm:$0xff] }
 0x845   : > { %14901 = vmatprep.mubr.f32.mxu1 %v21054_v52  ;;  %23434 = vst [vmem:[#allocation63_spill] sm:$0xff] %v21068_v15  ;;  %v23435_v52 = vld [vmem:[#allocation57_spill] sm:$0xff] }
 0x846   : > { %v6761_v63 = vmul.f32 %v23435_v52, %v21066_v35  ;;  %v12378_v52 = vld [vmem:[%s23037_s12 + $0x220] sm:$0xff] }
 0x848   : > { %14902 = vmatmul.mubr.f32.gmra.mrb[38].mxu1 %v6757_v48  ;;  %v7068_v48 = vmul.f32 %v23382_v1, %v20771_v58  ;;  %v12379_v58 = vld [vmem:[%s23037_s12 + $0x228] sm:$0xff] }
 0x849   : > { %14904 = vmatprep.mubr.f32.mxu1 %v21061_v46  ;;  %v12376_v46 = vld [vmem:[%s23037_s12 + $0x210] sm:$0xff]  ;;  %v16390_v1 = vpack.c.bf16 %v12379_v58, %v12378_v52  ;;  %v12383_v52 = vld [vmem:[%s23037_s12 + $0x248] sm:$0xff]  ;;  %v12389_v58 = vld [vmem:[%s23037_s12 + $0x278] sm:$0xff] }
 0x84c   : > { %14905 = vmatmul.mubr.f32.gmra.mrb[40].mxu1 %v6759_v61  ;;  %v16386_v61 = vpack.c.bf16 %v12377_v17, %v12376_v46  ;;  %v12381_v17 = vld [vmem:[%s23037_s12 + $0x238] sm:$0xff]  ;;  %v7076_v46 = vmul.f32 %v23387_v29, %v20821_v7  ;;  %v12386_v7 = vld [vmem:[%s23037_s12 + $0x260] sm:$0xff] }
 0x84d   : > { %14907 = vmatprep.mubr.f32.mxu1 %v21068_v15  ;;  %v7070_v15 = vmul.f32 %v23383_v47, %v20781_v38  ;;  %v12380_v38 = vld [vmem:[%s23037_s12 + $0x230] sm:$0xff] }
 0x850   : > { %14908 = vmatmul.mubr.f32.gmra.mrb[42].mxu1 %v6761_v63  ;;  %v7072_v63 = vmul.f32 %v23385_v8, %v20795_v6  ;;  %v12382_v6 = vld [vmem:[%s23037_s12 + $0x240] sm:$0xff] }
 0x851   : > { %14942 = vmatprep.mubr.f32.mxu1 %v7068_v48  ;;  %v12387_v48 = vld [vmem:[%s23037_s12 + $0x268] sm:$0xff] }
 0x854   : > { %14943 = vmatmul.mubr.f32.vlgmr.msra.gmra.mrb[12].mxu1 %v20784_v18  ;;  %v16394_v18 = vpack.c.bf16 %v12381_v17, %v12380_v38  ;;  %v12391_v38 = vld [vmem:[%s23037_s12 + $0x288] sm:$0xff]  ;;  %v7084_v17 = vmul.f32 %v23391_v44, %v20867_v16  ;;  %v7090_v16 = vmul.f32 %v23394_v23, %v20888_v9  ;;  %v21170_v9 = vld [vmem:[#allocation3 + $0x108] sm:$0xff] }
 0x855   : > { %14945 = vmatprep.mubr.f32.mxu1 %v7070_v15  ;;  %16385 = vmatpush3.bf16.msra.mxu1 %v16382_v5  ;;  %v7074_v5 = vmul.f32 %v23386_v25, %v20808_v49  ;;  %v12384_v49 = vld [vmem:[%s23037_s12 + $0x250] sm:$0xff]  ;;  %v12385_v15 = vld [vmem:[%s23037_s12 + $0x258] sm:$0xff] }
 0x856   : > { %16387 = vmatprep.subr.bf16.mxu1 %v16386_v61 }
 0x858   : > { %14946 = vmatmul.mubr.f32.gmra.mrb[14].mxu1 %v20797_v4  ;;  %v16398_v4 = vpack.c.bf16 %v12383_v52, %v12382_v6  ;;  %v12396_v6 = vld [vmem:[%s23037_s12 + $0x2b0] sm:$0xff]  ;;  %v12397_v52 = vld [vmem:[%s23037_s12 + $0x2b8] sm:$0xff] }
 0x859   : > { %14948 = vmatprep.mubr.f32.mxu1 %v7072_v63  ;;  %16389 = vmatpush3.bf16.msra.mxu1 %v16386_v61  ;;  %v7080_v61 = vmul.f32 %v23389_v13, %v20847_v2  ;;  %v7082_v63 = vmul.f32 %v23390_v3, %v20860_v24  ;;  %v12390_v2 = vld [vmem:[%s23037_s12 + $0x280] sm:$0xff]  ;;  %v7086_v24 = vmul.f32 %v23392_v19, %v20874_v32 }
 0x85a   : > { %16391 = vmatprep.subr.bf16.mxu1 %v16390_v1  ;;  %v7094_v32 = vmul.f32 %v23396_v45, %v20902_v30 }
 0x85c   : > { %14949 = vmatmul.mubr.f32.gmra.mrb[16].mxu1 %v20810_v51  ;;  %v16402_v51 = vpack.c.bf16 %v12385_v15, %v12384_v49  ;;  %v21200_v49 = vld [vmem:[#allocation3 + $0x39] sm:$0xff] }
 0x85d   : > { %14951 = vmatprep.mubr.f32.mxu1 %v7074_v5  ;;  %16393 = vmatpush3.bf16.msra.mxu1 %v16390_v1  ;;  %v7078_v1 = vmul.f32 %v23388_v11, %v20834_v59  ;;  %v12388_v59 = vld [vmem:[%s23037_s12 + $0x270] sm:$0xff]  ;;  %v12398_v15 = vld [vmem:[%s23037_s12 + $0x2c0] sm:$0xff] }
 0x85e   : > { %16395 = vmatprep.subr.bf16.mxu1 %v16394_v18  ;;  %v21188_v5 = vld [vmem:[#allocation3 + $0x29] sm:$0xff] }
 0x860   : > { %14952 = vmatmul.mubr.f32.gmra.mrb[18].mxu1 %v20823_v39  ;;  %v16406_v39 = vpack.c.bf16 %v12387_v48, %v12386_v7  ;;  %v21212_v48 = vld [vmem:[#allocation3 + $0x49] sm:$0xff] }
 0x861   : > { %14954 = vmatprep.mubr.f32.mxu1 %v7076_v46  ;;  %16397 = vmatpush3.bf16.msra.mxu1 %v16394_v18  ;;  %v16426_v46 = vpack.c.bf16 %v12397_v52, %v12396_v6  ;;  %v21278_v6 = vld [vmem:[#allocation3 + $0xb9] sm:$0xff]  ;;  %v21281_v52 = vld [vmem:[#allocation3 + $0xc1] sm:$0xff] }
 0x862   : > { %16399 = vmatprep.subr.bf16.mxu1 %v16398_v4 }
 0x864   : > { %14955 = vmatmul.mubr.f32.gmra.mrb[20].mxu1 %v20836_v43  ;;  %v16410_v43 = vpack.c.bf16 %v12389_v58, %v12388_v59  ;;  %v21221_v59 = vld [vmem:[#allocation3 + $0x51] sm:$0xff] }
 0x865   : > { %14957 = vmatprep.mubr.f32.mxu1 %v7078_v1  ;;  %16401 = vmatpush3.bf16.msra.mxu1 %v16398_v4  ;;  %v21197_v4 = vld [vmem:[#allocation3 + $0x31] sm:$0xff]  ;;  %v21209_v1 = vld [vmem:[#allocation3 + $0x41] sm:$0xff] }
 0x866   : > { %16403 = vmatprep.subr.bf16.mxu1 %v16402_v51 }
 0x868   : > { %14958 = vmatmul.mubr.f32.gmra.mrb[22].mxu1 %v20849_v10  ;;  %v16414_v10 = vpack.c.bf16 %v12391_v38, %v12390_v2  ;;  %v12403_v2 = vld [vmem:[%s23037_s12 + $0x2e8] sm:$0xff] }
 0x869   : > { %14960 = vmatprep.mubr.f32.mxu1 %v7080_v61  ;;  %16405 = vmatpush3.bf16.msra.mxu1 %v16402_v51  ;;  %v12399_v51 = vld [vmem:[%s23037_s12 + $0x2c8] sm:$0xff]  ;;  %v12401_v61 = vld [vmem:[%s23037_s12 + $0x2d8] sm:$0xff] }
 0x86a   : > { %16407 = vmatprep.subr.bf16.mxu1 %v16406_v39  ;;  %v16430_v7 = vpack.c.bf16 %v12399_v51, %v12398_v15  ;;  %v21233_v38 = vld [vmem:[#allocation3 + $0x61] sm:$0xff]  ;;  %v21287_v15 = vld [vmem:[#allocation3 + $0xd1] sm:$0xff]  ;;  %v21290_v51 = vld [vmem:[#allocation3 + $0xd9] sm:$0xff] }
 0x86c   : > { %14961 = vmatmul.mubr.f32.gmra.mrb[24].mxu1 %v20862_v26  ;;  %v7088_v26 = vmul.f32 %v23393_v53, %v20881_v22  ;;  %v21165_v22 = vld [vmem:[#allocation3 + $0x100] sm:$0xff] }
 0x86d   : > { %14963 = vmatprep.mubr.f32.mxu1 %v7082_v63  ;;  %16409 = vmatpush3.bf16.msra.mxu1 %v16406_v39  ;;  %v12400_v39 = vld [vmem:[%s23037_s12 + $0x2d0] sm:$0xff]  ;;  %v12402_v63 = vld [vmem:[%s23037_s12 + $0x2e0] sm:$0xff] }
 0x86e   : > { %16411 = vmatprep.subr.bf16.mxu1 %v16410_v43  ;;  %v16434_v58 = vpack.c.bf16 %v12401_v61, %v12400_v39  ;;  %v21296_v39 = vld [vmem:[#allocation3 + $0xe9] sm:$0xff]  ;;  %v21299_v61 = vld [vmem:[#allocation3 + $0xf1] sm:$0xff] }
 0x870   : > { %14964 = vmatmul.mubr.f32.gmra.mrb[26].mxu1 %v20869_v33  ;;  %v7092_v33 = vmul.f32 %v23395_v56, %v20895_v62  ;;  %v12393_v62 = vld [vmem:[%s23037_s12 + $0x298] sm:$0xff] }
 0x871   : > { %14966 = vmatprep.mubr.f32.mxu1 %v7084_v17  ;;  %16413 = vmatpush3.bf16.msra.mxu1 %v16410_v43  ;;  %v21224_v43 = vld [vmem:[#allocation3 + $0x59] sm:$0xff]  ;;  %v21236_v17 = vld [vmem:[#allocation3 + $0x69] sm:$0xff] }
 0x872   : > { %16415 = vmatprep.subr.bf16.mxu1 %v16414_v10 }
 0x874   : > { %14967 = vmatmul.mubr.f32.gmra.mrb[28].mxu1 %v20876_v36  ;;  %v7096_v36 = vmul.f32 %v23397_v42, %v20909_v31  ;;  %v12394_v31 = vld [vmem:[%s23037_s12 + $0x2a0] sm:$0xff] }
 0x875   : > { %14969 = vmatprep.mubr.f32.mxu1 %v7086_v24  ;;  %v12404_v24 = vld [vmem:[%s23037_s12 + $0x2f0] sm:$0xff] }
 0x878   : > { %14970 = vmatmul.mubr.f32.gmra.mrb[30].mxu1 %v20883_v34  ;;  %v7098_v34 = vmul.f32 %v23398_v60, %v21165_v22 }
 0x879   : > { %14972 = vmatprep.mubr.f32.mxu1 %v7088_v26  ;;  %v12405_v26 = vld [vmem:[%s23037_s12 + $0x2f8] sm:$0xff] }
 0x87c   : > { %14973 = vmatmul.mubr.f32.gmra.mrb[32].mxu1 %v20890_v37  ;;  %v12392_v37 = vld [vmem:[%s23037_s12 + $0x290] sm:$0xff] }
 0x87d   : > { %14975 = vmatprep.mubr.f32.mxu1 %v7090_v16  ;;  %v16418_v30 = vpack.c.bf16 %v12393_v62, %v12392_v37  ;;  %v21245_v16 = vld [vmem:[#allocation3 + $0x71] sm:$0xff]  ;;  %v21257_v37 = vld [vmem:[#allocation3 + $0x81] sm:$0xff] }
 0x880   : > { %14976 = vmatmul.mubr.f32.gmra.mrb[34].mxu1 %v20897_v0  ;;  %v7374_v0 = vld [vmem:[#allocation3 + $0x11] sm:$0xff] }
 0x881   : > { %14978 = vmatprep.mubr.f32.mxu1 %v7092_v33  ;;  %v16442_v33 = vpack.c.bf16 %v12405_v26, %v12404_v24  ;;  %v12409_v24 = vld [vmem:[%s23037_s12 + $0x318] sm:$0xff]  ;;  %v7713_v26 = vmul.f32 %v23399_v28, %v20926_v40  ;;  %v12412_v40 = vld [vmem:[%s23037_s12 + $0x330] sm:$0xff] }
 0x884   : > { %14979 = vmatmul.mubr.f32.gmra.mrb[36].mxu1 %v20904_v14  ;;  %v7375_v14 = vld [vmem:[#allocation3 + $0x19] sm:$0xff] }
 0x885   : > { %14981 = vmatprep.mubr.f32.mxu1 %v7094_v32  ;;  %v21248_v32 = vld [vmem:[#allocation3 + $0x79] sm:$0xff] }
 0x888   : > { %14982 = vmatmul.mubr.f32.gmra.mrb[38].mxu1 %v20911_v21  ;;  %v12395_v21 = vld [vmem:[%s23037_s12 + $0x2a8] sm:$0xff] }
 0x889   : > { %14984 = vmatprep.mubr.f32.mxu1 %v7096_v36  ;;  %v16422_v18 = vpack.c.bf16 %v12395_v21, %v12394_v31  ;;  %v12406_v36 = vld [vmem:[%s23037_s12 + $0x300] sm:$0xff]  ;;  %v21269_v31 = vld [vmem:[#allocation3 + $0xa1] sm:$0xff]  ;;  %v21272_v21 = vld [vmem:[#allocation3 + $0xa9] sm:$0xff] }
 0x88c   : > { %14985 = vmatmul.mubr.f32.gmra.mrb[40].mxu1 %v20919_v20  ;;  %v21185_v20 = vld [vmem:[#allocation3 + $0x21] sm:$0xff] }
 0x88d   : > { %14987 = vmatprep.mubr.f32.mxu1 %v7098_v34  ;;  %v12407_v34 = vld [vmem:[%s23037_s12 + $0x308] sm:$0xff] }
 0x88e   : > { %v16446_v62 = vpack.c.bf16 %v12407_v34, %v12406_v36  ;;  %v12410_v36 = vld [vmem:[%s23037_s12 + $0x320] sm:$0xff]  ;;  %v12411_v34 = vld [vmem:[%s23037_s12 + $0x328] sm:$0xff] }
 0x890   : > { %14988 = vmatmul.mubr.f32.gmra.mrb[42].mxu1 %v21170_v9 }
 0x891   : > { %15022 = vmatprep.mubr.f32.mxu1 %v7374_v0  ;;  %v21260_v0 = vld [vmem:[#allocation3 + $0x89] sm:$0xff] }
 0x894   : > { %15023 = vmatmul.mubr.f32.vlgmr.msra.gmra.mrb[12].mxu1 %v7375_v14  ;;  %v21266_v14 = vld [vmem:[#allocation3 + $0x99] sm:$0xff] }
 0x895   : > { %15025 = vmatprep.mubr.f32.mxu1 %v21185_v20  ;;  %16417 = vmatpush3.bf16.msra.mxu1 %v16414_v10  ;;  %v16438_v10 = vpack.c.bf16 %v12403_v2, %v12402_v63  ;;  %v21305_v63 = vld [vmem:[#allocation3 + $0x101] sm:$0xff]  ;;  %v21308_v2 = vld [vmem:[#allocation3 + $0x109] sm:$0xff] }
 0x896   : > { %16419 = vmatprep.subr.bf16.mxu1 %v16418_v30  ;;  %23437 = vst [vmem:[#allocation65_spill] sm:$0xff] %v21305_v63  ;;  %23438 = vst [vmem:[#allocation66_spill] sm:$0xff] %v21308_v2 }
 0x898   : > { %15026 = vmatmul.mubr.f32.gmra.mrb[14].mxu1 %v21188_v5 }
 0x899   : > { %15028 = vmatprep.mubr.f32.mxu1 %v21197_v4  ;;  %16421 = vmatpush3.bf16.msra.mxu1 %v16418_v30  ;;  %v21263_v30 = vld [vmem:[#allocation3 + $0x91] sm:$0xff] }
 0x89a   : > { %16423 = vmatprep.subr.bf16.mxu1 %v16422_v18 }
 0x89c   : > { %15029 = vmatmul.mubr.f32.gmra.mrb[16].mxu1 %v21200_v49 }
 0x89d   : > { %15031 = vmatprep.mubr.f32.mxu1 %v21209_v1  ;;  %16425 = vmatpush3.bf16.msra.mxu1 %v16422_v18  ;;  %v21275_v18 = vld [vmem:[#allocation3 + $0xb1] sm:$0xff] }
 0x89e   : > { %16427 = vmatprep.subr.bf16.mxu1 %v16426_v46 }
 0x8a0   : > { %15032 = vmatmul.mubr.f32.gmra.mrb[18].mxu1 %v21212_v48 }
 0x8a1   : > { %15034 = vmatprep.mubr.f32.mxu1 %v21221_v59  ;;  %16429 = vmatpush3.bf16.msra.mxu1 %v16426_v46  ;;  %v21284_v46 = vld [vmem:[#allocation3 + $0xc9] sm:$0xff] }
 0x8a2   : > { %16431 = vmatprep.subr.bf16.mxu1 %v16430_v7 }
 0x8a4   : > { %15035 = vmatmul.mubr.f32.gmra.mrb[20].mxu1 %v21224_v43 }
 0x8a5   : > { %15037 = vmatprep.mubr.f32.mxu1 %v21233_v38  ;;  %16433 = vmatpush3.bf16.msra.mxu1 %v16430_v7  ;;  %v21293_v7 = vld [vmem:[#allocation3 + $0xe1] sm:$0xff] }
 0x8a6   : > { %16435 = vmatprep.subr.bf16.mxu1 %v16434_v58 }
 0x8a8   : > { %15038 = vmatmul.mubr.f32.gmra.mrb[22].mxu1 %v21236_v17 }
 0x8a9   : > { %15040 = vmatprep.mubr.f32.mxu1 %v21245_v16  ;;  %16437 = vmatpush3.bf16.msra.mxu1 %v16434_v58  ;;  %v21302_v58 = vld [vmem:[#allocation3 + $0xf9] sm:$0xff] }
 0x8aa   : > { %16439 = vmatprep.subr.bf16.mxu1 %v16438_v10  ;;  %23436 = vst [vmem:[#allocation64_spill] sm:$0xff] %v21302_v58 }
 0x8ac   : > { %15041 = vmatmul.mubr.f32.gmra.mrb[24].mxu1 %v21248_v32 }
 0x8ad   : > { %15043 = vmatprep.mubr.f32.mxu1 %v21257_v37  ;;  %16441 = vmatpush3.bf16.msra.mxu1 %v16438_v10  ;;  %v12408_v10 = vld [vmem:[%s23037_s12 + $0x310] sm:$0xff] }
 0x8ae   : > { %16443 = vmatprep.subr.bf16.mxu1 %v16442_v33 }
 0x8b0   : > { %15044 = vmatmul.mubr.f32.gmra.mrb[26].mxu1 %v21260_v0 }
 0x8b1   : > { %15046 = vmatprep.mubr.f32.mxu1 %v21263_v30  ;;  %16445 = vmatpush3.bf16.msra.mxu1 %v16442_v33  ;;  %v16450_v33 = vpack.c.bf16 %v12409_v24, %v12408_v10  ;;  %v12413_v10 = vld [vmem:[%s23037_s12 + $0x338] sm:$0xff] }
 0x8b2   : > { %16447 = vmatprep.subr.bf16.mxu1 %v16446_v62  ;;  %v23441_v24 = vld [vmem:[#allocation35_spill] sm:$0xff]  ;;  %v16458_v28 = vpack.c.bf16 %v12413_v10, %v12412_v40  ;;  %v12416_v40 = vld [vmem:[%s23037_s12 + $0x350] sm:$0xff] }
 0x8b3   : > { %v12417_v10 = vld [vmem:[%s23037_s12 + $0x358] sm:$0xff] }
 0x8b4   : > { %15047 = vmatmul.mubr.f32.gmra.mrb[28].mxu1 %v21266_v14 }
 0x8b5   : > { %15049 = vmatprep.mubr.f32.mxu1 %v21269_v31 }
 0x8b8   : > { %15050 = vmatmul.mubr.f32.gmra.mrb[30].mxu1 %v21272_v21 }
 0x8b9   : > { %15052 = vmatprep.mubr.f32.mxu1 %v21275_v18 }
 0x8bc   : > { %15053 = vmatmul.mubr.f32.gmra.mrb[32].mxu1 %v21278_v6 }
 0x8bd   : > { %15055 = vmatprep.mubr.f32.mxu1 %v21281_v52 }
 0x8c0   : > { %15056 = vmatmul.mubr.f32.gmra.mrb[34].mxu1 %v21284_v46 }
 0x8c1   : > { %15058 = vmatprep.mubr.f32.mxu1 %v21287_v15 }
 0x8c4   : > { %15059 = vmatmul.mubr.f32.gmra.mrb[36].mxu1 %v21290_v51 }
 0x8c5   : > { %15061 = vmatprep.mubr.f32.mxu1 %v21293_v7 }
 0x8c8   : > { %15062 = vmatmul.mubr.f32.gmra.mrb[38].mxu1 %v21296_v39 }
 0x8c9   : > { %15064 = vmatprep.mubr.f32.mxu1 %v21299_v61 }
 0x8cc   : > { %15065 = vmatmul.mubr.f32.gmra.mrb[40].mxu1 %v21302_v58 }
 0x8cd   : > { %15067 = vmatprep.mubr.f32.mxu1 %v21305_v63  ;;  %v23439_v63 = vld [vmem:[#allocation32_spill] sm:$0xff] }
 0x8d0   : > { %15068 = vmatmul.mubr.f32.gmra.mrb[42].mxu1 %v21308_v2  ;;  %v23440_v2 = vld [vmem:[#allocation24_spill] sm:$0xff] }
 0x8d1   : > { %15102 = vmatprep.mubr.f32.mxu1 %v20934_v54  ;;  %v7715_v58 = vmul.f32 %v23440_v2, %v23439_v63  ;;  %v16454_v54 = vpack.c.bf16 %v12411_v34, %v12410_v36  ;;  %v12414_v63 = vld [vmem:[%s23037_s12 + $0x340] sm:$0xff]  ;;  %v12415_v36 = vld [vmem:[%s23037_s12 + $0x348] sm:$0xff]  ;;  %v23444_v34 = vld [vmem:[#allocation38_spill] sm:$0xff] }
 0x8d2   : > { %v16462_v2 = vpack.c.bf16 %v12415_v36, %v12414_v63  ;;  %v12418_v63 = vld [vmem:[%s23037_s12 + $0x360] sm:$0xff]  ;;  %v12419_v36 = vld [vmem:[%s23037_s12 + $0x368] sm:$0xff] }
 0x8d4   : > { %15103 = vmatmul.mubr.f32.vlgmr.msra.gmra.mrb[12].mxu1 %v7713_v26  ;;  %v23442_v26 = vld [vmem:[#allocation31_spill] sm:$0xff] }
 0x8d5   : > { %15105 = vmatprep.mubr.f32.mxu1 %v20947_v50  ;;  %16449 = vmatpush3.bf16.msra.mxu1 %v16446_v62  ;;  %v23443_v50 = vld [vmem:[#allocation27_spill] sm:$0xff] }
 0x8d6   : > { %16451 = vmatprep.subr.bf16.mxu1 %v16450_v33  ;;  %v7717_v62 = vmul.f32 %v23443_v50, %v23442_v26  ;;  %v23447_v26 = vld [vmem:[#allocation41_spill] sm:$0xff]  ;;  %v16466_v50 = vpack.c.bf16 %v12417_v10, %v12416_v40  ;;  %v12420_v40 = vld [vmem:[%s23037_s12 + $0x370] sm:$0xff]  ;;  %v12421_v10 = vld [vmem:[%s23037_s12 + $0x378] sm:$0xff] }
 0x8d8   : > { %15106 = vmatmul.mubr.f32.gmra.mrb[14].mxu1 %v7715_v58  ;;  %v23445_v58 = vld [vmem:[#allocation34_spill] sm:$0xff] }
 0x8d9   : > { %15108 = vmatprep.mubr.f32.mxu1 %v23441_v24  ;;  %16453 = vmatpush3.bf16.msra.mxu1 %v16450_v33  ;;  %v23446_v24 = vld [vmem:[#allocation30_spill] sm:$0xff] }
 0x8da   : > { %16455 = vmatprep.subr.bf16.mxu1 %v16454_v54  ;;  %v7719_v33 = vmul.f32 %v23446_v24, %v23445_v58  ;;  %v23450_v58 = vld [vmem:[#allocation44_spill] sm:$0xff]  ;;  %v16470_v24 = vpack.c.bf16 %v12419_v36, %v12418_v63  ;;  %v12423_v36 = vld [vmem:[%s23037_s12 + $0x388] sm:$0xff] }
 0x8db   : > { %v12422_v63 = vld [vmem:[%s23037_s12 + $0x380] sm:$0xff] }
 0x8dc   : > { %15109 = vmatmul.mubr.f32.gmra.mrb[16].mxu1 %v7717_v62  ;;  %v23448_v62 = vld [vmem:[#allocation37_spill] sm:$0xff] }
 0x8dd   : > { %15111 = vmatprep.mubr.f32.mxu1 %v23444_v34  ;;  %16457 = vmatpush3.bf16.msra.mxu1 %v16454_v54  ;;  %v23449_v34 = vld [vmem:[#allocation33_spill] sm:$0xff] }
 0x8de   : > { %16459 = vmatprep.subr.bf16.mxu1 %v16458_v28  ;;  %v7721_v54 = vmul.f32 %v23449_v34, %v23448_v62  ;;  %v23453_v62 = vld [vmem:[#allocation39_spill] sm:$0xff] }
 0x8e0   : > { %15112 = vmatmul.mubr.f32.gmra.mrb[18].mxu1 %v7719_v33  ;;  %v23451_v33 = vld [vmem:[#allocation40_spill] sm:$0xff] }
 0x8e1   : > { %15114 = vmatprep.mubr.f32.mxu1 %v23447_v26  ;;  %16461 = vmatpush3.bf16.msra.mxu1 %v16458_v28  ;;  %v23452_v26 = vld [vmem:[#allocation36_spill] sm:$0xff] }
 0x8e2   : > { %16463 = vmatprep.subr.bf16.mxu1 %v16462_v2  ;;  %v7723_v28 = vmul.f32 %v23452_v26, %v23451_v33  ;;  %v16478_v33 = vpack.c.bf16 %v12423_v36, %v12422_v63  ;;  %v23461_v26 = vld [vmem:[#allocation45_spill] sm:$0xff]  ;;  %v23465_v36 = vld [vmem:[#allocation60_spill] sm:$0xff] }
 0x8e4   : > { %15115 = vmatmul.mubr.f32.gmra.mrb[20].mxu1 %v7721_v54  ;;  %v16474_v54 = vpack.c.bf16 %v12421_v10, %v12420_v40  ;;  %v23458_v40 = vld [vmem:[#allocation43_spill] sm:$0xff] }
 0x8e5   : > { %15117 = vmatprep.mubr.f32.mxu1 %v23450_v58  ;;  %16465 = vmatpush3.bf16.msra.mxu1 %v16462_v2  ;;  %v7725_v2 = vmul.f32 %v23453_v62, %v21004_v12  ;;  %v23454_v58 = vld [vmem:[#allocation47_spill] sm:$0xff]  ;;  %v23456_v12 = vld [vmem:[#allocation50_spill] sm:$0xff]  ;;  %v23459_v62 = vld [vmem:[#allocation53_spill] sm:$0xff] }
 0x8e6   : > { %16467 = vmatprep.subr.bf16.mxu1 %v16466_v50 }
 0x8e8   : > { %15118 = vmatmul.mubr.f32.gmra.mrb[22].mxu1 %v7723_v28  ;;  %v23457_v28 = vld [vmem:[#allocation46_spill] sm:$0xff] }
 0x8e9   : > { %15120 = vmatprep.mubr.f32.mxu1 %v21012_v27  ;;  %16469 = vmatpush3.bf16.msra.mxu1 %v16466_v50  ;;  %v23455_v27 = vld [vmem:[#allocation42_spill] sm:$0xff]  ;;  %v7729_v10 = vmul.f32 %v23458_v40, %v23457_v28  ;;  %v23468_v28 = vld [vmem:[#allocation61_spill] sm:$0xff] }
 0x8ea   : > { %16471 = vmatprep.subr.bf16.mxu1 %v16470_v24  ;;  %v7727_v50 = vmul.f32 %v23455_v27, %v23454_v58  ;;  %v23463_v58 = vld [vmem:[#allocation52_spill] sm:$0xff] }
 0x8eb   : > { %v23464_v27 = vld [vmem:[#allocation48_spill] sm:$0xff] }
 0x8ec   : > { %15121 = vmatmul.mubr.f32.gmra.mrb[24].mxu1 %v7725_v2  ;;  %v23460_v2 = vld [vmem:[#allocation49_spill] sm:$0xff]  ;;  %v7733_v63 = vmul.f32 %v23464_v27, %v23463_v58  ;;  %v23472_v58 = vld [vmem:[#allocation63_spill] sm:$0xff] }
 0x8ed   : > { %15123 = vmatprep.mubr.f32.mxu1 %v21019_v55  ;;  %16473 = vmatpush3.bf16.msra.mxu1 %v16470_v24  ;;  %v7731_v55 = vmul.f32 %v23461_v26, %v23460_v2  ;;  %v23462_v24 = vld [vmem:[#allocation58_spill] sm:$0xff] }
 0x8ee   : > { %16475 = vmatprep.subr.bf16.mxu1 %v16474_v54  ;;  %v23470_v2 = vld [vmem:[#allocation62_spill] sm:$0xff] }
 0x8ef   : > { %v21404_v27 = vld [vmem:[#allocation3 + $0x10a] sm:$0xff] }
 0x8f0   : > { %15124 = vmatmul.mubr.f32.gmra.mrb[26].mxu1 %v7727_v50  ;;  %v23467_v50 = vld [vmem:[#allocation51_spill] sm:$0xff]  ;;  %23474 = vst [vmem:[#allocation6_spill] sm:$0xff] %v21404_v27 }
 0x8f1   : > { %15126 = vmatprep.mubr.f32.mxu1 %v23456_v12  ;;  %16477 = vmatpush3.bf16.msra.mxu1 %v16474_v54  ;;  %v23466_v54 = vld [vmem:[#allocation59_spill] sm:$0xff] }
 0x8f2   : > { %16479 = vmatprep.subr.bf16.mxu1 %v16478_v33  ;;  %v7735_v12 = vmul.f32 %v23467_v50, %v23466_v54  ;;  %v21406_v54 = vld [vmem:[#allocation3 + $0x102] sm:$0xff] }
 0x8f4   : > { %15127 = vmatmul.mubr.f32.gmra.mrb[28].mxu1 %v7729_v10 }
 0x8f5   : > { %15129 = vmatprep.mubr.f32.mxu1 %v23459_v62  ;;  %v23469_v62 = vld [vmem:[#allocation54_spill] sm:$0xff] }
 0x8f6   : > { %v7737_v10 = vmul.f32 %v23469_v62, %v21052_v41  ;;  %v23475_v41 = vld [vmem:[#allocation57_spill] sm:$0xff] }
 0x8f8   : > { %15130 = vmatmul.mubr.f32.gmra.mrb[30].mxu1 %v7731_v55  ;;  %v23471_v55 = vld [vmem:[#allocation55_spill] sm:$0xff] }
 0x8f9   : > { %15132 = vmatprep.mubr.f32.mxu1 %v23462_v24  ;;  %v7739_v24 = vmul.f32 %v23471_v55, %v21059_v57  ;;  %v12424_v57 = vld [vmem:[%s23037_s12 + $0x390] sm:$0xff] }
 0x8fc   : > { %15133 = vmatmul.mubr.f32.gmra.mrb[32].mxu1 %v7733_v63  ;;  %v23473_v63 = vld [vmem:[#allocation56_spill] sm:$0xff] }
 0x8fd   : > { %15135 = vmatprep.mubr.f32.mxu1 %v23465_v36  ;;  %v7741_v36 = vmul.f32 %v23473_v63, %v21066_v35  ;;  %v12425_v35 = vld [vmem:[%s23037_s12 + $0x398] sm:$0xff] }
 0x900   : > { %15136 = vmatmul.mubr.f32.gmra.mrb[34].mxu1 %v7735_v12  ;;  %v8018_v12 = vld [vmem:[#allocation3 + $0x20] sm:$0xff] }
 0x901   : > { %15138 = vmatprep.mubr.f32.mxu1 %v23468_v28  ;;  %v7743_v28 = vmul.f32 %v23475_v41, %v21404_v27  ;;  %v12426_v41 = vld [vmem:[%s23037_s12 + $0x3a0] sm:$0xff] }
 0x902   : > { %v8021_v27 = vld [vmem:[#allocation3 + $0x38] sm:$0xff] }
 0x904   : > { %15139 = vmatmul.mubr.f32.gmra.mrb[36].mxu1 %v7737_v10  ;;  %v23476_v10 = vld [vmem:[#allocation7_spill] sm:$0xff] }
 0x905   : > { %15141 = vmatprep.mubr.f32.mxu1 %v23470_v2  ;;  %v8050_v2 = vmul.f32 %v23476_v10, %v8018_v12  ;;  %v12427_v12 = vld [vmem:[%s23037_s12 + $0x3a8] sm:$0xff] }
 0x906   : > { %v8022_v10 = vld [vmem:[#allocation3 + $0x40] sm:$0xff] }
 0x908   : > { %15142 = vmatmul.mubr.f32.gmra.mrb[38].mxu1 %v7739_v24  ;;  %v8020_v24 = vld [vmem:[#allocation3 + $0x30] sm:$0xff] }
 0x909   : > { %15144 = vmatprep.mubr.f32.mxu1 %v23472_v58  ;;  %v16482_v58 = vpack.c.bf16 %v12425_v35, %v12424_v57  ;;  %v8052_v63 = vmul.f32 %v23383_v47, %v8020_v24  ;;  %v12428_v47 = vld [vmem:[%s23037_s12 + $0x3b0] sm:$0xff]  ;;  %v12429_v57 = vld [vmem:[%s23037_s12 + $0x3b8] sm:$0xff]  ;;  %v12431_v24 = vld [vmem:[%s23037_s12 + $0x3c8] sm:$0xff] }
 0x90a   : > { %v8024_v35 = vld [vmem:[#allocation3 + $0x50] sm:$0xff] }
 0x90c   : > { %15145 = vmatmul.mubr.f32.gmra.mrb[40].mxu1 %v7741_v36  ;;  %v8019_v36 = vld [vmem:[#allocation3 + $0x28] sm:$0xff] }
 0x90d   : > { %15147 = vmatprep.mubr.f32.mxu1 %v21406_v54 }
 0x910   : > { %15148 = vmatmul.mubr.f32.gmra.mrb[42].mxu1 %v7743_v28  ;;  %v16486_v28 = vpack.c.bf16 %v12427_v12, %v12426_v41  ;;  %v8056_v41 = vmul.f32 %v23386_v25, %v8024_v35  ;;  %v12432_v25 = vld [vmem:[%s23037_s12 + $0x3d0] sm:$0xff]  ;;  %v12435_v35 = vld [vmem:[%s23037_s12 + $0x3e8] sm:$0xff] }
 0x911   : > { %15182 = vmatprep.mubr.f32.mxu1 %v8050_v2  ;;  %v8054_v2 = vmul.f32 %v23385_v8, %v8022_v10  ;;  %v12430_v8 = vld [vmem:[%s23037_s12 + $0x3c0] sm:$0xff]  ;;  %v12433_v10 = vld [vmem:[%s23037_s12 + $0x3d8] sm:$0xff] }
 0x914   : > { %15183 = vmatmul.mubr.f32.vlgmr.msra.gmra.mrb[12].mxu1 %v8019_v36  ;;  %v8026_v36 = vld [vmem:[#allocation3 + $0x60] sm:$0xff] }
 0x915   : > { %15185 = vmatprep.mubr.f32.mxu1 %v8052_v63  ;;  %16481 = vmatpush3.bf16.msra.mxu1 %v16478_v33  ;;  %v16490_v63 = vpack.c.bf16 %v12429_v57, %v12428_v47  ;;  %v8023_v33 = vld [vmem:[#allocation3 + $0x48] sm:$0xff]  ;;  %v8058_v12 = vmul.f32 %v23387_v29, %v8026_v36  ;;  %v16498_v47 = vpack.c.bf16 %v12433_v10, %v12432_v25  ;;  %v12434_v29 = vld [vmem:[%s23037_s12 + $0x3e0] sm:$0xff]  ;;  %v8032_v36 = vld [vmem:[#allocation3 + $0x90] sm:$0xff] }
 0x916   : > { %16483 = vmatprep.subr.bf16.mxu1 %v16482_v58  ;;  %v12439_v25 = vld [vmem:[%s23037_s12 + $0x408] sm:$0xff] }
 0x917   : > { %v8034_v10 = vld [vmem:[#allocation3 + $0xa0] sm:$0xff] }
 0x918   : > { %15186 = vmatmul.mubr.f32.gmra.mrb[14].mxu1 %v8021_v27  ;;  %v16494_v27 = vpack.c.bf16 %v12431_v24, %v12430_v8  ;;  %v12437_v24 = vld [vmem:[%s23037_s12 + $0x3f8] sm:$0xff] }
 0x919   : > { %15188 = vmatprep.mubr.f32.mxu1 %v8054_v2  ;;  %16485 = vmatpush3.bf16.msra.mxu1 %v16482_v58  ;;  %v8025_v58 = vld [vmem:[#allocation3 + $0x58] sm:$0xff]  ;;  %v8028_v2 = vld [vmem:[#allocation3 + $0x70] sm:$0xff] }
 0x91a   : > { %16487 = vmatprep.subr.bf16.mxu1 %v16486_v28  ;;  %v8060_v57 = vmul.f32 %v23388_v11, %v8028_v2  ;;  %v12436_v11 = vld [vmem:[%s23037_s12 + $0x3f0] sm:$0xff] }
 0x91c   : > { %15189 = vmatmul.mubr.f32.gmra.mrb[16].mxu1 %v8023_v33  ;;  %v8030_v33 = vld [vmem:[#allocation3 + $0x80] sm:$0xff] }
 0x91d   : > { %15191 = vmatprep.mubr.f32.mxu1 %v8056_v41  ;;  %16489 = vmatpush3.bf16.msra.mxu1 %v16486_v28  ;;  %v8027_v28 = vld [vmem:[#allocation3 + $0x68] sm:$0xff]  ;;  %v16502_v41 = vpack.c.bf16 %v12435_v35, %v12434_v29  ;;  %v8062_v8 = vmul.f32 %v23389_v13, %v8030_v33  ;;  %v12438_v13 = vld [vmem:[%s23037_s12 + $0x400] sm:$0xff]  ;;  %v8038_v35 = vld [vmem:[#allocation3 + $0xc0] sm:$0xff] }
 0x91e   : > { %16491 = vmatprep.subr.bf16.mxu1 %v16490_v63  ;;  %v16510_v2 = vpack.c.bf16 %v12439_v25, %v12438_v13  ;;  %v8037_v33 = vld [vmem:[#allocation3 + $0xb8] sm:$0xff]  ;;  %v12440_v25 = vld [vmem:[%s23037_s12 + $0x410] sm:$0xff] }
 0x920   : > { %15192 = vmatmul.mubr.f32.gmra.mrb[18].mxu1 %v8025_v58  ;;  %v16506_v58 = vpack.c.bf16 %v12437_v24, %v12436_v11  ;;  %v8042_v11 = vld [vmem:[#allocation3 + $0xe0] sm:$0xff]  ;;  %v8041_v24 = vld [vmem:[#allocation3 + $0xd8] sm:$0xff] }
 0x921   : > { %15194 = vmatprep.mubr.f32.mxu1 %v8058_v12  ;;  %16493 = vmatpush3.bf16.msra.mxu1 %v16490_v63  ;;  %v8029_v63 = vld [vmem:[#allocation3 + $0x78] sm:$0xff]  ;;  %v8064_v12 = vmul.f32 %v23390_v3, %v8032_v36  ;;  %v8035_v3 = vld [vmem:[#allocation3 + $0xa8] sm:$0xff]  ;;  %v8074_v36 = vmul.f32 %v23395_v56, %v8042_v11  ;;  %v23482_v11 = vld [vmem:[#allocation27_spill] sm:$0xff] }
 0x922   : > { %16495 = vmatprep.subr.bf16.mxu1 %v16494_v27  ;;  %v8049_v56 = vld [vmem:[#allocation3 + $0x118] sm:$0xff] }
 0x924   : > { %15195 = vmatmul.mubr.f32.gmra.mrb[20].mxu1 %v8027_v28  ;;  %v8066_v28 = vmul.f32 %v23391_v44, %v8034_v10  ;;  %v12445_v10 = vld [vmem:[%s23037_s12 + $0x438] sm:$0xff] }
 0x925   : > { %15197 = vmatprep.mubr.f32.mxu1 %v8060_v57  ;;  %16497 = vmatpush3.bf16.msra.mxu1 %v16494_v27  ;;  %v8031_v27 = vld [vmem:[#allocation3 + $0x88] sm:$0xff]  ;;  %v8036_v57 = vld [vmem:[#allocation3 + $0xb0] sm:$0xff] }
 0x926   : > { %16499 = vmatprep.subr.bf16.mxu1 %v16498_v47  ;;  %v8068_v29 = vmul.f32 %v23392_v19, %v8036_v57  ;;  %v8044_v19 = vld [vmem:[#allocation3 + $0xf0] sm:$0xff] }
 0x927   : > { %v12453_v57 = vld [vmem:[%s23037_s12 + $0x478] sm:$0xff] }
 0x928   : > { %15198 = vmatmul.mubr.f32.gmra.mrb[22].mxu1 %v8029_v63  ;;  %v8070_v63 = vmul.f32 %v23393_v53, %v8038_v35  ;;  %v8045_v53 = vld [vmem:[#allocation3 + $0xf8] sm:$0xff] }
 0x929   : > { %15200 = vmatprep.mubr.f32.mxu1 %v8062_v8  ;;  %16501 = vmatpush3.bf16.msra.mxu1 %v16498_v47  ;;  %v8033_v47 = vld [vmem:[#allocation3 + $0x98] sm:$0xff]  ;;  %v8039_v8 = vld [vmem:[#allocation3 + $0xc8] sm:$0xff] }
 0x92a   : > { %16503 = vmatprep.subr.bf16.mxu1 %v16502_v41 }
 0x92c   : > { %15201 = vmatmul.mubr.f32.gmra.mrb[24].mxu1 %v8031_v27  ;;  %v8076_v27 = vmul.f32 %v23396_v45, %v8044_v19  ;;  %v12441_v45 = vld [vmem:[%s23037_s12 + $0x418] sm:$0xff]  ;;  %v8669_v19 = vld [vmem:[#allocation3 + $0x5a] sm:$0xff] }
 0x92d   : > { %15203 = vmatprep.mubr.f32.mxu1 %v8064_v12  ;;  %16505 = vmatpush3.bf16.msra.mxu1 %v16502_v41  ;;  %v8040_v41 = vld [vmem:[#allocation3 + $0xd0] sm:$0xff]  ;;  %v8078_v12 = vmul.f32 %v23397_v42, %v21165_v22  ;;  %v16514_v42 = vpack.c.bf16 %v12441_v45, %v12440_v25  ;;  %v12443_v22 = vld [vmem:[%s23037_s12 + $0x428] sm:$0xff]  ;;  %v9049_v25 = vld [vmem:[%s23039_s14 + $0x50] sm:$0xff] }
 0x92e   : > { %16507 = vmatprep.subr.bf16.mxu1 %v16506_v58  ;;  %v8072_v44 = vmul.f32 %v23394_v23, %v8040_v41  ;;  %v8048_v23 = vld [vmem:[#allocation3 + $0x110] sm:$0xff]  ;;  %v9045_v41 = vld [vmem:[%s23039_s14 + $0x30] sm:$0xff] }
 0x92f   : > { %v8080_v13 = vmul.f32 %v23398_v60, %v8048_v23  ;;  %v12442_v60 = vld [vmem:[%s23037_s12 + $0x420] sm:$0xff]  ;;  %v9050_v45 = vld [vmem:[%s23039_s14 + $0x58] sm:$0xff] }
 0x930   : > { %15204 = vmatmul.mubr.f32.gmra.mrb[26].mxu1 %v8033_v47  ;;  %v12449_v47 = vld [vmem:[%s23037_s12 + $0x458] sm:$0xff] }
 0x931   : > { %15206 = vmatprep.mubr.f32.mxu1 %v8066_v28  ;;  %16509 = vmatpush3.bf16.msra.mxu1 %v16506_v58  ;;  %v8043_v58 = vld [vmem:[#allocation3 + $0xe8] sm:$0xff]  ;;  %v12451_v28 = vld [vmem:[%s23037_s12 + $0x468] sm:$0xff] }
 0x932   : > { %16511 = vmatprep.subr.bf16.mxu1 %v16510_v2 }
 0x934   : > { %15207 = vmatmul.mubr.f32.gmra.mrb[28].mxu1 %v8035_v3  ;;  %v9040_v3 = vld [vmem:[%s23039_s14 + $0x8] sm:$0xff] }
 0x935   : > { %15209 = vmatprep.mubr.f32.mxu1 %v8068_v29  ;;  %v23481_v29 = vld [vmem:[#allocation24_spill] sm:$0xff] }
 0x938   : > { %15210 = vmatmul.mubr.f32.gmra.mrb[30].mxu1 %v8037_v33 }
 0x939   : > { %15212 = vmatprep.mubr.f32.mxu1 %v8070_v63  ;;  %v8667_v63 = vld [vmem:[#allocation3 + $0x4a] sm:$0xff] }
 0x93c   : > { %15213 = vmatmul.mubr.f32.gmra.mrb[32].mxu1 %v8039_v8  ;;  %v9046_v8 = vld [vmem:[%s23039_s14 + $0x38] sm:$0xff] }
 0x93d   : > { %15215 = vmatprep.mubr.f32.mxu1 %v8072_v44  ;;  %v8666_v44 = vld [vmem:[#allocation3 + $0x42] sm:$0xff] }
 0x940   : > { %15216 = vmatmul.mubr.f32.gmra.mrb[34].mxu1 %v8041_v24  ;;  %v8699_v24 = vmul.f32 %v23482_v11, %v8667_v63  ;;  %v8693_v63 = vld [vmem:[#allocation3 + $0x11a] sm:$0xff] }
 0x941   : > { %15218 = vmatprep.mubr.f32.mxu1 %v8074_v36  ;;  %v16554_v36 = vpack.c.bf16 %v9046_v8, %v9045_v41  ;;  %v23488_v41 = vld [vmem:[#allocation6_spill] sm:$0xff]  ;;  %v23489_v8 = vld [vmem:[#allocation56_spill] sm:$0xff]  ;;  %v23490_v11 = vld [vmem:[#allocation57_spill] sm:$0xff] }
 0x944   : > { %15219 = vmatmul.mubr.f32.gmra.mrb[36].mxu1 %v8043_v58  ;;  %v9047_v58 = vld [vmem:[%s23039_s14 + $0x40] sm:$0xff] }
 0x945   : > { %15221 = vmatprep.mubr.f32.mxu1 %v8076_v27  ;;  %v9048_v27 = vld [vmem:[%s23039_s14 + $0x48] sm:$0xff] }
 0x948   : > { %15222 = vmatmul.mubr.f32.gmra.mrb[38].mxu1 %v8045_v53  ;;  %v8668_v53 = vld [vmem:[#allocation3 + $0x52] sm:$0xff] }
 0x949   : > { %15224 = vmatprep.mubr.f32.mxu1 %v8078_v12  ;;  %v23483_v12 = vld [vmem:[#allocation30_spill] sm:$0xff] }
 0x94a   : > { %v8701_v23 = vmul.f32 %v23483_v12, %v8669_v19  ;;  %v9697_v19 = vld [vmem:[%s23044_s19 + $0x10] sm:$0xff] }
 0x94c   : > { %15225 = vmatmul.mubr.f32.gmra.mrb[40].mxu1 %v21170_v9  ;;  %v16518_v9 = vpack.c.bf16 %v12443_v22, %v12442_v60  ;;  %v16562_v22 = vpack.c.bf16 %v9050_v45, %v9049_v25  ;;  %v9699_v25 = vld [vmem:[%s23044_s19 + $0x20] sm:$0xff]  ;;  %v9700_v45 = vld [vmem:[%s23044_s19 + $0x28] sm:$0xff] }
 0x94d   : > { %15227 = vmatprep.mubr.f32.mxu1 %v8080_v13  ;;  %v16558_v13 = vpack.c.bf16 %v9048_v27, %v9047_v58  ;;  %v18001_v58 = vld [vmem:[%s18243_s0] sm:$0xff] }
 0x950   : > { %15228 = vmatmul.mubr.f32.gmra.mrb[42].mxu1 %v8049_v56  ;;  %v8671_v56 = vld [vmem:[#allocation3 + $0x6a] sm:$0xff] }
 0x951   : > { %15262 = vmatprep.mubr.f32.mxu1 %v21185_v20  ;;  %v12444_v20 = vld [vmem:[%s23037_s12 + $0x430] sm:$0xff]  ;;  %v8703_v60 = vmul.f32 %v23449_v34, %v8671_v56  ;;  %v9388_v56 = vld [vmem:[%s23042_s17 + $0x28] sm:$0xff] }
 0x952   : > { %v8675_v34 = vld [vmem:[#allocation3 + $0x8a] sm:$0xff] }
 0x954   : > { %15263 = vmatmul.mubr.f32.vlgmr.msra.gmra.mrb[12].mxu1 %v21188_v5  ;;  %v16522_v5 = vpack.c.bf16 %v12445_v10, %v12444_v20  ;;  %v9051_v20 = vld [vmem:[%s23039_s14 + $0x60] sm:$0xff]  ;;  %v9052_v10 = vld [vmem:[%s23039_s14 + $0x68] sm:$0xff] }
 0x955   : > { %15265 = vmatprep.mubr.f32.mxu1 %v21197_v4  ;;  %16513 = vmatpush3.bf16.msra.mxu1 %v16510_v2  ;;  %v12446_v4 = vld [vmem:[%s23037_s12 + $0x440] sm:$0xff]  ;;  %v12447_v2 = vld [vmem:[%s23037_s12 + $0x448] sm:$0xff] }
 0x956   : > { %16515 = vmatprep.subr.bf16.mxu1 %v16514_v42 }
 0x958   : > { %15266 = vmatmul.mubr.f32.gmra.mrb[14].mxu1 %v21200_v49  ;;  %v16526_v49 = vpack.c.bf16 %v12447_v2, %v12446_v4  ;;  %v23484_v4 = vld [vmem:[#allocation36_spill] sm:$0xff] }
 0x959   : > { %15268 = vmatprep.mubr.f32.mxu1 %v21209_v1  ;;  %16517 = vmatpush3.bf16.msra.mxu1 %v16514_v42  ;;  %v12448_v1 = vld [vmem:[%s23037_s12 + $0x450] sm:$0xff] }
 0x95a   : > { %16519 = vmatprep.subr.bf16.mxu1 %v16518_v9  ;;  %v8670_v42 = vld [vmem:[#allocation3 + $0x62] sm:$0xff] }
 0x95c   : > { %15269 = vmatmul.mubr.f32.gmra.mrb[16].mxu1 %v21212_v48  ;;  %v16530_v48 = vpack.c.bf16 %v12449_v47, %v12448_v1  ;;  %v9053_v1 = vld [vmem:[%s23039_s14 + $0x70] sm:$0xff]  ;;  %v9054_v47 = vld [vmem:[%s23039_s14 + $0x78] sm:$0xff] }
 0x95d   : > { %15271 = vmatprep.mubr.f32.mxu1 %v21221_v59  ;;  %16521 = vmatpush3.bf16.msra.mxu1 %v16518_v9  ;;  %v12450_v59 = vld [vmem:[%s23037_s12 + $0x460] sm:$0xff] }
 0x95e   : > { %16523 = vmatprep.subr.bf16.mxu1 %v16522_v5  ;;  %v8673_v9 = vld [vmem:[#allocation3 + $0x7a] sm:$0xff] }
 0x95f   : > { %v8705_v2 = vmul.f32 %v23484_v4, %v8673_v9  ;;  %v9389_v9 = vld [vmem:[%s23042_s17 + $0x30] sm:$0xff]  ;;  %v9702_v4 = vld [vmem:[%s23044_s19 + $0x38] sm:$0xff] }
 0x960   : > { %15272 = vmatmul.mubr.f32.gmra.mrb[18].mxu1 %v21224_v43  ;;  %v16534_v43 = vpack.c.bf16 %v12451_v28, %v12450_v59  ;;  %v23485_v59 = vld [vmem:[#allocation39_spill] sm:$0xff] }
 0x961   : > { %15274 = vmatprep.mubr.f32.mxu1 %v21233_v38  ;;  %16525 = vmatpush3.bf16.msra.mxu1 %v16522_v5  ;;  %v12452_v38 = vld [vmem:[%s23037_s12 + $0x470] sm:$0xff]  ;;  %v8672_v5 = vld [vmem:[#allocation3 + $0x72] sm:$0xff]  ;;  %v8707_v28 = vmul.f32 %v23485_v59, %v8675_v34 }
 0x962   : > { %16527 = vmatprep.subr.bf16.mxu1 %v16526_v49  ;;  %v9703_v59 = vld [vmem:[%s23044_s19 + $0x40] sm:$0xff] }
 0x964   : > { %15275 = vmatmul.mubr.f32.gmra.mrb[20].mxu1 %v21236_v17  ;;  %v16538_v17 = vpack.c.bf16 %v12453_v57, %v12452_v38  ;;  %v8677_v38 = vld [vmem:[#allocation3 + $0x9a] sm:$0xff] }
 0x965   : > { %15277 = vmatprep.mubr.f32.mxu1 %v21245_v16  ;;  %16529 = vmatpush3.bf16.msra.mxu1 %v16526_v49  ;;  %v9039_v16 = vld [vmem:[%s23039_s14] sm:$0xff]  ;;  %v16566_v49 = vpack.c.bf16 %v9052_v10, %v9051_v20  ;;  %v16614_v20 = vpack.c.bf16 %v9700_v45, %v9699_v25  ;;  %v9390_v10 = vld [vmem:[%s23042_s17 + $0x38] sm:$0xff]  ;;  %v18031_v25 = vld [vmem:[%s18243_s0 + $0xf0] sm:$0xff] }
 0x966   : > { %16531 = vmatprep.subr.bf16.mxu1 %v16530_v48  ;;  %v9383_v57 = vld [vmem:[%s23042_s17] sm:$0xff]  ;;  %v16586_v34 = vpack.c.bf16 %v9390_v10, %v9389_v9  ;;  %v9354_v9 = vld [vmem:[%s21745_s29 + $0x18] sm:$0xff]  ;;  %v9356_v10 = vld [vmem:[%s21745_s29 + $0x28] sm:$0xff] }
 0x967   : > { %v9351_v45 = vld [vmem:[%s21745_s29] sm:$0xff] }
 0x968   : > { %15278 = vmatmul.mubr.f32.gmra.mrb[22].mxu1 %v21248_v32  ;;  %v16542_v32 = vpack.c.bf16 %v9040_v3, %v9039_v16  ;;  %v8676_v16 = vld [vmem:[#allocation3 + $0x92] sm:$0xff]  ;;  %v23486_v3 = vld [vmem:[#allocation42_spill] sm:$0xff] }
 0x969   : > { %15280 = vmatprep.mubr.f32.mxu1 %v21257_v37  ;;  %16533 = vmatpush3.bf16.msra.mxu1 %v16530_v48  ;;  %v23477_v37 = vld [vmem:[#allocation64_spill] sm:$0xff]  ;;  %v8674_v48 = vld [vmem:[#allocation3 + $0x82] sm:$0xff] }
 0x96a   : > { %16535 = vmatprep.subr.bf16.mxu1 %v16534_v43 }
 0x96c   : > { %15281 = vmatmul.mubr.f32.gmra.mrb[24].mxu1 %v21260_v0  ;;  %v23478_v0 = vld [vmem:[#allocation65_spill] sm:$0xff] }
 0x96d   : > { %15283 = vmatprep.mubr.f32.mxu1 %v21263_v30  ;;  %16537 = vmatpush3.bf16.msra.mxu1 %v16534_v43  ;;  %v23479_v30 = vld [vmem:[#allocation66_spill] sm:$0xff]  ;;  %v16570_v43 = vpack.c.bf16 %v9054_v47, %v9053_v1  ;;  %v9391_v1 = vld [vmem:[%s23042_s17 + $0x40] sm:$0xff] }
 0x96e   : > { %16539 = vmatprep.subr.bf16.mxu1 %v16538_v17 }
 0x970   : > { %15284 = vmatmul.mubr.f32.gmra.mrb[26].mxu1 %v21266_v14  ;;  %v18000_v14 = vld [vmem:[#allocation2] sm:$0xff] }
 0x971   : > { %15286 = vmatprep.mubr.f32.mxu1 %v21269_v31  ;;  %16541 = vmatpush3.bf16.msra.mxu1 %v16538_v17  ;;  %v8663_v31 = vld [vmem:[#allocation3 + $0x2a] sm:$0xff]  ;;  %v9384_v17 = vld [vmem:[%s23042_s17 + $0x8] sm:$0xff] }
 0x972   : > { %16543 = vmatprep.subr.bf16.mxu1 %v16542_v32 }
 0x974   : > { %15287 = vmatmul.mubr.f32.gmra.mrb[28].mxu1 %v21272_v21  ;;  %v9041_v21 = vld [vmem:[%s23039_s14 + $0x10] sm:$0xff] }
 0x975   : > { %15289 = vmatprep.mubr.f32.mxu1 %v21275_v18  ;;  %v9042_v18 = vld [vmem:[%s23039_s14 + $0x18] sm:$0xff] }
 0x978   : > { %15290 = vmatmul.mubr.f32.gmra.mrb[30].mxu1 %v21278_v6  ;;  %v8662_v6 = vld [vmem:[#allocation3 + $0x22] sm:$0xff] }
 0x979   : > { %15292 = vmatprep.mubr.f32.mxu1 %v21281_v52  ;;  %v23480_v52 = vld [vmem:[#allocation23_spill] sm:$0xff] }
 0x97c   : > { %15293 = vmatmul.mubr.f32.gmra.mrb[32].mxu1 %v21284_v46  ;;  %v8695_v46 = vmul.f32 %v23480_v52, %v8663_v31  ;;  %v8681_v31 = vld [vmem:[#allocation3 + $0xba] sm:$0xff]  ;;  %v8682_v52 = vld [vmem:[#allocation3 + $0xc2] sm:$0xff] }
 0x97d   : > { %15295 = vmatprep.mubr.f32.mxu1 %v21287_v15  ;;  %v16546_v15 = vpack.c.bf16 %v9042_v18, %v9041_v21  ;;  %v8680_v21 = vld [vmem:[#allocation3 + $0xb2] sm:$0xff]  ;;  %v8713_v18 = vmul.f32 %v23461_v26, %v8681_v31 }
 0x97e   : > { %v8688_v26 = vld [vmem:[#allocation3 + $0xf2] sm:$0xff] }
 0x97f   : > { %v9395_v31 = vld [vmem:[%s23042_s17 + $0x60] sm:$0xff] }
 0x980   : > { %15296 = vmatmul.mubr.f32.gmra.mrb[34].mxu1 %v21290_v51  ;;  %v8665_v51 = vld [vmem:[#allocation3 + $0x3a] sm:$0xff] }
 0x981   : > { %15298 = vmatprep.mubr.f32.mxu1 %v21293_v7  ;;  %v9043_v7 = vld [vmem:[%s23039_s14 + $0x20] sm:$0xff]  ;;  %v8697_v35 = vmul.f32 %v23481_v29, %v8665_v51 }
 0x982   : > { %v8685_v51 = vld [vmem:[#allocation3 + $0xda] sm:$0xff] }
 0x984   : > { %15299 = vmatmul.mubr.f32.gmra.mrb[36].mxu1 %v21296_v39  ;;  %v9044_v39 = vld [vmem:[%s23039_s14 + $0x28] sm:$0xff] }
 0x985   : > { %15301 = vmatprep.mubr.f32.mxu1 %v21299_v61  ;;  %v8664_v61 = vld [vmem:[#allocation3 + $0x32] sm:$0xff]  ;;  %v16550_v33 = vpack.c.bf16 %v9044_v39, %v9043_v7  ;;  %v8717_v39 = vmul.f32 %v23467_v50, %v8685_v51  ;;  %v8723_v50 = vmul.f32 %v23489_v8, %v23488_v41  ;;  %v18014_v41 = vld [vmem:[%s18243_s0 + $0x68] sm:$0xff]  ;;  %v18015_v8 = vld [vmem:[%s18243_s0 + $0x70] sm:$0xff] }
 0x986   : > { %v8684_v7 = vld [vmem:[#allocation3 + $0xd2] sm:$0xff] }
 0x988   : > { %15302 = vmatmul.mubr.f32.gmra.mrb[38].mxu1 %v23477_v37  ;;  %v16574_v37 = vpack.c.bf16 %v9384_v17, %v9383_v57  ;;  %v9393_v17 = vld [vmem:[%s23042_s17 + $0x50] sm:$0xff] }
 0x989   : > { %15304 = vmatprep.mubr.f32.mxu1 %v23478_v0  ;;  %v8679_v0 = vld [vmem:[#allocation3 + $0xaa] sm:$0xff] }
 0x98c   : > { %15305 = vmatmul.mubr.f32.gmra.mrb[40].mxu1 %v23479_v30  ;;  %v8678_v30 = vld [vmem:[#allocation3 + $0xa2] sm:$0xff] }
 0x98d   : > { %15307 = vmatprep.mubr.f32.mxu1 %v18000_v14 }
 0x990   : > { %15308 = vmatmul.mubr.f32.gmra.mrb[42].mxu1 %v18000_v14  ;;  %v8711_v14 = vmul.f32 %v23458_v40, %v8679_v0  ;;  %v8687_v40 = vld [vmem:[#allocation3 + $0xea] sm:$0xff] }
 0x991   : > { %15342 = vmatprep.mubr.f32.mxu1 %v8662_v6  ;;  %v8683_v6 = vld [vmem:[#allocation3 + $0xca] sm:$0xff]  ;;  %v8719_v29 = vmul.f32 %v23469_v62, %v8687_v40 }
 0x992   : > { %v9385_v62 = vld [vmem:[%s23042_s17 + $0x10] sm:$0xff]  ;;  %v18008_v0 = vld [vmem:[%s18243_s0 + $0x38] sm:$0xff] }
 0x993   : > { %v9398_v40 = vld [vmem:[%s23042_s17 + $0x78] sm:$0xff] }
 0x994   : > { %15343 = vmatmul.mubr.f32.vlgmr.msra.gmra.mrb[12].mxu1 %v8695_v46  ;;  %v23487_v46 = vld [vmem:[#allocation48_spill] sm:$0xff] }
 0x995   : > { %15345 = vmatprep.mubr.f32.mxu1 %v8664_v61  ;;  %16545 = vmatpush3.bf16.msra.mxu1 %v16542_v32  ;;  %v8709_v32 = vmul.f32 %v23486_v3, %v8677_v38  ;;  %v8686_v61 = vld [vmem:[#allocation3 + $0xe2] sm:$0xff]  ;;  %v9394_v3 = vld [vmem:[%s23042_s17 + $0x58] sm:$0xff] }
 0x996   : > { %16547 = vmatprep.subr.bf16.mxu1 %v16546_v15  ;;  %v18007_v38 = vld [vmem:[%s18243_s0 + $0x30] sm:$0xff] }
 0x998   : > { %15346 = vmatmul.mubr.f32.gmra.mrb[14].mxu1 %v8697_v35  ;;  %v8689_v35 = vld [vmem:[#allocation3 + $0xfa] sm:$0xff] }
 0x999   : > { %15348 = vmatprep.mubr.f32.mxu1 %v8666_v44  ;;  %16549 = vmatpush3.bf16.msra.mxu1 %v16546_v15  ;;  %v8715_v15 = vmul.f32 %v23487_v46, %v8683_v6  ;;  %v8692_v44 = vld [vmem:[#allocation3 + $0x112] sm:$0xff]  ;;  %v18010_v46 = vld [vmem:[%s18243_s0 + $0x48] sm:$0xff] }
 0x99a   : > { %16551 = vmatprep.subr.bf16.mxu1 %v16550_v33  ;;  %v9707_v6 = vld [vmem:[%s23044_s19 + $0x60] sm:$0xff] }
 0x99c   : > { %15349 = vmatmul.mubr.f32.gmra.mrb[16].mxu1 %v8699_v24  ;;  %v8725_v24 = vmul.f32 %v23490_v11, %v8693_v63  ;;  %v23491_v11 = vmov 0.0|0.0  }
 0x99d   : > { %15351 = vmatprep.mubr.f32.mxu1 %v8668_v53  ;;  %16553 = vmatpush3.bf16.msra.mxu1 %v16550_v33  ;;  %v8721_v33 = vmul.f32 %v23471_v55, %v8689_v35  ;;  %v9386_v55 = vld [vmem:[%s23042_s17 + $0x18] sm:$0xff] }
 0x99e   : > { %16555 = vmatprep.subr.bf16.mxu1 %v16554_v36  ;;  %v9698_v53 = vld [vmem:[%s23044_s19 + $0x18] sm:$0xff]  ;;  %v16578_v12 = vpack.c.bf16 %v9386_v55, %v9385_v62  ;;  %v18019_v62 = vld [vmem:[%s18243_s0 + $0x90] sm:$0xff] }
 0x99f   : > { %v18012_v35 = vld [vmem:[%s18243_s0 + $0x58] sm:$0xff] }
 0x9a0   : > { %15352 = vmatmul.mubr.f32.gmra.mrb[18].mxu1 %v8701_v23  ;;  %v9387_v23 = vld [vmem:[%s23042_s17 + $0x20] sm:$0xff]  ;;  %v18020_v55 = vld [vmem:[%s18243_s0 + $0x98] sm:$0xff] }
 0x9a1   : > { %15354 = vmatprep.mubr.f32.mxu1 %v8670_v42  ;;  %16557 = vmatpush3.bf16.msra.mxu1 %v16554_v36  ;;  %v9696_v36 = vld [vmem:[%s23044_s19 + $0x8] sm:$0xff] }
 0x9a2   : > { %16559 = vmatprep.subr.bf16.mxu1 %v16558_v13  ;;  %v18002_v42 = vld [vmem:[%s18243_s0 + $0x8] sm:$0xff] }
 0x9a4   : > { %15355 = vmatmul.mubr.f32.gmra.mrb[20].mxu1 %v8703_v60  ;;  %v18003_v60 = vld [vmem:[%s18243_s0 + $0x10] sm:$0xff] }
 0x9a5   : > { %15357 = vmatprep.mubr.f32.mxu1 %v8672_v5  ;;  %16561 = vmatpush3.bf16.msra.mxu1 %v16558_v13  ;;  %v16610_v13 = vpack.c.bf16 %v9698_v53, %v9697_v19  ;;  %v9701_v5 = vld [vmem:[%s23044_s19 + $0x30] sm:$0xff]  ;;  %v18026_v53 = vld [vmem:[%s18243_s0 + $0xc8] sm:$0xff] }
 0x9a6   : > { %16563 = vmatprep.subr.bf16.mxu1 %v16562_v22  ;;  %v16618_v47 = vpack.c.bf16 %v9702_v4, %v9701_v5  ;;  %v18023_v19 = vld [vmem:[%s18243_s0 + $0xb0] sm:$0xff]  ;;  %v9358_v4 = vld [vmem:[%s21745_s29 + $0x38] sm:$0xff] }
 0x9a7   : > { %v9357_v5 = vld [vmem:[%s21745_s29 + $0x30] sm:$0xff] }
 0x9a8   : > { %15358 = vmatmul.mubr.f32.gmra.mrb[22].mxu1 %v8705_v2  ;;  %v18004_v2 = vld [vmem:[%s18243_s0 + $0x18] sm:$0xff] }
 0x9a9   : > { %15360 = vmatprep.mubr.f32.mxu1 %v8674_v48  ;;  %16565 = vmatpush3.bf16.msra.mxu1 %v16562_v22  ;;  %v16582_v22 = vpack.c.bf16 %v9388_v56, %v9387_v23  ;;  %v9392_v48 = vld [vmem:[%s23042_s17 + $0x48] sm:$0xff]  ;;  %v18028_v23 = vld [vmem:[%s18243_s0 + $0xd8] sm:$0xff] }
 0x9aa   : > { %16567 = vmatprep.subr.bf16.mxu1 %v16566_v49  ;;  %v16590_v57 = vpack.c.bf16 %v9392_v48, %v9391_v1  ;;  %v18030_v56 = vld [vmem:[%s18243_s0 + $0xe8] sm:$0xff]  ;;  %v9362_v1 = vld [vmem:[%s21745_s29 + $0x58] sm:$0xff] }
 0x9ab   : > { %v9364_v48 = vld [vmem:[%s21745_s29 + $0x68] sm:$0xff] }
 0x9ac   : > { %15361 = vmatmul.mubr.f32.gmra.mrb[24].mxu1 %v8707_v28  ;;  %v9704_v28 = vld [vmem:[%s23044_s19 + $0x48] sm:$0xff] }
 0x9ad   : > { %15363 = vmatprep.mubr.f32.mxu1 %v8676_v16  ;;  %16569 = vmatpush3.bf16.msra.mxu1 %v16566_v49  ;;  %v18005_v49 = vld [vmem:[%s18243_s0 + $0x20] sm:$0xff]  ;;  %v16622_v16 = vpack.c.bf16 %v9704_v28, %v9703_v59  ;;  %v9365_v59 = vld [vmem:[%s21745_s29 + $0x70] sm:$0xff]  ;;  %v9366_v28 = vld [vmem:[%s21745_s29 + $0x78] sm:$0xff] }
 0x9ae   : > { %16571 = vmatprep.subr.bf16.mxu1 %v16570_v43 }
 0x9b0   : > { %15364 = vmatmul.mubr.f32.gmra.mrb[26].mxu1 %v8709_v32  ;;  %v9705_v32 = vld [vmem:[%s23044_s19 + $0x50] sm:$0xff] }
 0x9b1   : > { %15366 = vmatprep.mubr.f32.mxu1 %v8678_v30  ;;  %16573 = vmatpush3.bf16.msra.mxu1 %v16570_v43  ;;  %v18006_v43 = vld [vmem:[%s18243_s0 + $0x28] sm:$0xff]  ;;  %v18009_v30 = vld [vmem:[%s18243_s0 + $0x40] sm:$0xff] }
 0x9b2   : > { %16575 = vmatprep.subr.bf16.mxu1 %v16574_v37 }
 0x9b4   : > { %15367 = vmatmul.mubr.f32.gmra.mrb[28].mxu1 %v8711_v14  ;;  %v16594_v14 = vpack.c.bf16 %v9394_v3, %v9393_v17  ;;  %v9370_v17 = vld [vmem:[%s21745_s29 + $0x98] sm:$0xff]  ;;  %v9372_v3 = vld [vmem:[%s21745_s29 + $0xa8] sm:$0xff] }
 0x9b5   : > { %15369 = vmatprep.mubr.f32.mxu1 %v8680_v21 }
 0x9b8   : > { %15370 = vmatmul.mubr.f32.gmra.mrb[30].mxu1 %v8713_v18  ;;  %v9396_v18 = vld [vmem:[%s23042_s17 + $0x68] sm:$0xff] }
 0x9b9   : > { %15372 = vmatprep.mubr.f32.mxu1 %v8682_v52  ;;  %v9708_v52 = vld [vmem:[%s23044_s19 + $0x68] sm:$0xff]  ;;  %v16598_v51 = vpack.c.bf16 %v9396_v18, %v9395_v31  ;;  %v9378_v31 = vld [vmem:[%s21745_s29 + $0xd8] sm:$0xff] }
 0x9ba   : > { %v9380_v18 = vld [vmem:[%s21745_s29 + $0xe8] sm:$0xff] }
 0x9bc   : > { %15373 = vmatmul.mubr.f32.gmra.mrb[32].mxu1 %v8715_v15  ;;  %v18011_v15 = vld [vmem:[%s18243_s0 + $0x50] sm:$0xff] }
 0x9bd   : > { %15375 = vmatprep.mubr.f32.mxu1 %v8684_v7  ;;  %v9397_v7 = vld [vmem:[%s23042_s17 + $0x70] sm:$0xff] }
 0x9c0   : > { %15376 = vmatmul.mubr.f32.gmra.mrb[34].mxu1 %v8717_v39  ;;  %v16630_v39 = vpack.c.bf16 %v9708_v52, %v9707_v6  ;;  %v9381_v6 = vld [vmem:[%s21745_s29 + $0xf0] sm:$0xff]  ;;  %v9382_v52 = vld [vmem:[%s21745_s29 + $0xf8] sm:$0xff] }
 0x9c1   : > { %15378 = vmatprep.mubr.f32.mxu1 %v8686_v61  ;;  %v9709_v61 = vld [vmem:[%s23044_s19 + $0x70] sm:$0xff] }
 0x9c4   : > { %15379 = vmatmul.mubr.f32.gmra.mrb[36].mxu1 %v8719_v29  ;;  %v9710_v29 = vld [vmem:[%s23044_s19 + $0x78] sm:$0xff] }
 0x9c5   : > { %15381 = vmatprep.mubr.f32.mxu1 %v8688_v26  ;;  %v18013_v26 = vld [vmem:[%s18243_s0 + $0x60] sm:$0xff]  ;;  %v16634_v63 = vpack.c.bf16 %v9710_v29, %v9709_v61 }
 0x9c8   : > { %15382 = vmatmul.mubr.f32.gmra.mrb[38].mxu1 %v8721_v33  ;;  %v16602_v33 = vpack.c.bf16 %v9398_v40, %v9397_v7  ;;  %v12454_v7 = vld [vmem:[%s23038_s13] ss:$0 sm:$0xff] }
 0x9c9   : > { %15384 = vmatprep.mubr.f32.mxu1 %v21406_v54  ;;  %v9695_v54 = vld [vmem:[%s23044_s19] sm:$0xff] }
 0x9ca   : > { %v16606_v27 = vpack.c.bf16 %v9696_v36, %v9695_v54  ;;  %v18021_v54 = vld [vmem:[%s18243_s0 + $0xa0] sm:$0xff]  ;;  %v18022_v36 = vld [vmem:[%s18243_s0 + $0xa8] sm:$0xff] }
 0x9cc   : > { %15385 = vmatmul.mubr.f32.gmra.mrb[40].mxu1 %v8723_v50  ;;  %16607 = vmatprep.subr.bf16.mxu0 %v16606_v27  ;;  %v18016_v50 = vld [vmem:[%s18243_s0 + $0x78] sm:$0xff] }
 0x9cd   : > { %15387 = vmatprep.mubr.f32.mxu1 %v8692_v44  ;;  %16609 = vmatpush3.bf16.msra.mxu0 %v16606_v27  ;;  %v18017_v44 = vld [vmem:[%s18243_s0 + $0x80] sm:$0xff] }
 0x9ce   : > { %16611 = vmatprep.subr.bf16.mxu0 %v16610_v13  ;;  %v18025_v27 = vld [vmem:[%s18243_s0 + $0xc0] sm:$0xff] }
 0x9d0   : > { %15388 = vmatmul.mubr.f32.gmra.mrb[42].mxu1 %v8725_v24  ;;  %v18018_v24 = vld [vmem:[%s18243_s0 + $0x88] sm:$0xff] }
 0x9d1   : > { %15422 = vmatprep.mubr.f32.mxu1 %v18001_v58  ;;  %16613 = vmatpush3.bf16.msra.mxu0 %v16610_v13  ;;  %v18024_v58 = vld [vmem:[%s18243_s0 + $0xb8] sm:$0xff]  ;;  %v18029_v13 = vld [vmem:[%s18243_s0 + $0xe0] sm:$0xff] }
 0x9d2   : > { %16615 = vmatprep.subr.bf16.mxu0 %v16614_v20 }
 0x9d4   : > { %15423 = vmatmul.mubr.f32.vlgmr.msra.gmra.mrb[12].mxu1 %v18002_v42  ;;  %v18032_v42 = vld [vmem:[%s18243_s0 + $0xf8] sm:$0xff] }
 0x9d5   : > { %16577 = vmatpush3.bf16.msra.mxu1 %v16574_v37  ;;  %15425 = vmatprep.mubr.f32.mxu1 %v18003_v60  ;;  %v9706_v37 = vld [vmem:[%s23044_s19 + $0x58] sm:$0xff]  ;;  %v9352_v60 = vld [vmem:[%s21745_s29 + $0x8] sm:$0xff] }
 0x9d6   : > { %16579 = vmatprep.subr.bf16.mxu1 %v16578_v12  ;;  %16617 = vmatpush3.bf16.msra.mxu0 %v16614_v20  ;;  %v16626_v21 = vpack.c.bf16 %v9706_v37, %v9705_v32  ;;  %v9355_v20 = vld [vmem:[%s21745_s29 + $0x20] sm:$0xff]  ;;  %v9373_v32 = vld [vmem:[%s21745_s29 + $0xb0] sm:$0xff]  ;;  %v9374_v37 = vld [vmem:[%s21745_s29 + $0xb8] sm:$0xff] }
 0x9d7   : > { %16619 = vmatprep.subr.bf16.mxu0 %v16618_v47 }
 0x9d8   : > { %15426 = vmatmul.mubr.f32.gmra.mrb[14].mxu1 %v18004_v2  ;;  %v9359_v2 = vld [vmem:[%s21745_s29 + $0x40] sm:$0xff] }
 0x9d9   : > { %15428 = vmatprep.mubr.f32.mxu1 %v18005_v49  ;;  %16581 = vmatpush3.bf16.msra.mxu1 %v16578_v12  ;;  %v18027_v12 = vld [vmem:[%s18243_s0 + $0xd0] sm:$0xff]  ;;  %v9360_v49 = vld [vmem:[%s21745_s29 + $0x48] sm:$0xff] }
 0x9da   : > { %16583 = vmatprep.subr.bf16.mxu1 %v16582_v22  ;;  %16621 = vmatpush3.bf16.msra.mxu0 %v16618_v47  ;;  %v9363_v47 = vld [vmem:[%s21745_s29 + $0x60] sm:$0xff] }
 0x9db   : > { %16623 = vmatprep.subr.bf16.mxu0 %v16622_v16 }
 0x9dc   : > { %15429 = vmatmul.mubr.f32.gmra.mrb[16].mxu1 %v18006_v43  ;;  %v9367_v43 = vld [vmem:[%s21745_s29 + $0x80] sm:$0xff] }
 0x9dd   : > { %15431 = vmatprep.mubr.f32.mxu1 %v18007_v38  ;;  %16585 = vmatpush3.bf16.msra.mxu1 %v16582_v22  ;;  %v9353_v22 = vld [vmem:[%s21745_s29 + $0x10] sm:$0xff]  ;;  %v9368_v38 = vld [vmem:[%s21745_s29 + $0x88] sm:$0xff] }
 0x9de   : > { %16587 = vmatprep.subr.bf16.mxu1 %v16586_v34  ;;  %16625 = vmatpush3.bf16.msra.mxu0 %v16622_v16  ;;  %v9371_v16 = vld [vmem:[%s21745_s29 + $0xa0] sm:$0xff] }
 0x9df   : > { %16627 = vmatprep.subr.bf16.mxu0 %v16626_v21 }
 0x9e0   : > { %15432 = vmatmul.mubr.f32.gmra.mrb[18].mxu1 %v18008_v0  ;;  %v9375_v0 = vld [vmem:[%s21745_s29 + $0xc0] sm:$0xff] }
 0x9e1   : > { %15434 = vmatprep.mubr.f32.mxu1 %v18009_v30  ;;  %16589 = vmatpush3.bf16.msra.mxu1 %v16586_v34  ;;  %v9361_v34 = vld [vmem:[%s21745_s29 + $0x50] sm:$0xff]  ;;  %v9376_v30 = vld [vmem:[%s21745_s29 + $0xc8] sm:$0xff] }
 0x9e2   : > { %16591 = vmatprep.subr.bf16.mxu1 %v16590_v57  ;;  %16629 = vmatpush3.bf16.msra.mxu0 %v16626_v21  ;;  %v9379_v21 = vld [vmem:[%s21745_s29 + $0xe0] sm:$0xff] }
 0x9e3   : > { %16631 = vmatprep.subr.bf16.mxu0 %v16630_v39 }
 0x9e4   : > { %15435 = vmatmul.mubr.f32.gmra.mrb[20].mxu1 %v18010_v46  ;;  %v9943_v46 = vld [vmem:[%s23046_s21] sm:$0xff] }
 0x9e5   : > { %15437 = vmatprep.mubr.f32.mxu1 %v18011_v15  ;;  %16593 = vmatpush3.bf16.msra.mxu1 %v16590_v57  ;;  %v9369_v57 = vld [vmem:[%s21745_s29 + $0x90] sm:$0xff]  ;;  %v9944_v15 = vld [vmem:[%s23046_s21 + $0x8] sm:$0xff] }
 0x9e6   : > { %16595 = vmatprep.subr.bf16.mxu1 %v16594_v14  ;;  %16633 = vmatpush3.bf16.msra.mxu0 %v16630_v39  ;;  %v12455_v39 = vld [vmem:[%s23040_s15] ss:$0 sm:$0xff] }
 0x9e7   : > { %16635 = vmatprep.subr.bf16.mxu0 %v16634_v63  ;;  %v21794_v40 = vadd.f32 %v12455_v39, %v12454_v7  ;;  %v9958_v7 = vld [vmem:[%s23046_s21 + $0x78] sm:$0xff] }
 0x9e8   : > { %15438 = vmatmul.mubr.f32.gmra.mrb[22].mxu1 %v18012_v35  ;;  %v21800_v35 = vld [vmem:[%s23043_s18] ss:$0 sm:$0xff] }
 0x9e9   : > { %15440 = vmatprep.mubr.f32.mxu1 %v18013_v26  ;;  %16597 = vmatpush3.bf16.msra.mxu1 %v16594_v14  ;;  %v9377_v14 = vld [vmem:[%s21745_s29 + $0xd0] sm:$0xff] }
 0x9ea   : > { %16599 = vmatprep.subr.bf16.mxu1 %v16598_v51  ;;  %16637 = vmatpush3.bf16.msra.mxu0 %v16634_v63  ;;  %v9945_v63 = vld [vmem:[%s23046_s21 + $0x10] sm:$0xff] }
 0x9ec   : > { %15441 = vmatmul.mubr.f32.gmra.mrb[24].mxu1 %v18014_v41  ;;  %v9946_v41 = vld [vmem:[%s23046_s21 + $0x18] sm:$0xff] }
 0x9ed   : > { %15443 = vmatprep.mubr.f32.mxu1 %v18015_v8  ;;  %16601 = vmatpush3.bf16.msra.mxu1 %v16598_v51  ;;  %v16638_v51 = vpack.c.bf16 %v9944_v15, %v9943_v46 }
 0x9ee   : > { %16603 = vmatprep.subr.bf16.mxu1 %v16602_v33 }
 0x9ef   : > { %16639 = vmatprep.subr.bf16.mxu0 %v16638_v51 }
 0x9f0   : > { %15444 = vmatmul.mubr.f32.gmra.mrb[26].mxu1 %v18016_v50 }
 0x9f1   : > { %15446 = vmatprep.mubr.f32.mxu1 %v18017_v44  ;;  %16605 = vmatpush3.bf16.msra.mxu1 %v16602_v33 }
 0x9f2   : > { %16734 = vmatprep.subr.bf16.mxu1 %v23491_v11 }
 0x9f4   : > { %15447 = vmatmul.mubr.f32.gmra.mrb[28].mxu1 %v18018_v24 }
 0x9f5   : > { %15449 = vmatprep.mubr.f32.mxu1 %v18019_v62 }
 0x9f8   : > { %15450 = vmatmul.mubr.f32.gmra.mrb[30].mxu1 %v18020_v55  ;;  %v16642_v55 = vpack.c.bf16 %v9946_v41, %v9945_v63 }
 0x9f9   : > { %15452 = vmatprep.mubr.f32.mxu1 %v18021_v54 }
 0x9fc   : > { %15453 = vmatmul.mubr.f32.gmra.mrb[32].mxu1 %v18022_v36  ;;  %v9947_v36 = vld [vmem:[%s23046_s21 + $0x20] sm:$0xff] }
 0x9fd   : > { %15455 = vmatprep.mubr.f32.mxu1 %v18023_v19  ;;  %v9948_v19 = vld [vmem:[%s23046_s21 + $0x28] sm:$0xff] }
 0xa00   : > { %15456 = vmatmul.mubr.f32.gmra.mrb[34].mxu1 %v18024_v58 }
 0xa01   : > { %15458 = vmatprep.mubr.f32.mxu1 %v18025_v27 }
 0xa04   : > { %15459 = vmatmul.mubr.f32.gmra.mrb[36].mxu1 %v18026_v53 }
 0xa05   : > { %15461 = vmatprep.mubr.f32.mxu1 %v18027_v12 }
 0xa08   : > { %15462 = vmatmul.mubr.f32.gmra.mrb[38].mxu1 %v18028_v23 }
 0xa09   : > { %15464 = vmatprep.mubr.f32.mxu1 %v18029_v13  ;;  %v16646_v13 = vpack.c.bf16 %v9948_v19, %v9947_v36 }
 0xa0c   : > { %15465 = vmatmul.mubr.f32.gmra.mrb[40].mxu1 %v18030_v56 }
 0xa0d   : > { %15467 = vmatprep.mubr.f32.mxu1 %v18031_v25  ;;  %v9949_v25 = vld [vmem:[%s23046_s21 + $0x30] sm:$0xff] }
 0xa10   : > { %15468 = vmatmul.mubr.f32.gmra.mrb[42].mxu1 %v18032_v42 }
 0xa11   : > { %15502 = vmatprep.mubr.f32.mxu1 %v9351_v45  ;;  %v9950_v45 = vld [vmem:[%s23046_s21 + $0x38] sm:$0xff] }
 0xa14   : > { %15503 = vmatmul.mubr.f32.vlgmr.msra.gmra.mrb[12].mxu1 %v9352_v60 }
 0xa15   : > { %15505 = vmatprep.mubr.f32.mxu1 %v9353_v22 }
 0xa18   : > { %15506 = vmatmul.mubr.f32.gmra.mrb[14].mxu1 %v9354_v9 }
 0xa19   : > { %15508 = vmatprep.mubr.f32.mxu1 %v9355_v20 }
 0xa1c   : > { %15509 = vmatmul.mubr.f32.gmra.mrb[16].mxu1 %v9356_v10  ;;  %v16650_v10 = vpack.c.bf16 %v9950_v45, %v9949_v25 }
 0xa1d   : > { %15511 = vmatprep.mubr.f32.mxu1 %v9357_v5 }
 0xa20   : > { %15512 = vmatmul.mubr.f32.gmra.mrb[18].mxu1 %v9358_v4  ;;  %v9951_v4 = vld [vmem:[%s23046_s21 + $0x40] sm:$0xff] }
 0xa21   : > { %15514 = vmatprep.mubr.f32.mxu1 %v9359_v2  ;;  %v9952_v2 = vld [vmem:[%s23046_s21 + $0x48] sm:$0xff] }
 0xa24   : > { %15515 = vmatmul.mubr.f32.gmra.mrb[20].mxu1 %v9360_v49 }
 0xa25   : > { %15517 = vmatprep.mubr.f32.mxu1 %v9361_v34 }
 0xa28   : > { %15518 = vmatmul.mubr.f32.gmra.mrb[22].mxu1 %v9362_v1 }
 0xa29   : > { %15520 = vmatprep.mubr.f32.mxu1 %v9363_v47 }
 0xa2c   : > { %15521 = vmatmul.mubr.f32.gmra.mrb[24].mxu1 %v9364_v48 }
 0xa2d   : > { %15523 = vmatprep.mubr.f32.mxu1 %v9365_v59  ;;  %v16654_v59 = vpack.c.bf16 %v9952_v2, %v9951_v4 }
 0xa30   : > { %15524 = vmatmul.mubr.f32.gmra.mrb[26].mxu1 %v9366_v28 }
 0xa31   : > { %15526 = vmatprep.mubr.f32.mxu1 %v9367_v43  ;;  %v9953_v43 = vld [vmem:[%s23046_s21 + $0x50] sm:$0xff] }
 0xa34   : > { %15527 = vmatmul.mubr.f32.gmra.mrb[28].mxu1 %v9368_v38  ;;  %v9954_v38 = vld [vmem:[%s23046_s21 + $0x58] sm:$0xff] }
 0xa35   : > { %15529 = vmatprep.mubr.f32.mxu1 %v9369_v57 }
 0xa38   : > { %15530 = vmatmul.mubr.f32.gmra.mrb[30].mxu1 %v9370_v17 }
 0xa39   : > { %15532 = vmatprep.mubr.f32.mxu1 %v9371_v16 }
 0xa3c   : > { %15533 = vmatmul.mubr.f32.gmra.mrb[32].mxu1 %v9372_v3 }
 0xa3d   : > { %15535 = vmatprep.mubr.f32.mxu1 %v9373_v32 }
 0xa40   : > { %15536 = vmatmul.mubr.f32.gmra.mrb[34].mxu1 %v9374_v37  ;;  %v16658_v37 = vpack.c.bf16 %v9954_v38, %v9953_v43 }
 0xa41   : > { %15538 = vmatprep.mubr.f32.mxu1 %v9375_v0 }
 0xa44   : > { %15539 = vmatmul.mubr.f32.gmra.mrb[36].mxu1 %v9376_v30  ;;  %v9955_v30 = vld [vmem:[%s23046_s21 + $0x60] sm:$0xff] }
 0xa45   : > { %15541 = vmatprep.mubr.f32.mxu1 %v9377_v14  ;;  %v9956_v14 = vld [vmem:[%s23046_s21 + $0x68] sm:$0xff] }
 0xa46   : > { %v16662_v46 = vpack.c.bf16 %v9956_v14, %v9955_v30 }
 0xa48   : > { %15542 = vmatmul.mubr.f32.gmra.mrb[38].mxu1 %v9378_v31 }
 0xa49   : > { %15544 = vmatprep.mubr.f32.mxu1 %v9379_v21 }
 0xa4c   : > { %15545 = vmatmul.mubr.f32.gmra.mrb[40].mxu1 %v9380_v18 }
 0xa4d   : > { %15547 = vmatprep.mubr.f32.mxu1 %v9381_v6 }
 0xa50   : > { %15548 = vmatmul.mubr.f32.gmra.mrb[42].mxu1 %v9382_v52 }
 0xae7   : > { %v15504_v61 = vpop.f32.mrb[12].mxu1 }
 0xae8   : > { %v16831_v29 = vadd.f32 %v21794_v40, %v15504_v61  ;;  %v9465_v26 = vpop.f32.mrb[13].mxu1 }
 0xae9   : > { %v16833_v33 = vadd.f32 %v21794_v40, %v9465_v26 }
 0xaea   : > { %v21813_v44 = vadd.f32 %v16831_v29, %v21800_v35 }
 0xaeb   : > { %v21810_v8 = vadd.f32 %v16833_v33, %v21800_v35  ;;  %v15507_v50 = vpop.f32.mrb[14].mxu1 }
 0xaec   : > { %23493 = vst [vmem:[#allocation29_spill] sm:$0xff] %v21813_v44  ;;  %v16835_v24 = vadd.f32 %v21794_v40, %v15507_v50  ;;  %v9475_v62 = vpop.f32.mrb[15].mxu1  ;;  %v10223_v50 = vld [vmem:[%s23048_s23] sm:$0xff] }
 0xaed   : > { %23492 = vst [vmem:[#allocation25_spill] sm:$0xff] %v21810_v8  ;;  %v16837_v54 = vadd.f32 %v21794_v40, %v9475_v62  ;;  %15582 = vmatprep.mubr.f32.mxu0 %v21810_v8 }
 0xaee   : > { %15583 = vmatmul.mubr.f32.vlgmr.msra.gmra.mrb[36].mxu0 %v21813_v44  ;;  %v21829_v53 = vadd.f32 %v16835_v24, %v21800_v35  ;;  %v10224_v24 = vld [vmem:[%s23048_s23 + $0x8] sm:$0xff] }
 0xaef   : > { %v21826_v58 = vadd.f32 %v16837_v54, %v21800_v35  ;;  %v15510_v27 = vpop.f32.mrb[16].mxu1  ;;  %16641 = vmatpush3.bf16.msra.mxu0 %v16638_v51  ;;  %v9957_v51 = vld [vmem:[%s23046_s21 + $0x70] sm:$0xff] }
 0xaf0   : > { %23495 = vst [vmem:[#allocation8_spill] sm:$0xff] %v21829_v53  ;;  %v16839_v12 = vadd.f32 %v21794_v40, %v15510_v27  ;;  %v9485_v23 = vpop.f32.mrb[17].mxu1  ;;  %16643 = vmatprep.subr.bf16.mxu0 %v16642_v55  ;;  %v16666_v63 = vpack.c.bf16 %v9958_v7, %v9957_v51  ;;  %v21928_v27 = vpack.c.bf16 %v10224_v24, %v10223_v50 }
 0xaf1   : > { %23494 = vst [vmem:[#allocation28_spill] sm:$0xff] %v21826_v58  ;;  %v16841_v56 = vadd.f32 %v21794_v40, %v9485_v23  ;;  %15585 = vmatprep.mubr.f32.mxu0 %v21826_v58 }
 0xaf2   : > { %15586 = vmatmul.mubr.f32.gmra.mrb[38].mxu0 %v21829_v53  ;;  %v21845_v22 = vadd.f32 %v16839_v12, %v21800_v35 }
 0xaf3   : > { %v21842_v42 = vadd.f32 %v16841_v56, %v21800_v35  ;;  %v15513_v60 = vpop.f32.mrb[18].mxu1  ;;  %16645 = vmatpush3.bf16.msra.mxu0 %v16642_v55 }
 0xaf4   : > { %23497 = vst [vmem:[#allocation9_spill] sm:$0xff] %v21845_v22  ;;  %v16843_v9 = vadd.f32 %v21794_v40, %v15513_v60  ;;  %v9495_v20 = vpop.f32.mrb[19].mxu1  ;;  %16647 = vmatprep.subr.bf16.mxu0 %v16646_v13 }
 0xaf5   : > { %23496 = vst [vmem:[#allocation26_spill] sm:$0xff] %v21842_v42  ;;  %v16845_v5 = vadd.f32 %v21794_v40, %v9495_v20  ;;  %15588 = vmatprep.mubr.f32.mxu0 %v21842_v42 }
 0xaf6   : > { %15589 = vmatmul.mubr.f32.gmra.mrb[40].mxu0 %v21845_v22  ;;  %v21861_v1 = vadd.f32 %v16843_v9, %v21800_v35 }
 0xaf7   : > { %v21858_v49 = vadd.f32 %v16845_v5, %v21800_v35  ;;  %v15516_v34 = vpop.f32.mrb[20].mxu1  ;;  %16649 = vmatpush3.bf16.msra.mxu0 %v16646_v13 }
 0xaf8   : > { %23499 = vst [vmem:[#allocation11_spill] sm:$0xff] %v21861_v1  ;;  %v16847_v47 = vadd.f32 %v21794_v40, %v15516_v34  ;;  %v9505_v48 = vpop.f32.mrb[21].mxu1  ;;  %16651 = vmatprep.subr.bf16.mxu0 %v16650_v10 }
 0xaf9   : > { %23498 = vst [vmem:[#allocation10_spill] sm:$0xff] %v21858_v49  ;;  %v16849_v28 = vadd.f32 %v21794_v40, %v9505_v48  ;;  %15591 = vmatprep.mubr.f32.mxu0 %v21858_v49 }
 0xafa   : > { %15592 = vmatmul.mubr.f32.gmra.mrb[42].mxu0 %v21861_v1  ;;  %v21877_v16 = vadd.f32 %v16847_v47, %v21800_v35 }
 0xafb   : > { %v21874_v57 = vadd.f32 %v16849_v28, %v21800_v35  ;;  %v15519_v17 = vpop.f32.mrb[22].mxu1  ;;  %16653 = vmatpush3.bf16.msra.mxu0 %v16650_v10 }
 0xafc   : > { %23501 = vst [vmem:[#allocation13_spill] sm:$0xff] %v21877_v16  ;;  %v16851_v3 = vadd.f32 %v21794_v40, %v15519_v17  ;;  %v9515_v32 = vpop.f32.mrb[23].mxu1  ;;  %16655 = vmatprep.subr.bf16.mxu0 %v16654_v59 }
 0xafd   : > { %23500 = vst [vmem:[#allocation12_spill] sm:$0xff] %v21874_v57  ;;  %v16853_v0 = vadd.f32 %v21794_v40, %v9515_v32  ;;  %15594 = vmatprep.mubr.f32.mxu0 %v21874_v57 }
 0xafe   : > { %15595 = vmatmul.mubr.f32.gmra.mrb[44].mxu0 %v21877_v16  ;;  %v21893_v18 = vadd.f32 %v16851_v3, %v21800_v35 }
 0xaff   : > { %v21890_v31 = vadd.f32 %v16853_v0, %v21800_v35  ;;  %v15522_v21 = vpop.f32.mrb[24].mxu1  ;;  %16657 = vmatpush3.bf16.msra.mxu0 %v16654_v59 }
 0xb00   : > { %23503 = vst [vmem:[#allocation15_spill] sm:$0xff] %v21893_v18  ;;  %v16855_v6 = vadd.f32 %v21794_v40, %v15522_v21  ;;  %v9525_v52 = vpop.f32.mrb[25].mxu1  ;;  %16659 = vmatprep.subr.bf16.mxu0 %v16658_v37 }
 0xb01   : > { %23502 = vst [vmem:[#allocation14_spill] sm:$0xff] %v21890_v31  ;;  %v16857_v15 = vadd.f32 %v21794_v40, %v9525_v52  ;;  %15597 = vmatprep.mubr.f32.mxu0 %v21890_v31 }
 0xb02   : > { %15598 = vmatmul.mubr.f32.gmra.mrb[46].mxu0 %v21893_v18  ;;  %v21909_v29 = vadd.f32 %v16855_v6, %v21800_v35 }
 0xb03   : > { %v21906_v39 = vadd.f32 %v16857_v15, %v21800_v35  ;;  %v15525_v61 = vpop.f32.mrb[26].mxu1  ;;  %16661 = vmatpush3.bf16.msra.mxu0 %v16658_v37 }
 0xb04   : > { %23505 = vst [vmem:[#allocation17_spill] sm:$0xff] %v21909_v29  ;;  %v16859_v26 = vadd.f32 %v21794_v40, %v15525_v61  ;;  %v9535_v33 = vpop.f32.mrb[27].mxu1  ;;  %16663 = vmatprep.subr.bf16.mxu0 %v16662_v46 }
 0xb05   : > { %23504 = vst [vmem:[#allocation16_spill] sm:$0xff] %v21906_v39  ;;  %v16861_v41 = vadd.f32 %v21794_v40, %v9535_v33  ;;  %15600 = vmatprep.mubr.f32.mxu0 %v21906_v39 }
 0xb06   : > { %15601 = vmatmul.mubr.f32.gmra.mrb[48].mxu0 %v21909_v29  ;;  %v21925_v54 = vadd.f32 %v16859_v26, %v21800_v35 }
 0xb07   : > { %v21922_v62 = vadd.f32 %v16861_v41, %v21800_v35  ;;  %v15528_v55 = vpop.f32.mrb[28].mxu1  ;;  %16665 = vmatpush3.bf16.msra.mxu0 %v16662_v46 }
 0xb08   : > { %23507 = vst [vmem:[#allocation19_spill] sm:$0xff] %v21925_v54  ;;  %v16863_v36 = vadd.f32 %v21794_v40, %v15528_v55  ;;  %v9545_v19 = vpop.f32.mrb[29].mxu1  ;;  %16667 = vmatprep.subr.bf16.mxu0 %v16666_v63 }
 0xb09   : > { %23506 = vst [vmem:[#allocation18_spill] sm:$0xff] %v21922_v62  ;;  %v16865_v12 = vadd.f32 %v21794_v40, %v9545_v19  ;;  %15603 = vmatprep.mubr.f32.mxu0 %v21922_v62 }
 0xb0a   : > { %15604 = vmatmul.mubr.f32.gmra.mrb[50].mxu0 %v21925_v54  ;;  %v21937_v56 = vadd.f32 %v16863_v36, %v21800_v35 }
 0xb0b   : > { %v21934_v23 = vadd.f32 %v16865_v12, %v21800_v35  ;;  %v15531_v13 = vpop.f32.mrb[30].mxu1  ;;  %16669 = vmatpush3.bf16.msra.mxu0 %v16666_v63 }
 0xb0c   : > { %23509 = vst [vmem:[#allocation21_spill] sm:$0xff] %v21937_v56  ;;  %v16867_v25 = vadd.f32 %v21794_v40, %v15531_v13  ;;  %v9555_v45 = vpop.f32.mrb[31].mxu1  ;;  %16671 = vmatprep.subr.bf16.mxu0 %v21928_v27  ;;  %v10225_v13 = vld [vmem:[%s23048_s23 + $0x10] sm:$0xff] }
 0xb0d   : > { %23508 = vst [vmem:[#allocation20_spill] sm:$0xff] %v21934_v23  ;;  %v16869_v60 = vadd.f32 %v21794_v40, %v9555_v45  ;;  %15606 = vmatprep.mubr.f32.mxu0 %v21934_v23  ;;  %v10228_v45 = vld [vmem:[%s23048_s23 + $0x28] sm:$0xff] }
 0xb0e   : > { %15607 = vmatmul.mubr.f32.gmra.mrb[52].mxu0 %v21937_v56  ;;  %v21948_v10 = vadd.f32 %v16867_v25, %v21800_v35 }
 0xb0f   : > { %v21945_v9 = vadd.f32 %v16869_v60, %v21800_v35  ;;  %v15534_v20 = vpop.f32.mrb[32].mxu1 }
 0xb10   : > { %23511 = vst [vmem:[#allocation32_spill] sm:$0xff] %v21948_v10  ;;  %v16871_v5 = vadd.f32 %v21794_v40, %v15534_v20  ;;  %v9565_v4 = vpop.f32.mrb[33].mxu1  ;;  %v10229_v20 = vld [vmem:[%s23048_s23 + $0x30] sm:$0xff] }
 0xb11   : > { %23510 = vst [vmem:[#allocation22_spill] sm:$0xff] %v21945_v9  ;;  %v16873_v2 = vadd.f32 %v21794_v40, %v9565_v4  ;;  %15609 = vmatprep.mubr.f32.mxu0 %v21945_v9 }
 0xb12   : > { %15610 = vmatmul.mubr.f32.gmra.mrb[54].mxu0 %v21948_v10  ;;  %v21958_v48 = vadd.f32 %v16871_v5, %v21800_v35  ;;  %v10230_v5 = vld [vmem:[%s23048_s23 + $0x38] sm:$0xff] }
 0xb13   : > { %v21955_v34 = vadd.f32 %v16873_v2, %v21800_v35  ;;  %v15537_v47 = vpop.f32.mrb[34].mxu1  ;;  %v16682_v4 = vpack.c.bf16 %v10230_v5, %v10229_v20  ;;  %v10232_v2 = vld [vmem:[%s23048_s23 + $0x48] sm:$0xff] }
 0xb14   : > { %23513 = vst [vmem:[#allocation31_spill] sm:$0xff] %v21958_v48  ;;  %v16875_v59 = vadd.f32 %v21794_v40, %v15537_v47  ;;  %v9575_v28 = vpop.f32.mrb[35].mxu1 }
 0xb15   : > { %23512 = vst [vmem:[#allocation35_spill] sm:$0xff] %v21955_v34  ;;  %v16877_v43 = vadd.f32 %v21794_v40, %v9575_v28  ;;  %15612 = vmatprep.mubr.f32.mxu0 %v21955_v34  ;;  %v10234_v28 = vld [vmem:[%s23048_s23 + $0x58] sm:$0xff] }
 0xb16   : > { %15613 = vmatmul.mubr.f32.gmra.mrb[56].mxu0 %v21958_v48  ;;  %v21968_v3 = vadd.f32 %v16875_v59, %v21800_v35  ;;  %v10233_v59 = vld [vmem:[%s23048_s23 + $0x50] sm:$0xff] }
 0xb17   : > { %v21965_v38 = vadd.f32 %v16877_v43, %v21800_v35  ;;  %v15540_v17 = vpop.f32.mrb[36].mxu1  ;;  %v16690_v43 = vpack.c.bf16 %v10234_v28, %v10233_v59 }
 0xb18   : > { %23515 = vst [vmem:[#allocation34_spill] sm:$0xff] %v21968_v3  ;;  %v16879_v32 = vadd.f32 %v21794_v40, %v15540_v17  ;;  %v9585_v37 = vpop.f32.mrb[37].mxu1  ;;  %v10235_v17 = vld [vmem:[%s23048_s23 + $0x60] sm:$0xff] }
 0xb19   : > { %23514 = vst [vmem:[#allocation38_spill] sm:$0xff] %v21965_v38  ;;  %v16881_v0 = vadd.f32 %v21794_v40, %v9585_v37  ;;  %15615 = vmatprep.mubr.f32.mxu0 %v21965_v38 }
 0xb1a   : > { %15616 = vmatmul.mubr.f32.gmra.mrb[58].mxu0 %v21968_v3  ;;  %v21978_v21 = vadd.f32 %v16879_v32, %v21800_v35  ;;  %v10236_v32 = vld [vmem:[%s23048_s23 + $0x68] sm:$0xff] }
 0xb1b   : > { %v21975_v30 = vadd.f32 %v16881_v0, %v21800_v35  ;;  %v15543_v14 = vpop.f32.mrb[38].mxu1  ;;  %v16694_v37 = vpack.c.bf16 %v10236_v32, %v10235_v17  ;;  %v10237_v0 = vld [vmem:[%s23048_s23 + $0x70] sm:$0xff] }
 0xb1c   : > { %23517 = vst [vmem:[#allocation37_spill] sm:$0xff] %v21978_v21  ;;  %v16883_v6 = vadd.f32 %v21794_v40, %v15543_v14  ;;  %v9595_v52 = vpop.f32.mrb[39].mxu1  ;;  %v10238_v14 = vld [vmem:[%s23048_s23 + $0x78] sm:$0xff] }
 0xb1d   : > { %23516 = vst [vmem:[#allocation41_spill] sm:$0xff] %v21975_v30  ;;  %v16885_v46 = vadd.f32 %v21794_v40, %v9595_v52  ;;  %15618 = vmatprep.mubr.f32.mxu0 %v21975_v30  ;;  %v22122_v52 = vld [vmem:[%s23045_s20] ss:$0 sm:$0xff] }
 0xb1e   : > { %15619 = vmatmul.mubr.f32.gmra.mrb[60].mxu0 %v21978_v21  ;;  %v21988_v7 = vadd.f32 %v16883_v6, %v21800_v35  ;;  %v16698_v6 = vpack.c.bf16 %v10238_v14, %v10237_v0 }
 0xb1f   : > { %v21985_v15 = vadd.f32 %v16885_v46, %v21800_v35  ;;  %v15546_v51 = vpop.f32.mrb[40].mxu1 }
 0xb20   : > { %23519 = vst [vmem:[#allocation44_spill] sm:$0xff] %v21988_v7  ;;  %v16887_v61 = vadd.f32 %v21794_v40, %v15546_v51  ;;  %v9605_v26 = vpop.f32.mrb[41].mxu1 }
 0xb21   : > { %23518 = vst [vmem:[#allocation33_spill] sm:$0xff] %v21985_v15  ;;  %v16889_v33 = vadd.f32 %v21794_v40, %v9605_v26  ;;  %15621 = vmatprep.mubr.f32.mxu0 %v21985_v15 }
 0xb22   : > { %15622 = vmatmul.mubr.f32.gmra.mrb[62].mxu0 %v21988_v7  ;;  %v21998_v50 = vadd.f32 %v16887_v61, %v21800_v35 }
 0xb23   : > { %v21995_v63 = vadd.f32 %v16889_v33, %v21800_v35  ;;  %v15549_v41 = vpop.f32.mrb[42].mxu1 }
 0xb24   : > { %23521 = vst [vmem:[#allocation47_spill] sm:$0xff] %v21998_v50  ;;  %v16891_v24 = vadd.f32 %v21794_v40, %v15549_v41  ;;  %v9615_v55 = vpop.f32.mrb[43].mxu1 }
 0xb25   : > { %23520 = vst [vmem:[#allocation40_spill] sm:$0xff] %v21995_v63  ;;  %v16893_v36 = vadd.f32 %v21794_v40, %v9615_v55  ;;  %15624 = vmatprep.mubr.f32.mxu0 %v21995_v63  ;;  %v10226_v40 = vld [vmem:[%s23048_s23 + $0x18] sm:$0xff] }
 0xb26   : > { %15625 = vmatmul.mubr.f32.gmra.mrb[64].mxu0 %v21998_v50  ;;  %v22008_v12 = vadd.f32 %v16891_v24, %v21800_v35  ;;  %v16674_v25 = vpack.c.bf16 %v10226_v40, %v10225_v13 }
 0xb27   : > { %v22005_v19 = vadd.f32 %v16893_v36, %v21800_v35  ;;  %v10227_v35 = vld [vmem:[%s23048_s23 + $0x20] sm:$0xff] }
 0xb28   : > { %23523 = vst [vmem:[#allocation46_spill] sm:$0xff] %v22008_v12  ;;  %v16678_v60 = vpack.c.bf16 %v10228_v45, %v10227_v35 }
 0xb29   : > { %23522 = vst [vmem:[#allocation50_spill] sm:$0xff] %v22005_v19  ;;  %15627 = vmatprep.mubr.f32.mxu0 %v22005_v19 }
 0xb2a   : > { %15628 = vmatmul.mubr.f32.gmra.mrb[66].mxu0 %v22008_v12 }
 0xb2b   : > { %15662 = vmatprep.mubr.f32.mxu0 %v21810_v8 }
 0xb2e   : > { %15663 = vmatmul.mubr.f32.vlgmr.msra.gmra.mrb[68].mxu0 %v21813_v44 }
 0xb2f   : > { %15665 = vmatprep.mubr.f32.mxu0 %v21826_v58  ;;  %16673 = vmatpush3.bf16.msra.mxu0 %v21928_v27  ;;  %v10231_v27 = vld [vmem:[%s23048_s23 + $0x40] sm:$0xff] }
 0xb30   : > { %16675 = vmatprep.subr.bf16.mxu0 %v16674_v25  ;;  %v16686_v47 = vpack.c.bf16 %v10232_v2, %v10231_v27 }
 0xb32   : > { %15666 = vmatmul.mubr.f32.gmra.mrb[70].mxu0 %v21829_v53 }
 0xb33   : > { %15668 = vmatprep.mubr.f32.mxu0 %v21842_v42  ;;  %16677 = vmatpush3.bf16.msra.mxu0 %v16674_v25 }
 0xb34   : > { %16679 = vmatprep.subr.bf16.mxu0 %v16678_v60 }
 0xb36   : > { %15669 = vmatmul.mubr.f32.gmra.mrb[72].mxu0 %v21845_v22 }
 0xb37   : > { %15671 = vmatprep.mubr.f32.mxu0 %v21858_v49  ;;  %16681 = vmatpush3.bf16.msra.mxu0 %v16678_v60 }
 0xb38   : > { %16683 = vmatprep.subr.bf16.mxu0 %v16682_v4 }
 0xb3a   : > { %15672 = vmatmul.mubr.f32.gmra.mrb[74].mxu0 %v21861_v1 }
 0xb3b   : > { %15674 = vmatprep.mubr.f32.mxu0 %v21874_v57  ;;  %16685 = vmatpush3.bf16.msra.mxu0 %v16682_v4 }
 0xb3c   : > { %16687 = vmatprep.subr.bf16.mxu0 %v16686_v47 }
 0xb3e   : > { %15675 = vmatmul.mubr.f32.gmra.mrb[76].mxu0 %v21877_v16 }
 0xb3f   : > { %15677 = vmatprep.mubr.f32.mxu0 %v21890_v31  ;;  %16689 = vmatpush3.bf16.msra.mxu0 %v16686_v47 }
 0xb40   : > { %16691 = vmatprep.subr.bf16.mxu0 %v16690_v43 }
 0xb42   : > { %15678 = vmatmul.mubr.f32.gmra.mrb[78].mxu0 %v21893_v18 }
 0xb43   : > { %15680 = vmatprep.mubr.f32.mxu0 %v21906_v39  ;;  %16693 = vmatpush3.bf16.msra.mxu0 %v16690_v43 }
 0xb44   : > { %16695 = vmatprep.subr.bf16.mxu0 %v16694_v37 }
 0xb46   : > { %15681 = vmatmul.mubr.f32.gmra.mrb[80].mxu0 %v21909_v29 }
 0xb47   : > { %15683 = vmatprep.mubr.f32.mxu0 %v21922_v62  ;;  %16697 = vmatpush3.bf16.msra.mxu0 %v16694_v37 }
 0xb48   : > { %16699 = vmatprep.subr.bf16.mxu0 %v16698_v6 }
 0xb4a   : > { %15684 = vmatmul.mubr.f32.gmra.mrb[82].mxu0 %v21925_v54 }
 0xb4b   : > { %15686 = vmatprep.mubr.f32.mxu0 %v21934_v23  ;;  %16701 = vmatpush3.bf16.msra.mxu0 %v16698_v6 }
 0xb4e   : > { %15687 = vmatmul.mubr.f32.gmra.mrb[84].mxu0 %v21937_v56 }
 0xb4f   : > { %15689 = vmatprep.mubr.f32.mxu0 %v21945_v9 }
 0xb52   : > { %15690 = vmatmul.mubr.f32.gmra.mrb[86].mxu0 %v21948_v10 }
 0xb53   : > { %15692 = vmatprep.mubr.f32.mxu0 %v21955_v34 }
 0xb56   : > { %15693 = vmatmul.mubr.f32.gmra.mrb[88].mxu0 %v21958_v48 }
 0xb57   : > { %15695 = vmatprep.mubr.f32.mxu0 %v21965_v38 }
 0xb5a   : > { %15696 = vmatmul.mubr.f32.gmra.mrb[90].mxu0 %v21968_v3 }
 0xb5b   : > { %15698 = vmatprep.mubr.f32.mxu0 %v21975_v30 }
 0xb5e   : > { %15699 = vmatmul.mubr.f32.gmra.mrb[92].mxu0 %v21978_v21 }
 0xb5f   : > { %15701 = vmatprep.mubr.f32.mxu0 %v21985_v15 }
 0xb62   : > { %15702 = vmatmul.mubr.f32.gmra.mrb[94].mxu0 %v21988_v7 }
 0xb63   : > { %15704 = vmatprep.mubr.f32.mxu0 %v21995_v63 }
 0xb66   : > { %15705 = vmatmul.mubr.f32.gmra.mrb[96].mxu0 %v21998_v50 }
 0xb67   : > { %15707 = vmatprep.mubr.f32.mxu0 %v22005_v19 }
 0xb6a   : > { %15708 = vmatmul.mubr.f32.gmra.mrb[98].mxu0 %v22008_v12 }
 0xb6b   : > { %15742 = vmatprep.mubr.f32.mxu0 %v21810_v8 }
 0xb6e   : > { %15743 = vmatmul.mubr.f32.vlgmr.msra.gmra.mrb[100].mxu0 %v21813_v44 }
 0xb6f   : > { %15745 = vmatprep.mubr.f32.mxu0 %v21826_v58 }
 0xb72   : > { %15746 = vmatmul.mubr.f32.gmra.mrb[102].mxu0 %v21829_v53 }
 0xb73   : > { %15748 = vmatprep.mubr.f32.mxu0 %v21842_v42 }
 0xb76   : > { %15749 = vmatmul.mubr.f32.gmra.mrb[104].mxu0 %v21845_v22 }
 0xb77   : > { %15751 = vmatprep.mubr.f32.mxu0 %v21858_v49 }
 0xb7a   : > { %15752 = vmatmul.mubr.f32.gmra.mrb[106].mxu0 %v21861_v1 }
 0xb7b   : > { %15754 = vmatprep.mubr.f32.mxu0 %v21874_v57 }
 0xb7e   : > { %15755 = vmatmul.mubr.f32.gmra.mrb[108].mxu0 %v21877_v16 }
 0xb7f   : > { %15757 = vmatprep.mubr.f32.mxu0 %v21890_v31 }
 0xb82   : > { %15758 = vmatmul.mubr.f32.gmra.mrb[110].mxu0 %v21893_v18 }
 0xb83   : > { %15760 = vmatprep.mubr.f32.mxu0 %v21906_v39 }
 0xb86   : > { %15761 = vmatmul.mubr.f32.gmra.mrb[112].mxu0 %v21909_v29 }
 0xb87   : > { %15763 = vmatprep.mubr.f32.mxu0 %v21922_v62 }
 0xb8a   : > { %15764 = vmatmul.mubr.f32.gmra.mrb[114].mxu0 %v21925_v54 }
 0xb8b   : > { %15766 = vmatprep.mubr.f32.mxu0 %v21934_v23 }
 0xb8e   : > { %15767 = vmatmul.mubr.f32.gmra.mrb[116].mxu0 %v21937_v56 }
 0xb8f   : > { %15769 = vmatprep.mubr.f32.mxu0 %v21945_v9 }
 0xb92   : > { %15770 = vmatmul.mubr.f32.gmra.mrb[118].mxu0 %v21948_v10 }
 0xb93   : > { %15772 = vmatprep.mubr.f32.mxu0 %v21955_v34 }
 0xb96   : > { %15773 = vmatmul.mubr.f32.gmra.mrb[120].mxu0 %v21958_v48 }
 0xb97   : > { %15775 = vmatprep.mubr.f32.mxu0 %v21965_v38 }
 0xb9a   : > { %15776 = vmatmul.mubr.f32.gmra.mrb[122].mxu0 %v21968_v3 }
 0xb9b   : > { %15778 = vmatprep.mubr.f32.mxu0 %v21975_v30 }
 0xb9e   : > { %15779 = vmatmul.mubr.f32.gmra.mrb[124].mxu0 %v21978_v21 }
 0xb9f   : > { %15781 = vmatprep.mubr.f32.mxu0 %v21985_v15 }
 0xba2   : > { %15782 = vmatmul.mubr.f32.gmra.mrb[126].mxu0 %v21988_v7 }
 0xba3   : > { %15784 = vmatprep.mubr.f32.mxu0 %v21995_v63 }
 0xba6   : > { %15785 = vmatmul.mubr.f32.gmra.mrb[128].mxu0 %v21998_v50 }
 0xba7   : > { %15787 = vmatprep.mubr.f32.mxu0 %v22005_v19 }
 0xbaa   : > { %15788 = vmatmul.mubr.f32.gmra.mrb[130].mxu0 %v22008_v12 }
 0xbc1   : > { %v15584_v46 = vpop.f32.mrb[36].mxu0 }
 0xbc2   : > { %v22125_v51 = vadd.f32 %v15584_v46, %v22122_v52  ;;  %v9784_v61 = vpop.f32.mrb[37].mxu0 }
 0xbc3   : > { %v22128_v26 = vadd.f32 %v22122_v52, %v9784_v61 }
 0xbc5   : > { %v15587_v33 = vpop.f32.mrb[38].mxu0  ;;  %13678 = vmatprep.mubr.f32.mxu0 %v22128_v26 }
 0xbc6   : > { %v22132_v41 = vadd.f32 %v15587_v33, %v22122_v52  ;;  %v9794_v24 = vpop.f32.mrb[39].mxu0 }
 0xbc7   : > { %v22135_v55 = vadd.f32 %v22122_v52, %v9794_v24 }
 0xbc9   : > { %v15590_v36 = vpop.f32.mrb[40].mxu0 }
 0xbca   : > { %v22138_v13 = vadd.f32 %v15590_v36, %v22122_v52  ;;  %v9804_v40 = vpop.f32.mrb[41].mxu0 }
 0xbcb   : > { %v22141_v25 = vadd.f32 %v22122_v52, %v9804_v40 }
 0xbcd   : > { %v15593_v35 = vpop.f32.mrb[42].mxu0 }
 0xbce   : > { %v22144_v45 = vadd.f32 %v15593_v35, %v22122_v52  ;;  %v9814_v60 = vpop.f32.mrb[43].mxu0 }
 0xbcf   : > { %v22147_v20 = vadd.f32 %v22122_v52, %v9814_v60 }
 0xbd1   : > { %v15596_v5 = vpop.f32.mrb[44].mxu0 }
 0xbd2   : > { %v22150_v4 = vadd.f32 %v15596_v5, %v22122_v52  ;;  %v9824_v27 = vpop.f32.mrb[45].mxu0 }
 0xbd3   : > { %v22153_v2 = vadd.f32 %v22122_v52, %v9824_v27 }
 0xbd5   : > { %v15599_v47 = vpop.f32.mrb[46].mxu0 }
 0xbd6   : > { %v22156_v59 = vadd.f32 %v15599_v47, %v22122_v52  ;;  %v9834_v28 = vpop.f32.mrb[47].mxu0 }
 0xbd7   : > { %v22159_v43 = vadd.f32 %v22122_v52, %v9834_v28 }
 0xbd9   : > { %v15602_v17 = vpop.f32.mrb[48].mxu0 }
 0xbda   : > { %v22162_v32 = vadd.f32 %v15602_v17, %v22122_v52  ;;  %v9844_v37 = vpop.f32.mrb[49].mxu0 }
 0xbdb   : > { %v22165_v0 = vadd.f32 %v22122_v52, %v9844_v37 }
 0xbdd   : > { %v15605_v14 = vpop.f32.mrb[50].mxu0 }
 0xbde   : > { %v22168_v6 = vadd.f32 %v15605_v14, %v22122_v52  ;;  %v9854_v46 = vpop.f32.mrb[51].mxu0 }
 0xbdf   : > { %v22171_v61 = vadd.f32 %v22122_v52, %v9854_v46 }
 0xbe1   : > { %v15608_v33 = vpop.f32.mrb[52].mxu0 }
 0xbe2   : > { %v22174_v24 = vadd.f32 %v15608_v33, %v22122_v52  ;;  %v9864_v36 = vpop.f32.mrb[53].mxu0 }
 0xbe3   : > { %v22177_v40 = vadd.f32 %v22122_v52, %v9864_v36 }
 0xbe5   : > { %v15611_v35 = vpop.f32.mrb[54].mxu0 }
 0xbe6   : > { %v22180_v60 = vadd.f32 %v15611_v35, %v22122_v52  ;;  %v9874_v5 = vpop.f32.mrb[55].mxu0 }
 0xbe7   : > { %v22183_v27 = vadd.f32 %v22122_v52, %v9874_v5 }
 0xbe9   : > { %v15614_v47 = vpop.f32.mrb[56].mxu0 }
 0xbea   : > { %v22186_v28 = vadd.f32 %v15614_v47, %v22122_v52  ;;  %v9884_v17 = vpop.f32.mrb[57].mxu0 }
 0xbeb   : > { %v22189_v37 = vadd.f32 %v22122_v52, %v9884_v17 }
 0xbed   : > { %v15617_v14 = vpop.f32.mrb[58].mxu0 }
 0xbee   : > { %v22192_v46 = vadd.f32 %v15617_v14, %v22122_v52  ;;  %v9894_v33 = vpop.f32.mrb[59].mxu0 }
 0xbef   : > { %v22195_v36 = vadd.f32 %v22122_v52, %v9894_v33 }
 0xbf1   : > { %v15620_v35 = vpop.f32.mrb[60].mxu0 }
 0xbf2   : > { %v22198_v5 = vadd.f32 %v15620_v35, %v22122_v52  ;;  %v9904_v19 = vpop.f32.mrb[61].mxu0 }
 0xbf3   : > { %v22201_v47 = vadd.f32 %v22122_v52, %v9904_v19 }
 0xbf5   : > { %v15623_v12 = vpop.f32.mrb[62].mxu0 }
 0xbf6   : > { %v22204_v17 = vadd.f32 %v15623_v12, %v22122_v52  ;;  %v9914_v63 = vpop.f32.mrb[63].mxu0 }
 0xbf7   : > { %v22207_v14 = vadd.f32 %v22122_v52, %v9914_v63  ;;  %v22224_v63 = vld [vmem:[%s23047_s22] ss:$0 sm:$0xff] }
 0xbf9   : > { %v15626_v50 = vpop.f32.mrb[64].mxu0 }
 0xbfa   : > { %v22210_v33 = vadd.f32 %v15626_v50, %v22122_v52  ;;  %v9924_v15 = vpop.f32.mrb[65].mxu0 }
 0xbfb   : > { %v22213_v35 = vadd.f32 %v22122_v52, %v9924_v15 }
 0xbfd   : > { %v15629_v7 = vpop.f32.mrb[66].mxu0 }
 0xbfe   : > { %v22216_v19 = vadd.f32 %v15629_v7, %v22122_v52  ;;  %v9934_v30 = vpop.f32.mrb[67].mxu0 }
 0xbff   : > { %v22219_v12 = vadd.f32 %v22122_v52, %v9934_v30 }
 0xc01   : > { %v15664_v21 = vpop.f32.mrb[68].mxu0 }
 0xc02   : > { %v10038_v50 = vadd.f32 %v15664_v21, %v22224_v63  ;;  %v10032_v38 = vpop.f32.mrb[69].mxu0 }
 0xc03   : > { %v10033_v15 = vadd.f32 %v22224_v63, %v10032_v38 }
 0xc05   : > { %v16704_v3 = vpack.c.bf16 %v10038_v50, %v10033_v15  ;;  %v15667_v34 = vpop.f32.mrb[70].mxu0 }
 0xc06   : > { %v10048_v7 = vadd.f32 %v15667_v34, %v22224_v63  ;;  %v10042_v48 = vpop.f32.mrb[71].mxu0 }
 0xc07   : > { %v10043_v9 = vadd.f32 %v22224_v63, %v10042_v48 }
 0xc09   : > { %v16708_v30 = vpack.c.bf16 %v10048_v7, %v10043_v9  ;;  %v15670_v52 = vpop.f32.mrb[72].mxu0 }
 0xc0a   : > { %v22231_v10 = vadd.f32 %v15670_v52, %v22224_v63  ;;  %v10052_v23 = vpop.f32.mrb[73].mxu0 }
 0xc0b   : > { %v10053_v56 = vadd.f32 %v22224_v63, %v10052_v23 }
 0xc0d   : > { %v16712_v21 = vpack.c.bf16 %v22231_v10, %v10053_v56  ;;  %v15673_v62 = vpop.f32.mrb[74].mxu0 }
 0xc0e   : > { %v22236_v38 = vadd.f32 %v15673_v62, %v22224_v63  ;;  %v10062_v50 = vpop.f32.mrb[75].mxu0 }
 0xc0f   : > { %v22239_v34 = vadd.f32 %v22224_v63, %v10062_v50 }
 0xc11   : > { %v15676_v48 = vpop.f32.mrb[76].mxu0 }
 0xc12   : > { %v22244_v15 = vadd.f32 %v15676_v48, %v22224_v63  ;;  %v10072_v7 = vpop.f32.mrb[77].mxu0 }
 0xc13   : > { %v22247_v23 = vadd.f32 %v22224_v63, %v10072_v7 }
 0xc15   : > { %v15679_v62 = vpop.f32.mrb[78].mxu0 }
 0xc16   : > { %v22252_v10 = vadd.f32 %v15679_v62, %v22224_v63  ;;  %v10082_v52 = vpop.f32.mrb[79].mxu0 }
 0xc17   : > { %v22255_v50 = vadd.f32 %v22224_v63, %v10082_v52 }
 0xc19   : > { %v15682_v48 = vpop.f32.mrb[80].mxu0 }
 0xc1a   : > { %v22260_v54 = vadd.f32 %v15682_v48, %v22224_v63  ;;  %v10092_v7 = vpop.f32.mrb[81].mxu0 }
 0xc1b   : > { %v22263_v39 = vadd.f32 %v22224_v63, %v10092_v7 }
 0xc1d   : > { %v15685_v62 = vpop.f32.mrb[82].mxu0 }
 0xc1e   : > { %v22268_v29 = vadd.f32 %v15685_v62, %v22224_v63  ;;  %v10102_v52 = vpop.f32.mrb[83].mxu0 }
 0xc1f   : > { %v22271_v31 = vadd.f32 %v22224_v63, %v10102_v52 }
 0xc21   : > { %v15688_v48 = vpop.f32.mrb[84].mxu0 }
 0xc22   : > { %v10118_v18 = vadd.f32 %v15688_v48, %v22224_v63  ;;  %v10112_v57 = vpop.f32.mrb[85].mxu0 }
 0xc23   : > { %v10113_v7 = vadd.f32 %v22224_v63, %v10112_v57 }
 0xc25   : > { %v16702_v16 = vpack.c.bf16 %v10118_v18, %v10113_v7  ;;  %v15691_v49 = vpop.f32.mrb[86].mxu0 }
 0xc26   : > { %v10128_v56 = vadd.f32 %v15691_v49, %v22224_v63  ;;  %v10122_v1 = vpop.f32.mrb[87].mxu0 }
 0xc27   : > { %v10123_v62 = vadd.f32 %v22224_v63, %v10122_v1  ;;  %16703 = vmatprep.subr.bf16.mxu0 %v16702_v16 }
 0xc28   : > { %16705 = vmatpush3.bf16.xpose.msra.mxu0 %v16704_v3 }
 0xc29   : > { %v16706_v52 = vpack.c.bf16 %v10128_v56, %v10123_v62  ;;  %v15694_v42 = vpop.f32.mrb[88].mxu0 }
 0xc2a   : > { %v10138_v22 = vadd.f32 %v15694_v42, %v22224_v63  ;;  %v10132_v9 = vpop.f32.mrb[89].mxu0 }
 0xc2b   : > { %v10133_v58 = vadd.f32 %v22224_v63, %v10132_v9  ;;  %16707 = vmatprep.subr.bf16.mxu0 %v16706_v52 }
 0xc2d   : > { %v16710_v48 = vpack.c.bf16 %v10138_v22, %v10133_v58  ;;  %v15697_v53 = vpop.f32.mrb[90].mxu0 }
 0xc2e   : > { %v10148_v57 = vadd.f32 %v15697_v53, %v22224_v63  ;;  %v10142_v18 = vpop.f32.mrb[91].mxu0 }
 0xc2f   : > { %v10143_v49 = vadd.f32 %v22224_v63, %v10142_v18 }
 0xc30   : > { %16709 = vmatpush3.bf16.xpose.msra.mxu0 %v16708_v30 }
 0xc31   : > { %v16714_v7 = vpack.c.bf16 %v10148_v57, %v10143_v49  ;;  %v15700_v1 = vpop.f32.mrb[92].mxu0  ;;  %16711 = vmatprep.subr.bf16.mxu0 %v16710_v48 }
 0xc32   : > { %v10158_v16 = vadd.f32 %v15700_v1, %v22224_v63  ;;  %v10152_v3 = vpop.f32.mrb[93].mxu0 }
 0xc33   : > { %v10153_v42 = vadd.f32 %v22224_v63, %v10152_v3 }
 0xc35   : > { %v16718_v56 = vpack.c.bf16 %v10158_v16, %v10153_v42  ;;  %v15703_v62 = vpop.f32.mrb[94].mxu0  ;;  %v22294_v42 = vld [vmem:[%s23049_s24] ss:$0 sm:$0xff] }
 0xc36   : > { %v10168_v9 = vadd.f32 %v15703_v62, %v22224_v63  ;;  %v10162_v58 = vpop.f32.mrb[95].mxu0 }
 0xc37   : > { %v10163_v22 = vadd.f32 %v22224_v63, %v10162_v58 }
 0xc38   : > { %16713 = vmatpush3.bf16.xpose.msra.mxu0 %v16712_v21  ;;  %v23524_v21 = vpack.c.bf16 %v22236_v38, %v22239_v34  ;;  %v23525_v38 = vpack.c.bf16 %v22244_v15, %v22247_v23  ;;  %v23526_v23 = vpack.c.bf16 %v22252_v10, %v22255_v50  ;;  %v23527_v50 = vpack.c.bf16 %v22260_v54, %v22263_v39 }
 0xc39   : > { %v16722_v53 = vpack.c.bf16 %v10168_v9, %v10163_v22  ;;  %v15706_v52 = vpop.f32.mrb[96].mxu0  ;;  %16715 = vmatprep.subr.bf16.mxu0 %v16714_v7  ;;  %v23528_v54 = vpack.c.bf16 %v22268_v29, %v22271_v31 }
 0xc3a   : > { %v10178_v30 = vadd.f32 %v15706_v52, %v22224_v63  ;;  %v10172_v57 = vpop.f32.mrb[97].mxu0 }
 0xc3b   : > { %v10173_v48 = vadd.f32 %v22224_v63, %v10172_v57 }
 0xc3d   : > { %v16726_v18 = vpack.c.bf16 %v10178_v30, %v10173_v48  ;;  %v15709_v49 = vpop.f32.mrb[98].mxu0 }
 0xc3e   : > { %v10188_v1 = vadd.f32 %v15709_v49, %v22224_v63  ;;  %v10182_v16 = vpop.f32.mrb[99].mxu0 }
 0xc3f   : > { %v10183_v3 = vadd.f32 %v22224_v63, %v10182_v16 }
 0xc40   : > { %16717 = vmatpush3.bf16.xpose.msra.mxu0 %v23524_v21 }
 0xc41   : > { %v16730_v7 = vpack.c.bf16 %v10188_v1, %v10183_v3  ;;  %v15744_v62 = vpop.f32.mrb[100].mxu0  ;;  %16719 = vmatprep.subr.bf16.mxu0 %v16718_v56 }
 0xc42   : > { %v10318_v9 = vadd.f32 %v15744_v62, %v22294_v42  ;;  %v10312_v58 = vpop.f32.mrb[101].mxu0 }
 0xc43   : > { %v10313_v22 = vadd.f32 %v22294_v42, %v10312_v58 }
 0xc45   : > { %v16735_v52 = vpack.c.bf16 %v10318_v9, %v10313_v22  ;;  %v15747_v30 = vpop.f32.mrb[102].mxu0 }
 0xc46   : > { %v10328_v63 = vadd.f32 %v15747_v30, %v22294_v42  ;;  %v10322_v57 = vpop.f32.mrb[103].mxu0 }
 0xc47   : > { %v10323_v48 = vadd.f32 %v22294_v42, %v10322_v57  ;;  %16736 = vmatpush1.bf16.msra.mxu1 %v16735_v52 }
 0xc48   : > { %16721 = vmatpush3.bf16.xpose.msra.mxu0 %v23525_v38  ;;  %16737 = vmatprep.subr.bf16.mxu1 %v23491_v11 }
 0xc49   : > { %v16738_v34 = vpack.c.bf16 %v10328_v63, %v10323_v48  ;;  %v15750_v56 = vpop.f32.mrb[104].mxu0  ;;  %16723 = vmatprep.subr.bf16.mxu0 %v16722_v53 }
 0xc4a   : > { %v10338_v49 = vadd.f32 %v15750_v56, %v22294_v42  ;;  %v10332_v1 = vpop.f32.mrb[105].mxu0 }
 0xc4b   : > { %v10333_v16 = vadd.f32 %v22294_v42, %v10332_v1  ;;  %16739 = vmatpush1.bf16.msra.mxu1 %v16738_v34 }
 0xc4c   : > { %16740 = vmatprep.subr.bf16.mxu1 %v23491_v11 }
 0xc4d   : > { %v16741_v3 = vpack.c.bf16 %v10338_v49, %v10333_v16  ;;  %v15753_v21 = vpop.f32.mrb[106].mxu0 }
 0xc4e   : > { %v10348_v62 = vadd.f32 %v15753_v21, %v22294_v42  ;;  %v10342_v9 = vpop.f32.mrb[107].mxu0 }
 0xc4f   : > { %v10343_v15 = vadd.f32 %v22294_v42, %v10342_v9  ;;  %16742 = vmatpush1.bf16.msra.mxu1 %v16741_v3 }
 0xc50   : > { %16725 = vmatpush3.bf16.xpose.msra.mxu0 %v23526_v23  ;;  %16743 = vmatprep.subr.bf16.mxu1 %v23491_v11 }
 0xc51   : > { %v16744_v53 = vpack.c.bf16 %v10348_v62, %v10343_v15  ;;  %v15756_v58 = vpop.f32.mrb[108].mxu0  ;;  %16727 = vmatprep.subr.bf16.mxu0 %v16726_v18 }
 0xc52   : > { %v10358_v22 = vadd.f32 %v15756_v58, %v22294_v42  ;;  %v10352_v52 = vpop.f32.mrb[109].mxu0 }
 0xc53   : > { %v10353_v30 = vadd.f32 %v22294_v42, %v10352_v52  ;;  %16745 = vmatpush1.bf16.msra.mxu1 %v16744_v53 }
 0xc54   : > { %16746 = vmatprep.subr.bf16.mxu1 %v23491_v11 }
 0xc55   : > { %v16747_v63 = vpack.c.bf16 %v10358_v22, %v10353_v30  ;;  %v15759_v57 = vpop.f32.mrb[110].mxu0 }
 0xc56   : > { %v10368_v48 = vadd.f32 %v15759_v57, %v22294_v42  ;;  %v10362_v38 = vpop.f32.mrb[111].mxu0 }
 0xc57   : > { %v10363_v10 = vadd.f32 %v22294_v42, %v10362_v38  ;;  %16748 = vmatpush1.bf16.msra.mxu1 %v16747_v63 }
 0xc58   : > { %16729 = vmatpush3.bf16.xpose.msra.mxu0 %v23527_v50  ;;  %16749 = vmatprep.subr.bf16.mxu1 %v23491_v11 }
 0xc59   : > { %v16750_v18 = vpack.c.bf16 %v10368_v48, %v10363_v10  ;;  %v15762_v34 = vpop.f32.mrb[112].mxu0  ;;  %16731 = vmatprep.subr.bf16.mxu0 %v16730_v7 }
 0xc5a   : > { %v10378_v56 = vadd.f32 %v15762_v34, %v22294_v42  ;;  %v10372_v49 = vpop.f32.mrb[113].mxu0 }
 0xc5b   : > { %v10373_v1 = vadd.f32 %v22294_v42, %v10372_v49  ;;  %16751 = vmatpush1.bf16.msra.mxu1 %v16750_v18 }
 0xc5c   : > { %16752 = vmatprep.subr.bf16.mxu1 %v23491_v11 }
 0xc5d   : > { %v16753_v16 = vpack.c.bf16 %v10378_v56, %v10373_v1  ;;  %v15765_v3 = vpop.f32.mrb[114].mxu0 }
 0xc5e   : > { %v10388_v21 = vadd.f32 %v15765_v3, %v22294_v42  ;;  %v10382_v62 = vpop.f32.mrb[115].mxu0 }
 0xc5f   : > { %v10383_v39 = vadd.f32 %v22294_v42, %v10382_v62  ;;  %16754 = vmatpush1.bf16.msra.mxu1 %v16753_v16 }
 0xc60   : > { %16733 = vmatpush3.bf16.xpose.msra.mxu0 %v23528_v54  ;;  %16755 = vmatprep.subr.bf16.mxu1 %v23491_v11 }
 0xc61   : > { %v16756_v7 = vpack.c.bf16 %v10388_v21, %v10383_v39  ;;  %v15768_v9 = vpop.f32.mrb[116].mxu0 }
 0xc62   : > { %v10398_v15 = vadd.f32 %v15768_v9, %v22294_v42  ;;  %v10392_v23 = vpop.f32.mrb[117].mxu0 }
 0xc63   : > { %v10393_v53 = vadd.f32 %v22294_v42, %v10392_v23  ;;  %16757 = vmatpush1.bf16.msra.mxu1 %v16756_v7 }
 0xc64   : > { %16758 = vmatprep.subr.bf16.mxu1 %v23491_v11 }
 0xc65   : > { %v16759_v58 = vpack.c.bf16 %v10398_v15, %v10393_v53  ;;  %v15771_v22 = vpop.f32.mrb[118].mxu0 }
 0xc66   : > { %v10408_v52 = vadd.f32 %v15771_v22, %v22294_v42  ;;  %v10402_v30 = vpop.f32.mrb[119].mxu0 }
 0xc67   : > { %v10403_v31 = vadd.f32 %v22294_v42, %v10402_v30  ;;  %13679 = vmatmul.mubr.f32.vlgmr.msra.gmra.mrb[132].mxu0 %v22128_v26  ;;  %16760 = vmatpush1.bf16.msra.mxu1 %v16759_v58 }
 0xc68   : > { %13680 = vmatprep.mubr.f32.mxu0 %v22125_v51  ;;  %16761 = vmatprep.subr.bf16.mxu1 %v23491_v11 }
 0xc69   : > { %v16762_v29 = vpack.c.bf16 %v10408_v52, %v10403_v31  ;;  %v15774_v63 = vpop.f32.mrb[120].mxu0 }
 0xc6a   : > { %v10418_v57 = vadd.f32 %v15774_v63, %v22294_v42  ;;  %v10412_v48 = vpop.f32.mrb[121].mxu0 }
 0xc6b   : > { %v10413_v38 = vadd.f32 %v22294_v42, %v10412_v48  ;;  %13681 = vmatmul.mubr.f32.gmra.mrb[134].mxu0 %v22125_v51  ;;  %16763 = vmatpush1.bf16.msra.mxu1 %v16762_v29 }
 0xc6c   : > { %13682 = vmatprep.mubr.f32.mxu0 %v22135_v55  ;;  %16764 = vmatprep.subr.bf16.mxu1 %v23491_v11 }
 0xc6d   : > { %v16765_v26 = vpack.c.bf16 %v10418_v57, %v10413_v38  ;;  %v15777_v10 = vpop.f32.mrb[122].mxu0 }
 0xc6e   : > { %v10428_v50 = vadd.f32 %v15777_v10, %v22294_v42  ;;  %v10422_v18 = vpop.f32.mrb[123].mxu0 }
 0xc6f   : > { %v10423_v34 = vadd.f32 %v22294_v42, %v10422_v18  ;;  %13683 = vmatmul.mubr.f32.gmra.mrb[136].mxu0 %v22135_v55  ;;  %16766 = vmatpush1.bf16.msra.mxu1 %v16765_v26 }
 0xc70   : > { %13684 = vmatprep.mubr.f32.mxu0 %v22132_v41  ;;  %16767 = vmatprep.subr.bf16.mxu1 %v23491_v11 }
 0xc71   : > { %v16768_v51 = vpack.c.bf16 %v10428_v50, %v10423_v34  ;;  %v15780_v56 = vpop.f32.mrb[124].mxu0 }
 0xc72   : > { %v10438_v49 = vadd.f32 %v15780_v56, %v22294_v42  ;;  %v10432_v1 = vpop.f32.mrb[125].mxu0 }
 0xc73   : > { %v10433_v16 = vadd.f32 %v22294_v42, %v10432_v1  ;;  %13685 = vmatmul.mubr.f32.gmra.mrb[138].mxu0 %v22132_v41  ;;  %16769 = vmatpush1.bf16.msra.mxu1 %v16768_v51 }
 0xc74   : > { %13686 = vmatprep.mubr.f32.mxu0 %v22141_v25  ;;  %16770 = vmatprep.subr.bf16.mxu1 %v23491_v11 }
 0xc75   : > { %v16771_v55 = vpack.c.bf16 %v10438_v49, %v10433_v16  ;;  %v15783_v3 = vpop.f32.mrb[126].mxu0 }
 0xc76   : > { %v10448_v21 = vadd.f32 %v15783_v3, %v22294_v42  ;;  %v10442_v62 = vpop.f32.mrb[127].mxu0 }
 0xc77   : > { %v10443_v39 = vadd.f32 %v22294_v42, %v10442_v62  ;;  %13687 = vmatmul.mubr.f32.gmra.mrb[140].mxu0 %v22141_v25  ;;  %16772 = vmatpush1.bf16.msra.mxu1 %v16771_v55 }
 0xc78   : > { %13688 = vmatprep.mubr.f32.mxu0 %v22138_v13  ;;  %16773 = vmatprep.subr.bf16.mxu1 %v23491_v11 }
 0xc79   : > { %v16774_v41 = vpack.c.bf16 %v10448_v21, %v10443_v39  ;;  %v15786_v54 = vpop.f32.mrb[128].mxu0 }
 0xc7a   : > { %v10458_v7 = vadd.f32 %v15786_v54, %v22294_v42  ;;  %v10452_v9 = vpop.f32.mrb[129].mxu0 }
 0xc7b   : > { %v10453_v15 = vadd.f32 %v22294_v42, %v10452_v9  ;;  %13689 = vmatmul.mubr.f32.gmra.mrb[142].mxu0 %v22138_v13  ;;  %16775 = vmatpush1.bf16.msra.mxu1 %v16774_v41 }
 0xc7c   : > { %13690 = vmatprep.mubr.f32.mxu0 %v22147_v20  ;;  %16776 = vmatprep.subr.bf16.mxu1 %v23491_v11 }
 0xc7d   : > { %v16777_v25 = vpack.c.bf16 %v10458_v7, %v10453_v15  ;;  %v15789_v23 = vpop.f32.mrb[130].mxu0 }
 0xc7e   : > { %v10468_v53 = vadd.f32 %v15789_v23, %v22294_v42  ;;  %v10462_v58 = vpop.f32.mrb[131].mxu0 }
 0xc7f   : > { %v10463_v22 = vadd.f32 %v22294_v42, %v10462_v58  ;;  %13691 = vmatmul.mubr.f32.gmra.mrb[144].mxu0 %v22147_v20  ;;  %16778 = vmatpush1.bf16.msra.mxu1 %v16777_v25 }
 0xc80   : > { %13692 = vmatprep.mubr.f32.mxu0 %v22144_v45  ;;  %16779 = vmatprep.subr.bf16.mxu1 %v23491_v11 }
 0xc81   : > { %v16780_v13 = vpack.c.bf16 %v10468_v53, %v10463_v22 }
 0xc83   : > { %13693 = vmatmul.mubr.f32.gmra.mrb[146].mxu0 %v22144_v45  ;;  %16781 = vmatpush1.bf16.msra.mxu1 %v16780_v13 }
 0xc84   : > { %13694 = vmatprep.mubr.f32.mxu0 %v22153_v2 }
 0xc87   : > { %13695 = vmatmul.mubr.f32.gmra.mrb[148].mxu0 %v22153_v2 }
 0xc88   : > { %13696 = vmatprep.mubr.f32.mxu0 %v22150_v4 }
 0xc8b   : > { %13697 = vmatmul.mubr.f32.gmra.mrb[150].mxu0 %v22150_v4 }
 0xc8c   : > { %13698 = vmatprep.mubr.f32.mxu0 %v22159_v43 }
 0xc8f   : > { %13699 = vmatmul.mubr.f32.gmra.mrb[152].mxu0 %v22159_v43 }
 0xc90   : > { %13700 = vmatprep.mubr.f32.mxu0 %v22156_v59 }
 0xc93   : > { %13701 = vmatmul.mubr.f32.gmra.mrb[154].mxu0 %v22156_v59 }
 0xc94   : > { %13702 = vmatprep.mubr.f32.mxu0 %v22165_v0 }
 0xc97   : > { %13703 = vmatmul.mubr.f32.gmra.mrb[156].mxu0 %v22165_v0 }
 0xc98   : > { %13704 = vmatprep.mubr.f32.mxu0 %v22162_v32 }
 0xc9b   : > { %13705 = vmatmul.mubr.f32.gmra.mrb[158].mxu0 %v22162_v32 }
 0xc9c   : > { %13706 = vmatprep.mubr.f32.mxu0 %v22171_v61 }
 0xc9f   : > { %13707 = vmatmul.mubr.f32.gmra.mrb[160].mxu0 %v22171_v61 }
 0xca0   : > { %13708 = vmatprep.mubr.f32.mxu0 %v22168_v6 }
 0xca3   : > { %13709 = vmatmul.mubr.f32.gmra.mrb[162].mxu0 %v22168_v6 }
 0xca4   : > { %13710 = vmatprep.mubr.f32.mxu0 %v22177_v40 }
 0xca7   : > { %13711 = vmatmul.mubr.f32.gmra.mrb[164].mxu0 %v22177_v40 }
 0xca8   : > { %13712 = vmatprep.mubr.f32.mxu0 %v22174_v24 }
 0xcab   : > { %13713 = vmatmul.mubr.f32.gmra.mrb[166].mxu0 %v22174_v24 }
 0xcac   : > { %13714 = vmatprep.mubr.f32.mxu0 %v22183_v27 }
 0xcaf   : > { %13715 = vmatmul.mubr.f32.gmra.mrb[168].mxu0 %v22183_v27 }
 0xcb0   : > { %13716 = vmatprep.mubr.f32.mxu0 %v22180_v60 }
 0xcb3   : > { %13717 = vmatmul.mubr.f32.gmra.mrb[170].mxu0 %v22180_v60 }
 0xcb4   : > { %13718 = vmatprep.mubr.f32.mxu0 %v22189_v37 }
 0xcb7   : > { %13719 = vmatmul.mubr.f32.gmra.mrb[172].mxu0 %v22189_v37 }
 0xcb8   : > { %13720 = vmatprep.mubr.f32.mxu0 %v22186_v28 }
 0xcbb   : > { %13721 = vmatmul.mubr.f32.gmra.mrb[174].mxu0 %v22186_v28 }
 0xcbc   : > { %13722 = vmatprep.mubr.f32.mxu0 %v22195_v36 }
 0xcbf   : > { %13723 = vmatmul.mubr.f32.gmra.mrb[176].mxu0 %v22195_v36 }
 0xcc0   : > { %13724 = vmatprep.mubr.f32.mxu0 %v22192_v46 }
 0xcc3   : > { %13725 = vmatmul.mubr.f32.gmra.mrb[178].mxu0 %v22192_v46 }
 0xcc4   : > { %13726 = vmatprep.mubr.f32.mxu0 %v22201_v47 }
 0xcc7   : > { %13727 = vmatmul.mubr.f32.gmra.mrb[180].mxu0 %v22201_v47 }
 0xcc8   : > { %13728 = vmatprep.mubr.f32.mxu0 %v22198_v5 }
 0xccb   : > { %13729 = vmatmul.mubr.f32.gmra.mrb[182].mxu0 %v22198_v5 }
 0xccc   : > { %13730 = vmatprep.mubr.f32.mxu0 %v22207_v14 }
 0xccf   : > { %13731 = vmatmul.mubr.f32.gmra.mrb[184].mxu0 %v22207_v14 }
 0xcd0   : > { %13732 = vmatprep.mubr.f32.mxu0 %v22204_v17 }
 0xcd3   : > { %13733 = vmatmul.mubr.f32.gmra.mrb[186].mxu0 %v22204_v17 }
 0xcd4   : > { %13734 = vmatprep.mubr.f32.mxu0 %v22213_v35 }
 0xcd7   : > { %13735 = vmatmul.mubr.f32.gmra.mrb[188].mxu0 %v22213_v35 }
 0xcd8   : > { %13736 = vmatprep.mubr.f32.mxu0 %v22210_v33 }
 0xcdb   : > { %13737 = vmatmul.mubr.f32.gmra.mrb[190].mxu0 %v22210_v33 }
 0xcdc   : > { %13738 = vmatprep.mubr.f32.mxu0 %v22219_v12 }
 0xcdf   : > { %13739 = vmatmul.mubr.f32.gmra.mrb[192].mxu0 %v22219_v12 }
 0xce0   : > { %13740 = vmatprep.mubr.f32.mxu0 %v22216_v19 }
 0xce3   : > { %13741 = vmatmul.mubr.f32.gmra.mrb[194].mxu0 %v22216_v19 }
 0xd3a   : > { %v22421_v11 = vpop.f32.mrb[132].mxu0 }
 0xd3b   : > { %v22423_v45 = vpop.f32.mrb[133].mxu0 }
 0xd3c   : > { %v10824_v20 = vmax.f32 %v22421_v11, %v22423_v45 }
 0xd3e   : > { %10825 = vmax.xlane.f32.xlu0 %v10824_v20  ;;  %v22427_v4 = vpop.f32.mrb[134].mxu0 }
 0xd3f   : > { %v22429_v2 = vpop.f32.mrb[135].mxu0 }
 0xd40   : > { %v10827_v59 = vmax.f32 %v22427_v4, %v22429_v2 }
 0xd42   : > { %10828 = vmax.xlane.f32.xlu0 %v10827_v59  ;;  %v22433_v43 = vpop.f32.mrb[136].mxu0 }
 0xd43   : > { %v22435_v32 = vpop.f32.mrb[137].mxu0 }
 0xd44   : > { %v10830_v0 = vmax.f32 %v22433_v43, %v22435_v32 }
 0xd46   : > { %10831 = vmax.xlane.f32.xlu1 %v10830_v0  ;;  %v22439_v6 = vpop.f32.mrb[138].mxu0 }
 0xd47   : > { %v22441_v61 = vpop.f32.mrb[139].mxu0 }
 0xd48   : > { %v10833_v24 = vmax.f32 %v22439_v6, %v22441_v61 }
 0xd4a   : > { %10834 = vmax.xlane.f32.xlu1 %v10833_v24  ;;  %v22445_v40 = vpop.f32.mrb[140].mxu0 }
 0xd4b   : > { %v22447_v60 = vpop.f32.mrb[141].mxu0 }
 0xd4c   : > { %v10836_v27 = vmax.f32 %v22445_v40, %v22447_v60 }
 0xd4e   : > { %10837 = vmax.xlane.f32.xlu0 %v10836_v27  ;;  %v22451_v28 = vpop.f32.mrb[142].mxu0 }
 0xd4f   : > { %v22453_v37 = vpop.f32.mrb[143].mxu0 }
 0xd50   : > { %v10839_v46 = vmax.f32 %v22451_v28, %v22453_v37 }
 0xd52   : > { %10840 = vmax.xlane.f32.xlu1 %v10839_v46  ;;  %v22457_v36 = vpop.f32.mrb[144].mxu0 }
 0xd53   : > { %v22459_v5 = vpop.f32.mrb[145].mxu0 }
 0xd54   : > { %v10842_v47 = vmax.f32 %v22457_v36, %v22459_v5 }
 0xd56   : > { %10843 = vmax.xlane.f32.xlu0 %v10842_v47  ;;  %v22463_v17 = vpop.f32.mrb[146].mxu0 }
 0xd57   : > { %v22465_v14 = vpop.f32.mrb[147].mxu0 }
 0xd58   : > { %v10845_v33 = vmax.f32 %v22463_v17, %v22465_v14 }
 0xd5a   : > { %10846 = vmax.xlane.f32.xlu1 %v10845_v33  ;;  %v22469_v35 = vpop.f32.mrb[148].mxu0 }
 0xd5b   : > { %v22471_v19 = vpop.f32.mrb[149].mxu0 }
 0xd5c   : > { %v10848_v12 = vmax.f32 %v22469_v35, %v22471_v19 }
 0xd5e   : > { %10849 = vmax.xlane.f32.xlu0 %v10848_v12  ;;  %v22475_v42 = vpop.f32.mrb[150].mxu0 }
 0xd5f   : > { %v22477_v52 = vpop.f32.mrb[151].mxu0 }
 0xd60   : > { %v10851_v30 = vmax.f32 %v22475_v42, %v22477_v52 }
 0xd62   : > { %10852 = vmax.xlane.f32.xlu1 %v10851_v30  ;;  %v22481_v31 = vpop.f32.mrb[152].mxu0 }
 0xd63   : > { %v22483_v29 = vpop.f32.mrb[153].mxu0 }
 0xd64   : > { %v10854_v63 = vmax.f32 %v22481_v31, %v22483_v29 }
 0xd66   : > { %10855 = vmax.xlane.f32.xlu0 %v10854_v63  ;;  %v22487_v57 = vpop.f32.mrb[154].mxu0 }
 0xd67   : > { %v22489_v48 = vpop.f32.mrb[155].mxu0 }
 0xd68   : > { %v10857_v38 = vmax.f32 %v22487_v57, %v22489_v48 }
 0xd6a   : > { %10858 = vmax.xlane.f32.xlu1 %v10857_v38  ;;  %v22493_v26 = vpop.f32.mrb[156].mxu0 }
 0xd6b   : > { %v22495_v10 = vpop.f32.mrb[157].mxu0 }
 0xd6c   : > { %v10860_v50 = vmax.f32 %v22493_v26, %v22495_v10 }
 0xd6e   : > { %10861 = vmax.xlane.f32.xlu0 %v10860_v50  ;;  %v22499_v18 = vpop.f32.mrb[158].mxu0 }
 0xd6f   : > { %v22501_v34 = vpop.f32.mrb[159].mxu0 }
 0xd70   : > { %v10863_v51 = vmax.f32 %v22499_v18, %v22501_v34 }
 0xd72   : > { %10864 = vmax.xlane.f32.xlu1 %v10863_v51  ;;  %v22505_v56 = vpop.f32.mrb[160].mxu0 }
 0xd73   : > { %v22507_v49 = vpop.f32.mrb[161].mxu0 }
 0xd74   : > { %v10866_v1 = vmax.f32 %v22505_v56, %v22507_v49 }
 0xd76   : > { %10867 = vmax.xlane.f32.xlu0 %v10866_v1  ;;  %v22511_v16 = vpop.f32.mrb[162].mxu0 }
 0xd77   : > { %v22513_v55 = vpop.f32.mrb[163].mxu0 }
 0xd78   : > { %v10869_v3 = vmax.f32 %v22511_v16, %v22513_v55 }
 0xd7a   : > { %10870 = vmax.xlane.f32.xlu1 %v10869_v3  ;;  %v22517_v21 = vpop.f32.mrb[164].mxu0 }
 0xd7b   : > { %v22519_v62 = vpop.f32.mrb[165].mxu0 }
 0xd7c   : > { %v10872_v39 = vmax.f32 %v22517_v21, %v22519_v62 }
 0xd7e   : > { %10873 = vmax.xlane.f32.xlu0 %v10872_v39  ;;  %v22523_v41 = vpop.f32.mrb[166].mxu0 }
 0xd7f   : > { %v22525_v54 = vpop.f32.mrb[167].mxu0 }
 0xd80   : > { %v10875_v7 = vmax.f32 %v22523_v41, %v22525_v54 }
 0xd82   : > { %10876 = vmax.xlane.f32.xlu1 %v10875_v7  ;;  %v22529_v9 = vpop.f32.mrb[168].mxu0 }
 0xd83   : > { %v22531_v15 = vpop.f32.mrb[169].mxu0 }
 0xd84   : > { %v10878_v25 = vmax.f32 %v22529_v9, %v22531_v15 }
 0xd86   : > { %10879 = vmax.xlane.f32.xlu0 %v10878_v25  ;;  %v22535_v23 = vpop.f32.mrb[170].mxu0 }
 0xd87   : > { %v22537_v53 = vpop.f32.mrb[171].mxu0 }
 0xd88   : > { %v10881_v58 = vmax.f32 %v22535_v23, %v22537_v53 }
 0xd8a   : > { %10882 = vmax.xlane.f32.xlu1 %v10881_v58  ;;  %v22541_v22 = vpop.f32.mrb[172].mxu0 }
 0xd8b   : > { %v22543_v13 = vpop.f32.mrb[173].mxu0 }
 0xd8c   : > { %v10884_v20 = vmax.f32 %v22541_v22, %v22543_v13 }
 0xd8e   : > { %10885 = vmax.xlane.f32.xlu0 %v10884_v20  ;;  %v22547_v59 = vpop.f32.mrb[174].mxu0 }
 0xd8f   : > { %v22549_v0 = vpop.f32.mrb[175].mxu0 }
 0xd90   : > { %v10887_v24 = vmax.f32 %v22547_v59, %v22549_v0 }
 0xd92   : > { %10888 = vmax.xlane.f32.xlu1 %v10887_v24  ;;  %v22553_v27 = vpop.f32.mrb[176].mxu0 }
 0xd93   : > { %v22555_v46 = vpop.f32.mrb[177].mxu0 }
 0xd94   : > { %v10890_v47 = vmax.f32 %v22553_v27, %v22555_v46 }
 0xd96   : > { %10891 = vmax.xlane.f32.xlu0 %v10890_v47  ;;  %v22559_v33 = vpop.f32.mrb[178].mxu0 }
 0xd97   : > { %v22561_v12 = vpop.f32.mrb[179].mxu0 }
 0xd98   : > { %v10893_v30 = vmax.f32 %v22559_v33, %v22561_v12 }
 0xd9a   : > { %10894 = vmax.xlane.f32.xlu1 %v10893_v30  ;;  %v22565_v63 = vpop.f32.mrb[180].mxu0 }
 0xd9b   : > { %v22567_v38 = vpop.f32.mrb[181].mxu0 }
 0xd9c   : > { %v10896_v50 = vmax.f32 %v22565_v63, %v22567_v38 }
 0xd9e   : > { %10897 = vmax.xlane.f32.xlu0 %v10896_v50  ;;  %v22571_v51 = vpop.f32.mrb[182].mxu0 }
 0xd9f   : > { %v22573_v1 = vpop.f32.mrb[183].mxu0 }
 0xda0   : > { %v10899_v3 = vmax.f32 %v22571_v51, %v22573_v1 }
 0xda2   : > { %10900 = vmax.xlane.f32.xlu1 %v10899_v3  ;;  %v22577_v39 = vpop.f32.mrb[184].mxu0 }
 0xda3   : > { %v22579_v7 = vpop.f32.mrb[185].mxu0 }
 0xda4   : > { %23529 = vst [vmem:[#allocation43_spill] sm:$0xff] %v22579_v7  ;;  %v10902_v25 = vmax.f32 %v22577_v39, %v22579_v7 }
 0xda6   : > { %10903 = vmax.xlane.f32.xlu0 %v10902_v25  ;;  %v22583_v58 = vpop.f32.mrb[186].mxu0 }
 0xda7   : > { %23530 = vst [vmem:[#allocation53_spill] sm:$0xff] %v22583_v58  ;;  %v22585_v20 = vpop.f32.mrb[187].mxu0 }
 0xda8   : > { %23531 = vst [vmem:[#allocation49_spill] sm:$0xff] %v22585_v20  ;;  %v10905_v24 = vmax.f32 %v22583_v58, %v22585_v20 }
 0xdaa   : > { %10906 = vmax.xlane.f32.xlu1 %v10905_v24  ;;  %v22589_v47 = vpop.f32.mrb[188].mxu0 }
 0xdab   : > { %23532 = vst [vmem:[#allocation45_spill] sm:$0xff] %v22589_v47  ;;  %v22591_v30 = vpop.f32.mrb[189].mxu0 }
 0xdac   : > { %23533 = vst [vmem:[#allocation58_spill] sm:$0xff] %v22591_v30  ;;  %v10908_v50 = vmax.f32 %v22589_v47, %v22591_v30 }
 0xdae   : > { %10909 = vmax.xlane.f32.xlu0 %v10908_v50  ;;  %v22595_v3 = vpop.f32.mrb[190].mxu0 }
 0xdaf   : > { %23534 = vst [vmem:[#allocation52_spill] sm:$0xff] %v22595_v3  ;;  %v22597_v8 = vpop.f32.mrb[191].mxu0 }
 0xdb0   : > { %23535 = vst [vmem:[#allocation60_spill] sm:$0xff] %v22597_v8  ;;  %v10911_v25 = vmax.f32 %v22595_v3, %v22597_v8 }
 0xdb2   : > { %10912 = vmax.xlane.f32.xlu1 %v10911_v25  ;;  %v22601_v44 = vpop.f32.mrb[192].mxu0 }
 0xdb3   : > { %23536 = vst [vmem:[#allocation59_spill] sm:$0xff] %v22601_v44  ;;  %v22603_v20 = vpop.f32.mrb[193].mxu0 }
 0xdb4   : > { %23537 = vst [vmem:[#allocation51_spill] sm:$0xff] %v22603_v20  ;;  %v10914_v24 = vmax.f32 %v22601_v44, %v22603_v20 }
 0xdb6   : > { %10915 = vmax.xlane.f32.xlu0 %v10914_v24  ;;  %v22607_v58 = vpop.f32.mrb[194].mxu0 }
 0xdb7   : > { %23538 = vst [vmem:[#allocation61_spill] sm:$0xff] %v22607_v58  ;;  %v22609_v30 = vpop.f32.mrb[195].mxu0 }
 0xdb8   : > { %23539 = vst [vmem:[#allocation54_spill] sm:$0xff] %v22609_v30  ;;  %v10917_v50 = vmax.f32 %v22607_v58, %v22609_v30 }
 0xdba   : > { %10918 = vmax.xlane.f32.xlu1 %v10917_v50 }
 0xdcb   : > { %v22613_v47 = vpop.xlane.xlu0 %10825 }
 0xdcc   : > { %v11016_v25 = vsub.f32 %v22421_v11, %v22613_v47  ;;  %v11017_v8 = vsub.f32 %v22423_v45, %v22613_v47 }
 0xdce   : > { %v11080_v3 = vmul.f32 1.442695, %v11016_v25  ;;  %v11082_v7 = vmul.f32 1.442695, %v11017_v8 }
 0xdcf   : > { %v22619_v20 = vpop.xlane.xlu0 %10828 }
 0xdd0   : > { %v11018_v24 = vsub.f32 %v22427_v4, %v22619_v20  ;;  %v11019_v44 = vsub.f32 %v22429_v2, %v22619_v20  ;;  %17741 = vpow2.f32 %v11080_v3 }
 0xdd1   : > { %17743 = vpow2.f32 %v11082_v7 }
 0xdd2   : > { %v11084_v50 = vmul.f32 1.442695, %v11018_v24  ;;  %v11086_v30 = vmul.f32 1.442695, %v11019_v44 }
 0xdd3   : > { %v22625_v58 = vpop.xlane.xlu1 %10831 }
 0xdd4   : > { %v11020_v11 = vsub.f32 %v22433_v43, %v22625_v58  ;;  %v11021_v8 = vsub.f32 %v22435_v32, %v22625_v58  ;;  %17745 = vpow2.f32 %v11084_v50 }
 0xdd5   : > { %17747 = vpow2.f32 %v11086_v30 }
 0xdd6   : > { %v11088_v45 = vmul.f32 1.442695, %v11020_v11  ;;  %v11090_v25 = vmul.f32 1.442695, %v11021_v8 }
 0xdd7   : > { %v22631_v4 = vpop.xlane.xlu1 %10834 }
 0xdd8   : > { %v11022_v2 = vsub.f32 %v22439_v6, %v22631_v4  ;;  %v11023_v44 = vsub.f32 %v22441_v61, %v22631_v4  ;;  %17749 = vpow2.f32 %v11088_v45 }
 0xdd9   : > { %17751 = vpow2.f32 %v11090_v25 }
 0xdda   : > { %v11092_v7 = vmul.f32 1.442695, %v11022_v2  ;;  %v11094_v3 = vmul.f32 1.442695, %v11023_v44  ;;  %v17742_v43 = vpop.eup %17741 }
 0xddb   : > { %v22637_v24 = vpop.xlane.xlu0 %10837  ;;  %v17744_v32 = vpop.eup %17743 }
 0xddc   : > { %v11024_v30 = vsub.f32 %v22445_v40, %v22637_v24  ;;  %v11025_v50 = vsub.f32 %v22447_v60, %v22637_v24  ;;  %17753 = vpow2.f32 %v11092_v7  ;;  %11432 = vmatprep.mubr.f32.mxu1 %v17744_v32  ;;  %v11240_v6 = vadd.f32 %v17744_v32, %v17742_v43 }
 0xddd   : > { %17755 = vpow2.f32 %v11094_v3  ;;  %11433 = vmatmul.mubr.f32.vlgmr.msra.gmra.mrb[44].mxu1 %v17742_v43 }
 0xdde   : > { %v11096_v11 = vmul.f32 1.442695, %v11024_v30  ;;  %v11098_v61 = vmul.f32 1.442695, %v11025_v50  ;;  %v17746_v8 = vpop.eup %17745  ;;  %11241 = vadd.xlane.f32.xlu0 %v11240_v6 }
 0xddf   : > { %v22643_v45 = vpop.xlane.xlu1 %10840  ;;  %v17748_v25 = vpop.eup %17747 }
 0xde0   : > { %v11026_v2 = vsub.f32 %v22451_v28, %v22643_v45  ;;  %v11027_v40 = vsub.f32 %v22453_v37, %v22643_v45  ;;  %17757 = vpow2.f32 %v11096_v11  ;;  %11437 = vmatprep.mubr.f32.mxu1 %v17748_v25  ;;  %v11243_v60 = vadd.f32 %v17748_v25, %v17746_v8 }
 0xde1   : > { %17759 = vpow2.f32 %v11098_v61  ;;  %11438 = vmatmul.mubr.f32.gmra.mrb[46].mxu1 %v17746_v8 }
 0xde2   : > { %v11100_v44 = vmul.f32 1.442695, %v11026_v2  ;;  %v11102_v7 = vmul.f32 1.442695, %v11027_v40  ;;  %v17750_v3 = vpop.eup %17749  ;;  %11244 = vadd.xlane.f32.xlu1 %v11243_v60 }
 0xde3   : > { %v22649_v43 = vpop.xlane.xlu0 %10843  ;;  %v17752_v32 = vpop.eup %17751 }
 0xde4   : > { %v11028_v30 = vsub.f32 %v22457_v36, %v22649_v43  ;;  %v11029_v28 = vsub.f32 %v22459_v5, %v22649_v43  ;;  %17761 = vpow2.f32 %v11100_v44  ;;  %11442 = vmatprep.mubr.f32.mxu1 %v17752_v32  ;;  %v11246_v37 = vadd.f32 %v17752_v32, %v17750_v3 }
 0xde5   : > { %17763 = vpow2.f32 %v11102_v7  ;;  %11443 = vmatmul.mubr.f32.gmra.mrb[48].mxu1 %v17750_v3 }
 0xde6   : > { %v11104_v50 = vmul.f32 1.442695, %v11028_v30  ;;  %v11106_v6 = vmul.f32 1.442695, %v11029_v28  ;;  %v17754_v11 = vpop.eup %17753  ;;  %11247 = vadd.xlane.f32.xlu0 %v11246_v37 }
 0xde7   : > { %v22655_v61 = vpop.xlane.xlu1 %10846  ;;  %v17756_v8 = vpop.eup %17755 }
 0xde8   : > { %v11030_v25 = vsub.f32 %v22463_v17, %v22655_v61  ;;  %v11031_v36 = vsub.f32 %v22465_v14, %v22655_v61  ;;  %17765 = vpow2.f32 %v11104_v50  ;;  %11447 = vmatprep.mubr.f32.mxu1 %v17756_v8  ;;  %v11249_v5 = vadd.f32 %v17756_v8, %v17754_v11 }
 0xde9   : > { %17767 = vpow2.f32 %v11106_v6  ;;  %11448 = vmatmul.mubr.f32.gmra.mrb[50].mxu1 %v17754_v11 }
 0xdea   : > { %v11108_v2 = vmul.f32 1.442695, %v11030_v25  ;;  %v11110_v40 = vmul.f32 1.442695, %v11031_v36  ;;  %v17758_v60 = vpop.eup %17757  ;;  %11250 = vadd.xlane.f32.xlu1 %v11249_v5 }
 0xdeb   : > { %v22661_v44 = vpop.xlane.xlu0 %10849  ;;  %v17760_v7 = vpop.eup %17759 }
 0xdec   : > { %v11032_v3 = vsub.f32 %v22469_v35, %v22661_v44  ;;  %v11033_v17 = vsub.f32 %v22471_v19, %v22661_v44  ;;  %17769 = vpow2.f32 %v11108_v2  ;;  %11452 = vmatprep.mubr.f32.mxu1 %v17760_v7  ;;  %v11252_v14 = vadd.f32 %v17760_v7, %v17758_v60 }
 0xded   : > { %17771 = vpow2.f32 %v11110_v40  ;;  %11453 = vmatmul.mubr.f32.gmra.mrb[52].mxu1 %v17758_v60 }
 0xdee   : > { %v11112_v32 = vmul.f32 1.442695, %v11032_v3  ;;  %v11114_v30 = vmul.f32 1.442695, %v11033_v17  ;;  %v17762_v28 = vpop.eup %17761  ;;  %11253 = vadd.xlane.f32.xlu0 %v11252_v14 }
 0xdef   : > { %v22667_v37 = vpop.xlane.xlu1 %10852  ;;  %v17764_v50 = vpop.eup %17763 }
 0xdf0   : > { %v11034_v6 = vsub.f32 %v22475_v42, %v22667_v37  ;;  %v11035_v35 = vsub.f32 %v22477_v52, %v22667_v37  ;;  %17773 = vpow2.f32 %v11112_v32  ;;  %11457 = vmatprep.mubr.f32.mxu1 %v17764_v50  ;;  %v11255_v19 = vadd.f32 %v17764_v50, %v17762_v28 }
 0xdf1   : > { %17775 = vpow2.f32 %v11114_v30  ;;  %11458 = vmatmul.mubr.f32.gmra.mrb[54].mxu1 %v17762_v28 }
 0xdf2   : > { %v11116_v11 = vmul.f32 1.442695, %v11034_v6  ;;  %v11118_v8 = vmul.f32 1.442695, %v11035_v35  ;;  %v17766_v25 = vpop.eup %17765  ;;  %11256 = vadd.xlane.f32.xlu0 %v11255_v19 }
 0xdf3   : > { %v22673_v36 = vpop.xlane.xlu0 %10855  ;;  %v17768_v5 = vpop.eup %17767 }
 0xdf4   : > { %v11036_v2 = vsub.f32 %v22481_v31, %v22673_v36  ;;  %v11037_v42 = vsub.f32 %v22483_v29, %v22673_v36  ;;  %17777 = vpow2.f32 %v11116_v11  ;;  %11462 = vmatprep.mubr.f32.mxu1 %v17768_v5  ;;  %v11258_v52 = vadd.f32 %v17768_v5, %v17766_v25 }
 0xdf5   : > { %17779 = vpow2.f32 %v11118_v8  ;;  %11463 = vmatmul.mubr.f32.gmra.mrb[56].mxu1 %v17766_v25 }
 0xdf6   : > { %v11120_v40 = vmul.f32 1.442695, %v11036_v2  ;;  %v11122_v60 = vmul.f32 1.442695, %v11037_v42  ;;  %v17770_v7 = vpop.eup %17769  ;;  %11259 = vadd.xlane.f32.xlu0 %v11258_v52 }
 0xdf7   : > { %v22679_v3 = vpop.xlane.xlu1 %10858  ;;  %v17772_v17 = vpop.eup %17771 }
 0xdf8   : > { %v11038_v14 = vsub.f32 %v22487_v57, %v22679_v3  ;;  %v11039_v31 = vsub.f32 %v22489_v48, %v22679_v3  ;;  %17781 = vpow2.f32 %v11120_v40  ;;  %11467 = vmatprep.mubr.f32.mxu1 %v17772_v17  ;;  %v11261_v29 = vadd.f32 %v17772_v17, %v17770_v7 }
 0xdf9   : > { %17783 = vpow2.f32 %v11122_v60  ;;  %11468 = vmatmul.mubr.f32.gmra.mrb[58].mxu1 %v17770_v7 }
 0xdfa   : > { %v11124_v32 = vmul.f32 1.442695, %v11038_v14  ;;  %v11126_v30 = vmul.f32 1.442695, %v11039_v31  ;;  %v17774_v28 = vpop.eup %17773  ;;  %11262 = vadd.xlane.f32.xlu0 %v11261_v29 }
 0xdfb   : > { %v22685_v50 = vpop.xlane.xlu0 %10861  ;;  %v17776_v6 = vpop.eup %17775 }
 0xdfc   : > { %v11040_v35 = vsub.f32 %v22493_v26, %v22685_v50  ;;  %v11041_v57 = vsub.f32 %v22495_v10, %v22685_v50  ;;  %17785 = vpow2.f32 %v11124_v32  ;;  %11472 = vmatprep.mubr.f32.mxu1 %v17776_v6  ;;  %v11264_v48 = vadd.f32 %v17776_v6, %v17774_v28 }
 0xdfd   : > { %17787 = vpow2.f32 %v11126_v30  ;;  %11473 = vmatmul.mubr.f32.gmra.mrb[60].mxu1 %v17774_v28 }
 0xdfe   : > { %v11128_v19 = vmul.f32 1.442695, %v11040_v35  ;;  %v11130_v11 = vmul.f32 1.442695, %v11041_v57  ;;  %v17778_v8 = vpop.eup %17777  ;;  %11265 = vadd.xlane.f32.xlu0 %v11264_v48 }
 0xdff   : > { %v22691_v25 = vpop.xlane.xlu1 %10864  ;;  %v17780_v5 = vpop.eup %17779 }
 0xe00   : > { %v11042_v2 = vsub.f32 %v22499_v18, %v22691_v25  ;;  %v11043_v26 = vsub.f32 %v22501_v34, %v22691_v25  ;;  %17789 = vpow2.f32 %v11128_v19  ;;  %11477 = vmatprep.mubr.f32.mxu1 %v17780_v5  ;;  %v11267_v10 = vadd.f32 %v17780_v5, %v17778_v8 }
 0xe01   : > { %17791 = vpow2.f32 %v11130_v11  ;;  %11478 = vmatmul.mubr.f32.gmra.mrb[62].mxu1 %v17778_v8 }
 0xe02   : > { %v11132_v42 = vmul.f32 1.442695, %v11042_v2  ;;  %v11134_v52 = vmul.f32 1.442695, %v11043_v26  ;;  %v17782_v40 = vpop.eup %17781  ;;  %11268 = vadd.xlane.f32.xlu0 %v11267_v10 }
 0xe03   : > { %v22697_v60 = vpop.xlane.xlu0 %10867  ;;  %v17784_v7 = vpop.eup %17783 }
 0xe04   : > { %v11044_v17 = vsub.f32 %v22505_v56, %v22697_v60  ;;  %v11045_v18 = vsub.f32 %v22507_v49, %v22697_v60  ;;  %17793 = vpow2.f32 %v11132_v42  ;;  %11482 = vmatprep.mubr.f32.mxu1 %v17784_v7  ;;  %v11270_v34 = vadd.f32 %v17784_v7, %v17782_v40 }
 0xe05   : > { %17795 = vpow2.f32 %v11134_v52  ;;  %11483 = vmatmul.mubr.f32.gmra.mrb[64].mxu1 %v17782_v40 }
 0xe06   : > { %v11136_v14 = vmul.f32 1.442695, %v11044_v17  ;;  %v11138_v31 = vmul.f32 1.442695, %v11045_v18  ;;  %v17786_v29 = vpop.eup %17785  ;;  %11271 = vadd.xlane.f32.xlu0 %v11270_v34  ;;  %v11689_v18 = vld [vmem:[%s23050_s25] sm:$0xff] }
 0xe07   : > { %v22703_v32 = vpop.xlane.xlu1 %10870  ;;  %v17788_v30 = vpop.eup %17787 }
 0xe08   : > { %v11046_v28 = vsub.f32 %v22511_v16, %v22703_v32  ;;  %v11047_v56 = vsub.f32 %v22513_v55, %v22703_v32  ;;  %17797 = vpow2.f32 %v11136_v14  ;;  %11487 = vmatprep.mubr.f32.mxu1 %v17788_v30  ;;  %v11273_v49 = vadd.f32 %v17788_v30, %v17786_v29 }
 0xe09   : > { %17799 = vpow2.f32 %v11138_v31  ;;  %11488 = vmatmul.mubr.f32.gmra.mrb[66].mxu1 %v17786_v29 }
 0xe0a   : > { %v11140_v6 = vmul.f32 1.442695, %v11046_v28  ;;  %v11142_v35 = vmul.f32 1.442695, %v11047_v56  ;;  %v17790_v57 = vpop.eup %17789  ;;  %11274 = vadd.xlane.f32.xlu0 %v11273_v49 }
 0xe0b   : > { %v22709_v48 = vpop.xlane.xlu0 %10873  ;;  %v17792_v19 = vpop.eup %17791 }
 0xe0c   : > { %v11048_v11 = vsub.f32 %v22517_v21, %v22709_v48  ;;  %v11049_v16 = vsub.f32 %v22519_v62, %v22709_v48  ;;  %17801 = vpow2.f32 %v11140_v6  ;;  %11492 = vmatprep.mubr.f32.mxu1 %v17792_v19  ;;  %v11276_v55 = vadd.f32 %v17792_v19, %v17790_v57 }
 0xe0d   : > { %17803 = vpow2.f32 %v11142_v35  ;;  %11493 = vmatmul.mubr.f32.gmra.mrb[68].mxu1 %v17790_v57 }
 0xe0e   : > { %v11144_v8 = vmul.f32 1.442695, %v11048_v11  ;;  %v11146_v5 = vmul.f32 1.442695, %v11049_v16  ;;  %v17794_v2 = vpop.eup %17793  ;;  %11277 = vadd.xlane.f32.xlu0 %v11276_v55 }
 0xe0f   : > { %v22715_v26 = vpop.xlane.xlu1 %10876  ;;  %v17796_v10 = vpop.eup %17795 }
 0xe10   : > { %v11050_v42 = vsub.f32 %v22523_v41, %v22715_v26  ;;  %v11051_v21 = vsub.f32 %v22525_v54, %v22715_v26  ;;  %17805 = vpow2.f32 %v11144_v8  ;;  %11497 = vmatprep.mubr.f32.mxu1 %v17796_v10  ;;  %v11279_v62 = vadd.f32 %v17796_v10, %v17794_v2  ;;  %v11690_v41 = vld [vmem:[%s23050_s25 + $0x8] sm:$0xff] }
 0xe11   : > { %17807 = vpow2.f32 %v11146_v5  ;;  %11498 = vmatmul.mubr.f32.gmra.mrb[70].mxu1 %v17794_v2  ;;  %v16782_v29 = vpack.c.bf16 %v11690_v41, %v11689_v18 }
 0xe12   : > { %v11148_v52 = vmul.f32 1.442695, %v11050_v42  ;;  %v11150_v40 = vmul.f32 1.442695, %v11051_v21  ;;  %v17798_v7 = vpop.eup %17797  ;;  %11280 = vadd.xlane.f32.xlu0 %v11279_v62  ;;  %v11691_v21 = vld [vmem:[%s23050_s25 + $0x10] sm:$0xff] }
 0xe13   : > { %v22721_v17 = vpop.xlane.xlu0 %10879  ;;  %v17800_v54 = vpop.eup %17799  ;;  %16783 = vmatprep.subr.bf16.mxu0 %v16782_v29  ;;  %16814 = vmatprep.subr.bf16.mxu1 %v16782_v29 }
 0xe14   : > { %v11052_v34 = vsub.f32 %v22529_v9, %v22721_v17  ;;  %v11053_v14 = vsub.f32 %v22531_v15, %v22721_v17  ;;  %17809 = vpow2.f32 %v11148_v52  ;;  %11502 = vmatprep.mubr.f32.mxu1 %v17800_v54  ;;  %v11282_v31 = vadd.f32 %v17800_v54, %v17798_v7  ;;  %16785 = vmatpush3.bf16.msra.mxu0 %v16782_v29 }
 0xe15   : > { %17811 = vpow2.f32 %v11150_v40  ;;  %11503 = vmatmul.mubr.f32.gmra.mrb[72].mxu1 %v17798_v7 }
 0xe16   : > { %v11152_v30 = vmul.f32 1.442695, %v11052_v34  ;;  %v11154_v28 = vmul.f32 1.442695, %v11053_v14  ;;  %v17802_v56 = vpop.eup %17801  ;;  %11283 = vadd.xlane.f32.xlu0 %v11282_v31  ;;  %16822 = vmatpush3.bf16.msra.mxu1 %v16782_v29 }
 0xe17   : > { %v22733_v49 = vpop.xlane.xlu1 %10882  ;;  %v17804_v6 = vpop.eup %17803 }
 0xe18   : > { %v11054_v9 = vsub.f32 %v22535_v23, %v22733_v49  ;;  %v11055_v15 = vsub.f32 %v22537_v53, %v22733_v49  ;;  %17813 = vpow2.f32 %v11152_v30  ;;  %11507 = vmatprep.mubr.f32.mxu1 %v17804_v6  ;;  %v11285_v35 = vadd.f32 %v17804_v6, %v17802_v56 }
 0xe19   : > { %17815 = vpow2.f32 %v11154_v28  ;;  %11508 = vmatmul.mubr.f32.gmra.mrb[74].mxu1 %v17802_v56 }
 0xe1a   : > { %v11156_v57 = vmul.f32 1.442695, %v11054_v9  ;;  %v11158_v19 = vmul.f32 1.442695, %v11055_v15  ;;  %v17806_v11 = vpop.eup %17805  ;;  %11286 = vadd.xlane.f32.xlu0 %v11285_v35 }
 0xe1b   : > { %v22739_v16 = vpop.xlane.xlu0 %10885  ;;  %v17808_v55 = vpop.eup %17807 }
 0xe1c   : > { %v11056_v23 = vsub.f32 %v22541_v22, %v22739_v16  ;;  %v11057_v53 = vsub.f32 %v22543_v13, %v22739_v16  ;;  %17817 = vpow2.f32 %v11156_v57  ;;  %11512 = vmatprep.mubr.f32.mxu1 %v17808_v55  ;;  %v11288_v8 = vadd.f32 %v17808_v55, %v17806_v11  ;;  %v11692_v22 = vld [vmem:[%s23050_s25 + $0x18] sm:$0xff] }
 0xe1d   : > { %17819 = vpow2.f32 %v11158_v19  ;;  %11513 = vmatmul.mubr.f32.gmra.mrb[76].mxu1 %v17806_v11  ;;  %v16786_v7 = vpack.c.bf16 %v11692_v22, %v11691_v21 }
 0xe1e   : > { %v11160_v5 = vmul.f32 1.442695, %v11056_v23  ;;  %v11162_v2 = vmul.f32 1.442695, %v11057_v53  ;;  %v17810_v10 = vpop.eup %17809  ;;  %11289 = vadd.xlane.f32.xlu0 %v11288_v8 }
 0xe1f   : > { %v22745_v42 = vpop.xlane.xlu1 %10888  ;;  %v17812_v13 = vpop.eup %17811  ;;  %16787 = vmatprep.subr.bf16.mxu0 %v16786_v7  ;;  %16815 = vmatprep.subr.bf16.mxu1 %v16786_v7 }
 0xe20   : > { %v11058_v62 = vsub.f32 %v22547_v59, %v22745_v42  ;;  %v11059_v52 = vsub.f32 %v22549_v0, %v22745_v42  ;;  %17821 = vpow2.f32 %v11160_v5  ;;  %11517 = vmatprep.mubr.f32.mxu1 %v17812_v13  ;;  %v11291_v40 = vadd.f32 %v17812_v13, %v17810_v10  ;;  %v11693_v59 = vld [vmem:[%s23050_s25 + $0x20] sm:$0xff]  ;;  %v11694_v0 = vld [vmem:[%s23050_s25 + $0x28] sm:$0xff]  ;;  %16789 = vmatpush3.bf16.msra.mxu0 %v16786_v7 }
 0xe21   : > { %17823 = vpow2.f32 %v11162_v2  ;;  %11518 = vmatmul.mubr.f32.gmra.mrb[78].mxu1 %v17810_v10  ;;  %v16790_v28 = vpack.c.bf16 %v11694_v0, %v11693_v59 }
 0xe22   : > { %v11164_v18 = vmul.f32 1.442695, %v11058_v62  ;;  %v11166_v41 = vmul.f32 1.442695, %v11059_v52  ;;  %v17814_v54 = vpop.eup %17813  ;;  %11292 = vadd.xlane.f32.xlu0 %v11291_v40  ;;  %16823 = vmatpush3.bf16.msra.mxu1 %v16786_v7 }
 0xe23   : > { %v22757_v34 = vpop.xlane.xlu0 %10891  ;;  %v17816_v14 = vpop.eup %17815  ;;  %16791 = vmatprep.subr.bf16.mxu0 %v16790_v28  ;;  %16816 = vmatprep.subr.bf16.mxu1 %v16790_v28 }
 0xe24   : > { %v11060_v31 = vsub.f32 %v22553_v27, %v22757_v34  ;;  %v11061_v29 = vsub.f32 %v22555_v46, %v22757_v34  ;;  %17825 = vpow2.f32 %v11164_v18  ;;  %11522 = vmatprep.mubr.f32.mxu1 %v17816_v14  ;;  %v11294_v30 = vadd.f32 %v17816_v14, %v17814_v54  ;;  %v11695_v27 = vld [vmem:[%s23050_s25 + $0x30] sm:$0xff]  ;;  %v11696_v46 = vld [vmem:[%s23050_s25 + $0x38] sm:$0xff]  ;;  %16793 = vmatpush3.bf16.msra.mxu0 %v16790_v28 }
 0xe25   : > { %17827 = vpow2.f32 %v11166_v41  ;;  %11523 = vmatmul.mubr.f32.gmra.mrb[80].mxu1 %v17814_v54  ;;  %v16794_v55 = vpack.c.bf16 %v11696_v46, %v11695_v27 }
 0xe26   : > { %v11168_v56 = vmul.f32 1.442695, %v11060_v31  ;;  %v11170_v6 = vmul.f32 1.442695, %v11061_v29  ;;  %v17818_v9 = vpop.eup %17817  ;;  %11295 = vadd.xlane.f32.xlu1 %v11294_v30  ;;  %16824 = vmatpush3.bf16.msra.mxu1 %v16790_v28  ;;  %v23540_v28 = vld [vmem:[#allocation43_spill] sm:$0xff] }
 0xe27   : > { %v22769_v15 = vpop.xlane.xlu1 %10894  ;;  %v17820_v35 = vpop.eup %17819  ;;  %16795 = vmatprep.subr.bf16.mxu0 %v16794_v55  ;;  %16817 = vmatprep.subr.bf16.mxu1 %v16794_v55 }
 0xe28   : > { %v11062_v57 = vsub.f32 %v22559_v33, %v22769_v15  ;;  %v11063_v19 = vsub.f32 %v22561_v12, %v22769_v15  ;;  %17829 = vpow2.f32 %v11168_v56  ;;  %11527 = vmatprep.mubr.f32.mxu1 %v17820_v35  ;;  %v11297_v11 = vadd.f32 %v17820_v35, %v17818_v9  ;;  %v11697_v33 = vld [vmem:[%s23050_s25 + $0x40] sm:$0xff]  ;;  %v11698_v12 = vld [vmem:[%s23050_s25 + $0x48] sm:$0xff]  ;;  %16797 = vmatpush3.bf16.msra.mxu0 %v16794_v55 }
 0xe29   : > { %17831 = vpow2.f32 %v11170_v6  ;;  %11528 = vmatmul.mubr.f32.gmra.mrb[82].mxu1 %v17818_v9  ;;  %v16798_v13 = vpack.c.bf16 %v11698_v12, %v11697_v33  ;;  %v11701_v6 = vld [vmem:[%s23050_s25 + $0x60] sm:$0xff]  ;;  %v11702_v9 = vld [vmem:[%s23050_s25 + $0x68] sm:$0xff]  ;;  %v11703_v33 = vld [vmem:[%s23050_s25 + $0x70] sm:$0xff] }
 0xe2a   : > { %v11172_v23 = vmul.f32 1.442695, %v11062_v57  ;;  %v11174_v53 = vmul.f32 1.442695, %v11063_v19  ;;  %v17822_v8 = vpop.eup %17821  ;;  %11298 = vadd.xlane.f32.xlu1 %v11297_v11  ;;  %16825 = vmatpush3.bf16.msra.mxu1 %v16794_v55  ;;  %v16806_v46 = vpack.c.bf16 %v11702_v9, %v11701_v6  ;;  %v23541_v55 = vld [vmem:[#allocation53_spill] sm:$0xff]  ;;  %v11704_v12 = vld [vmem:[%s23050_s25 + $0x78] sm:$0xff] }
 0xe2b   : > { %v22781_v5 = vpop.xlane.xlu0 %10897  ;;  %v17824_v2 = vpop.eup %17823  ;;  %16799 = vmatprep.subr.bf16.mxu0 %v16798_v13  ;;  %16818 = vmatprep.subr.bf16.mxu1 %v16798_v13 }
 0xe2c   : > { %v11064_v10 = vsub.f32 %v22565_v63, %v22781_v5  ;;  %v11065_v21 = vsub.f32 %v22567_v38, %v22781_v5  ;;  %17833 = vpow2.f32 %v11172_v23  ;;  %11532 = vmatprep.mubr.f32.mxu1 %v17824_v2  ;;  %v11300_v22 = vadd.f32 %v17824_v2, %v17822_v8  ;;  %v11699_v63 = vld [vmem:[%s23050_s25 + $0x50] sm:$0xff]  ;;  %v11700_v38 = vld [vmem:[%s23050_s25 + $0x58] sm:$0xff]  ;;  %16801 = vmatpush3.bf16.msra.mxu0 %v16798_v13 }
 0xe2d   : > { %17835 = vpow2.f32 %v11174_v53  ;;  %11533 = vmatmul.mubr.f32.gmra.mrb[84].mxu1 %v17822_v8  ;;  %v16802_v0 = vpack.c.bf16 %v11700_v38, %v11699_v63  ;;  %v23542_v53 = vld [vmem:[#allocation49_spill] sm:$0xff]  ;;  %v23544_v38 = vld [vmem:[#allocation58_spill] sm:$0xff] }
 0xe2e   : > { %v11176_v62 = vmul.f32 1.442695, %v11064_v10  ;;  %v11178_v52 = vmul.f32 1.442695, %v11065_v21  ;;  %v17826_v40 = vpop.eup %17825  ;;  %11301 = vadd.xlane.f32.xlu1 %v11300_v22  ;;  %16826 = vmatpush3.bf16.msra.mxu1 %v16798_v13  ;;  %v16810_v10 = vpack.c.bf16 %v11704_v12, %v11703_v33 }
 0xe2f   : > { %v22793_v7 = vpop.xlane.xlu1 %10900  ;;  %v17828_v18 = vpop.eup %17827  ;;  %16803 = vmatprep.subr.bf16.mxu0 %v16802_v0  ;;  %16819 = vmatprep.subr.bf16.mxu1 %v16802_v0 }
 0xe30   : > { %v11066_v41 = vsub.f32 %v22571_v51, %v22793_v7  ;;  %v11067_v54 = vsub.f32 %v22573_v1, %v22793_v7  ;;  %17837 = vpow2.f32 %v11176_v62  ;;  %11537 = vmatprep.mubr.f32.mxu1 %v17828_v18  ;;  %v11303_v59 = vadd.f32 %v17828_v18, %v17826_v40  ;;  %16805 = vmatpush3.bf16.msra.mxu0 %v16802_v0 }
 0xe31   : > { %17839 = vpow2.f32 %v11178_v52  ;;  %11538 = vmatmul.mubr.f32.gmra.mrb[86].mxu1 %v17826_v40  ;;  %16807 = vmatprep.subr.bf16.mxu0 %v16806_v46  ;;  %v23543_v40 = vld [vmem:[#allocation45_spill] sm:$0xff] }
 0xe32   : > { %v11180_v14 = vmul.f32 1.442695, %v11066_v41  ;;  %v11182_v31 = vmul.f32 1.442695, %v11067_v54  ;;  %v17830_v29 = vpop.eup %17829  ;;  %11304 = vadd.xlane.f32.xlu1 %v11303_v59  ;;  %16827 = vmatpush3.bf16.msra.mxu1 %v16802_v0 }
 0xe33   : > { %v22805_v30 = vpop.xlane.xlu0 %10903  ;;  %v17832_v51 = vpop.eup %17831  ;;  %16820 = vmatprep.subr.bf16.mxu1 %v16806_v46 }
 0xe34   : > { %v11068_v1 = vsub.f32 %v22577_v39, %v22805_v30  ;;  %v11069_v56 = vsub.f32 %v23540_v28, %v22805_v30  ;;  %17841 = vpow2.f32 %v11180_v14  ;;  %11542 = vmatprep.mubr.f32.mxu1 %v17832_v51  ;;  %v11306_v27 = vadd.f32 %v17832_v51, %v17830_v29  ;;  %16809 = vmatpush3.bf16.msra.mxu0 %v16806_v46 }
 0xe35   : > { %17843 = vpow2.f32 %v11182_v31  ;;  %11543 = vmatmul.mubr.f32.gmra.mrb[88].mxu1 %v17830_v29  ;;  %16811 = vmatprep.subr.bf16.mxu0 %v16810_v10  ;;  %v23545_v29 = vld [vmem:[#allocation52_spill] sm:$0xff] }
 0xe36   : > { %v11184_v39 = vmul.f32 1.442695, %v11068_v1  ;;  %v11186_v35 = vmul.f32 1.442695, %v11069_v56  ;;  %v17834_v57 = vpop.eup %17833  ;;  %11307 = vadd.xlane.f32.xlu1 %v11306_v27  ;;  %16828 = vmatpush3.bf16.msra.mxu1 %v16806_v46  ;;  %v23546_v1 = vld [vmem:[#allocation60_spill] sm:$0xff] }
 0xe37   : > { %v22817_v19 = vpop.xlane.xlu1 %10906  ;;  %v17836_v11 = vpop.eup %17835  ;;  %16821 = vmatprep.subr.bf16.mxu1 %v16810_v10 }
 0xe38   : > { %v11070_v23 = vsub.f32 %v23541_v55, %v22817_v19  ;;  %v11071_v8 = vsub.f32 %v23542_v53, %v22817_v19  ;;  %17845 = vpow2.f32 %v11184_v39  ;;  %11547 = vmatprep.mubr.f32.mxu1 %v17836_v11  ;;  %v11309_v2 = vadd.f32 %v17836_v11, %v17834_v57  ;;  %16813 = vmatpush3.bf16.msra.mxu0 %v16810_v10  ;;  %v23548_v11 = vld [vmem:[#allocation51_spill] sm:$0xff] }
 0xe39   : > { %17847 = vpow2.f32 %v11186_v35  ;;  %11548 = vmatmul.mubr.f32.gmra.mrb[90].mxu1 %v17834_v57  ;;  %v23547_v35 = vld [vmem:[#allocation59_spill] sm:$0xff] }
 0xe3a   : > { %v11188_v21 = vmul.f32 1.442695, %v11070_v23  ;;  %v11190_v22 = vmul.f32 1.442695, %v11071_v8  ;;  %v17838_v13 = vpop.eup %17837  ;;  %11310 = vadd.xlane.f32.xlu1 %v11309_v2  ;;  %16829 = vmatpush3.bf16.msra.mxu1 %v16810_v10  ;;  %v23549_v10 = vld [vmem:[#allocation61_spill] sm:$0xff] }
 0xe3b   : > { %v22829_v62 = vpop.xlane.xlu0 %10909  ;;  %v17840_v52 = vpop.eup %17839 }
 0xe3c   : > { %v11072_v63 = vsub.f32 %v23543_v40, %v22829_v62  ;;  %v11073_v18 = vsub.f32 %v23544_v38, %v22829_v62  ;;  %17849 = vpow2.f32 %v11188_v21  ;;  %11552 = vmatprep.mubr.f32.mxu1 %v17840_v52  ;;  %v11312_v41 = vadd.f32 %v17840_v52, %v17838_v13 }
 0xe3d   : > { %17851 = vpow2.f32 %v11190_v22  ;;  %11553 = vmatmul.mubr.f32.gmra.mrb[92].mxu1 %v17838_v13  ;;  %v23550_v22 = vld [vmem:[#allocation54_spill] sm:$0xff] }
 0xe3e   : > { %v11192_v54 = vmul.f32 1.442695, %v11072_v63  ;;  %v11194_v59 = vmul.f32 1.442695, %v11073_v18  ;;  %v17842_v0 = vpop.eup %17841  ;;  %11313 = vadd.xlane.f32.xlu1 %v11312_v41 }
 0xe3f   : > { %v22835_v14 = vpop.xlane.xlu1 %10912  ;;  %v17844_v31 = vpop.eup %17843 }
 0xe40   : > { %v11074_v51 = vsub.f32 %v23545_v29, %v22835_v14  ;;  %v11075_v28 = vsub.f32 %v23546_v1, %v22835_v14  ;;  %17853 = vpow2.f32 %v11192_v54  ;;  %11557 = vmatprep.mubr.f32.mxu1 %v17844_v31  ;;  %v11315_v56 = vadd.f32 %v17844_v31, %v17842_v0 }
 0xe41   : > { %17855 = vpow2.f32 %v11194_v59  ;;  %11558 = vmatmul.mubr.f32.gmra.mrb[94].mxu1 %v17842_v0 }
 0xe42   : > { %v11196_v6 = vmul.f32 1.442695, %v11074_v51  ;;  %v11198_v9 = vmul.f32 1.442695, %v11075_v28  ;;  %v17846_v27 = vpop.eup %17845  ;;  %11316 = vadd.xlane.f32.xlu1 %v11315_v56 }
 0xe43   : > { %v22841_v46 = vpop.xlane.xlu0 %10915  ;;  %v17848_v39 = vpop.eup %17847 }
 0xe44   : > { %v11076_v57 = vsub.f32 %v23547_v35, %v22841_v46  ;;  %v11077_v55 = vsub.f32 %v23548_v11, %v22841_v46  ;;  %17857 = vpow2.f32 %v11196_v6  ;;  %11562 = vmatprep.mubr.f32.mxu1 %v17848_v39  ;;  %v11318_v23 = vadd.f32 %v17848_v39, %v17846_v27 }
 0xe45   : > { %17859 = vpow2.f32 %v11198_v9  ;;  %11563 = vmatmul.mubr.f32.gmra.mrb[96].mxu1 %v17846_v27  ;;  %v10920_v6 = vsub.f32 -inf, %v22613_v47  ;;  %v10921_v39 = vsub.f32 -inf, %v22619_v20  ;;  %v10922_v11 = vsub.f32 -inf, %v22625_v58 }
 0xe46   : > { %v11200_v53 = vmul.f32 1.442695, %v11076_v57  ;;  %v11202_v8 = vmul.f32 1.442695, %v11077_v55  ;;  %v17850_v33 = vpop.eup %17849  ;;  %11319 = vadd.xlane.f32.xlu1 %v11318_v23  ;;  %v10925_v20 = vsub.f32 -inf, %v22643_v45 }
 0xe47   : > { %v22847_v12 = vpop.xlane.xlu1 %10918  ;;  %v17852_v2 = vpop.eup %17851  ;;  %v10952_v27 = vmul.f32 1.442695, %v10920_v6  ;;  %v10954_v57 = vmul.f32 1.442695, %v10921_v39  ;;  %v10956_v23 = vmul.f32 1.442695, %v10922_v11 }
 0xe48   : > { %v11078_v21 = vsub.f32 %v23549_v10, %v22847_v12  ;;  %v11079_v13 = vsub.f32 %v23550_v22, %v22847_v12  ;;  %17861 = vpow2.f32 %v11200_v53  ;;  %11567 = vmatprep.mubr.f32.mxu1 %v17852_v2  ;;  %v11321_v52 = vadd.f32 %v17852_v2, %v17850_v33 }
 0xe49   : > { %17863 = vpow2.f32 %v11202_v8  ;;  %11568 = vmatmul.mubr.f32.gmra.mrb[98].mxu1 %v17850_v33  ;;  %v10923_v53 = vsub.f32 -inf, %v22631_v4  ;;  %v10924_v33 = vsub.f32 -inf, %v22637_v24 }
 0xe4a   : > { %v11204_v40 = vmul.f32 1.442695, %v11078_v21  ;;  %v11206_v63 = vmul.f32 1.442695, %v11079_v13  ;;  %v17854_v38 = vpop.eup %17853  ;;  %11322 = vadd.xlane.f32.xlu1 %v11321_v52  ;;  %v10962_v52 = vmul.f32 1.442695, %v10925_v20 }
 0xe4b   : > { %v17856_v18 = vpop.eup %17855  ;;  %v10958_v8 = vmul.f32 1.442695, %v10923_v53  ;;  %v10960_v10 = vmul.f32 1.442695, %v10924_v33  ;;  %v10930_v33 = vsub.f32 -inf, %v22673_v36 }
 0xe4c   : > { %17865 = vpow2.f32 %v11204_v40  ;;  %11572 = vmatprep.mubr.f32.mxu1 %v17856_v18  ;;  %v11324_v41 = vadd.f32 %v17856_v18, %v17854_v38  ;;  %v10926_v40 = vsub.f32 -inf, %v22649_v43 }
 0xe4d   : > { %17867 = vpow2.f32 %v11206_v63  ;;  %11573 = vmatmul.mubr.f32.gmra.mrb[100].mxu1 %v17854_v38 }
 0xe4e   : > { %v17858_v54 = vpop.eup %17857  ;;  %11325 = vadd.xlane.f32.xlu1 %v11324_v41  ;;  %17869 = vpow2.f32 %v10952_v27  ;;  %v10964_v18 = vmul.f32 1.442695, %v10926_v40  ;;  %v10927_v41 = vsub.f32 -inf, %v22655_v61 }
 0xe4f   : > { %v17860_v59 = vpop.eup %17859  ;;  %17871 = vpow2.f32 %v10954_v57 }
 0xe50   : > { %11577 = vmatprep.mubr.f32.mxu1 %v17860_v59  ;;  %v11327_v0 = vadd.f32 %v17860_v59, %v17858_v54  ;;  %17873 = vpow2.f32 %v10956_v23 }
 0xe51   : > { %11578 = vmatmul.mubr.f32.gmra.mrb[102].mxu1 %v17858_v54  ;;  %17875 = vpow2.f32 %v10958_v8 }
 0xe52   : > { %v17862_v31 = vpop.eup %17861  ;;  %11328 = vadd.xlane.f32.xlu1 %v11327_v0  ;;  %17877 = vpow2.f32 %v10960_v10 }
 0xe53   : > { %v17864_v29 = vpop.eup %17863 }
 0xe54   : > { %11582 = vmatprep.mubr.f32.mxu1 %v17864_v29  ;;  %v11330_v51 = vadd.f32 %v17864_v29, %v17862_v31  ;;  %v10928_v29 = vsub.f32 -inf, %v22661_v44 }
 0xe55   : > { %11583 = vmatmul.mubr.f32.gmra.mrb[104].mxu1 %v17862_v31  ;;  %v10966_v31 = vmul.f32 1.442695, %v10927_v41 }
 0xe56   : > { %v17866_v1 = vpop.eup %17865  ;;  %11331 = vadd.xlane.f32.xlu1 %v11330_v51  ;;  %v10968_v61 = vmul.f32 1.442695, %v10928_v29 }
 0xe57   : > { %v17868_v28 = vpop.eup %17867 }
 0xe58   : > { %11587 = vmatprep.mubr.f32.mxu1 %v17868_v28  ;;  %v11333_v56 = vadd.f32 %v17868_v28, %v17866_v1  ;;  %v17870_v47 = vpop.eup %17869 }
 0xe59   : > { %11588 = vmatmul.mubr.f32.gmra.mrb[106].mxu1 %v17866_v1  ;;  %v11208_v21 = vmul.f32 0.0, %v17870_v47  ;;  %v17872_v22 = vpop.eup %17871 }
 0xe5a   : > { %11334 = vadd.xlane.f32.xlu1 %v11333_v56  ;;  %v11209_v63 = vmul.f32 0.0, %v17872_v22  ;;  %v17874_v38 = vpop.eup %17873 }
 0xe5b   : > { %v11210_v45 = vmul.f32 0.0, %v17874_v38  ;;  %v17876_v59 = vpop.eup %17875 }
 0xe5c   : > { %v11211_v51 = vmul.f32 0.0, %v17876_v59  ;;  %v17878_v1 = vpop.eup %17877 }
 0xe6b   : > { %v11242_v9 = vpop.xlane.xlu0 %11241 }
 0xe6c   : > { %v11336_v58 = vadd.f32 %v11242_v9, %v11208_v21  ;;  %v10929_v9 = vsub.f32 -inf, %v22667_v37 }
 0xe6e   : > { %17879 = vrcp.f32 %v11336_v58  ;;  %v10970_v8 = vmul.f32 1.442695, %v10929_v9 }
 0xe6f   : > { %v11245_v4 = vpop.xlane.xlu1 %11244  ;;  %17881 = vpow2.f32 %v10962_v52 }
 0xe70   : > { %v11337_v24 = vadd.f32 %v11245_v4, %v11209_v63  ;;  %v10972_v4 = vmul.f32 1.442695, %v10930_v33 }
 0xe72   : > { %17883 = vrcp.f32 %v11337_v24 }
 0xe73   : > { %v11248_v35 = vpop.xlane.xlu0 %11247  ;;  %17885 = vpow2.f32 %v10964_v18 }
 0xe74   : > { %v11338_v0 = vadd.f32 %v11248_v35, %v11210_v45  ;;  %v11212_v35 = vmul.f32 0.0, %v17878_v1 }
 0xe76   : > { %17887 = vrcp.f32 %v11338_v0 }
 0xe77   : > { %v11251_v43 = vpop.xlane.xlu1 %11250  ;;  %17889 = vpow2.f32 %v10966_v31 }
 0xe78   : > { %v11339_v56 = vadd.f32 %v11251_v43, %v11211_v51  ;;  %v17880_v57 = vpop.eup %17879 }
 0xe79   : > { %v17882_v11 = vpop.eup %17881 }
 0xe7a   : > { %17891 = vrcp.f32 %v11339_v56  ;;  %v11213_v37 = vmul.f32 0.0, %v17882_v11 }
 0xe7b   : > { %v11254_v55 = vpop.xlane.xlu0 %11253  ;;  %17893 = vpow2.f32 %v10968_v61 }
 0xe7c   : > { %v11340_v44 = vadd.f32 %v11254_v55, %v11212_v35  ;;  %v17884_v22 = vpop.eup %17883  ;;  %v10931_v55 = vsub.f32 -inf, %v22679_v3 }
 0xe7e   : > { %17895 = vrcp.f32 %v11340_v44  ;;  %v10974_v29 = vmul.f32 1.442695, %v10931_v55 }
 0xe7f   : > { %v11257_v2 = vpop.xlane.xlu0 %11256  ;;  %17897 = vpow2.f32 %v10970_v8 }
 0xe80   : > { %v11341_v52 = vadd.f32 %v11257_v2, %v11213_v37  ;;  %v10932_v2 = vsub.f32 -inf, %v22685_v50 }
 0xe82   : > { %17899 = vrcp.f32 %v11341_v52 }
 0xe83   : > { %v22859_v13 = vpop.xlane.xlu0 %11259  ;;  %17901 = vpow2.f32 %v10972_v4 }
 0xe87   : > { %v22863_v54 = vpop.xlane.xlu0 %11262 }
 0xe8b   : > { %v22866_v28 = vpop.xlane.xlu0 %11265 }
 0xe8f   : > { %v22870_v47 = vpop.xlane.xlu0 %11268 }
 0xeb0   : > { %v11434_v6 = vpop.f32.mrb[44].mxu1 }
 0xeb1   : > { %v11593_v27 = vadd.f32 %v11434_v6, %v11208_v21  ;;  %v11436_v39 = vpop.f32.mrb[45].mxu1  ;;  %v17886_v21 = vpop.eup %17885 }
 0xeb2   : > { %v17888_v36 = vpop.eup %17887  ;;  %v11214_v18 = vmul.f32 0.0, %v17886_v21 }
 0xeb3   : > { %v11657_v23 = vmul.f32 %v17880_v57, %v11593_v27  ;;  %v17890_v41 = vpop.eup %17889  ;;  %v10976_v27 = vmul.f32 1.442695, %v10932_v2 }
 0xeb4   : > { %v11439_v53 = vpop.f32.mrb[46].mxu1  ;;  %v11342_v0 = vadd.f32 %v22859_v13, %v11214_v18  ;;  %v17892_v3 = vpop.eup %17891  ;;  %v10933_v13 = vsub.f32 -inf, %v22691_v25 }
 0xeb5   : > { %v11594_v10 = vadd.f32 %v11439_v53, %v11209_v63  ;;  %v11441_v20 = vpop.f32.mrb[47].mxu1  ;;  %15822 = vmatprep.mubr.f32.mxu0 %v11657_v23  ;;  %v11272_v63 = vpop.xlane.xlu0 %11271 }
 0xeb6   : > { %v17894_v56 = vpop.eup %17893  ;;  %17903 = vrcp.f32 %v11342_v0  ;;  %v10978_v33 = vmul.f32 1.442695, %v10933_v13 }
 0xeb7   : > { %v11658_v58 = vmul.f32 %v17884_v22, %v11594_v10  ;;  %17905 = vpow2.f32 %v10974_v29  ;;  %v17896_v50 = vpop.eup %17895 }
 0xeb8   : > { %v11444_v40 = vpop.f32.mrb[48].mxu1  ;;  %v17898_v23 = vpop.eup %17897 }
 0xeb9   : > { %v11595_v38 = vadd.f32 %v11444_v40, %v11210_v45  ;;  %v11446_v24 = vpop.f32.mrb[49].mxu1  ;;  %15823 = vmatmul.mubr.f32.vlgmr.msra.gmra.mrb[196].mxu0 %v11658_v58  ;;  %v11215_v45 = vmul.f32 0.0, %v17890_v41  ;;  %v11275_v39 = vpop.xlane.xlu0 %11274  ;;  %v11217_v22 = vmul.f32 0.0, %v17898_v23 }
 0xeba   : > { %v17900_v25 = vpop.eup %17899 }
 0xebb   : > { %v11659_v59 = vmul.f32 %v17888_v36, %v11595_v38  ;;  %v11343_v61 = vadd.f32 %v22863_v54, %v11215_v45  ;;  %v10934_v54 = vsub.f32 -inf, %v22697_v60  ;;  %v11345_v52 = vadd.f32 %v22870_v47, %v11217_v22 }
 0xebc   : > { %v11449_v31 = vpop.f32.mrb[50].mxu1 }
 0xebd   : > { %v11596_v43 = vadd.f32 %v11449_v31, %v11211_v51  ;;  %v11451_v1 = vpop.f32.mrb[51].mxu1  ;;  %15825 = vmatprep.mubr.f32.mxu0 %v11659_v59  ;;  %v11216_v51 = vmul.f32 0.0, %v17894_v56  ;;  %17907 = vrcp.f32 %v11343_v61  ;;  %v11278_v21 = vpop.xlane.xlu0 %11277  ;;  %v10980_v4 = vmul.f32 1.442695, %v10934_v54 }
 0xebe   : > { %17909 = vpow2.f32 %v10976_v27  ;;  %v10936_v31 = vsub.f32 -inf, %v22709_v48  ;;  %v22882_v1 = vpop.xlane.xlu1 %11295  ;;  %v10937_v61 = vsub.f32 -inf, %v22715_v26 }
 0xebf   : > { %v11660_v6 = vmul.f32 %v17892_v3, %v11596_v43  ;;  %v11344_v53 = vadd.f32 %v22866_v28, %v11216_v51  ;;  %v10935_v28 = vsub.f32 -inf, %v22703_v32 }
 0xec0   : > { %v11454_v9 = vpop.f32.mrb[52].mxu1 }
 0xec1   : > { %v11597_v57 = vadd.f32 %v11454_v9, %v11212_v35  ;;  %v11456_v11 = vpop.f32.mrb[53].mxu1  ;;  %15826 = vmatmul.mubr.f32.gmra.mrb[198].mxu0 %v11660_v6  ;;  %v17902_v35 = vpop.eup %17901  ;;  %17911 = vrcp.f32 %v11344_v53  ;;  %v10982_v0 = vmul.f32 1.442695, %v10935_v28 }
 0xec2   : > { %17913 = vpow2.f32 %v10978_v33  ;;  %v17904_v60 = vpop.eup %17903  ;;  %v11281_v47 = vpop.xlane.xlu0 %11280 }
 0xec3   : > { %v11661_v44 = vmul.f32 %v17896_v50, %v11597_v57  ;;  %v17906_v24 = vpop.eup %17905  ;;  %17915 = vrcp.f32 %v11345_v52  ;;  %v22886_v53 = vpop.xlane.xlu1 %11298 }
 0xec4   : > { %v11459_v8 = vpop.f32.mrb[54].mxu1  ;;  %17917 = vpow2.f32 %v10980_v4  ;;  %v11219_v32 = vmul.f32 0.0, %v17906_v24 }
 0xec5   : > { %v11598_v10 = vadd.f32 %v11459_v8, %v11213_v37  ;;  %v11461_v20 = vpop.f32.mrb[55].mxu1  ;;  %15828 = vmatprep.mubr.f32.mxu0 %v11661_v44  ;;  %v11218_v37 = vmul.f32 0.0, %v17902_v35  ;;  %v10986_v44 = vmul.f32 1.442695, %v10937_v61 }
 0xec6   : > { %v11347_v56 = vadd.f32 %v11275_v39, %v11219_v32  ;;  %v11284_v57 = vpop.xlane.xlu0 %11283  ;;  %v10938_v39 = vsub.f32 -inf, %v22721_v17 }
 0xec7   : > { %v11662_v58 = vmul.f32 %v17900_v25, %v11598_v10  ;;  %v11346_v41 = vadd.f32 %v11272_v63, %v11218_v37  ;;  %v17908_v43 = vpop.eup %17907  ;;  %v10984_v63 = vmul.f32 1.442695, %v10936_v31  ;;  %v22889_v28 = vpop.xlane.xlu1 %11301 }
 0xec8   : > { %v11464_v40 = vpop.f32.mrb[56].mxu1  ;;  %v10988_v35 = vmul.f32 1.442695, %v10938_v39 }
 0xec9   : > { %v11599_v55 = vadd.f32 %v11464_v40, %v11214_v18  ;;  %v11466_v38 = vpop.f32.mrb[57].mxu1  ;;  %15829 = vmatmul.mubr.f32.gmra.mrb[200].mxu0 %v11662_v58  ;;  %v17910_v18 = vpop.eup %17909  ;;  %17919 = vrcp.f32 %v11346_v41 }
 0xeca   : > { %17921 = vpow2.f32 %v10982_v0  ;;  %v11287_v58 = vpop.xlane.xlu0 %11286 }
 0xecb   : > { %v11663_v36 = vmul.f32 %v17904_v60, %v11599_v55  ;;  %v17912_v48 = vpop.eup %17911  ;;  %17923 = vrcp.f32 %v11347_v56 }
 0xecc   : > { %v11469_v59 = vpop.f32.mrb[58].mxu1  ;;  %v17914_v13 = vpop.eup %17913  ;;  %17925 = vpow2.f32 %v10984_v63 }
 0xecd   : > { %v11600_v29 = vadd.f32 %v11469_v59, %v11215_v45  ;;  %v11471_v2 = vpop.f32.mrb[59].mxu1  ;;  %15831 = vmatprep.mubr.f32.mxu0 %v11663_v36  ;;  %v11220_v45 = vmul.f32 0.0, %v17910_v18  ;;  %v17916_v26 = vpop.eup %17915  ;;  %v10940_v36 = vsub.f32 -inf, %v22739_v16  ;;  %v10941_v18 = vsub.f32 -inf, %v22745_v42 }
 0xece   : > { %v17918_v54 = vpop.eup %17917  ;;  %v11290_v31 = vpop.xlane.xlu0 %11289 }
 0xecf   : > { %v11664_v3 = vmul.f32 %v17908_v43, %v11600_v29  ;;  %v11348_v50 = vadd.f32 %v11278_v21, %v11220_v45  ;;  %v10939_v21 = vsub.f32 -inf, %v22733_v49  ;;  %v11222_v4 = vmul.f32 0.0, %v17918_v54 }
 0xed0   : > { %v11474_v6 = vpop.f32.mrb[60].mxu1  ;;  %v10992_v43 = vmul.f32 1.442695, %v10940_v36  ;;  %v10943_v54 = vsub.f32 -inf, %v22769_v15 }
 0xed1   : > { %v11601_v9 = vadd.f32 %v11474_v6, %v11216_v51  ;;  %v11476_v27 = vpop.f32.mrb[61].mxu1  ;;  %15832 = vmatmul.mubr.f32.gmra.mrb[202].mxu0 %v11664_v3  ;;  %v11221_v51 = vmul.f32 0.0, %v17914_v13  ;;  %17927 = vrcp.f32 %v11348_v50  ;;  %v11350_v38 = vadd.f32 %v11284_v57, %v11222_v4  ;;  %v22893_v3 = vpop.xlane.xlu1 %11304 }
 0xed2   : > { %17929 = vpow2.f32 %v10986_v44  ;;  %v10990_v24 = vmul.f32 1.442695, %v10939_v21  ;;  %v10942_v13 = vsub.f32 -inf, %v22757_v34  ;;  %v11293_v57 = vpop.xlane.xlu0 %11292 }
 0xed3   : > { %v11665_v11 = vmul.f32 %v17912_v48, %v11601_v9  ;;  %v11349_v20 = vadd.f32 %v11281_v47, %v11221_v51  ;;  %v17920_v17 = vpop.eup %17919  ;;  %v10994_v48 = vmul.f32 1.442695, %v10941_v18 }
 0xed4   : > { %v11479_v23 = vpop.f32.mrb[62].mxu1 }
 0xed5   : > { %v11602_v8 = vadd.f32 %v11479_v23, %v11217_v22  ;;  %v11481_v33 = vpop.f32.mrb[63].mxu1  ;;  %15834 = vmatprep.mubr.f32.mxu0 %v11665_v11  ;;  %v17922_v22 = vpop.eup %17921  ;;  %17931 = vrcp.f32 %v11349_v20 }
 0xed6   : > { %17933 = vpow2.f32 %v10988_v35  ;;  %v17924_v49 = vpop.eup %17923  ;;  %v22896_v44 = vpop.xlane.xlu1 %11307 }
 0xed7   : > { %v11666_v10 = vmul.f32 %v17916_v26, %v11602_v8  ;;  %v17926_v0 = vpop.eup %17925  ;;  %17935 = vrcp.f32 %v11350_v38  ;;  %v10996_v26 = vmul.f32 1.442695, %v10942_v13 }
 0xed8   : > { %v11484_v25 = vpop.f32.mrb[64].mxu1  ;;  %17937 = vpow2.f32 %v10990_v24 }
 0xed9   : > { %v11603_v52 = vadd.f32 %v11484_v25, %v11218_v37  ;;  %v11486_v40 = vpop.f32.mrb[65].mxu1  ;;  %15835 = vmatmul.mubr.f32.gmra.mrb[204].mxu0 %v11666_v10  ;;  %v11223_v37 = vmul.f32 0.0, %v17922_v22 }
 0xeda   : > { %v10944_v40 = vsub.f32 -inf, %v22781_v5 }
 0xedb   : > { %v11667_v55 = vmul.f32 %v17920_v17, %v11603_v52  ;;  %v11351_v29 = vadd.f32 %v11287_v58, %v11223_v37  ;;  %v17928_v16 = vpop.eup %17927  ;;  %v10998_v52 = vmul.f32 1.442695, %v10943_v54  ;;  %v22901_v17 = vpop.xlane.xlu1 %11310 }
 0xedc   : > { %v11489_v60 = vpop.f32.mrb[66].mxu1  ;;  %v17930_v63 = vpop.eup %17929 }
 0xedd   : > { %v11604_v41 = vadd.f32 %v11489_v60, %v11219_v32  ;;  %v11491_v59 = vpop.f32.mrb[67].mxu1  ;;  %15837 = vmatprep.mubr.f32.mxu0 %v11667_v55  ;;  %v11224_v32 = vmul.f32 0.0, %v17926_v0  ;;  %17939 = vrcp.f32 %v11351_v29  ;;  %v11225_v23 = vmul.f32 0.0, %v17930_v63 }
 0xede   : > { %17941 = vpow2.f32 %v10992_v43 }
 0xedf   : > { %v11668_v47 = vmul.f32 %v17924_v49, %v11604_v41  ;;  %v11352_v9 = vadd.f32 %v11290_v31, %v11224_v32  ;;  %v17932_v42 = vpop.eup %17931  ;;  %v11353_v8 = vadd.f32 %v11293_v57, %v11225_v23  ;;  %v10945_v41 = vsub.f32 -inf, %v22793_v7  ;;  %v11314_v31 = vpop.xlane.xlu1 %11313 }
 0xee0   : > { %v11494_v2 = vpop.f32.mrb[68].mxu1 }
 0xee1   : > { %v11605_v56 = vadd.f32 %v11494_v2, %v11220_v45  ;;  %v11496_v6 = vpop.f32.mrb[69].mxu1  ;;  %15838 = vmatmul.mubr.f32.gmra.mrb[206].mxu0 %v11668_v47  ;;  %v17934_v45 = vpop.eup %17933  ;;  %17943 = vrcp.f32 %v11352_v9  ;;  %v11002_v43 = vmul.f32 1.442695, %v10945_v41 }
 0xee2   : > { %17945 = vpow2.f32 %v10994_v48  ;;  %v17936_v34 = vpop.eup %17935 }
 0xee3   : > { %v11669_v61 = vmul.f32 %v17928_v16, %v11605_v56  ;;  %v17938_v25 = vpop.eup %17937  ;;  %17947 = vrcp.f32 %v11353_v8 }
 0xee4   : > { %v11499_v27 = vpop.f32.mrb[70].mxu1  ;;  %17949 = vpow2.f32 %v10996_v26 }
 0xee5   : > { %v11606_v11 = vadd.f32 %v11499_v27, %v11221_v51  ;;  %v11501_v50 = vpop.f32.mrb[71].mxu1  ;;  %15840 = vmatprep.mubr.f32.mxu0 %v11669_v61  ;;  %v11226_v51 = vmul.f32 0.0, %v17934_v45  ;;  %v11317_v27 = vpop.xlane.xlu1 %11316 }
 0xee7   : > { %v11670_v39 = vmul.f32 %v17932_v42, %v11606_v11  ;;  %v11354_v21 = vadd.f32 %v22882_v1, %v11226_v51  ;;  %v17940_v15 = vpop.eup %17939  ;;  %v11000_v1 = vmul.f32 1.442695, %v10944_v40 }
 0xee8   : > { %v11504_v33 = vpop.f32.mrb[72].mxu1  ;;  %v17942_v38 = vpop.eup %17941 }
 0xee9   : > { %v11607_v10 = vadd.f32 %v11504_v33, %v11222_v4  ;;  %v11506_v20 = vpop.f32.mrb[73].mxu1  ;;  %15841 = vmatmul.mubr.f32.gmra.mrb[208].mxu0 %v11670_v39  ;;  %v11227_v4 = vmul.f32 0.0, %v17938_v25  ;;  %17951 = vrcp.f32 %v11354_v21  ;;  %v11228_v0 = vmul.f32 0.0, %v17942_v38  ;;  %v11320_v54 = vpop.xlane.xlu1 %11319 }
 0xeea   : > { %17953 = vpow2.f32 %v10998_v52 }
 0xeeb   : > { %v11671_v35 = vmul.f32 %v17936_v34, %v11607_v10  ;;  %v11355_v24 = vadd.f32 %v22886_v53, %v11227_v4  ;;  %v17944_v5 = vpop.eup %17943  ;;  %v11356_v29 = vadd.f32 %v22889_v28, %v11228_v0  ;;  %v10946_v53 = vsub.f32 -inf, %v22805_v30 }
 0xeec   : > { %v11509_v58 = vpop.f32.mrb[74].mxu1  ;;  %v10947_v28 = vsub.f32 -inf, %v22817_v19 }
 0xeed   : > { %v11608_v22 = vadd.f32 %v11509_v58, %v11223_v37  ;;  %v11511_v55 = vpop.f32.mrb[75].mxu1  ;;  %15843 = vmatprep.mubr.f32.mxu0 %v11671_v35  ;;  %v17946_v37 = vpop.eup %17945  ;;  %17955 = vrcp.f32 %v11355_v24  ;;  %v11004_v9 = vmul.f32 1.442695, %v10946_v53 }
 0xeee   : > { %17957 = vpow2.f32 %v11000_v1  ;;  %v17948_v7 = vpop.eup %17947  ;;  %v11229_v6 = vmul.f32 0.0, %v17946_v37  ;;  %v11006_v45 = vmul.f32 1.442695, %v10947_v28 }
 0xeef   : > { %v11672_v60 = vmul.f32 %v17940_v15, %v11608_v22  ;;  %v17950_v16 = vpop.eup %17949  ;;  %17959 = vrcp.f32 %v11356_v29  ;;  %v10950_v15 = vsub.f32 -inf, %v22841_v46 }
 0xef0   : > { %v11514_v36 = vpop.f32.mrb[76].mxu1  ;;  %v11357_v63 = vadd.f32 %v22893_v3, %v11229_v6  ;;  %17961 = vpow2.f32 %v11002_v43  ;;  %v11230_v57 = vmul.f32 0.0, %v17950_v16  ;;  %v10948_v3 = vsub.f32 -inf, %v22829_v62 }
 0xef1   : > { %v11609_v59 = vadd.f32 %v11514_v36, %v11224_v32  ;;  %v11516_v49 = vpop.f32.mrb[77].mxu1  ;;  %15844 = vmatmul.mubr.f32.gmra.mrb[210].mxu0 %v11672_v60 }
 0xef2   : > { %17963 = vrcp.f32 %v11357_v63  ;;  %v11358_v42 = vadd.f32 %v22896_v44, %v11230_v57  ;;  %v10949_v44 = vsub.f32 -inf, %v22835_v14  ;;  %v10951_v49 = vsub.f32 -inf, %v22847_v12 }
 0xef3   : > { %v11673_v47 = vmul.f32 %v17944_v5, %v11609_v59  ;;  %v17952_v30 = vpop.eup %17951  ;;  %17965 = vpow2.f32 %v11004_v9  ;;  %v11012_v59 = vmul.f32 1.442695, %v10950_v15 }
 0xef4   : > { %v11519_v2 = vpop.f32.mrb[78].mxu1  ;;  %v17954_v11 = vpop.eup %17953  ;;  %17967 = vrcp.f32 %v11358_v42  ;;  %v11010_v55 = vmul.f32 1.442695, %v10949_v44  ;;  %v11014_v53 = vmul.f32 1.442695, %v10951_v49 }
 0xef5   : > { %v11610_v18 = vadd.f32 %v11519_v2, %v11225_v23  ;;  %v11521_v56 = vpop.f32.mrb[79].mxu1  ;;  %15846 = vmatprep.mubr.f32.mxu0 %v11673_v47  ;;  %v11231_v33 = vmul.f32 0.0, %v17954_v11  ;;  %17969 = vpow2.f32 %v11006_v45 }
 0xef7   : > { %v11674_v32 = vmul.f32 %v17948_v7, %v11610_v18  ;;  %v17956_v19 = vpop.eup %17955  ;;  %v11359_v20 = vadd.f32 %v22901_v17, %v11231_v33  ;;  %v11323_v17 = vpop.xlane.xlu1 %11322 }
 0xef8   : > { %v11524_v61 = vpop.f32.mrb[80].mxu1  ;;  %v17958_v26 = vpop.eup %17957 }
 0xef9   : > { %v11611_v48 = vadd.f32 %v11524_v61, %v11226_v51  ;;  %v11526_v13 = vpop.f32.mrb[81].mxu1  ;;  %15847 = vmatmul.mubr.f32.gmra.mrb[212].mxu0 %v11674_v32  ;;  %v11008_v51 = vmul.f32 1.442695, %v10948_v3  ;;  %v17960_v62 = vpop.eup %17959  ;;  %v11232_v21 = vmul.f32 0.0, %v17958_v26  ;;  %17971 = vrcp.f32 %v11359_v20 }
 0xefa   : > { %v17962_v58 = vpop.eup %17961 }
 0xefb   : > { %v11675_v50 = vmul.f32 %v17952_v30, %v11611_v48  ;;  %v11360_v40 = vadd.f32 %v11314_v31, %v11232_v21  ;;  %17973 = vpow2.f32 %v11008_v51  ;;  %v11233_v14 = vmul.f32 0.0, %v17962_v58  ;;  %v11326_v47 = vpop.xlane.xlu1 %11325 }
 0xefc   : > { %v11529_v23 = vpop.f32.mrb[82].mxu1  ;;  %v17964_v60 = vpop.eup %17963 }
 0xefd   : > { %v11612_v39 = vadd.f32 %v11529_v23, %v11227_v4  ;;  %v11531_v8 = vpop.f32.mrb[83].mxu1  ;;  %15849 = vmatprep.mubr.f32.mxu1 %v11675_v50  ;;  %v17966_v24 = vpop.eup %17965  ;;  %17975 = vrcp.f32 %v11360_v40  ;;  %v11361_v1 = vadd.f32 %v11317_v27, %v11233_v14 }
 0xefe   : > { %17977 = vpow2.f32 %v11010_v55  ;;  %v17968_v37 = vpop.eup %17967  ;;  %v11234_v46 = vmul.f32 0.0, %v17966_v24 }
 0xeff   : > { %v11676_v10 = vmul.f32 %v17956_v19, %v11612_v39  ;;  %v17970_v31 = vpop.eup %17969  ;;  %17979 = vrcp.f32 %v11361_v1  ;;  %v11329_v61 = vpop.xlane.xlu1 %11328 }
 0xf00   : > { %v11534_v34 = vpop.f32.mrb[84].mxu1  ;;  %v11362_v2 = vadd.f32 %v11320_v54, %v11234_v46  ;;  %17981 = vpow2.f32 %v11012_v59 }
 0xf01   : > { %v11613_v25 = vadd.f32 %v11534_v34, %v11228_v0  ;;  %v11536_v35 = vpop.f32.mrb[85].mxu1  ;;  %15850 = vmatmul.mubr.f32.vlgmr.msra.gmra.mrb[108].mxu1 %v11676_v10 }
 0xf02   : > { %17983 = vrcp.f32 %v11362_v2  ;;  %v22918_v2 = vld [vmem:[%s23051_s26] ss:$0 sm:$0xff] }
 0xf03   : > { %v11677_v52 = vmul.f32 %v17960_v62, %v11613_v25  ;;  %v17972_v7 = vpop.eup %17971  ;;  %17985 = vpow2.f32 %v11014_v53  ;;  %v11332_v39 = vpop.xlane.xlu1 %11331 }
 0xf04   : > { %v11539_v22 = vpop.f32.mrb[86].mxu1 }
 0xf05   : > { %v11614_v4 = vadd.f32 %v11539_v22, %v11229_v6  ;;  %v11541_v38 = vpop.f32.mrb[87].mxu1  ;;  %15852 = vmatprep.mubr.f32.mxu1 %v11677_v52  ;;  %v11235_v6 = vmul.f32 0.0, %v17970_v31  ;;  %v17974_v16 = vpop.eup %17973 }
 0xf06   : > { %v11236_v48 = vmul.f32 0.0, %v17974_v16  ;;  %v23552_v16 = vld [vmem:[#allocation25_spill] sm:$0xff] }
 0xf07   : > { %v11678_v36 = vmul.f32 %v17964_v60, %v11614_v4  ;;  %v11363_v32 = vadd.f32 %v11323_v17, %v11235_v6  ;;  %v17976_v27 = vpop.eup %17975  ;;  %v11335_v35 = vpop.xlane.xlu1 %11334 }
 0xf08   : > { %v11544_v41 = vpop.f32.mrb[88].mxu1  ;;  %v17978_v13 = vpop.eup %17977 }
 0xf09   : > { %v11615_v5 = vadd.f32 %v11544_v41, %v11230_v57  ;;  %v11546_v0 = vpop.f32.mrb[89].mxu1  ;;  %15853 = vmatmul.mubr.f32.gmra.mrb[110].mxu1 %v11678_v36  ;;  %17987 = vrcp.f32 %v11363_v32  ;;  %v11364_v57 = vadd.f32 %v11326_v47, %v11236_v48  ;;  %v17980_v23 = vpop.eup %17979  ;;  %v11237_v45 = vmul.f32 0.0, %v17978_v13 }
 0xf0a   : > { %v17982_v3 = vpop.eup %17981 }
 0xf0b   : > { %v11679_v29 = vmul.f32 %v17968_v37, %v11615_v5  ;;  %17989 = vrcp.f32 %v11364_v57  ;;  %v11365_v19 = vadd.f32 %v11329_v61, %v11237_v45  ;;  %v11238_v20 = vmul.f32 0.0, %v17982_v3 }
 0xf0c   : > { %v11549_v43 = vpop.f32.mrb[90].mxu1  ;;  %v17984_v10 = vpop.eup %17983 }
 0xf0d   : > { %v11616_v18 = vadd.f32 %v11549_v43, %v11231_v33  ;;  %v11551_v56 = vpop.f32.mrb[91].mxu1  ;;  %15855 = vmatprep.mubr.f32.mxu1 %v11679_v29  ;;  %v17986_v34 = vpop.eup %17985  ;;  %17991 = vrcp.f32 %v11365_v19  ;;  %v11366_v44 = vadd.f32 %v11332_v39, %v11238_v20 }
 0xf0e   : > { %v11239_v52 = vmul.f32 0.0, %v17986_v34 }
 0xf0f   : > { %v11680_v12 = vmul.f32 %v17972_v7, %v11616_v18  ;;  %17993 = vrcp.f32 %v11366_v44  ;;  %v23551_v7 = vld [vmem:[#allocation29_spill] sm:$0xff] }
 0xf10   : > { %v11554_v63 = vpop.f32.mrb[92].mxu1  ;;  %v11367_v22 = vadd.f32 %v11335_v35, %v11239_v52  ;;  %v23559_v35 = vld [vmem:[#allocation13_spill] sm:$0xff] }
 0xf11   : > { %v11617_v9 = vadd.f32 %v11554_v63, %v11232_v21  ;;  %v11556_v28 = vpop.f32.mrb[93].mxu1  ;;  %15856 = vmatmul.mubr.f32.gmra.mrb[112].mxu1 %v11680_v12 }
 0xf12   : > { %17995 = vrcp.f32 %v11367_v22  ;;  %v23553_v28 = vld [vmem:[#allocation8_spill] sm:$0xff] }
 0xf13   : > { %v11681_v30 = vmul.f32 %v17976_v27, %v11617_v9  ;;  %v17988_v58 = vpop.eup %17987 }
 0xf14   : > { %v11559_v11 = vpop.f32.mrb[94].mxu1 }
 0xf15   : > { %v11618_v50 = vadd.f32 %v11559_v11, %v11233_v14  ;;  %v11561_v42 = vpop.f32.mrb[95].mxu1  ;;  %15858 = vmatprep.mubr.f32.mxu1 %v11681_v30  ;;  %v17990_v4 = vpop.eup %17989 }
 0xf16   : > { %v23555_v42 = vld [vmem:[#allocation9_spill] sm:$0xff] }
 0xf17   : > { %v11682_v8 = vmul.f32 %v17980_v23, %v11618_v50  ;;  %v17992_v36 = vpop.eup %17991 }
 0xf18   : > { %v11564_v33 = vpop.f32.mrb[96].mxu1 }
 0xf19   : > { %v11619_v26 = vadd.f32 %v11564_v33, %v11234_v46  ;;  %v11566_v54 = vpop.f32.mrb[97].mxu1  ;;  %15859 = vmatmul.mubr.f32.gmra.mrb[114].mxu1 %v11682_v8  ;;  %v17994_v5 = vpop.eup %17993 }
 0xf1b   : > { %v11683_v51 = vmul.f32 %v17984_v10, %v11619_v26  ;;  %v23557_v26 = vld [vmem:[#allocation11_spill] sm:$0xff]  ;;  %v23558_v10 = vld [vmem:[#allocation10_spill] sm:$0xff] }
 0xf1c   : > { %v11569_v25 = vpop.f32.mrb[98].mxu1  ;;  %v17996_v47 = vpop.eup %17995 }
 0xf1d   : > { %v11620_v62 = vadd.f32 %v11569_v25, %v11235_v6  ;;  %v11571_v21 = vpop.f32.mrb[99].mxu1  ;;  %15861 = vmatprep.mubr.f32.mxu1 %v11683_v51 }
 0xf1e   : > { %v23560_v21 = vld [vmem:[#allocation12_spill] sm:$0xff] }
 0xf1f   : > { %v11684_v40 = vmul.f32 %v17988_v58, %v11620_v62 }
 0xf20   : > { %v11574_v55 = vpop.f32.mrb[100].mxu1 }
 0xf21   : > { %v11621_v15 = vadd.f32 %v11574_v55, %v11236_v48  ;;  %v11576_v17 = vpop.f32.mrb[101].mxu1  ;;  %15862 = vmatmul.mubr.f32.gmra.mrb[116].mxu1 %v11684_v40  ;;  %v23554_v48 = vld [vmem:[#allocation28_spill] sm:$0xff] }
 0xf23   : > { %v11685_v38 = vmul.f32 %v17990_v4, %v11621_v15  ;;  %v23561_v15 = vld [vmem:[#allocation15_spill] sm:$0xff]  ;;  %v23562_v4 = vld [vmem:[#allocation14_spill] sm:$0xff] }
 0xf24   : > { %v11579_v60 = vpop.f32.mrb[102].mxu1 }
 0xf25   : > { %v11622_v14 = vadd.f32 %v11579_v60, %v11237_v45  ;;  %v11581_v24 = vpop.f32.mrb[103].mxu1  ;;  %15864 = vmatprep.mubr.f32.mxu1 %v11685_v38  ;;  %v23556_v45 = vld [vmem:[#allocation26_spill] sm:$0xff] }
 0xf27   : > { %v11686_v1 = vmul.f32 %v17992_v36, %v11622_v14 }
 0xf28   : > { %v11584_v41 = vpop.f32.mrb[104].mxu1 }
 0xf29   : > { %v11623_v59 = vadd.f32 %v11584_v41, %v11238_v20  ;;  %v11586_v49 = vpop.f32.mrb[105].mxu1  ;;  %15865 = vmatmul.mubr.f32.gmra.mrb[118].mxu1 %v11686_v1  ;;  %v23563_v1 = vld [vmem:[#allocation17_spill] sm:$0xff] }
 0xf2b   : > { %v11687_v0 = vmul.f32 %v17994_v5, %v11623_v59  ;;  %v23564_v59 = vld [vmem:[#allocation16_spill] sm:$0xff] }
 0xf2c   : > { %v11589_v37 = vpop.f32.mrb[106].mxu1 }
 0xf2d   : > { %v11624_v46 = vadd.f32 %v11589_v37, %v11239_v52  ;;  %v11591_v31 = vpop.f32.mrb[107].mxu1  ;;  %15867 = vmatprep.mubr.f32.mxu1 %v11687_v0 }
 0xf2e   : > { %v23565_v31 = vld [vmem:[#allocation19_spill] sm:$0xff] }
 0xf2f   : > { %v11688_v29 = vmul.f32 %v17996_v47, %v11624_v46 }
 0xf31   : > { %15868 = vmatmul.mubr.f32.gmra.mrb[120].mxu1 %v11688_v29  ;;  %v23566_v29 = vld [vmem:[#allocation18_spill] sm:$0xff] }
 0xf8c   : > { %v15824_v43 = vpop.f32.mrb[196].mxu0 }
 0xf8d   : > { %v11784_v53 = vadd.f32 %v15824_v43, %v22918_v2  ;;  %v11778_v18 = vpop.f32.mrb[197].mxu0 }
 0xf8e   : > { %v11779_v56 = vadd.f32 %v22918_v2, %v11778_v18 }
 0xf8f   : > { %v11938_v6 = vadd.f32 %v11784_v53, %v23551_v7 }
 0xf90   : > { %v11937_v12 = vadd.f32 %v11779_v56, %v23552_v16 }
 0xf91   : > { %11970 = vst [vmem:[%s22925_s11 + $0x8] sm:$0xff] %v11938_v6  ;;  %v23567_v6 = vld [vmem:[#allocation21_spill] sm:$0xff] }
 0xf92   : > { %11969 = vst [vmem:[%s22925_s11] sm:$0xff] %v11937_v12  ;;  %v23568_v12 = vld [vmem:[#allocation20_spill] sm:$0xff] }
 0xf94   : > { %v15827_v32 = vpop.f32.mrb[198].mxu0 }
 0xf95   : > { %v11794_v63 = vadd.f32 %v15827_v32, %v22918_v2  ;;  %v11788_v61 = vpop.f32.mrb[199].mxu0 }
 0xf96   : > { %v11789_v9 = vadd.f32 %v22918_v2, %v11788_v61 }
 0xf97   : > { %v11940_v27 = vadd.f32 %v11794_v63, %v23553_v28 }
 0xf98   : > { %v11939_v13 = vadd.f32 %v11789_v9, %v23554_v48 }
 0xf99   : > { %11972 = vst [vmem:[%s22925_s11 + $0x18] sm:$0xff] %v11940_v27  ;;  %v23569_v27 = vld [vmem:[#allocation32_spill] sm:$0xff] }
 0xf9a   : > { %11971 = vst [vmem:[%s22925_s11 + $0x10] sm:$0xff] %v11939_v13  ;;  %v23570_v13 = vld [vmem:[#allocation22_spill] sm:$0xff] }
 0xf9c   : > { %v15830_v30 = vpop.f32.mrb[200].mxu0 }
 0xf9d   : > { %v11804_v57 = vadd.f32 %v15830_v30, %v22918_v2  ;;  %v11798_v11 = vpop.f32.mrb[201].mxu0 }
 0xf9e   : > { %v11799_v50 = vadd.f32 %v22918_v2, %v11798_v11 }
 0xf9f   : > { %v11942_v23 = vadd.f32 %v11804_v57, %v23555_v42 }
 0xfa0   : > { %v11941_v3 = vadd.f32 %v11799_v50, %v23556_v45 }
 0xfa1   : > { %11974 = vst [vmem:[%s22925_s11 + $0x28] sm:$0xff] %v11942_v23  ;;  %v23571_v23 = vld [vmem:[#allocation31_spill] sm:$0xff] }
 0xfa2   : > { %11973 = vst [vmem:[%s22925_s11 + $0x20] sm:$0xff] %v11941_v3  ;;  %v23572_v3 = vld [vmem:[#allocation35_spill] sm:$0xff] }
 0xfa4   : > { %v15833_v39 = vpop.f32.mrb[202].mxu0 }
 0xfa5   : > { %v11814_v8 = vadd.f32 %v15833_v39, %v22918_v2  ;;  %v11808_v19 = vpop.f32.mrb[203].mxu0 }
 0xfa6   : > { %v11809_v33 = vadd.f32 %v22918_v2, %v11808_v19 }
 0xfa7   : > { %v11944_v54 = vadd.f32 %v11814_v8, %v23557_v26 }
 0xfa8   : > { %v11943_v20 = vadd.f32 %v11809_v33, %v23558_v10 }
 0xfa9   : > { %11976 = vst [vmem:[%s22925_s11 + $0x38] sm:$0xff] %v11944_v54  ;;  %v23573_v54 = vld [vmem:[#allocation34_spill] sm:$0xff] }
 0xfaa   : > { %11975 = vst [vmem:[%s22925_s11 + $0x30] sm:$0xff] %v11943_v20  ;;  %v23574_v20 = vld [vmem:[#allocation38_spill] sm:$0xff] }
 0xfac   : > { %v15836_v34 = vpop.f32.mrb[204].mxu0 }
 0xfad   : > { %v11824_v51 = vadd.f32 %v15836_v34, %v22918_v2  ;;  %v11818_v44 = vpop.f32.mrb[205].mxu0 }
 0xfae   : > { %v11819_v25 = vadd.f32 %v22918_v2, %v11818_v44 }
 0xfaf   : > { %v11946_v62 = vadd.f32 %v11824_v51, %v23559_v35 }
 0xfb0   : > { %v11945_v58 = vadd.f32 %v11819_v25, %v23560_v21 }
 0xfb1   : > { %11978 = vst [vmem:[%s22925_s11 + $0x48] sm:$0xff] %v11946_v62  ;;  %v23575_v62 = vld [vmem:[#allocation37_spill] sm:$0xff] }
 0xfb2   : > { %11977 = vst [vmem:[%s22925_s11 + $0x40] sm:$0xff] %v11945_v58  ;;  %v23576_v58 = vld [vmem:[#allocation41_spill] sm:$0xff] }
 0xfb4   : > { %v15839_v52 = vpop.f32.mrb[206].mxu0 }
 0xfb5   : > { %v11834_v40 = vadd.f32 %v15839_v52, %v22918_v2  ;;  %v11828_v22 = vpop.f32.mrb[207].mxu0 }
 0xfb6   : > { %v11829_v55 = vadd.f32 %v22918_v2, %v11828_v22 }
 0xfb7   : > { %v11948_v17 = vadd.f32 %v11834_v40, %v23561_v15 }
 0xfb8   : > { %v11947_v38 = vadd.f32 %v11829_v55, %v23562_v4 }
 0xfb9   : > { %11980 = vst [vmem:[%s22925_s11 + $0x58] sm:$0xff] %v11948_v17  ;;  %v23577_v17 = vld [vmem:[#allocation44_spill] sm:$0xff] }
 0xfba   : > { %11979 = vst [vmem:[%s22925_s11 + $0x50] sm:$0xff] %v11947_v38  ;;  %v23578_v38 = vld [vmem:[#allocation33_spill] sm:$0xff] }
 0xfbc   : > { %v15842_v60 = vpop.f32.mrb[208].mxu0 }
 0xfbd   : > { %v11844_v14 = vadd.f32 %v15842_v60, %v22918_v2  ;;  %v11838_v24 = vpop.f32.mrb[209].mxu0 }
 0xfbe   : > { %v11839_v36 = vadd.f32 %v22918_v2, %v11838_v24 }
 0xfbf   : > { %v11950_v41 = vadd.f32 %v11844_v14, %v23563_v1 }
 0xfc0   : > { %v11949_v49 = vadd.f32 %v11839_v36, %v23564_v59 }
 0xfc1   : > { %11982 = vst [vmem:[%s22925_s11 + $0x68] sm:$0xff] %v11950_v41  ;;  %v23579_v41 = vld [vmem:[#allocation47_spill] sm:$0xff] }
 0xfc2   : > { %11981 = vst [vmem:[%s22925_s11 + $0x60] sm:$0xff] %v11949_v49  ;;  %v23580_v49 = vld [vmem:[#allocation40_spill] sm:$0xff] }
 0xfc4   : > { %v15845_v5 = vpop.f32.mrb[210].mxu0 }
 0xfc5   : > { %v11854_v0 = vadd.f32 %v15845_v5, %v22918_v2  ;;  %v11848_v37 = vpop.f32.mrb[211].mxu0 }
 0xfc6   : > { %v11849_v46 = vadd.f32 %v22918_v2, %v11848_v37 }
 0xfc7   : > { %v11952_v47 = vadd.f32 %v11854_v0, %v23565_v31 }
 0xfc8   : > { %v11951_v43 = vadd.f32 %v11849_v46, %v23566_v29 }
 0xfc9   : > { %11984 = vst [vmem:[%s22925_s11 + $0x78] sm:$0xff] %v11952_v47  ;;  %v23581_v47 = vld [vmem:[#allocation46_spill] sm:$0xff] }
 0xfca   : > { %11983 = vst [vmem:[%s22925_s11 + $0x70] sm:$0xff] %v11951_v43  ;;  %v23582_v43 = vld [vmem:[#allocation50_spill] sm:$0xff] }
 0xfcc   : > { %v15848_v53 = vpop.f32.mrb[212].mxu0 }
 0xfcd   : > { %v11864_v18 = vadd.f32 %v15848_v53, %v22918_v2  ;;  %v11858_v56 = vpop.f32.mrb[213].mxu0 }
 0xfce   : > { %v11859_v7 = vadd.f32 %v22918_v2, %v11858_v56 }
 0xfcf   : > { %v11954_v16 = vadd.f32 %v11864_v18, %v23567_v6 }
 0xfd0   : > { %v11953_v32 = vadd.f32 %v11859_v7, %v23568_v12 }
 0xfd1   : > { %11986 = vst [vmem:[%s22925_s11 + $0x88] sm:$0xff] %v11954_v16 }
 0xfd2   : > { %11985 = vst [vmem:[%s22925_s11 + $0x80] sm:$0xff] %v11953_v32 }
 0xfd4   : > { %v15851_v63 = vpop.f32.mrb[108].mxu1 }
 0xfd5   : > { %v11874_v61 = vadd.f32 %v15851_v63, %v22918_v2  ;;  %v11868_v9 = vpop.f32.mrb[109].mxu1 }
 0xfd6   : > { %v11869_v28 = vadd.f32 %v22918_v2, %v11868_v9 }
 0xfd7   : > { %v11956_v48 = vadd.f32 %v11874_v61, %v23569_v27 }
 0xfd8   : > { %v11955_v30 = vadd.f32 %v11869_v28, %v23570_v13 }
 0xfd9   : > { %11988 = vst [vmem:[%s22925_s11 + $0x98] sm:$0xff] %v11956_v48 }
 0xfda   : > { %11987 = vst [vmem:[%s22925_s11 + $0x90] sm:$0xff] %v11955_v30 }
 0xfdc   : > { %v15854_v57 = vpop.f32.mrb[110].mxu1 }
 0xfdd   : > { %v11884_v11 = vadd.f32 %v15854_v57, %v22918_v2  ;;  %v11878_v50 = vpop.f32.mrb[111].mxu1 }
 0xfde   : > { %v11879_v42 = vadd.f32 %v22918_v2, %v11878_v50 }
 0xfdf   : > { %v11958_v45 = vadd.f32 %v11884_v11, %v23571_v23 }
 0xfe0   : > { %v11957_v39 = vadd.f32 %v11879_v42, %v23572_v3 }
 0xfe1   : > { %11990 = vst [vmem:[%s22925_s11 + $0xa8] sm:$0xff] %v11958_v45 }
 0xfe2   : > { %11989 = vst [vmem:[%s22925_s11 + $0xa0] sm:$0xff] %v11957_v39 }
 0xfe4   : > { %v15857_v8 = vpop.f32.mrb[112].mxu1 }
 0xfe5   : > { %v11894_v19 = vadd.f32 %v15857_v8, %v22918_v2  ;;  %v11888_v33 = vpop.f32.mrb[113].mxu1 }
 0xfe6   : > { %v11889_v26 = vadd.f32 %v22918_v2, %v11888_v33 }
 0xfe7   : > { %v11960_v10 = vadd.f32 %v11894_v19, %v23573_v54 }
 0xfe8   : > { %v11959_v34 = vadd.f32 %v11889_v26, %v23574_v20 }
 0xfe9   : > { %11992 = vst [vmem:[%s22925_s11 + $0xb8] sm:$0xff] %v11960_v10 }
 0xfea   : > { %11991 = vst [vmem:[%s22925_s11 + $0xb0] sm:$0xff] %v11959_v34 }
 0xfec   : > { %v15860_v51 = vpop.f32.mrb[114].mxu1 }
 0xfed   : > { %v11904_v44 = vadd.f32 %v15860_v51, %v22918_v2  ;;  %v11898_v25 = vpop.f32.mrb[115].mxu1 }
 0xfee   : > { %v11899_v35 = vadd.f32 %v22918_v2, %v11898_v25 }
 0xfef   : > { %v11962_v21 = vadd.f32 %v11904_v44, %v23575_v62 }
 0xff0   : > { %v11961_v52 = vadd.f32 %v11899_v35, %v23576_v58 }
 0xff1   : > { %11994 = vst [vmem:[%s22925_s11 + $0xc8] sm:$0xff] %v11962_v21 }
 0xff2   : > { %11993 = vst [vmem:[%s22925_s11 + $0xc0] sm:$0xff] %v11961_v52 }
 0xff4   : > { %v15863_v40 = vpop.f32.mrb[116].mxu1 }
 0xff5   : > { %v11914_v22 = vadd.f32 %v15863_v40, %v22918_v2  ;;  %v11908_v55 = vpop.f32.mrb[117].mxu1 }
 0xff6   : > { %v11909_v15 = vadd.f32 %v22918_v2, %v11908_v55 }
 0xff7   : > { %v11964_v4 = vadd.f32 %v11914_v22, %v23577_v17 }
 0xff8   : > { %v11963_v60 = vadd.f32 %v11909_v15, %v23578_v38 }
 0xff9   : > { %11996 = vst [vmem:[%s22925_s11 + $0xd8] sm:$0xff] %v11964_v4 }
 0xffa   : > { %11995 = vst [vmem:[%s22925_s11 + $0xd0] sm:$0xff] %v11963_v60 }
 0xffc   : > { %v15866_v14 = vpop.f32.mrb[118].mxu1 }
 0xffd   : > { %v11924_v24 = vadd.f32 %v15866_v14, %v22918_v2  ;;  %v11918_v36 = vpop.f32.mrb[119].mxu1 }
 0xffe   : > { %v11919_v1 = vadd.f32 %v22918_v2, %v11918_v36 }
 0xfff   : > { %v11966_v59 = vadd.f32 %v11924_v24, %v23579_v41 }
0x1000   : > { %v11965_v5 = vadd.f32 %v11919_v1, %v23580_v49 }
0x1001   : > { %11998 = vst [vmem:[%s22925_s11 + $0xe8] sm:$0xff] %v11966_v59 }
0x1002   : > { %11997 = vst [vmem:[%s22925_s11 + $0xe0] sm:$0xff] %v11965_v5 }
0x1004   : > { %v15869_v0 = vpop.f32.mrb[120].mxu1 }
0x1005   : > { %v11934_v37 = vadd.f32 %v15869_v0, %v22918_v2  ;;  %v11928_v46 = vpop.f32.mrb[121].mxu1 }
0x1006   : > { %v11929_v31 = vadd.f32 %v22918_v2, %v11928_v46 }
0x1007   : > { %v11968_v29 = vadd.f32 %v11934_v37, %v23581_v47 }
0x1008   : > { %v11967_v53 = vadd.f32 %v11929_v31, %v23582_v43 }
0x1009   : > { %12000 = vst [vmem:[%s22925_s11 + $0xf8] sm:$0xff] %v11968_v29 }
0x100a   : > { %11999 = vst [vmem:[%s22925_s11 + $0xf0] sm:$0xff] %v11967_v53 }
0x100b PF: > { %s37_s7 = sadd.s32 1, %s18039_s7  }
0x100c   : > { %p34_p4 = scmp.ge.s32.totalorder %s37_s7, 4  }
0x100e   :  { %36 = sbr.rel (!%p34_p4) target bundleno = 13 (0xd), region = 180 }

</bundles_post_ra>
